<compile_context>
chip_gen: v5e
topology: v5e:2x2
jax: 0.10.0
libtpu: 0.0.40
codegen_flags: <defaults>
</compile_context>

<pallas_src>
from functools import partial

import jax
import jax.numpy as jnp
from jax.experimental import pallas as pl
from jax.experimental.pallas import tpu as pltpu

HIDDEN_SIZE = 10
INPUT_SIZE = 5
NUM_LAYERS = 2
OUTPUT_SIZE = 10

_HP = 128   # lane-padded width of one gate slab / hidden state (one vreg wide)
_BP = 8     # sublane-padded batch rows (one vreg tall)


# --------------------------------------------------------------------------
# Kernel
# --------------------------------------------------------------------------
def _lstm_kernel(x_ref, wih0_ref, b0_ref, r0_ref, r1_ref, b1_ref,
                 wfc_ref, bfc_ref, out_ref, *, seq_len, batch):
    T, B, HP = seq_len, batch, _HP
    G = 4 * HP                                    # padded gate-vector width

    # Hoisted layer-0 input projection: one (T*BP, I) @ (I, 4*HP) MXU pass,
    # off the recurrent critical path (depends only on x).
    g0_all = (jnp.dot(x_ref[...], wih0_ref[...],
                      preferred_element_type=jnp.float32)
              + b0_ref[...])                      # (T*BP, 4*HP)

    r0 = r0_ref[...]                              # (HP, 8*HP) fused recurrent RHS
    r1 = r1_ref[...]                              # (HP, 4*HP) layer-1 h1 RHS
    b1 = b1_ref[...]                              # (1, 4*HP)

    def cell(g, c):
        # Two EUP pushes over the whole padded gate vector; every slice below
        # starts at a multiple of 128 lanes -> whole-vreg selects, no XLU
        # lane rolls on the recurrence.
        sig = jax.nn.sigmoid(g)
        tnh = jnp.tanh(g)
        i = sig[:, 0 * HP:1 * HP]
        f = sig[:, 1 * HP:2 * HP]
        gg = tnh[:, 2 * HP:3 * HP]
        o = sig[:, 3 * HP:4 * HP]
        c_new = f * c + i * gg
        return o * jnp.tanh(c_new), c_new

    h1 = c0 = c1 = jnp.zeros((_BP, HP), jnp.float32)
    rec0 = jnp.zeros((_BP, G), jnp.float32)       # h0_{-1} @ Whh0^T == 0

    # T static -> fully unrolled: one fused MXU round trip per step on the
    # serial chain; the h1 @ r1 dot is independent and overlaps.
    for t in range(T):
        # layer 0: the recurrent term was produced by the previous step's
        # fused dot; the g0_all slice is (8,128)-tile aligned.
        g0 = g0_all[t * _BP:(t + 1) * _BP, :] + rec0
        h0, c0 = cell(g0, c0)

        # fused pass: lanes [0, 4*HP)    = layer-1 gate contribution of h0_t
        #             lanes [4*HP, 8*HP) = h0_t @ Whh0^T  (rec0 for step t+1)
        gb = jnp.dot(h0, r0, preferred_element_type=jnp.float32)   # (BP, 8*HP)
        g1 = gb[:, :G] + jnp.dot(h1, r1,
                                 preferred_element_type=jnp.float32) + b1
        rec0 = gb[:, G:]
        h1, c1 = cell(g1, c1)

    # Dropout(p=0.5) is identity in eval/inference mode; FC head once at end.
    out = (jnp.dot(h1, wfc_ref[...], preferred_element_type=jnp.float32)
           + bfc_ref[...])                        # (BP, OUTPUT_SIZE)
    out_ref[...] = out[:B, :]


# --------------------------------------------------------------------------
# One-time (init) weight layout work
# --------------------------------------------------------------------------
def _pad_gate_cols(w):
    """(K, 4H) -> (K, 4*_HP): gate k's H live columns at lane offset k*_HP."""
    out = jnp.zeros((w.shape[0], 4 * _HP), jnp.float32)
    for k in range(4):
        out = out.at[:, k * _HP:k * _HP + HIDDEN_SIZE].set(
            w[:, k * HIDDEN_SIZE:(k + 1) * HIDDEN_SIZE])
    return out


def _pad_rows(w):
    """(H, N) -> (_HP, N); zero padding rows so padded h lanes cannot leak."""
    return jnp.zeros((_HP, w.shape[1]), jnp.float32).at[:w.shape[0], :].set(w)


def prepare_params(params):
    """Run ONCE at parameter-init time (not per call)."""
    (wih0, whh0, bih0, bhh0), (wih1, whh1, bih1, bhh1), (wfc, bfc) = params
    f32 = lambda a: jnp.asarray(a, jnp.float32)

    wih0_p = _pad_gate_cols(f32(wih0).T)                           # (I, 4*HP)
    b0_p = _pad_gate_cols(f32(bih0 + bhh0)[None, :])               # (1, 4*HP)

    # fused recurrent RHS driven by h0_t: [layer-1 gates | next-step rec0]
    r0 = _pad_rows(jnp.concatenate(
        [_pad_gate_cols(f32(wih1).T), _pad_gate_cols(f32(whh0).T)],
        axis=1))                                                   # (HP, 8*HP)
    # layer-1 recurrent RHS driven by h1_{t-1}
    r1 = _pad_rows(_pad_gate_cols(f32(whh1).T))                    # (HP, 4*HP)
    b1_p = _pad_gate_cols(f32(bih1 + bhh1)[None, :])               # (1, 4*HP)

    wfc_p = _pad_rows(f32(wfc).T)                                  # (HP, OUT)
    bfc_p = f32(bfc)[None, :]                                      # (1, OUT)
    return (wih0_p, b0_p, r0, r1, b1_p, wfc_p, bfc_p)


# --------------------------------------------------------------------------
# Per-call wrapper
# --------------------------------------------------------------------------
def lstm_forward(x, prepared):
    """x: (B, T, INPUT_SIZE) float32, batch-first like the PyTorch module."""
    B, T, _ = x.shape
    assert B <= _BP
    # Only per-call layout work: time-major + pad batch rows to a full
    # sublane tile so per-step g0 slices in the kernel are (8,128)-aligned.
    x_tm = jnp.zeros((T, _BP, INPUT_SIZE), jnp.float32)
    x_tm = x_tm.at[:, :B, :].set(jnp.transpose(x, (1, 0, 2)).astype(jnp.float32))
    x2d = x_tm.reshape(T * _BP, INPUT_SIZE)

    vmem = pl.BlockSpec(memory_space=pltpu.MemorySpace.VMEM)
    kernel = partial(_lstm_kernel, seq_len=T, batch=B)
    # Everything fits comfortably in VMEM (<1 MiB total): no grid, no tiling.
    return pl.pallas_call(
        kernel,
        out_shape=jax.ShapeDtypeStruct((B, OUTPUT_SIZE), jnp.float32),
        in_specs=[vmem] * (1 + len(prepared)),
        out_specs=vmem,
    )(x2d, *prepared)


# --------------------------------------------------------------------------
# Pure-JAX reference (torch.nn.LSTM math)
# --------------------------------------------------------------------------
def _reference(x, params):
    (wih0, whh0, bih0, bhh0), (wih1, whh1, bih1, bhh1), (wfc, bfc) = params
    B, T, _ = x.shape
    H = HIDDEN_SIZE

    def cell(x_t, h, c, wih, whh, bih, bhh):
        g = x_t @ wih.T + bih + h @ whh.T + bhh
        i_g = jax.nn.sigmoid(g[:, 0 * H:1 * H])
        f_g = jax.nn.sigmoid(g[:, 1 * H:2 * H])
        g_g = jnp.tanh(g[:, 2 * H:3 * H])
        o_g = jax.nn.sigmoid(g[:, 3 * H:4 * H])
        c = f_g * c + i_g * g_g
        h = o_g * jnp.tanh(c)
        return h, c

    h0 = c0 = h1 = c1 = jnp.zeros((B, H), jnp.float32)
    for t in range(T):
        x_t = x[:, t, :]
        h0, c0 = cell(x_t, h0, c0, wih0, whh0, bih0, bhh0)
        h1, c1 = cell(h0, h1, c1, wih1, whh1, bih1, bhh1)
    return h1 @ wfc.T + bfc


if __name__ == "__main__":
    # NOTE: B=2 per the test spec. For real throughput, batch to B>=128 (and
    # add a parallel batch grid for v7x megacore); the kernel itself is
    # latency-bound at this size on every TPU generation.
    B, T = 2, 8
    key = jax.random.PRNGKey(0)
    keys = jax.random.split(key, 11)
    k = 1.0 / (HIDDEN_SIZE ** 0.5)

    def u(kk, shape):
        return jax.random.uniform(kk, shape, jnp.float32, -k, k)

    # layer 0: input -> hidden
    wih0 = u(keys[0], (4 * HIDDEN_SIZE, INPUT_SIZE))
    whh0 = u(keys[1], (4 * HIDDEN_SIZE, HIDDEN_SIZE))
    bih0 = u(keys[2], (4 * HIDDEN_SIZE,))
    bhh0 = u(keys[3], (4 * HIDDEN_SIZE,))
    # layer 1: hidden -> hidden
    wih1 = u(keys[4], (4 * HIDDEN_SIZE, HIDDEN_SIZE))
    whh1 = u(keys[5], (4 * HIDDEN_SIZE, HIDDEN_SIZE))
    bih1 = u(keys[6], (4 * HIDDEN_SIZE,))
    bhh1 = u(keys[7], (4 * HIDDEN_SIZE,))
    # fc head
    wfc = u(keys[8], (OUTPUT_SIZE, HIDDEN_SIZE))
    bfc = u(keys[9], (OUTPUT_SIZE,))

    x = jax.random.normal(keys[10], (B, T, INPUT_SIZE), jnp.float32)

    params = ((wih0, whh0, bih0, bhh0), (wih1, whh1, bih1, bhh1), (wfc, bfc))

    # Weight layout work happens exactly once, at init.
    prepared = prepare_params(params)
    fwd = jax.jit(lstm_forward)

    out = fwd(x, prepared)
    jax.block_until_ready(out)

    ref = _reference(x, params)
    assert out.shape == (B, OUTPUT_SIZE), out.shape
    # Tolerance 1e-2: default MXU precision (bf16 operand passes) per review.
    assert jnp.allclose(out, ref, rtol=1e-2, atol=1e-2), (
        f"max abs err = {jnp.max(jnp.abs(out - ref))}")

    print("KERNEL_OK")
</pallas_src>

<mosaic_0001>
module attributes {stable_mosaic.version = 11 : i64} {
  func.func @_lstm_kernel(%arg0: memref<64x5xf32, #tpu.memory_space<vmem>>, %arg1: memref<5x512xf32, #tpu.memory_space<vmem>>, %arg2: memref<1x512xf32, #tpu.memory_space<vmem>>, %arg3: memref<128x1024xf32, #tpu.memory_space<vmem>>, %arg4: memref<128x512xf32, #tpu.memory_space<vmem>>, %arg5: memref<1x512xf32, #tpu.memory_space<vmem>>, %arg6: memref<128x10xf32, #tpu.memory_space<vmem>>, %arg7: memref<1x10xf32, #tpu.memory_space<vmem>>, %arg8: memref<2x10xf32, #tpu.memory_space<vmem>>) attributes {dimension_semantics = [], scalar_prefetch = 0 : i64, scratch_operands = 0 : i64, tpu.core_type = #tpu.core_type<tc>} {
    %c0 = arith.constant 0 : index
    %c0_0 = arith.constant 0 : index
    %0 = vector.load %arg0[%c0, %c0_0] : memref<64x5xf32, #tpu.memory_space<vmem>>, vector<64x5xf32>
    %c0_1 = arith.constant 0 : index
    %c0_2 = arith.constant 0 : index
    %1 = vector.load %arg1[%c0_1, %c0_2] : memref<5x512xf32, #tpu.memory_space<vmem>>, vector<5x512xf32>
    %cst = arith.constant dense<0.000000e+00> : vector<64x512xf32>
    %2 = tpu.matmul %0, %1, %cst {dimension_numbers = #tpu.dot_dimension_numbers<[1], [0], [0], [1], [0, 0, 1, 1], [], []>} : vector<64x5xf32>, vector<5x512xf32>, vector<64x512xf32> -> vector<64x512xf32>
    %c0_3 = arith.constant 0 : index
    %c0_4 = arith.constant 0 : index
    %3 = vector.load %arg2[%c0_3, %c0_4] : memref<1x512xf32, #tpu.memory_space<vmem>>, vector<1x512xf32>
    %4 = vector.broadcast %3 : vector<1x512xf32> to vector<64x512xf32>
    %5 = arith.addf %2, %4 : vector<64x512xf32>
    %c0_5 = arith.constant 0 : index
    %c0_6 = arith.constant 0 : index
    %6 = vector.load %arg3[%c0_5, %c0_6] : memref<128x1024xf32, #tpu.memory_space<vmem>>, vector<128x1024xf32>
    %c0_7 = arith.constant 0 : index
    %c0_8 = arith.constant 0 : index
    %7 = vector.load %arg4[%c0_7, %c0_8] : memref<128x512xf32, #tpu.memory_space<vmem>>, vector<128x512xf32>
    %c0_9 = arith.constant 0 : index
    %c0_10 = arith.constant 0 : index
    %8 = vector.load %arg5[%c0_9, %c0_10] : memref<1x512xf32, #tpu.memory_space<vmem>>, vector<1x512xf32>
    %cst_11 = arith.constant 0.000000e+00 : f32
    %9 = vector.broadcast %cst_11 : f32 to vector<8x128xf32>
    %cst_12 = arith.constant 0.000000e+00 : f32
    %10 = vector.broadcast %cst_12 : f32 to vector<8x512xf32>
    %11 = vector.extract_strided_slice %5 {offsets = [0, 0], sizes = [8, 512], strides = [1, 1]} : vector<64x512xf32> to vector<8x512xf32>
    %12 = arith.addf %11, %10 : vector<8x512xf32>
    %13 = arith.negf %12 : vector<8x512xf32>
    %14 = math.exp %13 : vector<8x512xf32>
    %cst_13 = arith.constant 1.000000e+00 : f32
    %15 = vector.broadcast %cst_13 : f32 to vector<8x512xf32>
    %16 = arith.addf %15, %14 : vector<8x512xf32>
    %17 = arith.divf %15, %16 : vector<8x512xf32>
    %18 = math.tanh %12 : vector<8x512xf32>
    %19 = vector.extract_strided_slice %17 {offsets = [0, 0], sizes = [8, 128], strides = [1, 1]} : vector<8x512xf32> to vector<8x128xf32>
    %20 = vector.extract_strided_slice %17 {offsets = [0, 128], sizes = [8, 128], strides = [1, 1]} : vector<8x512xf32> to vector<8x128xf32>
    %21 = vector.extract_strided_slice %18 {offsets = [0, 256], sizes = [8, 128], strides = [1, 1]} : vector<8x512xf32> to vector<8x128xf32>
    %22 = vector.extract_strided_slice %17 {offsets = [0, 384], sizes = [8, 128], strides = [1, 1]} : vector<8x512xf32> to vector<8x128xf32>
    %23 = arith.mulf %20, %9 : vector<8x128xf32>
    %24 = arith.mulf %19, %21 : vector<8x128xf32>
    %25 = arith.addf %23, %24 : vector<8x128xf32>
    %26 = math.tanh %25 : vector<8x128xf32>
    %27 = arith.mulf %22, %26 : vector<8x128xf32>
    %cst_14 = arith.constant dense<0.000000e+00> : vector<8x1024xf32>
    %28 = tpu.matmul %27, %6, %cst_14 {dimension_numbers = #tpu.dot_dimension_numbers<[1], [0], [0], [1], [0, 0, 1, 1], [], []>} : vector<8x128xf32>, vector<128x1024xf32>, vector<8x1024xf32> -> vector<8x1024xf32>
    %29 = vector.extract_strided_slice %28 {offsets = [0, 0], sizes = [8, 512], strides = [1, 1]} : vector<8x1024xf32> to vector<8x512xf32>
    %cst_15 = arith.constant dense<0.000000e+00> : vector<8x512xf32>
    %30 = tpu.matmul %9, %7, %cst_15 {dimension_numbers = #tpu.dot_dimension_numbers<[1], [0], [0], [1], [0, 0, 1, 1], [], []>} : vector<8x128xf32>, vector<128x512xf32>, vector<8x512xf32> -> vector<8x512xf32>
    %31 = arith.addf %29, %30 : vector<8x512xf32>
    %32 = vector.broadcast %8 : vector<1x512xf32> to vector<8x512xf32>
    %33 = arith.addf %31, %32 : vector<8x512xf32>
    %34 = vector.extract_strided_slice %28 {offsets = [0, 512], sizes = [8, 512], strides = [1, 1]} : vector<8x1024xf32> to vector<8x512xf32>
    %35 = arith.negf %33 : vector<8x512xf32>
    %36 = math.exp %35 : vector<8x512xf32>
    %cst_16 = arith.constant 1.000000e+00 : f32
    %37 = vector.broadcast %cst_16 : f32 to vector<8x512xf32>
    %38 = arith.addf %37, %36 : vector<8x512xf32>
    %39 = arith.divf %37, %38 : vector<8x512xf32>
    %40 = math.tanh %33 : vector<8x512xf32>
    %41 = vector.extract_strided_slice %39 {offsets = [0, 0], sizes = [8, 128], strides = [1, 1]} : vector<8x512xf32> to vector<8x128xf32>
    %42 = vector.extract_strided_slice %39 {offsets = [0, 128], sizes = [8, 128], strides = [1, 1]} : vector<8x512xf32> to vector<8x128xf32>
    %43 = vector.extract_strided_slice %40 {offsets = [0, 256], sizes = [8, 128], strides = [1, 1]} : vector<8x512xf32> to vector<8x128xf32>
    %44 = vector.extract_strided_slice %39 {offsets = [0, 384], sizes = [8, 128], strides = [1, 1]} : vector<8x512xf32> to vector<8x128xf32>
    %45 = arith.mulf %42, %9 : vector<8x128xf32>
    %46 = arith.mulf %41, %43 : vector<8x128xf32>
    %47 = arith.addf %45, %46 : vector<8x128xf32>
    %48 = math.tanh %47 : vector<8x128xf32>
    %49 = arith.mulf %44, %48 : vector<8x128xf32>
    %50 = vector.extract_strided_slice %5 {offsets = [8, 0], sizes = [8, 512], strides = [1, 1]} : vector<64x512xf32> to vector<8x512xf32>
    %51 = arith.addf %50, %34 : vector<8x512xf32>
    %52 = arith.negf %51 : vector<8x512xf32>
    %53 = math.exp %52 : vector<8x512xf32>
    %cst_17 = arith.constant 1.000000e+00 : f32
    %54 = vector.broadcast %cst_17 : f32 to vector<8x512xf32>
    %55 = arith.addf %54, %53 : vector<8x512xf32>
    %56 = arith.divf %54, %55 : vector<8x512xf32>
    %57 = math.tanh %51 : vector<8x512xf32>
    %58 = vector.extract_strided_slice %56 {offsets = [0, 0], sizes = [8, 128], strides = [1, 1]} : vector<8x512xf32> to vector<8x128xf32>
    %59 = vector.extract_strided_slice %56 {offsets = [0, 128], sizes = [8, 128], strides = [1, 1]} : vector<8x512xf32> to vector<8x128xf32>
    %60 = vector.extract_strided_slice %57 {offsets = [0, 256], sizes = [8, 128], strides = [1, 1]} : vector<8x512xf32> to vector<8x128xf32>
    %61 = vector.extract_strided_slice %56 {offsets = [0, 384], sizes = [8, 128], strides = [1, 1]} : vector<8x512xf32> to vector<8x128xf32>
    %62 = arith.mulf %59, %25 : vector<8x128xf32>
    %63 = arith.mulf %58, %60 : vector<8x128xf32>
    %64 = arith.addf %62, %63 : vector<8x128xf32>
    %65 = math.tanh %64 : vector<8x128xf32>
    %66 = arith.mulf %61, %65 : vector<8x128xf32>
    %cst_18 = arith.constant dense<0.000000e+00> : vector<8x1024xf32>
    %67 = tpu.matmul %66, %6, %cst_18 {dimension_numbers = #tpu.dot_dimension_numbers<[1], [0], [0], [1], [0, 0, 1, 1], [], []>} : vector<8x128xf32>, vector<128x1024xf32>, vector<8x1024xf32> -> vector<8x1024xf32>
    %68 = vector.extract_strided_slice %67 {offsets = [0, 0], sizes = [8, 512], strides = [1, 1]} : vector<8x1024xf32> to vector<8x512xf32>
    %cst_19 = arith.constant dense<0.000000e+00> : vector<8x512xf32>
    %69 = tpu.matmul %49, %7, %cst_19 {dimension_numbers = #tpu.dot_dimension_numbers<[1], [0], [0], [1], [0, 0, 1, 1], [], []>} : vector<8x128xf32>, vector<128x512xf32>, vector<8x512xf32> -> vector<8x512xf32>
    %70 = arith.addf %68, %69 : vector<8x512xf32>
    %71 = vector.broadcast %8 : vector<1x512xf32> to vector<8x512xf32>
    %72 = arith.addf %70, %71 : vector<8x512xf32>
    %73 = vector.extract_strided_slice %67 {offsets = [0, 512], sizes = [8, 512], strides = [1, 1]} : vector<8x1024xf32> to vector<8x512xf32>
    %74 = arith.negf %72 : vector<8x512xf32>
    %75 = math.exp %74 : vector<8x512xf32>
    %cst_20 = arith.constant 1.000000e+00 : f32
    %76 = vector.broadcast %cst_20 : f32 to vector<8x512xf32>
    %77 = arith.addf %76, %75 : vector<8x512xf32>
    %78 = arith.divf %76, %77 : vector<8x512xf32>
    %79 = math.tanh %72 : vector<8x512xf32>
    %80 = vector.extract_strided_slice %78 {offsets = [0, 0], sizes = [8, 128], strides = [1, 1]} : vector<8x512xf32> to vector<8x128xf32>
    %81 = vector.extract_strided_slice %78 {offsets = [0, 128], sizes = [8, 128], strides = [1, 1]} : vector<8x512xf32> to vector<8x128xf32>
    %82 = vector.extract_strided_slice %79 {offsets = [0, 256], sizes = [8, 128], strides = [1, 1]} : vector<8x512xf32> to vector<8x128xf32>
    %83 = vector.extract_strided_slice %78 {offsets = [0, 384], sizes = [8, 128], strides = [1, 1]} : vector<8x512xf32> to vector<8x128xf32>
    %84 = arith.mulf %81, %47 : vector<8x128xf32>
    %85 = arith.mulf %80, %82 : vector<8x128xf32>
    %86 = arith.addf %84, %85 : vector<8x128xf32>
    %87 = math.tanh %86 : vector<8x128xf32>
    %88 = arith.mulf %83, %87 : vector<8x128xf32>
    %89 = vector.extract_strided_slice %5 {offsets = [16, 0], sizes = [8, 512], strides = [1, 1]} : vector<64x512xf32> to vector<8x512xf32>
    %90 = arith.addf %89, %73 : vector<8x512xf32>
    %91 = arith.negf %90 : vector<8x512xf32>
    %92 = math.exp %91 : vector<8x512xf32>
    %cst_21 = arith.constant 1.000000e+00 : f32
    %93 = vector.broadcast %cst_21 : f32 to vector<8x512xf32>
    %94 = arith.addf %93, %92 : vector<8x512xf32>
    %95 = arith.divf %93, %94 : vector<8x512xf32>
    %96 = math.tanh %90 : vector<8x512xf32>
    %97 = vector.extract_strided_slice %95 {offsets = [0, 0], sizes = [8, 128], strides = [1, 1]} : vector<8x512xf32> to vector<8x128xf32>
    %98 = vector.extract_strided_slice %95 {offsets = [0, 128], sizes = [8, 128], strides = [1, 1]} : vector<8x512xf32> to vector<8x128xf32>
    %99 = vector.extract_strided_slice %96 {offsets = [0, 256], sizes = [8, 128], strides = [1, 1]} : vector<8x512xf32> to vector<8x128xf32>
    %100 = vector.extract_strided_slice %95 {offsets = [0, 384], sizes = [8, 128], strides = [1, 1]} : vector<8x512xf32> to vector<8x128xf32>
    %101 = arith.mulf %98, %64 : vector<8x128xf32>
    %102 = arith.mulf %97, %99 : vector<8x128xf32>
    %103 = arith.addf %101, %102 : vector<8x128xf32>
    %104 = math.tanh %103 : vector<8x128xf32>
    %105 = arith.mulf %100, %104 : vector<8x128xf32>
    %cst_22 = arith.constant dense<0.000000e+00> : vector<8x1024xf32>
    %106 = tpu.matmul %105, %6, %cst_22 {dimension_numbers = #tpu.dot_dimension_numbers<[1], [0], [0], [1], [0, 0, 1, 1], [], []>} : vector<8x128xf32>, vector<128x1024xf32>, vector<8x1024xf32> -> vector<8x1024xf32>
    %107 = vector.extract_strided_slice %106 {offsets = [0, 0], sizes = [8, 512], strides = [1, 1]} : vector<8x1024xf32> to vector<8x512xf32>
    %cst_23 = arith.constant dense<0.000000e+00> : vector<8x512xf32>
    %108 = tpu.matmul %88, %7, %cst_23 {dimension_numbers = #tpu.dot_dimension_numbers<[1], [0], [0], [1], [0, 0, 1, 1], [], []>} : vector<8x128xf32>, vector<128x512xf32>, vector<8x512xf32> -> vector<8x512xf32>
    %109 = arith.addf %107, %108 : vector<8x512xf32>
    %110 = vector.broadcast %8 : vector<1x512xf32> to vector<8x512xf32>
    %111 = arith.addf %109, %110 : vector<8x512xf32>
    %112 = vector.extract_strided_slice %106 {offsets = [0, 512], sizes = [8, 512], strides = [1, 1]} : vector<8x1024xf32> to vector<8x512xf32>
    %113 = arith.negf %111 : vector<8x512xf32>
    %114 = math.exp %113 : vector<8x512xf32>
    %cst_24 = arith.constant 1.000000e+00 : f32
    %115 = vector.broadcast %cst_24 : f32 to vector<8x512xf32>
    %116 = arith.addf %115, %114 : vector<8x512xf32>
    %117 = arith.divf %115, %116 : vector<8x512xf32>
    %118 = math.tanh %111 : vector<8x512xf32>
    %119 = vector.extract_strided_slice %117 {offsets = [0, 0], sizes = [8, 128], strides = [1, 1]} : vector<8x512xf32> to vector<8x128xf32>
    %120 = vector.extract_strided_slice %117 {offsets = [0, 128], sizes = [8, 128], strides = [1, 1]} : vector<8x512xf32> to vector<8x128xf32>
    %121 = vector.extract_strided_slice %118 {offsets = [0, 256], sizes = [8, 128], strides = [1, 1]} : vector<8x512xf32> to vector<8x128xf32>
    %122 = vector.extract_strided_slice %117 {offsets = [0, 384], sizes = [8, 128], strides = [1, 1]} : vector<8x512xf32> to vector<8x128xf32>
    %123 = arith.mulf %120, %86 : vector<8x128xf32>
    %124 = arith.mulf %119, %121 : vector<8x128xf32>
    %125 = arith.addf %123, %124 : vector<8x128xf32>
    %126 = math.tanh %125 : vector<8x128xf32>
    %127 = arith.mulf %122, %126 : vector<8x128xf32>
    %128 = vector.extract_strided_slice %5 {offsets = [24, 0], sizes = [8, 512], strides = [1, 1]} : vector<64x512xf32> to vector<8x512xf32>
    %129 = arith.addf %128, %112 : vector<8x512xf32>
    %130 = arith.negf %129 : vector<8x512xf32>
    %131 = math.exp %130 : vector<8x512xf32>
    %cst_25 = arith.constant 1.000000e+00 : f32
    %132 = vector.broadcast %cst_25 : f32 to vector<8x512xf32>
    %133 = arith.addf %132, %131 : vector<8x512xf32>
    %134 = arith.divf %132, %133 : vector<8x512xf32>
    %135 = math.tanh %129 : vector<8x512xf32>
    %136 = vector.extract_strided_slice %134 {offsets = [0, 0], sizes = [8, 128], strides = [1, 1]} : vector<8x512xf32> to vector<8x128xf32>
    %137 = vector.extract_strided_slice %134 {offsets = [0, 128], sizes = [8, 128], strides = [1, 1]} : vector<8x512xf32> to vector<8x128xf32>
    %138 = vector.extract_strided_slice %135 {offsets = [0, 256], sizes = [8, 128], strides = [1, 1]} : vector<8x512xf32> to vector<8x128xf32>
    %139 = vector.extract_strided_slice %134 {offsets = [0, 384], sizes = [8, 128], strides = [1, 1]} : vector<8x512xf32> to vector<8x128xf32>
    %140 = arith.mulf %137, %103 : vector<8x128xf32>
    %141 = arith.mulf %136, %138 : vector<8x128xf32>
    %142 = arith.addf %140, %141 : vector<8x128xf32>
    %143 = math.tanh %142 : vector<8x128xf32>
    %144 = arith.mulf %139, %143 : vector<8x128xf32>
    %cst_26 = arith.constant dense<0.000000e+00> : vector<8x1024xf32>
    %145 = tpu.matmul %144, %6, %cst_26 {dimension_numbers = #tpu.dot_dimension_numbers<[1], [0], [0], [1], [0, 0, 1, 1], [], []>} : vector<8x128xf32>, vector<128x1024xf32>, vector<8x1024xf32> -> vector<8x1024xf32>
    %146 = vector.extract_strided_slice %145 {offsets = [0, 0], sizes = [8, 512], strides = [1, 1]} : vector<8x1024xf32> to vector<8x512xf32>
    %cst_27 = arith.constant dense<0.000000e+00> : vector<8x512xf32>
    %147 = tpu.matmul %127, %7, %cst_27 {dimension_numbers = #tpu.dot_dimension_numbers<[1], [0], [0], [1], [0, 0, 1, 1], [], []>} : vector<8x128xf32>, vector<128x512xf32>, vector<8x512xf32> -> vector<8x512xf32>
    %148 = arith.addf %146, %147 : vector<8x512xf32>
    %149 = vector.broadcast %8 : vector<1x512xf32> to vector<8x512xf32>
    %150 = arith.addf %148, %149 : vector<8x512xf32>
    %151 = vector.extract_strided_slice %145 {offsets = [0, 512], sizes = [8, 512], strides = [1, 1]} : vector<8x1024xf32> to vector<8x512xf32>
    %152 = arith.negf %150 : vector<8x512xf32>
    %153 = math.exp %152 : vector<8x512xf32>
    %cst_28 = arith.constant 1.000000e+00 : f32
    %154 = vector.broadcast %cst_28 : f32 to vector<8x512xf32>
    %155 = arith.addf %154, %153 : vector<8x512xf32>
    %156 = arith.divf %154, %155 : vector<8x512xf32>
    %157 = math.tanh %150 : vector<8x512xf32>
    %158 = vector.extract_strided_slice %156 {offsets = [0, 0], sizes = [8, 128], strides = [1, 1]} : vector<8x512xf32> to vector<8x128xf32>
    %159 = vector.extract_strided_slice %156 {offsets = [0, 128], sizes = [8, 128], strides = [1, 1]} : vector<8x512xf32> to vector<8x128xf32>
    %160 = vector.extract_strided_slice %157 {offsets = [0, 256], sizes = [8, 128], strides = [1, 1]} : vector<8x512xf32> to vector<8x128xf32>
    %161 = vector.extract_strided_slice %156 {offsets = [0, 384], sizes = [8, 128], strides = [1, 1]} : vector<8x512xf32> to vector<8x128xf32>
    %162 = arith.mulf %159, %125 : vector<8x128xf32>
    %163 = arith.mulf %158, %160 : vector<8x128xf32>
    %164 = arith.addf %162, %163 : vector<8x128xf32>
    %165 = math.tanh %164 : vector<8x128xf32>
    %166 = arith.mulf %161, %165 : vector<8x128xf32>
    %167 = vector.extract_strided_slice %5 {offsets = [32, 0], sizes = [8, 512], strides = [1, 1]} : vector<64x512xf32> to vector<8x512xf32>
    %168 = arith.addf %167, %151 : vector<8x512xf32>
    %169 = arith.negf %168 : vector<8x512xf32>
    %170 = math.exp %169 : vector<8x512xf32>
    %cst_29 = arith.constant 1.000000e+00 : f32
    %171 = vector.broadcast %cst_29 : f32 to vector<8x512xf32>
    %172 = arith.addf %171, %170 : vector<8x512xf32>
    %173 = arith.divf %171, %172 : vector<8x512xf32>
    %174 = math.tanh %168 : vector<8x512xf32>
    %175 = vector.extract_strided_slice %173 {offsets = [0, 0], sizes = [8, 128], strides = [1, 1]} : vector<8x512xf32> to vector<8x128xf32>
    %176 = vector.extract_strided_slice %173 {offsets = [0, 128], sizes = [8, 128], strides = [1, 1]} : vector<8x512xf32> to vector<8x128xf32>
    %177 = vector.extract_strided_slice %174 {offsets = [0, 256], sizes = [8, 128], strides = [1, 1]} : vector<8x512xf32> to vector<8x128xf32>
    %178 = vector.extract_strided_slice %173 {offsets = [0, 384], sizes = [8, 128], strides = [1, 1]} : vector<8x512xf32> to vector<8x128xf32>
    %179 = arith.mulf %176, %142 : vector<8x128xf32>
    %180 = arith.mulf %175, %177 : vector<8x128xf32>
    %181 = arith.addf %179, %180 : vector<8x128xf32>
    %182 = math.tanh %181 : vector<8x128xf32>
    %183 = arith.mulf %178, %182 : vector<8x128xf32>
    %cst_30 = arith.constant dense<0.000000e+00> : vector<8x1024xf32>
    %184 = tpu.matmul %183, %6, %cst_30 {dimension_numbers = #tpu.dot_dimension_numbers<[1], [0], [0], [1], [0, 0, 1, 1], [], []>} : vector<8x128xf32>, vector<128x1024xf32>, vector<8x1024xf32> -> vector<8x1024xf32>
    %185 = vector.extract_strided_slice %184 {offsets = [0, 0], sizes = [8, 512], strides = [1, 1]} : vector<8x1024xf32> to vector<8x512xf32>
    %cst_31 = arith.constant dense<0.000000e+00> : vector<8x512xf32>
    %186 = tpu.matmul %166, %7, %cst_31 {dimension_numbers = #tpu.dot_dimension_numbers<[1], [0], [0], [1], [0, 0, 1, 1], [], []>} : vector<8x128xf32>, vector<128x512xf32>, vector<8x512xf32> -> vector<8x512xf32>
    %187 = arith.addf %185, %186 : vector<8x512xf32>
    %188 = vector.broadcast %8 : vector<1x512xf32> to vector<8x512xf32>
    %189 = arith.addf %187, %188 : vector<8x512xf32>
    %190 = vector.extract_strided_slice %184 {offsets = [0, 512], sizes = [8, 512], strides = [1, 1]} : vector<8x1024xf32> to vector<8x512xf32>
    %191 = arith.negf %189 : vector<8x512xf32>
    %192 = math.exp %191 : vector<8x512xf32>
    %cst_32 = arith.constant 1.000000e+00 : f32
    %193 = vector.broadcast %cst_32 : f32 to vector<8x512xf32>
    %194 = arith.addf %193, %192 : vector<8x512xf32>
    %195 = arith.divf %193, %194 : vector<8x512xf32>
    %196 = math.tanh %189 : vector<8x512xf32>
    %197 = vector.extract_strided_slice %195 {offsets = [0, 0], sizes = [8, 128], strides = [1, 1]} : vector<8x512xf32> to vector<8x128xf32>
    %198 = vector.extract_strided_slice %195 {offsets = [0, 128], sizes = [8, 128], strides = [1, 1]} : vector<8x512xf32> to vector<8x128xf32>
    %199 = vector.extract_strided_slice %196 {offsets = [0, 256], sizes = [8, 128], strides = [1, 1]} : vector<8x512xf32> to vector<8x128xf32>
    %200 = vector.extract_strided_slice %195 {offsets = [0, 384], sizes = [8, 128], strides = [1, 1]} : vector<8x512xf32> to vector<8x128xf32>
    %201 = arith.mulf %198, %164 : vector<8x128xf32>
    %202 = arith.mulf %197, %199 : vector<8x128xf32>
    %203 = arith.addf %201, %202 : vector<8x128xf32>
    %204 = math.tanh %203 : vector<8x128xf32>
    %205 = arith.mulf %200, %204 : vector<8x128xf32>
    %206 = vector.extract_strided_slice %5 {offsets = [40, 0], sizes = [8, 512], strides = [1, 1]} : vector<64x512xf32> to vector<8x512xf32>
    %207 = arith.addf %206, %190 : vector<8x512xf32>
    %208 = arith.negf %207 : vector<8x512xf32>
    %209 = math.exp %208 : vector<8x512xf32>
    %cst_33 = arith.constant 1.000000e+00 : f32
    %210 = vector.broadcast %cst_33 : f32 to vector<8x512xf32>
    %211 = arith.addf %210, %209 : vector<8x512xf32>
    %212 = arith.divf %210, %211 : vector<8x512xf32>
    %213 = math.tanh %207 : vector<8x512xf32>
    %214 = vector.extract_strided_slice %212 {offsets = [0, 0], sizes = [8, 128], strides = [1, 1]} : vector<8x512xf32> to vector<8x128xf32>
    %215 = vector.extract_strided_slice %212 {offsets = [0, 128], sizes = [8, 128], strides = [1, 1]} : vector<8x512xf32> to vector<8x128xf32>
    %216 = vector.extract_strided_slice %213 {offsets = [0, 256], sizes = [8, 128], strides = [1, 1]} : vector<8x512xf32> to vector<8x128xf32>
    %217 = vector.extract_strided_slice %212 {offsets = [0, 384], sizes = [8, 128], strides = [1, 1]} : vector<8x512xf32> to vector<8x128xf32>
    %218 = arith.mulf %215, %181 : vector<8x128xf32>
    %219 = arith.mulf %214, %216 : vector<8x128xf32>
    %220 = arith.addf %218, %219 : vector<8x128xf32>
    %221 = math.tanh %220 : vector<8x128xf32>
    %222 = arith.mulf %217, %221 : vector<8x128xf32>
    %cst_34 = arith.constant dense<0.000000e+00> : vector<8x1024xf32>
    %223 = tpu.matmul %222, %6, %cst_34 {dimension_numbers = #tpu.dot_dimension_numbers<[1], [0], [0], [1], [0, 0, 1, 1], [], []>} : vector<8x128xf32>, vector<128x1024xf32>, vector<8x1024xf32> -> vector<8x1024xf32>
    %224 = vector.extract_strided_slice %223 {offsets = [0, 0], sizes = [8, 512], strides = [1, 1]} : vector<8x1024xf32> to vector<8x512xf32>
    %cst_35 = arith.constant dense<0.000000e+00> : vector<8x512xf32>
    %225 = tpu.matmul %205, %7, %cst_35 {dimension_numbers = #tpu.dot_dimension_numbers<[1], [0], [0], [1], [0, 0, 1, 1], [], []>} : vector<8x128xf32>, vector<128x512xf32>, vector<8x512xf32> -> vector<8x512xf32>
    %226 = arith.addf %224, %225 : vector<8x512xf32>
    %227 = vector.broadcast %8 : vector<1x512xf32> to vector<8x512xf32>
    %228 = arith.addf %226, %227 : vector<8x512xf32>
    %229 = vector.extract_strided_slice %223 {offsets = [0, 512], sizes = [8, 512], strides = [1, 1]} : vector<8x1024xf32> to vector<8x512xf32>
    %230 = arith.negf %228 : vector<8x512xf32>
    %231 = math.exp %230 : vector<8x512xf32>
    %cst_36 = arith.constant 1.000000e+00 : f32
    %232 = vector.broadcast %cst_36 : f32 to vector<8x512xf32>
    %233 = arith.addf %232, %231 : vector<8x512xf32>
    %234 = arith.divf %232, %233 : vector<8x512xf32>
    %235 = math.tanh %228 : vector<8x512xf32>
    %236 = vector.extract_strided_slice %234 {offsets = [0, 0], sizes = [8, 128], strides = [1, 1]} : vector<8x512xf32> to vector<8x128xf32>
    %237 = vector.extract_strided_slice %234 {offsets = [0, 128], sizes = [8, 128], strides = [1, 1]} : vector<8x512xf32> to vector<8x128xf32>
    %238 = vector.extract_strided_slice %235 {offsets = [0, 256], sizes = [8, 128], strides = [1, 1]} : vector<8x512xf32> to vector<8x128xf32>
    %239 = vector.extract_strided_slice %234 {offsets = [0, 384], sizes = [8, 128], strides = [1, 1]} : vector<8x512xf32> to vector<8x128xf32>
    %240 = arith.mulf %237, %203 : vector<8x128xf32>
    %241 = arith.mulf %236, %238 : vector<8x128xf32>
    %242 = arith.addf %240, %241 : vector<8x128xf32>
    %243 = math.tanh %242 : vector<8x128xf32>
    %244 = arith.mulf %239, %243 : vector<8x128xf32>
    %245 = vector.extract_strided_slice %5 {offsets = [48, 0], sizes = [8, 512], strides = [1, 1]} : vector<64x512xf32> to vector<8x512xf32>
    %246 = arith.addf %245, %229 : vector<8x512xf32>
    %247 = arith.negf %246 : vector<8x512xf32>
    %248 = math.exp %247 : vector<8x512xf32>
    %cst_37 = arith.constant 1.000000e+00 : f32
    %249 = vector.broadcast %cst_37 : f32 to vector<8x512xf32>
    %250 = arith.addf %249, %248 : vector<8x512xf32>
    %251 = arith.divf %249, %250 : vector<8x512xf32>
    %252 = math.tanh %246 : vector<8x512xf32>
    %253 = vector.extract_strided_slice %251 {offsets = [0, 0], sizes = [8, 128], strides = [1, 1]} : vector<8x512xf32> to vector<8x128xf32>
    %254 = vector.extract_strided_slice %251 {offsets = [0, 128], sizes = [8, 128], strides = [1, 1]} : vector<8x512xf32> to vector<8x128xf32>
    %255 = vector.extract_strided_slice %252 {offsets = [0, 256], sizes = [8, 128], strides = [1, 1]} : vector<8x512xf32> to vector<8x128xf32>
    %256 = vector.extract_strided_slice %251 {offsets = [0, 384], sizes = [8, 128], strides = [1, 1]} : vector<8x512xf32> to vector<8x128xf32>
    %257 = arith.mulf %254, %220 : vector<8x128xf32>
    %258 = arith.mulf %253, %255 : vector<8x128xf32>
    %259 = arith.addf %257, %258 : vector<8x128xf32>
    %260 = math.tanh %259 : vector<8x128xf32>
    %261 = arith.mulf %256, %260 : vector<8x128xf32>
    %cst_38 = arith.constant dense<0.000000e+00> : vector<8x1024xf32>
    %262 = tpu.matmul %261, %6, %cst_38 {dimension_numbers = #tpu.dot_dimension_numbers<[1], [0], [0], [1], [0, 0, 1, 1], [], []>} : vector<8x128xf32>, vector<128x1024xf32>, vector<8x1024xf32> -> vector<8x1024xf32>
    %263 = vector.extract_strided_slice %262 {offsets = [0, 0], sizes = [8, 512], strides = [1, 1]} : vector<8x1024xf32> to vector<8x512xf32>
    %cst_39 = arith.constant dense<0.000000e+00> : vector<8x512xf32>
    %264 = tpu.matmul %244, %7, %cst_39 {dimension_numbers = #tpu.dot_dimension_numbers<[1], [0], [0], [1], [0, 0, 1, 1], [], []>} : vector<8x128xf32>, vector<128x512xf32>, vector<8x512xf32> -> vector<8x512xf32>
    %265 = arith.addf %263, %264 : vector<8x512xf32>
    %266 = vector.broadcast %8 : vector<1x512xf32> to vector<8x512xf32>
    %267 = arith.addf %265, %266 : vector<8x512xf32>
    %268 = vector.extract_strided_slice %262 {offsets = [0, 512], sizes = [8, 512], strides = [1, 1]} : vector<8x1024xf32> to vector<8x512xf32>
    %269 = arith.negf %267 : vector<8x512xf32>
    %270 = math.exp %269 : vector<8x512xf32>
    %cst_40 = arith.constant 1.000000e+00 : f32
    %271 = vector.broadcast %cst_40 : f32 to vector<8x512xf32>
    %272 = arith.addf %271, %270 : vector<8x512xf32>
    %273 = arith.divf %271, %272 : vector<8x512xf32>
    %274 = math.tanh %267 : vector<8x512xf32>
    %275 = vector.extract_strided_slice %273 {offsets = [0, 0], sizes = [8, 128], strides = [1, 1]} : vector<8x512xf32> to vector<8x128xf32>
    %276 = vector.extract_strided_slice %273 {offsets = [0, 128], sizes = [8, 128], strides = [1, 1]} : vector<8x512xf32> to vector<8x128xf32>
    %277 = vector.extract_strided_slice %274 {offsets = [0, 256], sizes = [8, 128], strides = [1, 1]} : vector<8x512xf32> to vector<8x128xf32>
    %278 = vector.extract_strided_slice %273 {offsets = [0, 384], sizes = [8, 128], strides = [1, 1]} : vector<8x512xf32> to vector<8x128xf32>
    %279 = arith.mulf %276, %242 : vector<8x128xf32>
    %280 = arith.mulf %275, %277 : vector<8x128xf32>
    %281 = arith.addf %279, %280 : vector<8x128xf32>
    %282 = math.tanh %281 : vector<8x128xf32>
    %283 = arith.mulf %278, %282 : vector<8x128xf32>
    %284 = vector.extract_strided_slice %5 {offsets = [56, 0], sizes = [8, 512], strides = [1, 1]} : vector<64x512xf32> to vector<8x512xf32>
    %285 = arith.addf %284, %268 : vector<8x512xf32>
    %286 = arith.negf %285 : vector<8x512xf32>
    %287 = math.exp %286 : vector<8x512xf32>
    %cst_41 = arith.constant 1.000000e+00 : f32
    %288 = vector.broadcast %cst_41 : f32 to vector<8x512xf32>
    %289 = arith.addf %288, %287 : vector<8x512xf32>
    %290 = arith.divf %288, %289 : vector<8x512xf32>
    %291 = math.tanh %285 : vector<8x512xf32>
    %292 = vector.extract_strided_slice %290 {offsets = [0, 0], sizes = [8, 128], strides = [1, 1]} : vector<8x512xf32> to vector<8x128xf32>
    %293 = vector.extract_strided_slice %290 {offsets = [0, 128], sizes = [8, 128], strides = [1, 1]} : vector<8x512xf32> to vector<8x128xf32>
    %294 = vector.extract_strided_slice %291 {offsets = [0, 256], sizes = [8, 128], strides = [1, 1]} : vector<8x512xf32> to vector<8x128xf32>
    %295 = vector.extract_strided_slice %290 {offsets = [0, 384], sizes = [8, 128], strides = [1, 1]} : vector<8x512xf32> to vector<8x128xf32>
    %296 = arith.mulf %293, %259 : vector<8x128xf32>
    %297 = arith.mulf %292, %294 : vector<8x128xf32>
    %298 = arith.addf %296, %297 : vector<8x128xf32>
    %299 = math.tanh %298 : vector<8x128xf32>
    %300 = arith.mulf %295, %299 : vector<8x128xf32>
    %cst_42 = arith.constant dense<0.000000e+00> : vector<8x1024xf32>
    %301 = tpu.matmul %300, %6, %cst_42 {dimension_numbers = #tpu.dot_dimension_numbers<[1], [0], [0], [1], [0, 0, 1, 1], [], []>} : vector<8x128xf32>, vector<128x1024xf32>, vector<8x1024xf32> -> vector<8x1024xf32>
    %302 = vector.extract_strided_slice %301 {offsets = [0, 0], sizes = [8, 512], strides = [1, 1]} : vector<8x1024xf32> to vector<8x512xf32>
    %cst_43 = arith.constant dense<0.000000e+00> : vector<8x512xf32>
    %303 = tpu.matmul %283, %7, %cst_43 {dimension_numbers = #tpu.dot_dimension_numbers<[1], [0], [0], [1], [0, 0, 1, 1], [], []>} : vector<8x128xf32>, vector<128x512xf32>, vector<8x512xf32> -> vector<8x512xf32>
    %304 = arith.addf %302, %303 : vector<8x512xf32>
    %305 = vector.broadcast %8 : vector<1x512xf32> to vector<8x512xf32>
    %306 = arith.addf %304, %305 : vector<8x512xf32>
    %307 = arith.negf %306 : vector<8x512xf32>
    %308 = math.exp %307 : vector<8x512xf32>
    %cst_44 = arith.constant 1.000000e+00 : f32
    %309 = vector.broadcast %cst_44 : f32 to vector<8x512xf32>
    %310 = arith.addf %309, %308 : vector<8x512xf32>
    %311 = arith.divf %309, %310 : vector<8x512xf32>
    %312 = math.tanh %306 : vector<8x512xf32>
    %313 = vector.extract_strided_slice %311 {offsets = [0, 0], sizes = [8, 128], strides = [1, 1]} : vector<8x512xf32> to vector<8x128xf32>
    %314 = vector.extract_strided_slice %311 {offsets = [0, 128], sizes = [8, 128], strides = [1, 1]} : vector<8x512xf32> to vector<8x128xf32>
    %315 = vector.extract_strided_slice %312 {offsets = [0, 256], sizes = [8, 128], strides = [1, 1]} : vector<8x512xf32> to vector<8x128xf32>
    %316 = vector.extract_strided_slice %311 {offsets = [0, 384], sizes = [8, 128], strides = [1, 1]} : vector<8x512xf32> to vector<8x128xf32>
    %317 = arith.mulf %314, %281 : vector<8x128xf32>
    %318 = arith.mulf %313, %315 : vector<8x128xf32>
    %319 = arith.addf %317, %318 : vector<8x128xf32>
    %320 = math.tanh %319 : vector<8x128xf32>
    %321 = arith.mulf %316, %320 : vector<8x128xf32>
    %c0_45 = arith.constant 0 : index
    %c0_46 = arith.constant 0 : index
    %322 = vector.load %arg6[%c0_45, %c0_46] : memref<128x10xf32, #tpu.memory_space<vmem>>, vector<128x10xf32>
    %cst_47 = arith.constant dense<0.000000e+00> : vector<8x10xf32>
    %323 = tpu.matmul %321, %322, %cst_47 {dimension_numbers = #tpu.dot_dimension_numbers<[1], [0], [0], [1], [0, 0, 1, 1], [], []>} : vector<8x128xf32>, vector<128x10xf32>, vector<8x10xf32> -> vector<8x10xf32>
    %c0_48 = arith.constant 0 : index
    %c0_49 = arith.constant 0 : index
    %324 = vector.load %arg7[%c0_48, %c0_49] : memref<1x10xf32, #tpu.memory_space<vmem>>, vector<1x10xf32>
    %325 = vector.broadcast %324 : vector<1x10xf32> to vector<8x10xf32>
    %326 = arith.addf %323, %325 : vector<8x10xf32>
    %327 = vector.extract_strided_slice %326 {offsets = [0, 0], sizes = [2, 10], strides = [1, 1]} : vector<8x10xf32> to vector<2x10xf32>
    %c0_50 = arith.constant 0 : index
    %c0_51 = arith.constant 0 : index
    %328 = vector.load %arg8[%c0_50, %c0_51] : memref<2x10xf32, #tpu.memory_space<vmem>>, vector<2x10xf32>
    tpu.vector_store %arg8[%c0_50, %c0_51], %327 {strides = array<i32>} : memref<2x10xf32, #tpu.memory_space<vmem>>, vector<2x10xf32>,
    return
  }
}

</mosaic_0001>

<bundles_post_ra>
// kernel: lstm_forward.1
= control target key start
LH: loop header
LB: loop body
LE: loop exit
PB: predicated region body
PF: predicated region fallthrough
CT: control target
= control target key end

     0   :  { %13 = vsyncpa [#allocation3], 0  ;;  %s8223_s0 = inlined_call_operand.vmem [shape: f32[64,5], index: 0, kind: input, shape index: {}]   ;;  %s8224_s1 = inlined_call_operand.vmem [shape: f32[5,512], index: 1, kind: input, shape index: {}]   ;;  %s8225_s2 = inlined_call_operand.vmem [shape: f32[1,512], index: 2, kind: input, shape index: {}]   ;;  %s8226_s3 = inlined_call_operand.hbm [shape: f32[128,1024], index: 3, kind: input, shape index: {}]   ;;  %s8227_s4 = inlined_call_operand.hbm [shape: f32[128,512], index: 4, kind: input, shape index: {}]   ;;  %s8228_s5 = inlined_call_operand.vmem [shape: f32[1,512], index: 5, kind: input, shape index: {}]   ;;  %s8229_s6 = inlined_call_operand.vmem [shape: f32[128,10], index: 6, kind: input, shape index: {}]   ;;  %s8230_s7 = inlined_call_operand.vmem [shape: f32[1,10], index: 7, kind: input, shape index: {}]   ;;  %s8231_s8 = inlined_call_operand.hbm [shape: f32[2,10], index: 8, kind: output, shape index: {}]  }
   0x1   :  { %14 = vsyncpa [#allocation6], 0 }
   0x2   :  { %15 = vsyncpa [#allocation4], 0  ;;  %s26_s29 = sshll.u32 %s8226_s3, 4  ;;  %s4502_s30 = smov [#allocation2]   ;;  %s27_s29 = int_to_ptr.hbm [resolvable:$true] %s26_s29 }
   0x3   :  { %s28_s9 = sshll.u32 %s4502_s30, 4  ;;  %s39_s12 = sshll.u32 %s8227_s4, 4  ;;  %s29_s9 = int_to_ptr.vmem [resolvable:$true] %s28_s9  ;;  %s40_s12 = int_to_ptr.hbm [resolvable:$true] %s39_s12 }
   0x4   :  { %s4503_s13 = smov 1024   ;;  %s4504_s14 = smov 64  }
   0x5   :  { %34 = dma.hbm_to_vmem [thread:$0]  %s27_s29, 16384, %s29_s9, [#allocation3], %s4503_s13, %s4503_s13, %s4504_s14  }
   0x6   :  { %s4505_s15 = smov [#allocation5]   ;;  %s4506_s17 = smov 512  }
   0x7   :  { %s41_s16 = sshll.u32 %s4505_s15, 4  ;;  %s4507_s18 = smov 32   ;;  %s42_s16 = int_to_ptr.vmem [resolvable:$true] %s41_s16 }
   0x8   :  { %47 = dma.hbm_to_vmem [thread:$0]  %s40_s12, 8192, %s42_s16, [#allocation6], %s4506_s17, %s4506_s17, %s4507_s18  }
   0x9   :  { %4496 = dma.done.wait [#allocation3], 16384  }
   0xa   :  { %4497 = vsyncadd [#allocation3], 4294950912 }
   0xb   :  { %4498 = dma.done.wait [#allocation6], 8192  }
   0xc   :  { %4499 = vsyncadd [#allocation6], 4294959104  ;;  %vm109_vm0 = vcmask 1044480   ;;  %vm84_vm1 = vcmask 39936   ;;  %v70_v0 = vld [vmem:[%s8224_s1] sm:$0x1f] }
   0xd   :  { %v62_v1 = vld [vmem:[%s8223_s0] sm:$0xff]  ;;  %v4570_v2 = vld [vmem:[%s8223_s0 + $0x28] sm:$0xff]  ;;  %3492 = vmatpush.msk.msra.mxu0 %vm109_vm0, %v70_v0  ;;  %3576 = vmatpush.msk.msra.mxu1 %vm109_vm0, %v70_v0  ;;  %v4577_v3 = vld [vmem:[%s8223_s0 + $0x38] sm:$0xff]  ;;  %s4509_s22 = smov [#allocation7]   ;;  %s3481_s26 = sshll.u32 %s8231_s8, 4  ;;  %s3482_s26 = int_to_ptr.hbm [resolvable:$true] %s3481_s26 }
   0xe   :  { %v71_v4 = vld [vmem:[%s8224_s1 + $0x8] sm:$0x1f]  ;;  %v73_v5 = vld [vmem:[%s8224_s1 + $0x18] sm:$0x1f]  ;;  %3578 = vmatpush.msk.msra.mxu3 %vm109_vm0, %v70_v0  ;;  %3493 = vmatmul.msk.f32.vlgmr.msra.gmra.mxu0 %vm84_vm1, %v62_v1  ;;  %v4594_v7 = vld [vmem:[%s8223_s0 + $0x30] sm:$0xff]  ;;  %s3479_s23 = sshll.u32 %s4509_s22, 4  ;;  %s3480_s23 = int_to_ptr.vmem [resolvable:$true] %s3479_s23 }
   0xf   :  { %v407_v6 = vld [vmem:[#allocation2 + $0x3c8] sm:$0xff]  ;;  %3498 = vmatmul.msk.f32.vlgmr.msra.gmra.mxu1 %vm84_vm1, %v4570_v2  ;;  %3500 = vmatmul.msk.f32.vlgmr.msra.gmra.mxu3 %vm84_vm1, %v4577_v3  ;;  %v406_v8 = vld [vmem:[#allocation2 + $0x3c0] sm:$0xff]  ;;  %v72_v9 = vld [vmem:[%s8224_s1 + $0x10] sm:$0x1f] }
  0x10   :  { %3501 = vmatpush.msk.msrb.mxu1 %vm109_vm0, %v71_v4  ;;  %3519 = vmatpush.msk.msrb.mxu3 %vm109_vm0, %v73_v5  ;;  %v409_v10 = vld [vmem:[#allocation2 + $0x3d8] sm:$0xff]  ;;  %v4602_v11 = vld [vmem:[#allocation2 + $0x3d0] sm:$0xff]  ;;  %v398_v12 = vld [vmem:[#allocation2 + $0x380] sm:$0xff] }
  0x11   :  { %3577 = vmatpush.msk.msra.mxu2 %vm109_vm0, %v70_v0  ;;  %546 = vmatpush.msrb.mxu0 %v406_v8  ;;  %v4606_v13 = vld [vmem:[#allocation2 + $0x388] sm:$0xff]  ;;  %v4608_v14 = vld [vmem:[#allocation2 + $0x398] sm:$0xff]  ;;  %v4611_v15 = vld [vmem:[#allocation2 + $0x390] sm:$0xff] }
  0x12   :  { %566 = vmatpush.msra.mxu1 %v407_v6  ;;  %3499 = vmatmul.msk.f32.vlgmr.msra.gmra.mxu2 %vm84_vm1, %v4594_v7  ;;  %v4613_v16 = vld [vmem:[#allocation2 + $0x340] sm:$0xff]  ;;  %v4618_v17 = vld [vmem:[#allocation2 + $0x348] sm:$0xff]  ;;  %v4620_v18 = vld [vmem:[#allocation2 + $0x350] sm:$0xff] }
  0x13   :  { %3510 = vmatpush.msk.msrb.mxu2 %vm109_vm0, %v72_v9  ;;  %606 = vmatpush.msra.mxu3 %v409_v10  ;;  %v4624_v19 = vld [vmem:[#allocation2 + $0x358] sm:$0xff]  ;;  %v4626_v20 = vld [vmem:[#allocation2 + $0x300] sm:$0xff]  ;;  %v4630_v21 = vld [vmem:[#allocation2 + $0x308] sm:$0xff] }
  0x14   :  { %547 = vmatpush.msrb.mxu0 %v398_v12  ;;  %567 = vmatpush.msra.mxu1 %v4606_v13  ;;  %v4634_v22 = vld [vmem:[#allocation2 + $0x310] sm:$0xff]  ;;  %v4636_v23 = vld [vmem:[#allocation2 + $0x318] sm:$0xff]  ;;  %v4640_v24 = vld [vmem:[#allocation2 + $0x2c0] sm:$0xff] }
  0x15   :  { %586 = vmatpush.msra.mxu2 %v4602_v11  ;;  %607 = vmatpush.msra.mxu3 %v4608_v14  ;;  %v4642_v25 = vld [vmem:[#allocation2 + $0x2c8] sm:$0xff]  ;;  %v4646_v26 = vld [vmem:[#allocation2 + $0x2d0] sm:$0xff]  ;;  %v4648_v27 = vld [vmem:[#allocation2 + $0x2d8] sm:$0xff] }
  0x16   :  { %548 = vmatpush.msrb.mxu0 %v4613_v16  ;;  %568 = vmatpush.msra.mxu1 %v4618_v17  ;;  %v63_v28 = vld [vmem:[%s8223_s0 + $0x8] sm:$0xff]  ;;  %v4663_v29 = vld [vmem:[#allocation2 + $0x280] sm:$0xff]  ;;  %v4667_v31 = vld [vmem:[#allocation2 + $0x290] sm:$0xff] }
  0x17   :  { %587 = vmatpush.msra.mxu2 %v4611_v15  ;;  %3502 = vmatmul.msk.f32.vlgmr.msrb.gmra.mxu1 %vm84_vm1, %v62_v1  ;;  %v4665_v30 = vld [vmem:[#allocation2 + $0x288] sm:$0xff]  ;;  %v4671_v32 = vld [vmem:[#allocation2 + $0x298] sm:$0xff]  ;;  %v4675_v33 = vld [vmem:[#allocation2 + $0x240] sm:$0xff] }
  0x18   :  { %3520 = vmatmul.msk.f32.vlgmr.msrb.gmra.mxu3 %vm84_vm1, %v62_v1  ;;  %549 = vmatpush.msrb.mxu0 %v4626_v20  ;;  %v4677_v34 = vld [vmem:[#allocation2 + $0x248] sm:$0xff]  ;;  %v4679_v35 = vld [vmem:[#allocation2 + $0x250] sm:$0xff]  ;;  %v4683_v36 = vld [vmem:[#allocation2 + $0x258] sm:$0xff] }
  0x19   :  { %588 = vmatpush.msra.mxu2 %v4620_v18  ;;  %608 = vmatpush.msra.mxu3 %v4624_v19  ;;  %v4690_v37 = vld [vmem:[%s8223_s0 + $0x10] sm:$0xff]  ;;  %v4692_v38 = vld [vmem:[#allocation2 + $0x200] sm:$0xff]  ;;  %v4694_v39 = vld [vmem:[#allocation2 + $0x208] sm:$0xff] }
  0x1a   :  { %3511 = vmatmul.msk.f32.vlgmr.msrb.gmra.mxu2 %vm84_vm1, %v62_v1  ;;  %569 = vmatpush.msra.mxu1 %v4630_v21  ;;  %v4700_v40 = vld [vmem:[#allocation2 + $0x210] sm:$0xff]  ;;  %v4702_v41 = vld [vmem:[#allocation2 + $0x218] sm:$0xff]  ;;  %v4707_v42 = vld [vmem:[#allocation2 + $0x1c0] sm:$0xff] }
  0x1b   :  { %589 = vmatpush.msra.mxu2 %v4634_v22  ;;  %609 = vmatpush.msra.mxu3 %v4636_v23  ;;  %v4709_v43 = vld [vmem:[#allocation2 + $0x1c8] sm:$0xff]  ;;  %v4711_v44 = vld [vmem:[#allocation2 + $0x1d0] sm:$0xff]  ;;  %v4715_v45 = vld [vmem:[#allocation2 + $0x1d8] sm:$0xff] }
  0x1c   :  { %550 = vmatpush.msrb.mxu0 %v4640_v24  ;;  %570 = vmatpush.msra.mxu1 %v4642_v25  ;;  %v4721_v46 = vld [vmem:[#allocation2 + $0x180] sm:$0xff]  ;;  %v4723_v47 = vld [vmem:[#allocation2 + $0x188] sm:$0xff]  ;;  %v4725_v48 = vld [vmem:[#allocation2 + $0x190] sm:$0xff] }
  0x1d   :  { %590 = vmatpush.msra.mxu2 %v4646_v26  ;;  %610 = vmatpush.msra.mxu3 %v4648_v27  ;;  %v4729_v49 = vld [vmem:[#allocation2 + $0x198] sm:$0xff]  ;;  %v4733_v50 = vld [vmem:[#allocation2 + $0x140] sm:$0xff]  ;;  %v4735_v51 = vld [vmem:[#allocation2 + $0x148] sm:$0xff] }
  0x1e   :  { %3494 = vmatmul.msk.f32.gmra.mxu0 %vm84_vm1, %v63_v28  ;;  %571 = vmatpush.msra.mxu1 %v4665_v30  ;;  %v4737_v52 = vld [vmem:[#allocation2 + $0x150] sm:$0xff]  ;;  %v4741_v53 = vld [vmem:[#allocation2 + $0x158] sm:$0xff]  ;;  %v4750_v55 = vld [vmem:[#allocation2 + $0x100] sm:$0xff] }
  0x1f   :  { %3503 = vmatmul.msk.f32.gmra.mxu1 %vm84_vm1, %v63_v28  ;;  %551 = vmatpush.msrb.mxu0 %v4663_v29  ;;  %v4748_v54 = vld [vmem:[%s8223_s0 + $0x18] sm:$0xff]  ;;  %8722 = vst [vmem:[#allocation11_spill] sm:$0xff] %v4750_v55  ;;  %v4752_v56 = vld [vmem:[#allocation2 + $0x108] sm:$0xff]  ;;  %v4757_v57 = vld [vmem:[#allocation2 + $0x110] sm:$0xff] }
  0x20   :  { %3521 = vmatmul.msk.f32.gmra.mxu3 %vm84_vm1, %v63_v28  ;;  %591 = vmatpush.msra.mxu2 %v4667_v31  ;;  %8723 = vst [vmem:[#allocation12_spill] sm:$0xff] %v4752_v56  ;;  %v4759_v58 = vld [vmem:[#allocation2 + $0x118] sm:$0xff]  ;;  %v4765_v59 = vld [vmem:[#allocation2 + $0xc0] sm:$0xff]  ;;  %v4767_v60 = vld [vmem:[#allocation2 + $0xc8] sm:$0xff] }
  0x21   :  { %611 = vmatpush.msra.mxu3 %v4671_v32  ;;  %552 = vmatpush.msrb.mxu0 %v4675_v33  ;;  %8724 = vst [vmem:[#allocation13_spill] sm:$0xff] %v4757_v57  ;;  %v4771_v61 = vld [vmem:[#allocation2 + $0xd0] sm:$0xff]  ;;  %v4773_v62 = vld [vmem:[#allocation2 + $0xd8] sm:$0xff]  ;;  %v4777_v63 = vld [vmem:[#allocation2 + $0x80] sm:$0xff] }
  0x22   :  { %3512 = vmatmul.msk.f32.gmra.mxu2 %vm84_vm1, %v63_v28  ;;  %572 = vmatpush.msra.mxu1 %v4677_v34  ;;  %8725 = vst [vmem:[#allocation14_spill] sm:$0xff] %v4759_v58  ;;  %v4779_v0 = vld [vmem:[#allocation2 + $0x88] sm:$0xff]  ;;  %v4783_v1 = vld [vmem:[#allocation2 + $0x90] sm:$0xff]  ;;  %v4785_v4 = vld [vmem:[#allocation2 + $0x98] sm:$0xff] }
  0x23   :  { %592 = vmatpush.msra.mxu2 %v4679_v35  ;;  %612 = vmatpush.msra.mxu3 %v4683_v36  ;;  %8726 = vst [vmem:[#allocation15_spill] sm:$0xff] %v4765_v59  ;;  %v4789_v5 = vld [vmem:[#allocation2 + $0x40] sm:$0xff]  ;;  %v4791_v6 = vld [vmem:[#allocation2 + $0x48] sm:$0xff]  ;;  %v4795_v8 = vld [vmem:[#allocation2 + $0x50] sm:$0xff] }
  0x24   :  { %553 = vmatpush.msrb.mxu0 %v4692_v38  ;;  %573 = vmatpush.msra.mxu1 %v4694_v39  ;;  %8727 = vst [vmem:[#allocation16_spill] sm:$0xff] %v4767_v60  ;;  %v4797_v9 = vld [vmem:[#allocation2 + $0x58] sm:$0xff]  ;;  %v4804_v10 = vld [vmem:[%s8223_s0 + $0x20] sm:$0xff]  ;;  %v4812_v28 = vld [vmem:[#allocation2 + $0x8] sm:$0xff] }
  0x25   :  { %593 = vmatpush.msra.mxu2 %v4700_v40  ;;  %613 = vmatpush.msra.mxu3 %v4702_v41  ;;  %8728 = vst [vmem:[#allocation17_spill] sm:$0xff] %v4771_v61  ;;  %v4808_v12 = vld [vmem:[#allocation2] sm:$0xff] }
  0x26   :  { %554 = vmatpush.msrb.mxu0 %v4707_v42  ;;  %574 = vmatpush.msra.mxu1 %v4709_v43  ;;  %8729 = vst [vmem:[#allocation18_spill] sm:$0xff] %v4773_v62 }
  0x27   :  { %3504 = vmatmul.msk.f32.gmra.mxu1 %vm84_vm1, %v4690_v37  ;;  %594 = vmatpush.msra.mxu2 %v4711_v44  ;;  %8730 = vst [vmem:[#allocation19_spill] sm:$0xff] %v4777_v63 }
  0x28   :  { %3522 = vmatmul.msk.f32.gmra.mxu3 %vm84_vm1, %v4690_v37  ;;  %555 = vmatpush.msrb.mxu0 %v4721_v46  ;;  %8731 = vst [vmem:[#allocation20_spill] sm:$0xff] %v4779_v0 }
  0x29   :  { %614 = vmatpush.msra.mxu3 %v4715_v45  ;;  %575 = vmatpush.msra.mxu1 %v4723_v47  ;;  %8732 = vst [vmem:[#allocation21_spill] sm:$0xff] %v4783_v1 }
  0x2a   :  { %3513 = vmatmul.msk.f32.gmra.mxu2 %vm84_vm1, %v4690_v37  ;;  %556 = vmatpush.msrb.mxu0 %v4733_v50  ;;  %8733 = vst [vmem:[#allocation22_spill] sm:$0xff] %v4785_v4 }
  0x2b   :  { %595 = vmatpush.msra.mxu2 %v4725_v48  ;;  %615 = vmatpush.msra.mxu3 %v4729_v49  ;;  %8734 = vst [vmem:[#allocation23_spill] sm:$0xff] %v4789_v5 }
  0x2c   :  { %576 = vmatpush.msra.mxu1 %v4735_v51  ;;  %557 = vmatpush.msrb.mxu0 %v4750_v55  ;;  %8735 = vst [vmem:[#allocation24_spill] sm:$0xff] %v4791_v6 }
  0x2d   :  { %596 = vmatpush.msra.mxu2 %v4737_v52  ;;  %616 = vmatpush.msra.mxu3 %v4741_v53  ;;  %8736 = vst [vmem:[#allocation25_spill] sm:$0xff] %v4795_v8 }
  0x2e   :  { %577 = vmatpush.msra.mxu1 %v4752_v56  ;;  %558 = vmatpush.msrb.mxu0 %v4765_v59  ;;  %8737 = vst [vmem:[#allocation26_spill] sm:$0xff] %v4797_v9 }
  0x2f   :  { %3505 = vmatmul.msk.f32.gmra.mxu1 %vm84_vm1, %v4748_v54  ;;  %597 = vmatpush.msra.mxu2 %v4757_v57  ;;  %8738 = vst [vmem:[#allocation27_spill] sm:$0xff] %v4808_v12 }
  0x30   :  { %3523 = vmatmul.msk.f32.gmra.mxu3 %vm84_vm1, %v4748_v54  ;;  %578 = vmatpush.msra.mxu1 %v4767_v60  ;;  %8739 = vst [vmem:[#allocation28_spill] sm:$0xff] %v4812_v28  ;;  %v4871_v60 = vld [vmem:[#allocation2 + $0x328] sm:$0xff] }
  0x31   :  { %617 = vmatpush.msra.mxu3 %v4759_v58  ;;  %598 = vmatpush.msra.mxu2 %v4771_v61  ;;  %v4850_v61 = vld [vmem:[#allocation2 + $0x3b8] sm:$0xff]  ;;  %8756 = vst [vmem:[#allocation45_spill] sm:$0xff] %v4871_v60 }
  0x32   :  { %3514 = vmatmul.msk.f32.gmra.mxu2 %vm84_vm1, %v4748_v54  ;;  %559 = vmatpush.msrb.mxu0 %v4777_v63  ;;  %v4840_v63 = vld [vmem:[#allocation2 + $0x3a0] sm:$0xff]  ;;  %8749 = vst [vmem:[#allocation38_spill] sm:$0xff] %v4850_v61 }
  0x33   :  { %618 = vmatpush.msra.mxu3 %v4773_v62  ;;  %579 = vmatpush.msra.mxu1 %v4779_v0  ;;  %v4838_v0 = vld [vmem:[#allocation2 + $0x3f8] sm:$0xff]  ;;  %8746 = vst [vmem:[#allocation35_spill] sm:$0xff] %v4840_v63  ;;  %v4846_v62 = vld [vmem:[#allocation2 + $0x3b0] sm:$0xff] }
  0x34   :  { %599 = vmatpush.msra.mxu2 %v4783_v1  ;;  %560 = vmatpush.msrb.mxu0 %v4789_v5  ;;  %v4814_v1 = vld [vmem:[#allocation2 + $0x10] sm:$0xff]  ;;  %v4822_v5 = vld [vmem:[#allocation2 + $0x3e0] sm:$0xff]  ;;  %8745 = vst [vmem:[#allocation34_spill] sm:$0xff] %v4838_v0 }
  0x35   :  { %619 = vmatpush.msra.mxu3 %v4785_v4  ;;  %580 = vmatpush.msra.mxu1 %v4791_v6  ;;  %8740 = vst [vmem:[#allocation29_spill] sm:$0xff] %v4814_v1  ;;  %v4820_v4 = vld [vmem:[#allocation2 + $0x18] sm:$0xff]  ;;  %v4834_v6 = vld [vmem:[%s8225_s2] sm:$0xf] }
  0x36   :  { %600 = vmatpush.msra.mxu2 %v4795_v8  ;;  %8741 = vst [vmem:[#allocation30_spill] sm:$0xff] %v4820_v4  ;;  %561 = vmatpush.msrb.mxu0 %v4808_v12  ;;  %v4829_v8 = vld [vmem:[#allocation2 + $0x3f0] sm:$0xff]  ;;  %v4844_v12 = vld [vmem:[#allocation2 + $0x3a8] sm:$0xff] }
  0x37   :  { %620 = vmatpush.msra.mxu3 %v4797_v9  ;;  %3506 = vmatmul.msk.f32.gmra.mxu1 %vm84_vm1, %v4804_v10  ;;  %8742 = vst [vmem:[#allocation31_spill] sm:$0xff] %v4822_v5  ;;  %v4827_v9 = vld [vmem:[#allocation2 + $0x3e8] sm:$0xff] }
  0x38   :  { %3524 = vmatmul.msk.f32.gmra.mxu3 %vm84_vm1, %v4804_v10  ;;  %8743 = vst [vmem:[#allocation32_spill] sm:$0xff] %v4827_v9  ;;  %581 = vmatpush.msra.mxu1 %v4812_v28  ;;  %v4852_v28 = vld [vmem:[#allocation2 + $0x360] sm:$0xff] }
  0x39   :  { %8744 = vst [vmem:[#allocation33_spill] sm:$0xff] %v4829_v8  ;;  %601 = vmatpush.msra.mxu2 %v4814_v1  ;;  %621 = vmatpush.msra.mxu3 %v4820_v4  ;;  %v4855_v1 = vperm.slane %v4834_v6, 0  ;;  %v4861_v4 = vld [vmem:[#allocation2 + $0x370] sm:$0xff] }
  0x3a   :  { %3515 = vmatmul.msk.f32.gmra.mxu2 %vm84_vm1, %v4804_v10  ;;  %626 = vmatpush.msra.mxu0 %v4822_v5  ;;  %8747 = vst [vmem:[#allocation36_spill] sm:$0xff] %v4844_v12  ;;  %v4859_v5 = vld [vmem:[#allocation2 + $0x368] sm:$0xff] }
  0x3b   :  { %8748 = vst [vmem:[#allocation37_spill] sm:$0xff] %v4846_v62  ;;  %646 = vmatpush.msrb.mxu1 %v4827_v9  ;;  %666 = vmatpush.msrb.mxu2 %v4829_v8  ;;  %v4865_v8 = vld [vmem:[#allocation2 + $0x378] sm:$0xff]  ;;  %v4867_v9 = vld [vmem:[#allocation2 + $0x320] sm:$0xff] }
  0x3c   :  { %8750 = vst [vmem:[#allocation39_spill] sm:$0xff] %v4852_v28  ;;  %686 = vmatpush.msrb.mxu3 %v4838_v0  ;;  %627 = vmatpush.msra.mxu0 %v4840_v63  ;;  %v4873_v0 = vld [vmem:[#allocation2 + $0x330] sm:$0xff] }
  0x3d   :  { %8751 = vst [vmem:[#allocation40_spill] sm:$0xff] %v4855_v1  ;;  %647 = vmatpush.msrb.mxu1 %v4844_v12  ;;  %667 = vmatpush.msrb.mxu2 %v4846_v62  ;;  %v4877_v12 = vld [vmem:[#allocation2 + $0x338] sm:$0xff] }
  0x3e   :  { %8752 = vst [vmem:[#allocation41_spill] sm:$0xff] %v4859_v5  ;;  %687 = vmatpush.msrb.mxu3 %v4850_v61  ;;  %628 = vmatpush.msra.mxu0 %v4852_v28  ;;  %v4886_v28 = vld [vmem:[#allocation2 + $0x2e0] sm:$0xff] }
  0x3f   :  { %8753 = vst [vmem:[#allocation42_spill] sm:$0xff] %v4861_v4  ;;  %648 = vmatpush.msrb.mxu1 %v4859_v5  ;;  %668 = vmatpush.msrb.mxu2 %v4861_v4  ;;  %v4891_v4 = vld [vmem:[#allocation2 + $0x2e8] sm:$0xff] }
  0x40   :  { %8754 = vst [vmem:[#allocation43_spill] sm:$0xff] %v4865_v8  ;;  %688 = vmatpush.msrb.mxu3 %v4865_v8  ;;  %629 = vmatpush.msra.mxu0 %v4867_v9  ;;  %v4949_v8 = vperm.slane %v4834_v6, 3 }
  0x41   :  { %8755 = vst [vmem:[#allocation44_spill] sm:$0xff] %v4867_v9  ;;  %649 = vmatpush.msrb.mxu1 %v4871_v60  ;;  %669 = vmatpush.msrb.mxu2 %v4873_v0  ;;  %v4917_v60 = vld [vmem:[#allocation2 + $0x260] sm:$0xff] }
  0x42   :  { %8757 = vst [vmem:[#allocation46_spill] sm:$0xff] %v4873_v0  ;;  %689 = vmatpush.msrb.mxu3 %v4877_v12  ;;  %3495 = vmatmul.msk.f32.gmra.mxu0 %vm84_vm1, %v4690_v37  ;;  %v4906_v37 = vld [vmem:[#allocation2 + $0x2a8] sm:$0xff]  ;;  %v4915_v0 = vld [vmem:[#allocation2 + $0x2b8] sm:$0xff] }
  0x43   :  { %8758 = vst [vmem:[#allocation47_spill] sm:$0xff] %v4877_v12  ;;  %3507 = vmatmul.msk.f32.gmra.mxu1 %vm84_vm1, %v4570_v2  ;;  %3516 = vmatmul.msk.f32.gmra.mxu2 %vm84_vm1, %v4570_v2  ;;  %v4911_v12 = vperm.slane %v4834_v6, 1 }
  0x44   :  { %8760 = vst [vmem:[#allocation49_spill] sm:$0xff] %v4886_v28  ;;  %3525 = vmatmul.msk.f32.gmra.mxu3 %vm84_vm1, %v4570_v2  ;;  %630 = vmatpush.msra.mxu0 %v4886_v28  ;;  %v4923_v2 = vld [vmem:[#allocation2 + $0x268] sm:$0xff]  ;;  %v4925_v28 = vld [vmem:[#allocation2 + $0x270] sm:$0xff] }
  0x45   :  { %8761 = vst [vmem:[#allocation50_spill] sm:$0xff] %v4891_v4  ;;  %650 = vmatpush.msrb.mxu1 %v4891_v4  ;;  %v4929_v4 = vld [vmem:[#allocation2 + $0x278] sm:$0xff] }
  0x46   :  { %8765 = vst [vmem:[#allocation54_spill] sm:$0xff] %v4906_v37 }
  0x47   :  { %8767 = vst [vmem:[#allocation56_spill] sm:$0xff] %v4911_v12  ;;  %651 = vmatpush.msrb.mxu1 %v4906_v37 }
  0x48   :  { %8768 = vst [vmem:[#allocation57_spill] sm:$0xff] %v4915_v0 }
  0x49   :  { %8769 = vst [vmem:[#allocation58_spill] sm:$0xff] %v4917_v60  ;;  %652 = vmatpush.msrb.mxu1 %v4923_v2 }
  0x4a   :  { %8771 = vst [vmem:[#allocation60_spill] sm:$0xff] %v4923_v2  ;;  %3496 = vmatmul.msk.f32.gmra.mxu0 %vm84_vm1, %v4748_v54 }
  0x4b   :  { %8772 = vst [vmem:[#allocation61_spill] sm:$0xff] %v4925_v28  ;;  %3508 = vmatmul.msk.f32.gmra.mxu1 %vm84_vm1, %v4594_v7  ;;  %3517 = vmatmul.msk.f32.gmra.mxu2 %vm84_vm1, %v4594_v7 }
  0x4c   :  { %8773 = vst [vmem:[#allocation62_spill] sm:$0xff] %v4929_v4  ;;  %3526 = vmatmul.msk.f32.gmra.mxu3 %vm84_vm1, %v4594_v7  ;;  %v4989_v7 = vld [vmem:[#allocation2 + $0x168] sm:$0xff] }
  0x4d   :  { %8778 = vst [vmem:[#allocation67_spill] sm:$0xff] %v4949_v8 }
  0x4e   :  { %8789 = vst [vmem:[#allocation78_spill] sm:$0xff] %v4989_v7 }
  0x52   :  { %3497 = vmatmul.msk.f32.gmra.mxu0 %vm84_vm1, %v4804_v10 }
  0x53   :  { %3509 = vmatmul.msk.f32.gmra.mxu1 %vm84_vm1, %v4577_v3  ;;  %3518 = vmatmul.msk.f32.gmra.mxu2 %vm84_vm1, %v4577_v3 }
  0x54   :  { %3527 = vmatmul.msk.f32.gmra.mxu3 %vm84_vm1, %v4577_v3  ;;  %v5058_v3 = vld [vmem:[#allocation2 + $0x68] sm:$0xff] }
  0x55   :  { %8806 = vst [vmem:[#allocation95_spill] sm:$0xff] %v5058_v3 }
  0x8b   :  { %v139_v63 = vpop.f32.mrf.mxu0 }
  0x8c   :  { %v140_v62 = vadd.f32 %v139_v63, %v4855_v1  ;;  %v4880_v59 = vpop.f32.mrf.mxu1  ;;  %v4893_v63 = vld [vmem:[#allocation2 + $0x2f0] sm:$0xff]  ;;  %v4901_v1 = vld [vmem:[#allocation2 + $0x2a0] sm:$0xff] }
  0x8d   :  { %8759 = vst [vmem:[#allocation48_spill] sm:$0xff] %v4880_v59  ;;  %v4899_v59 = vld [vmem:[#allocation2 + $0x2f8] sm:$0xff]  ;;  %670 = vmatpush.msrb.mxu2 %v4893_v63  ;;  %631 = vmatpush.msra.mxu0 %v4901_v1 }
  0x8e   :  { %v3528_v61 = vmul.f32 -1.442695, %v140_v62  ;;  %8762 = vst [vmem:[#allocation51_spill] sm:$0xff] %v4893_v63  ;;  %v4908_v62 = vld [vmem:[#allocation2 + $0x2b0] sm:$0xff]  ;;  %690 = vmatpush.msrb.mxu3 %v4899_v59  ;;  %v4931_v63 = vld [vmem:[#allocation2 + $0x220] sm:$0xff] }
  0x8f   :  { %8763 = vst [vmem:[#allocation52_spill] sm:$0xff] %v4899_v59  ;;  %671 = vmatpush.msrb.mxu2 %v4908_v62  ;;  %632 = vmatpush.msra.mxu0 %v4917_v60 }
  0x90   :  { %8764 = vst [vmem:[#allocation53_spill] sm:$0xff] %v4901_v1  ;;  %3588 = vpow2.f32 %v3528_v61  ;;  %691 = vmatpush.msrb.mxu3 %v4915_v0  ;;  %v4937_v1 = vld [vmem:[#allocation2 + $0x230] sm:$0xff] }
  0x91   :  { %8766 = vst [vmem:[#allocation55_spill] sm:$0xff] %v4908_v62  ;;  %672 = vmatpush.msrb.mxu2 %v4925_v28  ;;  %v4942_v62 = vld [vmem:[#allocation2 + $0x238] sm:$0xff]  ;;  %633 = vmatpush.msra.mxu0 %v4931_v63 }
  0x92   :  { %v4919_v61 = vpop.f32.mrf.mxu3  ;;  %8774 = vst [vmem:[#allocation63_spill] sm:$0xff] %v4931_v63  ;;  %692 = vmatpush.msrb.mxu3 %v4929_v4  ;;  %v4960_v63 = vld [vmem:[#allocation2 + $0x1f0] sm:$0xff]  ;;  %v4983_v28 = vld [vmem:[#allocation2 + $0x1b8] sm:$0xff] }
  0x93   :  { %8770 = vst [vmem:[#allocation59_spill] sm:$0xff] %v4919_v61  ;;  %v4935_v61 = vld [vmem:[#allocation2 + $0x228] sm:$0xff]  ;;  %673 = vmatpush.msrb.mxu2 %v4937_v1 }
  0x94   :  { %v180_v9 = vpop.f32.mrf.mxu1  ;;  %8775 = vst [vmem:[#allocation64_spill] sm:$0xff] %v4935_v61  ;;  %653 = vmatpush.msrb.mxu1 %v4935_v61  ;;  %693 = vmatpush.msrb.mxu3 %v4942_v62  ;;  %v4978_v61 = vld [vmem:[#allocation2 + $0x1b0] sm:$0xff] }
  0x95   :  { %8776 = vst [vmem:[#allocation65_spill] sm:$0xff] %v4937_v1  ;;  %v181_v59 = vadd.f32 %v180_v9, %v4911_v12  ;;  %v4953_v9 = vld [vmem:[#allocation2 + $0x1e0] sm:$0xff]  ;;  %v4958_v12 = vld [vmem:[#allocation2 + $0x1e8] sm:$0xff]  ;;  %674 = vmatpush.msrb.mxu2 %v4960_v63 }
  0x96   :  { %8777 = vst [vmem:[#allocation66_spill] sm:$0xff] %v4942_v62  ;;  %v3589_v37 = vpop.eup %3588  ;;  %v4971_v62 = vpop.f32.mrf.mxu2  ;;  %634 = vmatpush.msra.mxu0 %v4953_v9  ;;  %v4976_v1 = vld [vmem:[#allocation2 + $0x1a8] sm:$0xff]  ;;  %654 = vmatpush.msrb.mxu1 %v4958_v12 }
  0x97   :  { %v4946_v0 = vadd.f32 1.0, %v3589_v37  ;;  %v3529_v60 = vmul.f32 -1.442695, %v181_v59  ;;  %8779 = vst [vmem:[#allocation68_spill] sm:$0xff] %v4953_v9  ;;  %v4967_v59 = vld [vmem:[#allocation2 + $0x1f8] sm:$0xff]  ;;  %v4969_v37 = vld [vmem:[#allocation2 + $0x1a0] sm:$0xff]  ;;  %675 = vmatpush.msrb.mxu2 %v4978_v61 }
  0x98   :  { %8780 = vst [vmem:[#allocation69_spill] sm:$0xff] %v4958_v12  ;;  %694 = vmatpush.msrb.mxu3 %v4967_v59  ;;  %635 = vmatpush.msra.mxu0 %v4969_v37 }
  0x99   :  { %8781 = vst [vmem:[#allocation70_spill] sm:$0xff] %v4960_v63  ;;  %3590 = vrcp.f32 %v4946_v0  ;;  %655 = vmatpush.msrb.mxu1 %v4976_v1  ;;  %vm500_vm2 = vweird.f32 %v4946_v0 }
  0x9a   :  { %8782 = vst [vmem:[#allocation71_spill] sm:$0xff] %v4967_v59  ;;  %3592 = vpow2.f32 %v3529_v60  ;;  %v4985_v60 = vld [vmem:[#allocation2 + $0x160] sm:$0xff]  ;;  %695 = vmatpush.msrb.mxu3 %v4983_v28  ;;  %v5001_v59 = vld [vmem:[#allocation2 + $0x128] sm:$0xff] }
  0x9b   :  { %8783 = vst [vmem:[#allocation72_spill] sm:$0xff] %v4969_v37  ;;  %v262_v54 = vpop.f32.mrf.mxu3  ;;  %636 = vmatpush.msra.mxu0 %v4985_v60  ;;  %v5003_v37 = vld [vmem:[#allocation2 + $0x130] sm:$0xff]  ;;  %656 = vmatpush.msrb.mxu1 %v4989_v7 }
  0x9c   :  { %8784 = vst [vmem:[#allocation73_spill] sm:$0xff] %v4971_v62  ;;  %v263_v4 = vadd.f32 %v262_v54, %v4949_v8  ;;  %v4991_v62 = vld [vmem:[#allocation2 + $0x170] sm:$0xff]  ;;  %v4995_v54 = vld [vmem:[#allocation2 + $0x178] sm:$0xff]  ;;  %v4997_v8 = vld [vmem:[#allocation2 + $0x120] sm:$0xff] }
  0x9d   :  { %8785 = vst [vmem:[#allocation74_spill] sm:$0xff] %v4976_v1  ;;  %676 = vmatpush.msrb.mxu2 %v4991_v62  ;;  %696 = vmatpush.msrb.mxu3 %v4995_v54 }
  0x9e   :  { %8786 = vst [vmem:[#allocation75_spill] sm:$0xff] %v4978_v61  ;;  %v3530_v9 = vmul.f32 -1.442695, %v263_v4  ;;  %v5009_v4 = vld [vmem:[#allocation2 + $0x138] sm:$0xff]  ;;  %637 = vmatpush.msra.mxu0 %v4997_v8  ;;  %657 = vmatpush.msrb.mxu1 %v5001_v59  ;;  %v221_v10 = vpop.f32.mrf.mxu2 }
  0x9f   :  { %8787 = vst [vmem:[#allocation76_spill] sm:$0xff] %v4983_v28  ;;  %v5005_v63 = vpop.eup %3590  ;;  %677 = vmatpush.msrb.mxu2 %v5003_v37  ;;  %697 = vmatpush.msrb.mxu3 %v5009_v4  ;;  %v5026_v28 = vld [vmem:[#allocation2 + $0xf0] sm:$0xff] }
  0xa0   :  { %8788 = vst [vmem:[#allocation77_spill] sm:$0xff] %v4985_v60  ;;  %3594 = vpow2.f32 %v3530_v9  ;;  %v3593_v61 = vpop.eup %3592  ;;  %v496_v1 = vmul.f32 %v5005_v63, %v4946_v0  ;;  %v5019_v9 = vld [vmem:[#allocation2 + $0xe0] sm:$0xff]  ;;  %vm501_vm3 = vweird.f32 %v5005_v63 }
  0xa1   :  { %8790 = vst [vmem:[#allocation79_spill] sm:$0xff] %v4991_v62  ;;  %v5015_v60 = vadd.f32 1.0, %v3593_v61  ;;  %v5024_v62 = vld [vmem:[#allocation2 + $0xe8] sm:$0xff]  ;;  %v5030_v61 = vperm.slane %v4834_v6, 2  ;;  %638 = vmatpush.msra.mxu0 %v5019_v9  ;;  %v5045_v6 = vld [vmem:[#allocation2 + $0xb0] sm:$0xff]  ;;  %678 = vmatpush.msrb.mxu2 %v5026_v28  ;;  %vm502_vm4 = vmor %vm500_vm2, %vm501_vm3 }
  0xa2   :  { %8791 = vst [vmem:[#allocation80_spill] sm:$0xff] %v4995_v54  ;;  %v497_v7 = vsub.f32 1.0, %v496_v1  ;;  %v5036_v1 = vld [vmem:[#allocation2 + $0xf8] sm:$0xff]  ;;  %658 = vmatpush.msrb.mxu1 %v5024_v62  ;;  %v5051_v54 = vld [vmem:[#allocation2 + $0x60] sm:$0xff] }
  0xa3   :  { %8792 = vst [vmem:[#allocation81_spill] sm:$0xff] %v4997_v8  ;;  %3596 = vrcp.f32 %v5015_v60  ;;  %v5049_v8 = vld [vmem:[#allocation2 + $0xb8] sm:$0xff]  ;;  %698 = vmatpush.msrb.mxu3 %v5036_v1  ;;  %679 = vmatpush.msrb.mxu2 %v5045_v6  ;;  %vm515_vm6 = vweird.f32 %v5015_v60 }
  0xa4   :  { %8793 = vst [vmem:[#allocation82_spill] sm:$0xff] %v5001_v59  ;;  %v498_v2 = vmul.f32 %v5005_v63, %v497_v7  ;;  %v5072_v7 = vld [vmem:[#allocation2 + $0x28] sm:$0xff] }
  0xa5   :  { %8794 = vst [vmem:[#allocation83_spill] sm:$0xff] %v5003_v37  ;;  %v5043_v37 = vld [vmem:[#allocation2 + $0xa8] sm:$0xff]  ;;  %699 = vmatpush.msrb.mxu3 %v5049_v8 }
  0xa6   :  { %8795 = vst [vmem:[#allocation84_spill] sm:$0xff] %v5009_v4  ;;  %v5038_v4 = vld [vmem:[#allocation2 + $0xa0] sm:$0xff]  ;;  %v3595_v59 = vpop.eup %3594  ;;  %659 = vmatpush.msrb.mxu1 %v5043_v37 }
  0xa7   :  { %8796 = vst [vmem:[#allocation85_spill] sm:$0xff] %v5019_v9  ;;  %v5053_v12 = vadd.f32 1.0, %v3595_v59  ;;  %639 = vmatpush.msra.mxu0 %v5038_v4  ;;  %v5060_v9 = vld [vmem:[#allocation2 + $0x70] sm:$0xff]  ;;  %v5067_v59 = vld [vmem:[#allocation2 + $0x20] sm:$0xff] }
  0xa8   :  { %8797 = vst [vmem:[#allocation86_spill] sm:$0xff] %v5024_v62  ;;  %v222_v62 = vadd.f32 %v221_v10, %v5030_v61  ;;  %660 = vmatpush.msrb.mxu1 %v5058_v3  ;;  %680 = vmatpush.msrb.mxu2 %v5060_v9  ;;  %v5078_v10 = vld [vmem:[#allocation2 + $0x38] sm:$0xff]  ;;  %v504_v3 = vand.u32 2147483647, %v4946_v0 }
  0xa9   :  { %8798 = vst [vmem:[#allocation87_spill] sm:$0xff] %v5026_v28  ;;  %v5065_v28 = vld [vmem:[#allocation2 + $0x78] sm:$0xff]  ;;  %3598 = vrcp.f32 %v5053_v12  ;;  %640 = vmatpush.msra.mxu0 %v5051_v54  ;;  %vm530_vm11 = vweird.f32 %v5053_v12 }
  0xaa   :  { %8799 = vst [vmem:[#allocation88_spill] sm:$0xff] %v5030_v61  ;;  %700 = vmatpush.msrb.mxu3 %v5065_v28  ;;  %3600 = vtanh.f32 %v222_v62  ;;  %661 = vmatpush.msrb.mxu1 %v5072_v7  ;;  %vm505_vm7 = vcmp.eq.f32.partialorder %v504_v3, 8.507059e+37  ;;  %v5106_v3 = vld [vmem:[#allocation5 + $0x1f0] sm:$0xff] }
  0xab   :  { %8800 = vst [vmem:[#allocation89_spill] sm:$0xff] %v5036_v1  ;;  %v3597_v1 = vpop.eup %3596  ;;  %641 = vmatpush.msra.mxu0 %v5067_v59 }
  0xac   :  { %8801 = vst [vmem:[#allocation90_spill] sm:$0xff] %v5038_v4  ;;  %v5074_v4 = vld [vmem:[#allocation2 + $0x30] sm:$0xff]  ;;  %v511_v61 = vmul.f32 %v3597_v1, %v5015_v60  ;;  %701 = vmatpush.msrb.mxu3 %v5078_v10  ;;  %vm516_vm5 = vweird.f32 %v3597_v1 }
  0xad   :  { %8802 = vst [vmem:[#allocation91_spill] sm:$0xff] %v5043_v37  ;;  %681 = vmatpush.msrb.mxu2 %v5074_v4  ;;  %vm517_vm8 = vmor %vm515_vm6, %vm516_vm5 }
  0xae   :  { %8803 = vst [vmem:[#allocation92_spill] sm:$0xff] %v5045_v6  ;;  %v499_v6 = vadd.f32 %v5005_v63, %v498_v2  ;;  %v521_v2 = vand.u32 2147483648, %v5015_v60 }
  0xaf   :  { %8804 = vst [vmem:[#allocation93_spill] sm:$0xff] %v5049_v8  ;;  %v3599_v8 = vpop.eup %3598 }
  0xb0   :  { %8805 = vst [vmem:[#allocation94_spill] sm:$0xff] %v5051_v54  ;;  %v506_v54 = vand.u32 2147483648, %v4946_v0  ;;  %v526_v62 = vmul.f32 %v3599_v8, %v5053_v12  ;;  %v3601_v0 = vpop.eup %3600  ;;  %vm531_vm10 = vweird.f32 %v3599_v8 }
  0xb1   :  { %8807 = vst [vmem:[#allocation96_spill] sm:$0xff] %v5060_v9  ;;  %v512_v9 = vsub.f32 1.0, %v511_v61  ;;  %vm532_vm12 = vmor %vm530_vm11, %vm531_vm10 }
  0xb2   :  { %8808 = vst [vmem:[#allocation97_spill] sm:$0xff] %v5065_v28  ;;  %v503_v28 = vsel %vm502_vm4, %v5005_v63, %v499_v6 }
  0xb3   :  { %8809 = vst [vmem:[#allocation98_spill] sm:$0xff] %v5067_v59  ;;  %v513_v37 = vmul.f32 %v3597_v1, %v512_v9  ;;  %v519_v59 = vand.u32 2147483647, %v5015_v60 }
  0xb4   :  { %8810 = vst [vmem:[#allocation99_spill] sm:$0xff] %v5072_v7  ;;  %v507_v7 = vor.u32 1.1754944e-38, %v506_v54  ;;  %v536_v54 = vand.u32 2147483648, %v5053_v12 }
  0xb5   :  { %8811 = vst [vmem:[#allocation100_spill] sm:$0xff] %v5074_v4  ;;  %v514_v61 = vadd.f32 %v3597_v1, %v513_v37  ;;  %v522_v4 = vor.u32 1.1754944e-38, %v521_v2  ;;  %vm520_vm9 = vcmp.eq.f32.partialorder %v519_v59, 8.507059e+37  ;;  %v534_v37 = vand.u32 2147483647, %v5053_v12  ;;  %v5108_v59 = vld [vmem:[#allocation5 + $0x1f8] sm:$0xff] }
  0xb6   :  { %8812 = vst [vmem:[#allocation101_spill] sm:$0xff] %v5078_v10  ;;  %v527_v10 = vsub.f32 1.0, %v526_v62  ;;  %v508_v5 = vsel %vm505_vm7, %v507_v7, %v503_v28  ;;  %v537_v60 = vor.u32 1.1754944e-38, %v536_v54  ;;  %v5110_v12 = vld [vmem:[#allocation5 + $0x1c0] sm:$0xff]  ;;  %v5118_v7 = vld [vmem:[#allocation5 + $0x1d8] sm:$0xff]  ;;  %v5124_v2 = vld [vmem:[#allocation5 + $0x1a8] sm:$0xff] }
  0xb7   :  { %v518_v58 = vsel %vm517_vm8, %v3597_v1, %v514_v61  ;;  %v542_v6 = vmul.f32 %v3601_v0, %v508_v5  ;;  %vm535_vm13 = vcmp.eq.f32.partialorder %v534_v37, 8.507059e+37  ;;  %v5102_v5 = vld [vmem:[#allocation5 + $0x1e0] sm:$0xff]  ;;  %v5128_v62 = vld [vmem:[#allocation5 + $0x1b0] sm:$0xff]  ;;  %v5130_v61 = vld [vmem:[#allocation5 + $0x1b8] sm:$0xff] }
  0xb8   :  { %v528_v9 = vmul.f32 %v3599_v8, %v527_v10  ;;  %v523_v57 = vsel %vm520_vm9, %v522_v4, %v518_v58  ;;  %v5104_v4 = vld [vmem:[#allocation5 + $0x1e8] sm:$0xff]  ;;  %v5122_v10 = vld [vmem:[#allocation5 + $0x1a0] sm:$0xff] }
  0xb9   :  { %v541_v63 = vmul.f32 0.0, %v523_v57  ;;  %v5134_v0 = vld [vmem:[#allocation5 + $0x180] sm:$0xff]  ;;  %v5152_v37 = vld [vmem:[#allocation5 + $0x168] sm:$0xff] }
  0xba   :  { %v529_v55 = vadd.f32 %v3599_v8, %v528_v9  ;;  %8813 = vst [vmem:[#allocation102_spill] sm:$0xff] %v5134_v0  ;;  %v5136_v9 = vld [vmem:[#allocation5 + $0x188] sm:$0xff]  ;;  %v5150_v54 = vld [vmem:[#allocation5 + $0x160] sm:$0xff] }
  0xbb   :  { %v5096_v56 = vadd.f32 %v542_v6, %v541_v63  ;;  %8814 = vst [vmem:[#allocation103_spill] sm:$0xff] %v5136_v9  ;;  %v5140_v63 = vld [vmem:[#allocation5 + $0x190] sm:$0xff]  ;;  %v5142_v6 = vld [vmem:[#allocation5 + $0x198] sm:$0xff] }
  0xbc   :  { %v533_v28 = vsel %vm532_vm12, %v3599_v8, %v529_v55  ;;  %v5112_v55 = vld [vmem:[#allocation5 + $0x1c8] sm:$0xff]  ;;  %v5116_v8 = vld [vmem:[#allocation5 + $0x1d0] sm:$0xff]  ;;  %8815 = vst [vmem:[#allocation104_spill] sm:$0xff] %v5140_v63 }
  0xbd   :  { %3602 = vtanh.f32 %v5096_v56  ;;  %v538_v58 = vsel %vm535_vm13, %v537_v60, %v533_v28  ;;  %8816 = vst [vmem:[#allocation105_spill] sm:$0xff] %v5142_v6  ;;  %v5154_v28 = vld [vmem:[#allocation5 + $0x170] sm:$0xff]  ;;  %v5156_v60 = vld [vmem:[#allocation5 + $0x178] sm:$0xff] }
  0xbe   :  { %8817 = vst [vmem:[#allocation106_spill] sm:$0xff] %v5150_v54 }
  0xbf   :  { %8818 = vst [vmem:[#allocation107_spill] sm:$0xff] %v5152_v37 }
  0xc0   :  { %8819 = vst [vmem:[#allocation108_spill] sm:$0xff] %v5154_v28 }
  0xc1   :  { %8820 = vst [vmem:[#allocation109_spill] sm:$0xff] %v5156_v60 }
  0xc3   :  { %v3603_v1 = vpop.eup %3602 }
  0xc4   :  { %v545_v57 = vmul.f32 %v3603_v1, %v538_v58  ;;  %v5158_v1 = vld [vmem:[#allocation5 + $0x140] sm:$0xff]  ;;  %v5160_v58 = vld [vmem:[#allocation5 + $0x148] sm:$0xff] }
  0xc5   :  { %8821 = vst [vmem:[#allocation110_spill] sm:$0xff] %v5158_v1 }
  0xc6   :  { %562 = vmatmul.f32.vlgmr.msrb.gmra.mxu0 %v545_v57  ;;  %582 = vmatmul.f32.vlgmr.msra.gmra.mxu1 %v545_v57  ;;  %8822 = vst [vmem:[#allocation111_spill] sm:$0xff] %v5160_v58 }
  0xc7   :  { %602 = vmatmul.f32.vlgmr.msra.gmra.mxu2 %v545_v57  ;;  %622 = vmatmul.f32.vlgmr.msra.gmra.mxu3 %v545_v57 }
  0xc8   :  { %706 = vmatpush.msrb.mxu0 %v5102_v5  ;;  %726 = vmatpush.msra.mxu1 %v5104_v4 }
  0xc9   :  { %746 = vmatpush.msra.mxu2 %v5106_v3  ;;  %766 = vmatpush.msra.mxu3 %v5108_v59 }
  0xca   :  { %707 = vmatpush.msrb.mxu0 %v5110_v12  ;;  %727 = vmatpush.msra.mxu1 %v5112_v55 }
  0xcb   :  { %747 = vmatpush.msra.mxu2 %v5116_v8  ;;  %767 = vmatpush.msra.mxu3 %v5118_v7 }
  0xcc   :  { %708 = vmatpush.msrb.mxu0 %v5122_v10  ;;  %728 = vmatpush.msra.mxu1 %v5124_v2 }
  0xcd   :  { %748 = vmatpush.msra.mxu2 %v5128_v62  ;;  %768 = vmatpush.msra.mxu3 %v5130_v61 }
  0xce   :  { %709 = vmatpush.msrb.mxu0 %v5134_v0  ;;  %729 = vmatpush.msra.mxu1 %v5136_v9  ;;  %v5170_v9 = vld [vmem:[#allocation5 + $0x120] sm:$0xff]  ;;  %v5172_v0 = vld [vmem:[#allocation5 + $0x128] sm:$0xff] }
  0xcf   :  { %749 = vmatpush.msra.mxu2 %v5140_v63  ;;  %769 = vmatpush.msra.mxu3 %v5142_v6  ;;  %v5164_v6 = vld [vmem:[#allocation5 + $0x150] sm:$0xff]  ;;  %v5166_v63 = vld [vmem:[#allocation5 + $0x158] sm:$0xff]  ;;  %8825 = vst [vmem:[#allocation114_spill] sm:$0xff] %v5170_v9 }
  0xd0   :  { %642 = vmatmul.f32.vlgmr.msra.gmra.mxu0 %v545_v57  ;;  %662 = vmatmul.f32.vlgmr.msrb.gmra.mxu1 %v545_v57  ;;  %8823 = vst [vmem:[#allocation112_spill] sm:$0xff] %v5164_v6 }
  0xd1   :  { %682 = vmatmul.f32.vlgmr.msrb.gmra.mxu2 %v545_v57  ;;  %702 = vmatmul.f32.vlgmr.msrb.gmra.mxu3 %v545_v57  ;;  %8824 = vst [vmem:[#allocation113_spill] sm:$0xff] %v5166_v63  ;;  %v5176_v57 = vld [vmem:[#allocation5 + $0x130] sm:$0xff] }
  0xd2   :  { %710 = vmatpush.msrb.mxu0 %v5150_v54  ;;  %730 = vmatpush.msra.mxu1 %v5152_v37  ;;  %8826 = vst [vmem:[#allocation115_spill] sm:$0xff] %v5172_v0  ;;  %v5178_v54 = vld [vmem:[#allocation5 + $0x138] sm:$0xff]  ;;  %v5182_v37 = vld [vmem:[#allocation5 + $0x100] sm:$0xff] }
  0xd3   :  { %750 = vmatpush.msra.mxu2 %v5154_v28  ;;  %770 = vmatpush.msra.mxu3 %v5156_v60  ;;  %8827 = vst [vmem:[#allocation116_spill] sm:$0xff] %v5176_v57  ;;  %v5184_v28 = vld [vmem:[#allocation5 + $0x108] sm:$0xff]  ;;  %v5188_v60 = vld [vmem:[#allocation5 + $0x110] sm:$0xff] }
  0xd4   :  { %711 = vmatpush.msrb.mxu0 %v5158_v1  ;;  %731 = vmatpush.msra.mxu1 %v5160_v58  ;;  %8828 = vst [vmem:[#allocation117_spill] sm:$0xff] %v5178_v54  ;;  %v5190_v1 = vld [vmem:[#allocation5 + $0x118] sm:$0xff]  ;;  %v5194_v58 = vld [vmem:[#allocation5 + $0xe0] sm:$0xff] }
  0xd5   :  { %751 = vmatpush.msra.mxu2 %v5164_v6  ;;  %771 = vmatpush.msra.mxu3 %v5166_v63  ;;  %8829 = vst [vmem:[#allocation118_spill] sm:$0xff] %v5182_v37  ;;  %v5196_v6 = vld [vmem:[#allocation5 + $0xe8] sm:$0xff]  ;;  %v5200_v63 = vld [vmem:[#allocation5 + $0xf0] sm:$0xff] }
  0xd6   :  { %8830 = vst [vmem:[#allocation119_spill] sm:$0xff] %v5184_v28  ;;  %712 = vmatpush.msrb.mxu0 %v5170_v9  ;;  %732 = vmatpush.msra.mxu1 %v5172_v0  ;;  %v5202_v9 = vld [vmem:[#allocation5 + $0xf8] sm:$0xff]  ;;  %v5206_v0 = vld [vmem:[#allocation5 + $0xc0] sm:$0xff] }
  0xd7   :  { %8831 = vst [vmem:[#allocation120_spill] sm:$0xff] %v5188_v60  ;;  %752 = vmatpush.msra.mxu2 %v5176_v57  ;;  %772 = vmatpush.msra.mxu3 %v5178_v54  ;;  %v5208_v57 = vld [vmem:[#allocation5 + $0xc8] sm:$0xff]  ;;  %v5212_v54 = vld [vmem:[#allocation5 + $0xd0] sm:$0xff] }
  0xd8   :  { %8832 = vst [vmem:[#allocation121_spill] sm:$0xff] %v5190_v1  ;;  %713 = vmatpush.msrb.mxu0 %v5182_v37  ;;  %733 = vmatpush.msra.mxu1 %v5184_v28  ;;  %v5214_v37 = vld [vmem:[#allocation5 + $0xd8] sm:$0xff]  ;;  %v5218_v28 = vld [vmem:[#allocation5 + $0xa0] sm:$0xff] }
  0xd9   :  { %8833 = vst [vmem:[#allocation122_spill] sm:$0xff] %v5194_v58  ;;  %753 = vmatpush.msra.mxu2 %v5188_v60  ;;  %773 = vmatpush.msra.mxu3 %v5190_v1  ;;  %v5220_v60 = vld [vmem:[#allocation5 + $0xa8] sm:$0xff]  ;;  %v5224_v1 = vld [vmem:[#allocation5 + $0xb0] sm:$0xff] }
  0xda   :  { %8834 = vst [vmem:[#allocation123_spill] sm:$0xff] %v5196_v6  ;;  %714 = vmatpush.msrb.mxu0 %v5194_v58  ;;  %734 = vmatpush.msra.mxu1 %v5196_v6  ;;  %v5226_v58 = vld [vmem:[#allocation5 + $0xb8] sm:$0xff]  ;;  %v5230_v6 = vld [vmem:[#allocation5 + $0x80] sm:$0xff] }
  0xdb   :  { %8835 = vst [vmem:[#allocation124_spill] sm:$0xff] %v5200_v63  ;;  %754 = vmatpush.msra.mxu2 %v5200_v63  ;;  %774 = vmatpush.msra.mxu3 %v5202_v9  ;;  %v5232_v63 = vld [vmem:[#allocation5 + $0x88] sm:$0xff] }
  0xdc   :  { %8836 = vst [vmem:[#allocation125_spill] sm:$0xff] %v5202_v9  ;;  %715 = vmatpush.msrb.mxu0 %v5206_v0  ;;  %735 = vmatpush.msra.mxu1 %v5208_v57  ;;  %v5236_v9 = vld [vmem:[#allocation5 + $0x90] sm:$0xff] }
  0xdd   :  { %8837 = vst [vmem:[#allocation126_spill] sm:$0xff] %v5206_v0  ;;  %755 = vmatpush.msra.mxu2 %v5212_v54  ;;  %775 = vmatpush.msra.mxu3 %v5214_v37  ;;  %v5238_v0 = vld [vmem:[#allocation5 + $0x98] sm:$0xff] }
  0xde   :  { %8838 = vst [vmem:[#allocation127_spill] sm:$0xff] %v5208_v57  ;;  %716 = vmatpush.msrb.mxu0 %v5218_v28  ;;  %736 = vmatpush.msra.mxu1 %v5220_v60  ;;  %v5242_v57 = vld [vmem:[#allocation5 + $0x60] sm:$0xff] }
  0xdf   :  { %8839 = vst [vmem:[#allocation128_spill] sm:$0xff] %v5212_v54  ;;  %756 = vmatpush.msra.mxu2 %v5224_v1  ;;  %776 = vmatpush.msra.mxu3 %v5226_v58  ;;  %v5244_v54 = vld [vmem:[#allocation5 + $0x68] sm:$0xff] }
  0xe0   :  { %8840 = vst [vmem:[#allocation129_spill] sm:$0xff] %v5214_v37  ;;  %717 = vmatpush.msrb.mxu0 %v5230_v6  ;;  %737 = vmatpush.msra.mxu1 %v5232_v63  ;;  %v5248_v37 = vld [vmem:[#allocation5 + $0x70] sm:$0xff] }
  0xe1   :  { %8841 = vst [vmem:[#allocation130_spill] sm:$0xff] %v5218_v28  ;;  %v5250_v28 = vld [vmem:[#allocation5 + $0x78] sm:$0xff]  ;;  %757 = vmatpush.msra.mxu2 %v5236_v9  ;;  %777 = vmatpush.msra.mxu3 %v5238_v0 }
  0xe2   :  { %8842 = vst [vmem:[#allocation131_spill] sm:$0xff] %v5220_v60  ;;  %v5254_v60 = vld [vmem:[#allocation5 + $0x40] sm:$0xff]  ;;  %718 = vmatpush.msrb.mxu0 %v5242_v57  ;;  %738 = vmatpush.msra.mxu1 %v5244_v54 }
  0xe3   :  { %8843 = vst [vmem:[#allocation132_spill] sm:$0xff] %v5224_v1  ;;  %v5256_v1 = vld [vmem:[#allocation5 + $0x48] sm:$0xff]  ;;  %758 = vmatpush.msra.mxu2 %v5248_v37  ;;  %778 = vmatpush.msra.mxu3 %v5250_v28 }
  0xe4   :  { %8844 = vst [vmem:[#allocation133_spill] sm:$0xff] %v5226_v58  ;;  %v5260_v58 = vld [vmem:[#allocation5 + $0x50] sm:$0xff]  ;;  %719 = vmatpush.msrb.mxu0 %v5254_v60  ;;  %739 = vmatpush.msra.mxu1 %v5256_v1 }
  0xe5   :  { %8845 = vst [vmem:[#allocation134_spill] sm:$0xff] %v5230_v6  ;;  %v5262_v6 = vld [vmem:[#allocation5 + $0x58] sm:$0xff]  ;;  %759 = vmatpush.msra.mxu2 %v5260_v58 }
  0xe6   :  { %8846 = vst [vmem:[#allocation135_spill] sm:$0xff] %v5232_v63  ;;  %v5266_v63 = vld [vmem:[#allocation5 + $0x20] sm:$0xff]  ;;  %779 = vmatpush.msra.mxu3 %v5262_v6 }
  0xe7   :  { %8847 = vst [vmem:[#allocation136_spill] sm:$0xff] %v5236_v9  ;;  %v5268_v9 = vld [vmem:[#allocation5 + $0x28] sm:$0xff]  ;;  %720 = vmatpush.msrb.mxu0 %v5266_v63 }
  0xe8   :  { %8848 = vst [vmem:[#allocation137_spill] sm:$0xff] %v5238_v0  ;;  %v5272_v0 = vld [vmem:[#allocation5 + $0x30] sm:$0xff]  ;;  %740 = vmatpush.msra.mxu1 %v5268_v9 }
  0xe9   :  { %8849 = vst [vmem:[#allocation138_spill] sm:$0xff] %v5242_v57  ;;  %v5274_v57 = vld [vmem:[#allocation5 + $0x38] sm:$0xff]  ;;  %760 = vmatpush.msra.mxu2 %v5272_v0 }
  0xea   :  { %8850 = vst [vmem:[#allocation139_spill] sm:$0xff] %v5244_v54  ;;  %v5278_v54 = vld [vmem:[#allocation5] sm:$0xff]  ;;  %780 = vmatpush.msra.mxu3 %v5274_v57 }
  0xeb   :  { %8851 = vst [vmem:[#allocation140_spill] sm:$0xff] %v5248_v37  ;;  %v5280_v37 = vld [vmem:[#allocation5 + $0x8] sm:$0xff]  ;;  %721 = vmatpush.msrb.mxu0 %v5278_v54 }
  0xec   :  { %8852 = vst [vmem:[#allocation141_spill] sm:$0xff] %v5250_v28  ;;  %v5284_v28 = vld [vmem:[#allocation5 + $0x10] sm:$0xff]  ;;  %741 = vmatpush.msra.mxu1 %v5280_v37 }
  0xed   :  { %8853 = vst [vmem:[#allocation142_spill] sm:$0xff] %v5254_v60  ;;  %v5286_v60 = vld [vmem:[#allocation5 + $0x18] sm:$0xff]  ;;  %761 = vmatpush.msra.mxu2 %v5284_v28 }
  0xee   :  { %8854 = vst [vmem:[#allocation143_spill] sm:$0xff] %v5262_v6  ;;  %781 = vmatpush.msra.mxu3 %v5286_v60  ;;  %v4508_v6 = vmov 0.0  }
  0xef   :  { %8855 = vst [vmem:[#allocation144_spill] sm:$0xff] %v5268_v9  ;;  %722 = vmatmul.f32.vlgmr.msrb.gmra.mxu0 %v4508_v6  ;;  %742 = vmatmul.f32.vlgmr.msra.gmra.mxu1 %v4508_v6  ;;  %v5294_v9 = vld [vmem:[#allocation2 + $0x3c0] sm:$0xff] }
  0xf0   :  { %8856 = vst [vmem:[#allocation145_spill] sm:$0xff] %v5272_v0  ;;  %762 = vmatmul.f32.vlgmr.msra.gmra.mxu2 %v4508_v6  ;;  %782 = vmatmul.f32.vlgmr.msra.gmra.mxu3 %v4508_v6  ;;  %v5297_v0 = vld [vmem:[#allocation2 + $0x3c8] sm:$0xff]  ;;  %v8894_v6 = vld [vmem:[#allocation46_spill] sm:$0xff] }
  0xf1   :  { %8857 = vst [vmem:[#allocation146_spill] sm:$0xff] %v5280_v37  ;;  %933 = vmatpush.msra.mxu0 %v5294_v9  ;;  %953 = vmatpush.msrb.mxu1 %v5297_v0  ;;  %v5301_v37 = vld [vmem:[#allocation2 + $0x3d8] sm:$0xff] }
  0xf2   :  { %8858 = vst [vmem:[#allocation147_spill] sm:$0xff] %v5286_v60  ;;  %973 = vmatpush.msrb.mxu2 %v4602_v11  ;;  %993 = vmatpush.msrb.mxu3 %v5301_v37  ;;  %v5304_v60 = vld [vmem:[#allocation2 + $0x380] sm:$0xff]  ;;  %v5336_v11 = vpop.f32.mrf.mxu1 }
  0xf3   :  { %934 = vmatpush.msra.mxu0 %v5304_v60  ;;  %954 = vmatpush.msrb.mxu1 %v4606_v13  ;;  %v8859_v13 = vld [vmem:[#allocation11_spill] sm:$0xff] }
  0xf4   :  { %974 = vmatpush.msrb.mxu2 %v4611_v15  ;;  %994 = vmatpush.msrb.mxu3 %v4608_v14  ;;  %v8860_v14 = vld [vmem:[#allocation12_spill] sm:$0xff]  ;;  %v8861_v15 = vld [vmem:[#allocation13_spill] sm:$0xff] }
  0xf5   :  { %935 = vmatpush.msra.mxu0 %v4613_v16  ;;  %955 = vmatpush.msrb.mxu1 %v4618_v17  ;;  %v8862_v16 = vld [vmem:[#allocation14_spill] sm:$0xff]  ;;  %v5352_v17 = vpop.f32.mrf.mxu3 }
  0xf6   :  { %975 = vmatpush.msrb.mxu2 %v4620_v18  ;;  %995 = vmatpush.msrb.mxu3 %v4624_v19  ;;  %v8863_v18 = vld [vmem:[#allocation15_spill] sm:$0xff]  ;;  %v8864_v19 = vld [vmem:[#allocation16_spill] sm:$0xff] }
  0xf7   :  { %936 = vmatpush.msra.mxu0 %v4626_v20  ;;  %956 = vmatpush.msrb.mxu1 %v4630_v21  ;;  %v8865_v20 = vld [vmem:[#allocation17_spill] sm:$0xff]  ;;  %v8866_v21 = vld [vmem:[#allocation18_spill] sm:$0xff] }
  0xf8   :  { %976 = vmatpush.msrb.mxu2 %v4634_v22  ;;  %996 = vmatpush.msrb.mxu3 %v4636_v23  ;;  %v8867_v22 = vld [vmem:[#allocation19_spill] sm:$0xff]  ;;  %v8868_v23 = vld [vmem:[#allocation20_spill] sm:$0xff] }
  0xf9   :  { %937 = vmatpush.msra.mxu0 %v4640_v24  ;;  %957 = vmatpush.msrb.mxu1 %v4642_v25  ;;  %v8869_v25 = vld [vmem:[#allocation21_spill] sm:$0xff] }
  0xfa   :  { %977 = vmatpush.msrb.mxu2 %v4646_v26  ;;  %997 = vmatpush.msrb.mxu3 %v4648_v27  ;;  %v5360_v24 = vpop.f32.mrf.mxu1  ;;  %v8870_v26 = vld [vmem:[#allocation22_spill] sm:$0xff]  ;;  %v8871_v27 = vld [vmem:[#allocation23_spill] sm:$0xff] }
  0xfb   :  { %938 = vmatpush.msra.mxu0 %v4663_v29  ;;  %958 = vmatpush.msrb.mxu1 %v4665_v30  ;;  %v8872_v29 = vld [vmem:[#allocation24_spill] sm:$0xff]  ;;  %v8873_v30 = vld [vmem:[#allocation25_spill] sm:$0xff] }
  0xfc   :  { %978 = vmatpush.msrb.mxu2 %v4667_v31  ;;  %998 = vmatpush.msrb.mxu3 %v4671_v32  ;;  %v8874_v31 = vld [vmem:[#allocation26_spill] sm:$0xff]  ;;  %v8875_v32 = vld [vmem:[#allocation27_spill] sm:$0xff] }
  0xfd   :  { %939 = vmatpush.msra.mxu0 %v4675_v33  ;;  %959 = vmatpush.msrb.mxu1 %v4677_v34  ;;  %v8876_v33 = vld [vmem:[#allocation28_spill] sm:$0xff]  ;;  %v8877_v34 = vld [vmem:[#allocation29_spill] sm:$0xff] }
  0xfe   :  { %979 = vmatpush.msrb.mxu2 %v4679_v35  ;;  %999 = vmatpush.msrb.mxu3 %v4683_v36  ;;  %v8878_v35 = vld [vmem:[#allocation30_spill] sm:$0xff]  ;;  %v8879_v36 = vld [vmem:[#allocation31_spill] sm:$0xff] }
  0xff   :  { %940 = vmatpush.msra.mxu0 %v4692_v38  ;;  %960 = vmatpush.msrb.mxu1 %v4694_v39  ;;  %v8880_v38 = vld [vmem:[#allocation32_spill] sm:$0xff]  ;;  %v8881_v39 = vld [vmem:[#allocation33_spill] sm:$0xff] }
 0x100   :  { %980 = vmatpush.msrb.mxu2 %v4700_v40  ;;  %1000 = vmatpush.msrb.mxu3 %v4702_v41  ;;  %v8882_v40 = vld [vmem:[#allocation34_spill] sm:$0xff]  ;;  %v5376_v41 = vpop.f32.mrf.mxu2 }
 0x101   :  { %941 = vmatpush.msra.mxu0 %v4707_v42  ;;  %961 = vmatpush.msrb.mxu1 %v4709_v43  ;;  %v5378_v42 = vpop.f32.mrf.mxu3  ;;  %v8883_v43 = vld [vmem:[#allocation35_spill] sm:$0xff] }
 0x102   :  { %981 = vmatpush.msrb.mxu2 %v4711_v44  ;;  %1001 = vmatpush.msrb.mxu3 %v4715_v45  ;;  %v8884_v44 = vld [vmem:[#allocation36_spill] sm:$0xff]  ;;  %v8885_v45 = vld [vmem:[#allocation37_spill] sm:$0xff] }
 0x103   :  { %942 = vmatpush.msra.mxu0 %v4721_v46  ;;  %962 = vmatpush.msrb.mxu1 %v4723_v47  ;;  %v8886_v46 = vld [vmem:[#allocation38_spill] sm:$0xff]  ;;  %v8887_v47 = vld [vmem:[#allocation39_spill] sm:$0xff] }
 0x104   :  { %982 = vmatpush.msrb.mxu2 %v4725_v48  ;;  %1002 = vmatpush.msrb.mxu3 %v4729_v49  ;;  %v8888_v48 = vld [vmem:[#allocation41_spill] sm:$0xff]  ;;  %v5386_v49 = vpop.f32.mrf.mxu1 }
 0x105   :  { %943 = vmatpush.msra.mxu0 %v4733_v50  ;;  %963 = vmatpush.msrb.mxu1 %v4735_v51  ;;  %8889 = vst [vmem:[#allocation11_spill] sm:$0xff] %v5386_v49  ;;  %v8890_v50 = vld [vmem:[#allocation42_spill] sm:$0xff]  ;;  %v8891_v51 = vld [vmem:[#allocation43_spill] sm:$0xff] }
 0x106   :  { %983 = vmatpush.msrb.mxu2 %v4737_v52  ;;  %1003 = vmatpush.msrb.mxu3 %v4741_v53  ;;  %v8892_v52 = vld [vmem:[#allocation44_spill] sm:$0xff]  ;;  %v8893_v53 = vld [vmem:[#allocation45_spill] sm:$0xff] }
 0x107   :  { %944 = vmatpush.msra.mxu0 %v8859_v13  ;;  %964 = vmatpush.msrb.mxu1 %v8860_v14  ;;  %v8895_v13 = vld [vmem:[#allocation47_spill] sm:$0xff]  ;;  %v8896_v14 = vld [vmem:[#allocation49_spill] sm:$0xff] }
 0x108   :  { %984 = vmatpush.msrb.mxu2 %v8861_v15  ;;  %1004 = vmatpush.msrb.mxu3 %v8862_v16  ;;  %v8897_v15 = vld [vmem:[#allocation50_spill] sm:$0xff]  ;;  %v8898_v16 = vld [vmem:[#allocation51_spill] sm:$0xff] }
 0x109   :  { %945 = vmatpush.msra.mxu0 %v8863_v18  ;;  %965 = vmatpush.msrb.mxu1 %v8864_v19  ;;  %v8899_v18 = vld [vmem:[#allocation52_spill] sm:$0xff]  ;;  %v8900_v19 = vld [vmem:[#allocation53_spill] sm:$0xff] }
 0x10a   :  { %985 = vmatpush.msrb.mxu2 %v8865_v20  ;;  %1005 = vmatpush.msrb.mxu3 %v8866_v21  ;;  %v8901_v20 = vld [vmem:[#allocation54_spill] sm:$0xff]  ;;  %v8902_v21 = vld [vmem:[#allocation55_spill] sm:$0xff] }
 0x10b   :  { %946 = vmatpush.msra.mxu0 %v8867_v22  ;;  %966 = vmatpush.msrb.mxu1 %v8868_v23  ;;  %v8903_v22 = vld [vmem:[#allocation57_spill] sm:$0xff]  ;;  %v5402_v23 = vpop.f32.mrf.mxu2  ;;  %v5778_v49 = vld [vmem:[#allocation2 + $0x88] sm:$0xff] }
 0x10c   :  { %986 = vmatpush.msrb.mxu2 %v8869_v25  ;;  %1006 = vmatpush.msrb.mxu3 %v8870_v26  ;;  %v5404_v25 = vpop.f32.mrf.mxu3  ;;  %v8905_v26 = vld [vmem:[#allocation58_spill] sm:$0xff]  ;;  %9036 = vst [vmem:[#allocation54_spill] sm:$0xff] %v5778_v49 }
 0x10d   :  { %947 = vmatpush.msra.mxu0 %v8871_v27  ;;  %967 = vmatpush.msrb.mxu1 %v8872_v29  ;;  %8904 = vst [vmem:[#allocation12_spill] sm:$0xff] %v5404_v25  ;;  %v8906_v27 = vld [vmem:[#allocation60_spill] sm:$0xff]  ;;  %v8907_v29 = vld [vmem:[#allocation61_spill] sm:$0xff] }
 0x10e   :  { %987 = vmatpush.msrb.mxu2 %v8873_v30  ;;  %1007 = vmatpush.msrb.mxu3 %v8874_v31  ;;  %v8908_v30 = vld [vmem:[#allocation62_spill] sm:$0xff]  ;;  %v8909_v31 = vld [vmem:[#allocation63_spill] sm:$0xff] }
 0x10f   :  { %948 = vmatpush.msra.mxu0 %v8875_v32  ;;  %968 = vmatpush.msrb.mxu1 %v8876_v33  ;;  %v8910_v32 = vld [vmem:[#allocation64_spill] sm:$0xff]  ;;  %v142_v33 = vpop.f32.mrf.mxu0 }
 0x110   :  { %988 = vmatpush.msrb.mxu2 %v8877_v34  ;;  %1008 = vmatpush.msrb.mxu3 %v8878_v35  ;;  %v5412_v34 = vpop.f32.mrf.mxu1  ;;  %v8912_v35 = vld [vmem:[#allocation65_spill] sm:$0xff] }
 0x111   :  { %1013 = vmatpush.msrb.mxu0 %v8879_v36  ;;  %1033 = vmatpush.msra.mxu1 %v8880_v38  ;;  %8911 = vst [vmem:[#allocation13_spill] sm:$0xff] %v5412_v34  ;;  %v8913_v36 = vld [vmem:[#allocation66_spill] sm:$0xff]  ;;  %v8914_v38 = vld [vmem:[#allocation68_spill] sm:$0xff] }
 0x112   :  { %1053 = vmatpush.msra.mxu2 %v8881_v39  ;;  %1073 = vmatpush.msra.mxu3 %v8882_v40  ;;  %v8915_v39 = vld [vmem:[#allocation69_spill] sm:$0xff]  ;;  %v8916_v40 = vld [vmem:[#allocation70_spill] sm:$0xff] }
 0x113   :  { %1014 = vmatpush.msrb.mxu0 %v8883_v43  ;;  %1034 = vmatpush.msra.mxu1 %v8884_v44  ;;  %v8917_v43 = vld [vmem:[#allocation71_spill] sm:$0xff]  ;;  %v8918_v44 = vld [vmem:[#allocation72_spill] sm:$0xff] }
 0x114   :  { %1054 = vmatpush.msra.mxu2 %v8885_v45  ;;  %1074 = vmatpush.msra.mxu3 %v8886_v46  ;;  %v8919_v45 = vld [vmem:[#allocation74_spill] sm:$0xff]  ;;  %v8920_v46 = vld [vmem:[#allocation75_spill] sm:$0xff] }
 0x115   :  { %1015 = vmatpush.msrb.mxu0 %v8887_v47  ;;  %1035 = vmatpush.msra.mxu1 %v8888_v48  ;;  %v8921_v47 = vld [vmem:[#allocation76_spill] sm:$0xff]  ;;  %v8922_v48 = vld [vmem:[#allocation77_spill] sm:$0xff] }
 0x116   :  { %1055 = vmatpush.msra.mxu2 %v8890_v50  ;;  %1075 = vmatpush.msra.mxu3 %v8891_v51  ;;  %v8923_v50 = vld [vmem:[#allocation78_spill] sm:$0xff]  ;;  %v8924_v51 = vld [vmem:[#allocation79_spill] sm:$0xff] }
 0x117   :  { %1016 = vmatpush.msrb.mxu0 %v8892_v52  ;;  %1036 = vmatpush.msra.mxu1 %v8893_v53  ;;  %v8925_v52 = vld [vmem:[#allocation80_spill] sm:$0xff]  ;;  %v5428_v53 = vpop.f32.mrf.mxu2 }
 0x118   :  { %1056 = vmatpush.msra.mxu2 %v8894_v6  ;;  %1076 = vmatpush.msra.mxu3 %v8895_v13  ;;  %8926 = vst [vmem:[#allocation14_spill] sm:$0xff] %v5428_v53  ;;  %v5430_v6 = vpop.f32.mrf.mxu3  ;;  %v8928_v13 = vld [vmem:[#allocation81_spill] sm:$0xff] }
 0x119   :  { %1017 = vmatpush.msrb.mxu0 %v8896_v14  ;;  %1037 = vmatpush.msra.mxu1 %v8897_v15  ;;  %8927 = vst [vmem:[#allocation15_spill] sm:$0xff] %v5430_v6  ;;  %v8929_v14 = vld [vmem:[#allocation82_spill] sm:$0xff]  ;;  %v8930_v15 = vld [vmem:[#allocation83_spill] sm:$0xff] }
 0x11a   :  { %1057 = vmatpush.msra.mxu2 %v8898_v16  ;;  %1077 = vmatpush.msra.mxu3 %v8899_v18  ;;  %v8931_v16 = vld [vmem:[#allocation84_spill] sm:$0xff]  ;;  %v8932_v18 = vld [vmem:[#allocation85_spill] sm:$0xff] }
 0x11b   :  { %1018 = vmatpush.msrb.mxu0 %v8900_v19  ;;  %1038 = vmatpush.msra.mxu1 %v8901_v20  ;;  %v8933_v19 = vld [vmem:[#allocation86_spill] sm:$0xff]  ;;  %v5438_v20 = vpop.f32.mrf.mxu0 }
 0x11c   :  { %1058 = vmatpush.msra.mxu2 %v8902_v21  ;;  %1078 = vmatpush.msra.mxu3 %v8903_v22  ;;  %v5440_v21 = vpop.f32.mrf.mxu1  ;;  %v8935_v22 = vld [vmem:[#allocation87_spill] sm:$0xff] }
 0x11d   :  { %1019 = vmatpush.msrb.mxu0 %v8905_v26  ;;  %1039 = vmatpush.msra.mxu1 %v8906_v27  ;;  %8934 = vst [vmem:[#allocation16_spill] sm:$0xff] %v5440_v21  ;;  %v8936_v26 = vld [vmem:[#allocation89_spill] sm:$0xff]  ;;  %v8937_v27 = vld [vmem:[#allocation90_spill] sm:$0xff] }
 0x11e   :  { %1059 = vmatpush.msra.mxu2 %v8907_v29  ;;  %1079 = vmatpush.msra.mxu3 %v8908_v30  ;;  %v8938_v29 = vld [vmem:[#allocation91_spill] sm:$0xff]  ;;  %v8939_v30 = vld [vmem:[#allocation92_spill] sm:$0xff] }
 0x11f   :  { %1020 = vmatpush.msrb.mxu0 %v8909_v31  ;;  %1040 = vmatpush.msra.mxu1 %v8910_v32  ;;  %v8940_v31 = vld [vmem:[#allocation93_spill] sm:$0xff]  ;;  %v8941_v32 = vld [vmem:[#allocation94_spill] sm:$0xff] }
 0x120   :  { %1060 = vmatpush.msra.mxu2 %v8912_v35  ;;  %1080 = vmatpush.msra.mxu3 %v8913_v36  ;;  %v8942_v35 = vld [vmem:[#allocation95_spill] sm:$0xff]  ;;  %v8943_v36 = vld [vmem:[#allocation96_spill] sm:$0xff] }
 0x121   :  { %1021 = vmatpush.msrb.mxu0 %v8914_v38  ;;  %1041 = vmatpush.msra.mxu1 %v8915_v39  ;;  %v8944_v38 = vld [vmem:[#allocation97_spill] sm:$0xff]  ;;  %v8945_v39 = vld [vmem:[#allocation98_spill] sm:$0xff] }
 0x122   :  { %1061 = vmatpush.msra.mxu2 %v8916_v40  ;;  %1081 = vmatpush.msra.mxu3 %v8917_v43  ;;  %v8946_v40 = vld [vmem:[#allocation99_spill] sm:$0xff]  ;;  %v8947_v43 = vld [vmem:[#allocation100_spill] sm:$0xff] }
 0x123   :  { %1022 = vmatpush.msrb.mxu0 %v8918_v44  ;;  %1042 = vmatpush.msra.mxu1 %v8919_v45  ;;  %v8948_v44 = vld [vmem:[#allocation101_spill] sm:$0xff]  ;;  %v5456_v45 = vpop.f32.mrf.mxu2 }
 0x124   :  { %1062 = vmatpush.msra.mxu2 %v8920_v46  ;;  %1082 = vmatpush.msra.mxu3 %v8921_v47  ;;  %8949 = vst [vmem:[#allocation17_spill] sm:$0xff] %v5456_v45  ;;  %v5458_v46 = vpop.f32.mrf.mxu3  ;;  %v5460_v47 = vpop.f32.mrf.mxu0 }
 0x125   :  { %1023 = vmatpush.msrb.mxu0 %v8922_v48  ;;  %1043 = vmatpush.msra.mxu1 %v8923_v50  ;;  %8950 = vst [vmem:[#allocation18_spill] sm:$0xff] %v5458_v46  ;;  %v5462_v48 = vpop.f32.mrf.mxu1 }
 0x126   :  { %1063 = vmatpush.msra.mxu2 %v8924_v51  ;;  %1083 = vmatpush.msra.mxu3 %v8925_v52  ;;  %8951 = vst [vmem:[#allocation19_spill] sm:$0xff] %v5460_v47 }
 0x127   :  { %1024 = vmatpush.msrb.mxu0 %v8928_v13  ;;  %1044 = vmatpush.msra.mxu1 %v8929_v14  ;;  %8952 = vst [vmem:[#allocation20_spill] sm:$0xff] %v5462_v48 }
 0x128   :  { %1064 = vmatpush.msra.mxu2 %v8930_v15  ;;  %1084 = vmatpush.msra.mxu3 %v8931_v16 }
 0x129   :  { %1025 = vmatpush.msrb.mxu0 %v8932_v18  ;;  %1045 = vmatpush.msra.mxu1 %v8933_v19 }
 0x12a   :  { %1065 = vmatpush.msra.mxu2 %v8935_v22  ;;  %1085 = vmatpush.msra.mxu3 %v8936_v26  ;;  %v8960_v26 = vld [vmem:[#allocation56_spill] sm:$0xff] }
 0x12b   :  { %1026 = vmatpush.msrb.mxu0 %v8937_v27  ;;  %1046 = vmatpush.msra.mxu1 %v8938_v29  ;;  %v5464_v50 = vpop.f32.mrf.mxu2  ;;  %v184_v27 = vadd.f32 %v5336_v11, %v8960_v26  ;;  %v8961_v29 = vld [vmem:[#allocation40_spill] sm:$0xff] }
 0x12c   :  { %1066 = vmatpush.msra.mxu2 %v8939_v30  ;;  %1086 = vmatpush.msra.mxu3 %v8940_v31  ;;  %8953 = vst [vmem:[#allocation21_spill] sm:$0xff] %v5464_v50  ;;  %v5466_v51 = vpop.f32.mrf.mxu3  ;;  %v5468_v52 = vpop.f32.mrf.mxu0  ;;  %v143_v30 = vadd.f32 %v142_v33, %v8961_v29 }
 0x12d   :  { %1027 = vmatpush.msrb.mxu0 %v8941_v32  ;;  %1047 = vmatpush.msra.mxu1 %v8942_v35  ;;  %8954 = vst [vmem:[#allocation22_spill] sm:$0xff] %v5466_v51  ;;  %v5470_v13 = vpop.f32.mrf.mxu1 }
 0x12e   :  { %1067 = vmatpush.msra.mxu2 %v8943_v36  ;;  %1087 = vmatpush.msra.mxu3 %v8944_v38  ;;  %8955 = vst [vmem:[#allocation23_spill] sm:$0xff] %v5468_v52 }
 0x12f   :  { %1028 = vmatpush.msrb.mxu0 %v8945_v39  ;;  %1048 = vmatpush.msra.mxu1 %v8946_v40  ;;  %8956 = vst [vmem:[#allocation24_spill] sm:$0xff] %v5470_v13  ;;  %v8962_v40 = vld [vmem:[#allocation67_spill] sm:$0xff] }
 0x130   :  { %1068 = vmatpush.msra.mxu2 %v8947_v43  ;;  %1088 = vmatpush.msra.mxu3 %v8948_v44  ;;  %v266_v43 = vadd.f32 %v5352_v17, %v8962_v40 }
 0x133   :  { %v5472_v14 = vpop.f32.mrf.mxu2 }
 0x134   :  { %8957 = vst [vmem:[#allocation25_spill] sm:$0xff] %v5472_v14  ;;  %v5474_v15 = vpop.f32.mrf.mxu3 }
 0x135   :  { %8958 = vst [vmem:[#allocation26_spill] sm:$0xff] %v5474_v15 }
 0x13b   :  { %v5476_v19 = vpop.f32.mrf.mxu2 }
 0x13c   :  { %8959 = vst [vmem:[#allocation27_spill] sm:$0xff] %v5476_v19 }
 0x143   :  { %v563_v16 = vpop.f32.mrf.mxu0  ;;  %v583_v18 = vpop.f32.mrf.mxu1 }
 0x14a   :  { %v5478_v22 = vpop.f32.mrf.mxu3  ;;  %v5485_v44 = vpop.f32.mrf.mxu2 }
 0x14d   :  { %v643_v31 = vpop.f32.mrf.mxu0  ;;  %v663_v32 = vpop.f32.mrf.mxu1 }
 0x14e   :  { %v866_v35 = vadd.f32 %v643_v31, %v143_v30  ;;  %v867_v36 = vadd.f32 %v663_v32, %v184_v27  ;;  %v8963_v31 = vld [vmem:[#allocation88_spill] sm:$0xff] }
 0x14f   :  { %v225_v32 = vadd.f32 %v5376_v41, %v8963_v31 }
 0x150   :  { %v3534_v38 = vmul.f32 -1.442695, %v866_v35  ;;  %v3535_v39 = vmul.f32 -1.442695, %v867_v36 }
 0x152   :  { %3604 = vpow2.f32 %v3534_v38 }
 0x153   :  { %3606 = vpow2.f32 %v3535_v39 }
 0x154   :  { %v703_v19 = vpop.f32.mrf.mxu3  ;;  %v683_v27 = vpop.f32.mrf.mxu2 }
 0x155   :  { %v869_v15 = vadd.f32 %v703_v19, %v266_v43  ;;  %v868_v36 = vadd.f32 %v683_v27, %v225_v32 }
 0x157   :  { %v3536_v13 = vmul.f32 -1.442695, %v869_v15  ;;  %v5494_v15 = vld [vmem:[%s8228_s5] sm:$0xf] }
 0x158   :  { %v3605_v14 = vpop.eup %3604  ;;  %v5498_v39 = vperm.slane %v5494_v15, 0  ;;  %v5501_v32 = vperm.slane %v5494_v15, 1 }
 0x159   :  { %v3607_v11 = vpop.eup %3606  ;;  %v879_v51 = vadd.f32 1.0, %v3605_v14  ;;  %3608 = vpow2.f32 %v3536_v13 }
 0x15a   :  { %v880_v33 = vadd.f32 1.0, %v3607_v11  ;;  %8964 = vst [vmem:[#allocation28_spill] sm:$0xff] %v5498_v39 }
 0x15b   :  { %3610 = vrcp.f32 %v879_v51  ;;  %v891_v41 = vand.u32 2147483647, %v879_v51  ;;  %v893_v11 = vand.u32 2147483648, %v879_v51  ;;  %8965 = vst [vmem:[#allocation29_spill] sm:$0xff] %v5501_v32  ;;  %vm887_vm0 = vweird.f32 %v879_v51 }
 0x15c   :  { %3612 = vrcp.f32 %v880_v33  ;;  %v906_v50 = vand.u32 2147483647, %v880_v33  ;;  %vm902_vm1 = vweird.f32 %v880_v33 }
 0x15d   :  { %vm892_vm3 = vcmp.eq.f32.partialorder %v891_v41, 8.507059e+37 }
 0x15e   :  { %vm907_vm5 = vcmp.eq.f32.partialorder %v906_v50, 8.507059e+37 }
 0x15f   :  { %v3609_v30 = vpop.eup %3608 }
 0x160   :  { %v5489_v35 = vadd.f32 1.0, %v3609_v30  ;;  %v908_v30 = vand.u32 2147483648, %v880_v33 }
 0x161   :  { %v3611_v17 = vpop.eup %3610 }
 0x162   :  { %v3613_v19 = vpop.eup %3612  ;;  %v883_v14 = vmul.f32 %v3611_v17, %v879_v51  ;;  %3614 = vrcp.f32 %v5489_v35  ;;  %vm888_vm14 = vweird.f32 %v3611_v17  ;;  %v909_v34 = vor.u32 1.1754944e-38, %v908_v30 }
 0x163   :  { %v898_v13 = vmul.f32 %v3613_v19, %v880_v33  ;;  %3616 = vtanh.f32 %v868_v36  ;;  %vm903_vm15 = vweird.f32 %v3613_v19  ;;  %vm889_vm2 = vmor %vm887_vm0, %vm888_vm14  ;;  %v894_v36 = vor.u32 1.1754944e-38, %v893_v11 }
 0x164   :  { %v884_v38 = vsub.f32 1.0, %v883_v14  ;;  %vm904_vm4 = vmor %vm902_vm1, %vm903_vm15  ;;  %vm917_vm7 = vweird.f32 %v5489_v35 }
 0x165   :  { %v899_v43 = vsub.f32 1.0, %v898_v13 }
 0x166   :  { %v885_v27 = vmul.f32 %v3611_v17, %v884_v38 }
 0x167   :  { %v900_v48 = vmul.f32 %v3613_v19, %v899_v43 }
 0x168   :  { %v3615_v14 = vpop.eup %3614  ;;  %v886_v45 = vadd.f32 %v3611_v17, %v885_v27 }
 0x169   :  { %v901_v52 = vadd.f32 %v3613_v19, %v900_v48  ;;  %v913_v38 = vmul.f32 %v3615_v14, %v5489_v35  ;;  %v3617_v25 = vpop.eup %3616  ;;  %vm918_vm6 = vweird.f32 %v3615_v14 }
 0x16a   :  { %v890_v43 = vsel %vm889_vm2, %v3611_v17, %v886_v45  ;;  %v5509_v45 = vperm.slane %v5494_v15, 3  ;;  %vm919_vm8 = vmor %vm917_vm7, %vm918_vm6 }
 0x16b   :  { %v895_v47 = vsel %vm892_vm3, %v894_v36, %v890_v43  ;;  %v905_v33 = vsel %vm904_vm4, %v3613_v19, %v901_v52 }
 0x16c   :  { %v723_v46 = vpop.f32.mrf.mxu0  ;;  %v743_v21 = vpop.f32.mrf.mxu1  ;;  %8966 = vst [vmem:[#allocation30_spill] sm:$0xff] %v5509_v45 }
 0x16d   :  { %v786_v6 = vadd.f32 %v723_v46, %v563_v16  ;;  %v787_v13 = vadd.f32 %v743_v21, %v583_v18  ;;  %v914_v46 = vsub.f32 1.0, %v913_v38  ;;  %v910_v21 = vsel %vm907_vm5, %v909_v34, %v905_v33 }
 0x16e   :  { %v929_v16 = vmul.f32 %v3617_v25, %v895_v47  ;;  %v928_v48 = vmul.f32 %v910_v21, %v5096_v56  ;;  %v923_v25 = vand.u32 2147483648, %v5489_v35  ;;  %v921_v56 = vand.u32 2147483647, %v5489_v35 }
 0x16f   :  { %v799_v51 = vadd.f32 %v5498_v39, %v786_v6  ;;  %v800_v53 = vadd.f32 %v5501_v32, %v787_v13  ;;  %v915_v11 = vmul.f32 %v3615_v14, %v914_v46  ;;  %v5527_v33 = vperm.slane %v5494_v15, 2 }
 0x170   :  { %v5511_v6 = vadd.f32 %v929_v16, %v928_v48  ;;  %v924_v30 = vor.u32 1.1754944e-38, %v923_v25  ;;  %vm922_vm9 = vcmp.eq.f32.partialorder %v921_v56, 8.507059e+37  ;;  %v8974_v56 = vld [vmem:[#allocation106_spill] sm:$0xff] }
 0x171   :  { %v3531_v18 = vmul.f32 -1.442695, %v799_v51  ;;  %v3532_v41 = vmul.f32 -1.442695, %v800_v53  ;;  %v916_v17 = vadd.f32 %v3615_v14, %v915_v11  ;;  %8967 = vst [vmem:[#allocation31_spill] sm:$0xff] %v5527_v33  ;;  %v8997_v11 = vld [vmem:[#allocation129_spill] sm:$0xff] }
 0x173   :  { %3618 = vpow2.f32 %v3531_v18  ;;  %v783_v27 = vpop.f32.mrf.mxu3  ;;  %v920_v47 = vsel %vm919_vm8, %v3615_v14, %v916_v17  ;;  %v763_v35 = vpop.f32.mrf.mxu2 }
 0x174   :  { %3620 = vpow2.f32 %v3532_v41  ;;  %v789_v50 = vadd.f32 %v783_v27, %v5478_v22  ;;  %v925_v38 = vsel %vm922_vm9, %v924_v30, %v920_v47  ;;  %v788_v51 = vadd.f32 %v763_v35, %v5485_v44  ;;  %v8970_v41 = vld [vmem:[#allocation104_spill] sm:$0xff] }
 0x175   :  { %3622 = vtanh.f32 %v5511_v6  ;;  %v8976_v47 = vld [vmem:[#allocation108_spill] sm:$0xff] }
 0x176   :  { %v802_v34 = vadd.f32 %v5509_v45, %v789_v50 }
 0x178   :  { %v3533_v52 = vmul.f32 -1.442695, %v802_v34  ;;  %v8975_v34 = vld [vmem:[#allocation107_spill] sm:$0xff] }
 0x179   :  { %v3619_v53 = vpop.eup %3618 }
 0x17a   :  { %v3621_v19 = vpop.eup %3620  ;;  %v5519_v13 = vadd.f32 1.0, %v3619_v53  ;;  %3624 = vpow2.f32 %v3533_v52  ;;  %v8977_v52 = vld [vmem:[#allocation109_spill] sm:$0xff] }
 0x17b   :  { %v5521_v22 = vadd.f32 1.0, %v3621_v19  ;;  %v3623_v36 = vpop.eup %3622 }
 0x17c   :  { %3626 = vrcp.f32 %v5519_v13  ;;  %v932_v43 = vmul.f32 %v3623_v36, %v925_v38  ;;  %vm820_vm12 = vweird.f32 %v5519_v13  ;;  %v8979_v36 = vld [vmem:[#allocation111_spill] sm:$0xff]  ;;  %v8980_v38 = vld [vmem:[#allocation112_spill] sm:$0xff] }
 0x17d   :  { %3628 = vrcp.f32 %v5521_v22  ;;  %vm835_vm13 = vweird.f32 %v5521_v22 }
 0x17e   :  { %949 = vmatmul.f32.vlgmr.msra.gmra.mxu0 %v932_v43  ;;  %969 = vmatmul.f32.vlgmr.msrb.gmra.mxu1 %v932_v43 }
 0x17f   :  { %989 = vmatmul.f32.vlgmr.msrb.gmra.mxu2 %v932_v43  ;;  %1009 = vmatmul.f32.vlgmr.msrb.gmra.mxu3 %v932_v43 }
 0x180   :  { %v3625_v14 = vpop.eup %3624  ;;  %1093 = vmatpush.msra.mxu0 %v5102_v5  ;;  %1113 = vmatpush.msrb.mxu1 %v5104_v4  ;;  %v801_v4 = vadd.f32 %v5527_v33, %v788_v51  ;;  %v8983_v51 = vld [vmem:[#allocation115_spill] sm:$0xff] }
 0x181   :  { %v5531_v21 = vadd.f32 1.0, %v3625_v14  ;;  %1133 = vmatpush.msrb.mxu2 %v5106_v3  ;;  %1153 = vmatpush.msrb.mxu3 %v5108_v59  ;;  %v841_v59 = vand.u32 2147483648, %v5521_v22  ;;  %v8982_v14 = vld [vmem:[#allocation114_spill] sm:$0xff] }
 0x182   :  { %v3627_v46 = vpop.eup %3626  ;;  %1094 = vmatpush.msra.mxu0 %v5110_v12  ;;  %1114 = vmatpush.msrb.mxu1 %v5112_v55  ;;  %v826_v55 = vand.u32 2147483648, %v5519_v13 }
 0x183   :  { %v3629_v16 = vpop.eup %3628  ;;  %v816_v18 = vmul.f32 %v3627_v46, %v5519_v13  ;;  %3630 = vrcp.f32 %v5531_v21  ;;  %1134 = vmatpush.msrb.mxu2 %v5116_v8  ;;  %1154 = vmatpush.msrb.mxu3 %v5118_v7  ;;  %vm821_vm10 = vweird.f32 %v3627_v46  ;;  %v8968_v8 = vld [vmem:[#allocation102_spill] sm:$0xff]  ;;  %v8969_v7 = vld [vmem:[#allocation103_spill] sm:$0xff]  ;;  %v842_v17 = vor.u32 1.1754944e-38, %v841_v59  ;;  %v8988_v59 = vld [vmem:[#allocation120_spill] sm:$0xff] }
 0x184   :  { %v831_v44 = vmul.f32 %v3629_v16, %v5521_v22  ;;  %1095 = vmatpush.msra.mxu0 %v5122_v10  ;;  %1115 = vmatpush.msrb.mxu1 %v5124_v2  ;;  %v824_v10 = vand.u32 2147483647, %v5519_v13  ;;  %vm836_vm11 = vweird.f32 %v3629_v16  ;;  %v839_v2 = vand.u32 2147483647, %v5521_v22  ;;  %vm5560_vm14 = vmor %vm820_vm12, %vm821_vm10  ;;  %v8978_v22 = vld [vmem:[#allocation110_spill] sm:$0xff] }
 0x185   :  { %v817_v5 = vsub.f32 1.0, %v816_v18  ;;  %1135 = vmatpush.msrb.mxu2 %v5128_v62  ;;  %1155 = vmatpush.msrb.mxu3 %v5130_v61  ;;  %v8971_v62 = vld [vmem:[#allocation105_spill] sm:$0xff]  ;;  %3632 = vtanh.f32 %v801_v4  ;;  %v827_v25 = vor.u32 1.1754944e-38, %v826_v55  ;;  %vm837_vm15 = vmor %vm835_vm13, %vm836_vm11  ;;  %v8984_v18 = vld [vmem:[#allocation116_spill] sm:$0xff]  ;;  %vm850_vm3 = vweird.f32 %v5531_v21 }
 0x186   :  { %v832_v3 = vsub.f32 1.0, %v831_v44  ;;  %1096 = vmatpush.msra.mxu0 %v8968_v8  ;;  %1116 = vmatpush.msrb.mxu1 %v8969_v7  ;;  %vm825_vm0 = vcmp.eq.f32.partialorder %v824_v10, 8.507059e+37  ;;  %vm840_vm1 = vcmp.eq.f32.partialorder %v839_v2, 8.507059e+37  ;;  %v8985_v44 = vld [vmem:[#allocation117_spill] sm:$0xff]  ;;  %v8986_v4 = vld [vmem:[#allocation118_spill] sm:$0xff]  ;;  %v8991_v8 = vld [vmem:[#allocation123_spill] sm:$0xff] }
 0x187   :  { %v818_v12 = vmul.f32 %v3627_v46, %v817_v5  ;;  %1136 = vmatpush.msrb.mxu2 %v8970_v41  ;;  %1156 = vmatpush.msrb.mxu3 %v8971_v62  ;;  %v8990_v55 = vld [vmem:[#allocation122_spill] sm:$0xff]  ;;  %v8993_v10 = vld [vmem:[#allocation125_spill] sm:$0xff]  ;;  %v8995_v41 = vld [vmem:[#allocation127_spill] sm:$0xff] }
 0x188   :  { %v833_v15 = vmul.f32 %v3629_v16, %v832_v3  ;;  %1029 = vmatmul.f32.vlgmr.msrb.gmra.mxu0 %v932_v43  ;;  %1049 = vmatmul.f32.vlgmr.msra.gmra.mxu1 %v932_v43  ;;  %v8987_v3 = vld [vmem:[#allocation119_spill] sm:$0xff]  ;;  %v8994_v2 = vld [vmem:[#allocation126_spill] sm:$0xff] }
 0x189   :  { %v819_v61 = vadd.f32 %v3627_v46, %v818_v12  ;;  %v5556_v48 = vpop.eup %3630  ;;  %1069 = vmatmul.f32.vlgmr.msra.gmra.mxu2 %v932_v43  ;;  %1089 = vmatmul.f32.vlgmr.msra.gmra.mxu3 %v932_v43  ;;  %v8981_v43 = vld [vmem:[#allocation113_spill] sm:$0xff] }
 0x18a   :  { %v834_v27 = vadd.f32 %v3629_v16, %v833_v15  ;;  %1097 = vmatpush.msra.mxu0 %v8974_v56  ;;  %1117 = vmatpush.msrb.mxu1 %v8975_v34  ;;  %v846_v13 = vmul.f32 %v5556_v48, %v5531_v21  ;;  %v8989_v12 = vld [vmem:[#allocation121_spill] sm:$0xff]  ;;  %v8992_v15 = vld [vmem:[#allocation124_spill] sm:$0xff]  ;;  %v9002_v56 = vld [vmem:[#allocation134_spill] sm:$0xff]  ;;  %vm851_vm2 = vweird.f32 %v5556_v48 }
 0x18b   :  { %v823_v50 = vsel %vm5560_vm14, %v3627_v46, %v819_v61  ;;  %1137 = vmatpush.msrb.mxu2 %v8976_v47  ;;  %1157 = vmatpush.msrb.mxu3 %v8977_v52  ;;  %v3633_v35 = vpop.eup %3632  ;;  %v8996_v61 = vld [vmem:[#allocation128_spill] sm:$0xff]  ;;  %v9003_v34 = vld [vmem:[#allocation135_spill] sm:$0xff]  ;;  %v9005_v52 = vld [vmem:[#allocation137_spill] sm:$0xff] }
 0x18c   :  { %v838_v53 = vsel %vm837_vm15, %v3629_v16, %v834_v27  ;;  %v828_v19 = vsel %vm825_vm0, %v827_v25, %v823_v50  ;;  %1098 = vmatpush.msra.mxu0 %v8978_v22  ;;  %1118 = vmatpush.msrb.mxu1 %v8979_v36  ;;  %v847_v5 = vsub.f32 1.0, %v846_v13  ;;  %v8998_v27 = vld [vmem:[#allocation130_spill] sm:$0xff]  ;;  %v9000_v50 = vld [vmem:[#allocation132_spill] sm:$0xff]  ;;  %v9001_v25 = vld [vmem:[#allocation133_spill] sm:$0xff]  ;;  %v854_v22 = vand.u32 2147483647, %v5531_v21 }
 0x18d   :  { %v843_v30 = vsel %vm840_vm1, %v842_v17, %v838_v53  ;;  %1138 = vmatpush.msrb.mxu2 %v8980_v38  ;;  %1158 = vmatpush.msrb.mxu3 %v8981_v43  ;;  %v862_v16 = vmul.f32 %v3633_v35, %v828_v19  ;;  %v8999_v17 = vld [vmem:[#allocation131_spill] sm:$0xff]  ;;  %v9004_v47 = vld [vmem:[#allocation136_spill] sm:$0xff]  ;;  %v856_v19 = vand.u32 2147483648, %v5531_v21  ;;  %v9009_v38 = vld [vmem:[#allocation141_spill] sm:$0xff] }
 0x18e   :  { %1099 = vmatpush.msra.mxu0 %v8982_v14  ;;  %1119 = vmatpush.msrb.mxu1 %v8983_v51  ;;  %v861_v46 = vmul.f32 0.0, %v843_v30  ;;  %v848_v62 = vmul.f32 %v5556_v48, %v847_v5  ;;  %v9006_v30 = vld [vmem:[#allocation138_spill] sm:$0xff]  ;;  %v9007_v13 = vld [vmem:[#allocation139_spill] sm:$0xff]  ;;  %v9008_v36 = vld [vmem:[#allocation140_spill] sm:$0xff]  ;;  %vm855_vm5 = vcmp.eq.f32.partialorder %v854_v22, 8.507059e+37 }
 0x18f   :  { %1139 = vmatpush.msrb.mxu2 %v8984_v18  ;;  %1159 = vmatpush.msrb.mxu3 %v8985_v44  ;;  %vm852_vm4 = vmor %vm850_vm3, %vm851_vm2  ;;  %v9010_v43 = vld [vmem:[#allocation142_spill] sm:$0xff]  ;;  %v9011_v51 = vld [vmem:[#allocation143_spill] sm:$0xff] }
 0x190   :  { %1100 = vmatpush.msra.mxu0 %v8986_v4  ;;  %1120 = vmatpush.msrb.mxu1 %v8987_v3  ;;  %v5587_v7 = vadd.f32 %v862_v16, %v861_v46  ;;  %v849_v53 = vadd.f32 %v5556_v48, %v848_v62  ;;  %v857_v46 = vor.u32 1.1754944e-38, %v856_v19  ;;  %v9012_v21 = vld [vmem:[#allocation144_spill] sm:$0xff]  ;;  %v9013_v16 = vld [vmem:[#allocation145_spill] sm:$0xff]  ;;  %v5655_v44 = vld [vmem:[#allocation2 + $0x300] sm:$0xff] }
 0x191   :  { %1140 = vmatpush.msrb.mxu2 %v8988_v59  ;;  %1160 = vmatpush.msrb.mxu3 %v8989_v12  ;;  %v5658_v5 = vld [vmem:[#allocation2 + $0x308] sm:$0xff]  ;;  %v5661_v4 = vld [vmem:[#allocation2 + $0x310] sm:$0xff]  ;;  %v5664_v3 = vld [vmem:[#allocation2 + $0x318] sm:$0xff] }
 0x192   :  { %1101 = vmatpush.msra.mxu0 %v8990_v55  ;;  %1121 = vmatpush.msrb.mxu1 %v8991_v8  ;;  %3634 = vtanh.f32 %v5587_v7  ;;  %v853_v35 = vsel %vm852_vm4, %v5556_v48, %v849_v53  ;;  %v5667_v59 = vld [vmem:[#allocation2 + $0x2c0] sm:$0xff]  ;;  %v5670_v12 = vld [vmem:[#allocation2 + $0x2c8] sm:$0xff]  ;;  %v5673_v55 = vld [vmem:[#allocation2 + $0x2d0] sm:$0xff] }
 0x193   :  { %1141 = vmatpush.msrb.mxu2 %v8992_v15  ;;  %1161 = vmatpush.msrb.mxu3 %v8993_v10  ;;  %v858_v18 = vsel %vm855_vm5, %v857_v46, %v853_v35  ;;  %v5676_v8 = vld [vmem:[#allocation2 + $0x2d8] sm:$0xff]  ;;  %v5679_v15 = vld [vmem:[#allocation2 + $0x280] sm:$0xff]  ;;  %v5682_v10 = vld [vmem:[#allocation2 + $0x288] sm:$0xff] }
 0x194   :  { %1102 = vmatpush.msra.mxu0 %v8994_v2  ;;  %1122 = vmatpush.msrb.mxu1 %v8995_v41  ;;  %v5685_v2 = vld [vmem:[#allocation2 + $0x290] sm:$0xff]  ;;  %v5688_v41 = vld [vmem:[#allocation2 + $0x298] sm:$0xff]  ;;  %v5691_v62 = vld [vmem:[#allocation2 + $0x240] sm:$0xff] }
 0x195   :  { %1142 = vmatpush.msrb.mxu2 %v8996_v61  ;;  %1162 = vmatpush.msrb.mxu3 %v8997_v11  ;;  %v5694_v61 = vld [vmem:[#allocation2 + $0x248] sm:$0xff]  ;;  %v5697_v11 = vld [vmem:[#allocation2 + $0x250] sm:$0xff]  ;;  %v5727_v19 = vld [vmem:[#allocation2 + $0x180] sm:$0xff] }
 0x196   :  { %1103 = vmatpush.msra.mxu0 %v8998_v27  ;;  %1123 = vmatpush.msrb.mxu1 %v8999_v17  ;;  %v5700_v27 = vld [vmem:[#allocation2 + $0x258] sm:$0xff]  ;;  %v5703_v17 = vld [vmem:[#allocation2 + $0x200] sm:$0xff]  ;;  %v5718_v53 = vld [vmem:[#allocation2 + $0x1c8] sm:$0xff]  ;;  %9019 = vst [vmem:[#allocation35_spill] sm:$0xff] %v5727_v19 }
 0x197   :  { %1143 = vmatpush.msrb.mxu2 %v9000_v50  ;;  %1163 = vmatpush.msrb.mxu3 %v9001_v25  ;;  %v5706_v50 = vld [vmem:[#allocation2 + $0x208] sm:$0xff]  ;;  %v5709_v25 = vld [vmem:[#allocation2 + $0x210] sm:$0xff]  ;;  %9016 = vst [vmem:[#allocation32_spill] sm:$0xff] %v5718_v53  ;;  %v5736_v22 = vld [vmem:[#allocation2 + $0x198] sm:$0xff] }
 0x198   :  { %1104 = vmatpush.msra.mxu0 %v9002_v56  ;;  %1124 = vmatpush.msrb.mxu1 %v9003_v34  ;;  %v3635_v14 = vpop.eup %3634  ;;  %v5712_v56 = vld [vmem:[#allocation2 + $0x218] sm:$0xff]  ;;  %v5715_v34 = vld [vmem:[#allocation2 + $0x1c0] sm:$0xff]  ;;  %9022 = vst [vmem:[#allocation38_spill] sm:$0xff] %v5736_v22  ;;  %v5757_v46 = vld [vmem:[#allocation2 + $0x110] sm:$0xff] }
 0x199   :  { %1144 = vmatpush.msrb.mxu2 %v9004_v47  ;;  %1164 = vmatpush.msrb.mxu3 %v9005_v52  ;;  %v865_v48 = vmul.f32 %v3635_v14, %v858_v18  ;;  %v5721_v47 = vld [vmem:[#allocation2 + $0x1d0] sm:$0xff]  ;;  %v5724_v52 = vld [vmem:[#allocation2 + $0x1d8] sm:$0xff]  ;;  %v5751_v14 = vld [vmem:[#allocation2 + $0x100] sm:$0xff]  ;;  %9029 = vst [vmem:[#allocation46_spill] sm:$0xff] %v5757_v46 }
 0x19a   :  { %1105 = vmatpush.msra.mxu0 %v9006_v30  ;;  %1125 = vmatpush.msrb.mxu1 %v9007_v13  ;;  %9017 = vst [vmem:[#allocation33_spill] sm:$0xff] %v5721_v47  ;;  %v5730_v30 = vld [vmem:[#allocation2 + $0x188] sm:$0xff]  ;;  %v5733_v13 = vld [vmem:[#allocation2 + $0x190] sm:$0xff]  ;;  %v5748_v35 = vld [vmem:[#allocation2 + $0x158] sm:$0xff] }
 0x19b   :  { %1145 = vmatpush.msrb.mxu2 %v9008_v36  ;;  %1165 = vmatpush.msrb.mxu3 %v9009_v38  ;;  %9018 = vst [vmem:[#allocation34_spill] sm:$0xff] %v5724_v52  ;;  %v5739_v36 = vld [vmem:[#allocation2 + $0x140] sm:$0xff]  ;;  %v5742_v38 = vld [vmem:[#allocation2 + $0x148] sm:$0xff] }
 0x19c   :  { %1106 = vmatpush.msra.mxu0 %v9010_v43  ;;  %1126 = vmatpush.msrb.mxu1 %v5256_v1  ;;  %v9014_v1 = vld [vmem:[#allocation146_spill] sm:$0xff]  ;;  %9020 = vst [vmem:[#allocation36_spill] sm:$0xff] %v5730_v30  ;;  %v5745_v43 = vld [vmem:[#allocation2 + $0x150] sm:$0xff]  ;;  %v5766_v18 = vld [vmem:[#allocation2 + $0xc8] sm:$0xff] }
 0x19d   :  { %1146 = vmatpush.msrb.mxu2 %v5260_v58  ;;  %1166 = vmatpush.msrb.mxu3 %v9011_v51  ;;  %v9015_v58 = vld [vmem:[#allocation147_spill] sm:$0xff]  ;;  %9021 = vst [vmem:[#allocation37_spill] sm:$0xff] %v5733_v13 }
 0x19e   :  { %1107 = vmatpush.msra.mxu0 %v5266_v63  ;;  %1127 = vmatpush.msrb.mxu1 %v9012_v21  ;;  %v5629_v63 = vld [vmem:[#allocation2 + $0x3d0] sm:$0xff]  ;;  %9023 = vst [vmem:[#allocation39_spill] sm:$0xff] %v5739_v36  ;;  %v5754_v51 = vld [vmem:[#allocation2 + $0x108] sm:$0xff]  ;;  %v5760_v21 = vld [vmem:[#allocation2 + $0x118] sm:$0xff] }
 0x19f   :  { %1147 = vmatpush.msrb.mxu2 %v9013_v16  ;;  %1167 = vmatpush.msrb.mxu3 %v5274_v57  ;;  %v5640_v57 = vld [vmem:[#allocation2 + $0x398] sm:$0xff]  ;;  %9024 = vst [vmem:[#allocation41_spill] sm:$0xff] %v5742_v38  ;;  %v5763_v16 = vld [vmem:[#allocation2 + $0xc0] sm:$0xff] }
 0x1a0   :  { %1108 = vmatpush.msra.mxu0 %v5278_v54  ;;  %1128 = vmatpush.msrb.mxu1 %v9014_v1  ;;  %v5634_v54 = vld [vmem:[#allocation2 + $0x388] sm:$0xff]  ;;  %9025 = vst [vmem:[#allocation42_spill] sm:$0xff] %v5745_v43  ;;  %v5769_v1 = vld [vmem:[#allocation2 + $0xd0] sm:$0xff] }
 0x1a1   :  { %1148 = vmatpush.msrb.mxu2 %v5284_v28  ;;  %1168 = vmatpush.msrb.mxu3 %v9015_v58  ;;  %v5637_v28 = vld [vmem:[#allocation2 + $0x390] sm:$0xff]  ;;  %9026 = vst [vmem:[#allocation43_spill] sm:$0xff] %v5748_v35  ;;  %v5775_v58 = vld [vmem:[#allocation2 + $0x80] sm:$0xff] }
 0x1a2   :  { %1109 = vmatmul.f32.vlgmr.msra.gmra.mxu0 %v865_v48  ;;  %1129 = vmatmul.f32.vlgmr.msrb.gmra.mxu1 %v865_v48  ;;  %9027 = vst [vmem:[#allocation44_spill] sm:$0xff] %v5751_v14 }
 0x1a3   :  { %1149 = vmatmul.f32.vlgmr.msrb.gmra.mxu2 %v865_v48  ;;  %1169 = vmatmul.f32.vlgmr.msrb.gmra.mxu3 %v865_v48  ;;  %9028 = vst [vmem:[#allocation45_spill] sm:$0xff] %v5754_v51  ;;  %v5772_v48 = vld [vmem:[#allocation2 + $0xd8] sm:$0xff] }
 0x1a4   :  { %1311 = vmatpush.msrb.mxu0 %v5294_v9  ;;  %1331 = vmatpush.msra.mxu1 %v5297_v0  ;;  %v5643_v0 = vld [vmem:[#allocation2 + $0x340] sm:$0xff]  ;;  %v5646_v9 = vld [vmem:[#allocation2 + $0x348] sm:$0xff]  ;;  %9030 = vst [vmem:[#allocation47_spill] sm:$0xff] %v5760_v21 }
 0x1a5   :  { %1351 = vmatpush.msra.mxu2 %v5629_v63  ;;  %1371 = vmatpush.msra.mxu3 %v5301_v37  ;;  %v5649_v37 = vld [vmem:[#allocation2 + $0x350] sm:$0xff]  ;;  %9031 = vst [vmem:[#allocation49_spill] sm:$0xff] %v5763_v16 }
 0x1a6   :  { %1312 = vmatpush.msrb.mxu0 %v5304_v60  ;;  %1332 = vmatpush.msra.mxu1 %v5634_v54  ;;  %v5652_v60 = vld [vmem:[#allocation2 + $0x358] sm:$0xff]  ;;  %9032 = vst [vmem:[#allocation50_spill] sm:$0xff] %v5766_v18 }
 0x1a7   :  { %1352 = vmatpush.msra.mxu2 %v5637_v28  ;;  %1372 = vmatpush.msra.mxu3 %v5640_v57  ;;  %9033 = vst [vmem:[#allocation51_spill] sm:$0xff] %v5769_v1 }
 0x1a8   :  { %1313 = vmatpush.msrb.mxu0 %v5643_v0  ;;  %1333 = vmatpush.msra.mxu1 %v5646_v9  ;;  %9034 = vst [vmem:[#allocation52_spill] sm:$0xff] %v5772_v48 }
 0x1a9   :  { %1353 = vmatpush.msra.mxu2 %v5649_v37  ;;  %1373 = vmatpush.msra.mxu3 %v5652_v60  ;;  %9035 = vst [vmem:[#allocation53_spill] sm:$0xff] %v5775_v58 }
 0x1aa   :  { %1314 = vmatpush.msrb.mxu0 %v5655_v44  ;;  %1334 = vmatpush.msra.mxu1 %v5658_v5 }
 0x1ab   :  { %1354 = vmatpush.msra.mxu2 %v5661_v4  ;;  %1374 = vmatpush.msra.mxu3 %v5664_v3 }
 0x1ac   :  { %1315 = vmatpush.msrb.mxu0 %v5667_v59  ;;  %1335 = vmatpush.msra.mxu1 %v5670_v12 }
 0x1ad   :  { %1355 = vmatpush.msra.mxu2 %v5673_v55  ;;  %1375 = vmatpush.msra.mxu3 %v5676_v8 }
 0x1ae   :  { %1316 = vmatpush.msrb.mxu0 %v5679_v15  ;;  %1336 = vmatpush.msra.mxu1 %v5682_v10 }
 0x1af   :  { %1356 = vmatpush.msra.mxu2 %v5685_v2  ;;  %1376 = vmatpush.msra.mxu3 %v5688_v41 }
 0x1b0   :  { %1317 = vmatpush.msrb.mxu0 %v5691_v62  ;;  %1337 = vmatpush.msra.mxu1 %v5694_v61 }
 0x1b1   :  { %1357 = vmatpush.msra.mxu2 %v5697_v11  ;;  %1377 = vmatpush.msra.mxu3 %v5700_v27 }
 0x1b2   :  { %1318 = vmatpush.msrb.mxu0 %v5703_v17  ;;  %1338 = vmatpush.msra.mxu1 %v5706_v50 }
 0x1b3   :  { %1358 = vmatpush.msra.mxu2 %v5709_v25  ;;  %1378 = vmatpush.msra.mxu3 %v5712_v56 }
 0x1b4   :  { %1319 = vmatpush.msrb.mxu0 %v5715_v34  ;;  %1339 = vmatpush.msra.mxu1 %v5718_v53 }
 0x1b5   :  { %1359 = vmatpush.msra.mxu2 %v5721_v47  ;;  %1379 = vmatpush.msra.mxu3 %v5724_v52 }
 0x1b6   :  { %1320 = vmatpush.msrb.mxu0 %v5727_v19  ;;  %1340 = vmatpush.msra.mxu1 %v5730_v30 }
 0x1b7   :  { %1360 = vmatpush.msra.mxu2 %v5733_v13  ;;  %1380 = vmatpush.msra.mxu3 %v5736_v22 }
 0x1b8   :  { %1321 = vmatpush.msrb.mxu0 %v5739_v36  ;;  %1341 = vmatpush.msra.mxu1 %v5742_v38 }
 0x1b9   :  { %1361 = vmatpush.msra.mxu2 %v5745_v43  ;;  %1381 = vmatpush.msra.mxu3 %v5748_v35 }
 0x1ba   :  { %1322 = vmatpush.msrb.mxu0 %v5751_v14  ;;  %1342 = vmatpush.msra.mxu1 %v5754_v51 }
 0x1bb   :  { %1362 = vmatpush.msra.mxu2 %v5757_v46  ;;  %1382 = vmatpush.msra.mxu3 %v5760_v21 }
 0x1bc   :  { %1323 = vmatpush.msrb.mxu0 %v5763_v16  ;;  %1343 = vmatpush.msra.mxu1 %v5766_v18  ;;  %v5781_v16 = vld [vmem:[#allocation2 + $0x90] sm:$0xff]  ;;  %v5784_v18 = vld [vmem:[#allocation2 + $0x98] sm:$0xff] }
 0x1bd   :  { %1363 = vmatpush.msra.mxu2 %v5769_v1  ;;  %1383 = vmatpush.msra.mxu3 %v5772_v48  ;;  %9037 = vst [vmem:[#allocation55_spill] sm:$0xff] %v5781_v16  ;;  %v5787_v1 = vld [vmem:[#allocation2 + $0x40] sm:$0xff]  ;;  %v5790_v48 = vld [vmem:[#allocation2 + $0x48] sm:$0xff] }
 0x1be   :  { %1324 = vmatpush.msrb.mxu0 %v5775_v58  ;;  %1344 = vmatpush.msra.mxu1 %v5778_v49  ;;  %9038 = vst [vmem:[#allocation57_spill] sm:$0xff] %v5784_v18  ;;  %v5793_v58 = vld [vmem:[#allocation2 + $0x50] sm:$0xff]  ;;  %v5796_v49 = vld [vmem:[#allocation2 + $0x58] sm:$0xff] }
 0x1bf   :  { %1364 = vmatpush.msra.mxu2 %v5781_v16  ;;  %1384 = vmatpush.msra.mxu3 %v5784_v18  ;;  %9039 = vst [vmem:[#allocation58_spill] sm:$0xff] %v5787_v1  ;;  %v5799_v16 = vld [vmem:[#allocation2] sm:$0xff]  ;;  %v5802_v18 = vld [vmem:[#allocation2 + $0x8] sm:$0xff] }
 0x1c0   :  { %1325 = vmatpush.msrb.mxu0 %v5787_v1  ;;  %9040 = vst [vmem:[#allocation60_spill] sm:$0xff] %v5790_v48  ;;  %1345 = vmatpush.msra.mxu1 %v5790_v48  ;;  %v5805_v1 = vld [vmem:[#allocation2 + $0x10] sm:$0xff]  ;;  %v5808_v48 = vld [vmem:[#allocation2 + $0x18] sm:$0xff] }
 0x1c1   :  { %9041 = vst [vmem:[#allocation61_spill] sm:$0xff] %v5793_v58  ;;  %1365 = vmatpush.msra.mxu2 %v5793_v58  ;;  %1385 = vmatpush.msra.mxu3 %v5796_v49  ;;  %v5811_v58 = vld [vmem:[#allocation2 + $0x3e0] sm:$0xff] }
 0x1c2   :  { %9042 = vst [vmem:[#allocation62_spill] sm:$0xff] %v5796_v49  ;;  %1326 = vmatpush.msrb.mxu0 %v5799_v16  ;;  %1346 = vmatpush.msra.mxu1 %v5802_v18  ;;  %v5814_v49 = vld [vmem:[#allocation2 + $0x3e8] sm:$0xff] }
 0x1c3   :  { %9043 = vst [vmem:[#allocation63_spill] sm:$0xff] %v5799_v16  ;;  %1366 = vmatpush.msra.mxu2 %v5805_v1  ;;  %1386 = vmatpush.msra.mxu3 %v5808_v48  ;;  %v5817_v16 = vld [vmem:[#allocation2 + $0x3f0] sm:$0xff] }
 0x1c4   :  { %9044 = vst [vmem:[#allocation64_spill] sm:$0xff] %v5802_v18  ;;  %1391 = vmatpush.msra.mxu0 %v5811_v58  ;;  %1411 = vmatpush.msrb.mxu1 %v5814_v49  ;;  %v5820_v18 = vld [vmem:[#allocation2 + $0x3f8] sm:$0xff] }
 0x1c5   :  { %9045 = vst [vmem:[#allocation65_spill] sm:$0xff] %v5805_v1  ;;  %1431 = vmatpush.msrb.mxu2 %v5817_v16  ;;  %1451 = vmatpush.msrb.mxu3 %v5820_v18  ;;  %v5823_v1 = vld [vmem:[#allocation2 + $0x3a0] sm:$0xff] }
 0x1c6   :  { %9046 = vst [vmem:[#allocation66_spill] sm:$0xff] %v5808_v48  ;;  %1392 = vmatpush.msra.mxu0 %v5823_v1  ;;  %v5826_v48 = vld [vmem:[#allocation2 + $0x3a8] sm:$0xff] }
 0x1c7   :  { %9047 = vst [vmem:[#allocation68_spill] sm:$0xff] %v5811_v58  ;;  %1412 = vmatpush.msrb.mxu1 %v5826_v48  ;;  %v5829_v58 = vld [vmem:[#allocation2 + $0x3b0] sm:$0xff] }
 0x1c8   :  { %9048 = vst [vmem:[#allocation69_spill] sm:$0xff] %v5814_v49  ;;  %1432 = vmatpush.msrb.mxu2 %v5829_v58  ;;  %v5832_v49 = vld [vmem:[#allocation2 + $0x3b8] sm:$0xff] }
 0x1c9   :  { %9049 = vst [vmem:[#allocation70_spill] sm:$0xff] %v5817_v16  ;;  %1452 = vmatpush.msrb.mxu3 %v5832_v49  ;;  %v5835_v16 = vld [vmem:[#allocation2 + $0x360] sm:$0xff] }
 0x1ca   :  { %9050 = vst [vmem:[#allocation71_spill] sm:$0xff] %v5820_v18  ;;  %1393 = vmatpush.msra.mxu0 %v5835_v16  ;;  %v5838_v18 = vld [vmem:[#allocation2 + $0x368] sm:$0xff] }
 0x1cb   :  { %9051 = vst [vmem:[#allocation72_spill] sm:$0xff] %v5823_v1  ;;  %1413 = vmatpush.msrb.mxu1 %v5838_v18  ;;  %v5841_v1 = vld [vmem:[#allocation2 + $0x370] sm:$0xff] }
 0x1cc   :  { %9052 = vst [vmem:[#allocation74_spill] sm:$0xff] %v5826_v48  ;;  %1433 = vmatpush.msrb.mxu2 %v5841_v1  ;;  %v5844_v48 = vld [vmem:[#allocation2 + $0x378] sm:$0xff] }
 0x1cd   :  { %9053 = vst [vmem:[#allocation75_spill] sm:$0xff] %v5829_v58  ;;  %1453 = vmatpush.msrb.mxu3 %v5844_v48  ;;  %v5847_v58 = vld [vmem:[#allocation2 + $0x320] sm:$0xff] }
 0x1ce   :  { %9054 = vst [vmem:[#allocation76_spill] sm:$0xff] %v5832_v49  ;;  %1394 = vmatpush.msra.mxu0 %v5847_v58  ;;  %v5850_v49 = vld [vmem:[#allocation2 + $0x328] sm:$0xff] }
 0x1cf   :  { %9055 = vst [vmem:[#allocation77_spill] sm:$0xff] %v5835_v16  ;;  %1414 = vmatpush.msrb.mxu1 %v5850_v49  ;;  %v5853_v16 = vld [vmem:[#allocation2 + $0x330] sm:$0xff] }
 0x1d0   :  { %9056 = vst [vmem:[#allocation78_spill] sm:$0xff] %v5838_v18  ;;  %1434 = vmatpush.msrb.mxu2 %v5853_v16  ;;  %v5856_v18 = vld [vmem:[#allocation2 + $0x338] sm:$0xff] }
 0x1d1   :  { %9057 = vst [vmem:[#allocation79_spill] sm:$0xff] %v5841_v1  ;;  %1454 = vmatpush.msrb.mxu3 %v5856_v18  ;;  %v5859_v1 = vld [vmem:[#allocation2 + $0x2e0] sm:$0xff] }
 0x1d2   :  { %9058 = vst [vmem:[#allocation80_spill] sm:$0xff] %v5844_v48  ;;  %1395 = vmatpush.msra.mxu0 %v5859_v1  ;;  %v5862_v48 = vld [vmem:[#allocation2 + $0x2e8] sm:$0xff] }
 0x1d3   :  { %9059 = vst [vmem:[#allocation81_spill] sm:$0xff] %v5847_v58  ;;  %1415 = vmatpush.msrb.mxu1 %v5862_v48  ;;  %v5865_v58 = vld [vmem:[#allocation2 + $0x2f0] sm:$0xff] }
 0x1d4   :  { %9060 = vst [vmem:[#allocation82_spill] sm:$0xff] %v5850_v49  ;;  %1435 = vmatpush.msrb.mxu2 %v5865_v58  ;;  %v5868_v49 = vld [vmem:[#allocation2 + $0x2f8] sm:$0xff] }
 0x1d5   :  { %9061 = vst [vmem:[#allocation83_spill] sm:$0xff] %v5853_v16  ;;  %1455 = vmatpush.msrb.mxu3 %v5868_v49  ;;  %v5871_v16 = vld [vmem:[#allocation2 + $0x2a0] sm:$0xff] }
 0x1d6   :  { %9062 = vst [vmem:[#allocation84_spill] sm:$0xff] %v5856_v18  ;;  %1396 = vmatpush.msra.mxu0 %v5871_v16  ;;  %v5874_v18 = vld [vmem:[#allocation2 + $0x2a8] sm:$0xff] }
 0x1d7   :  { %9063 = vst [vmem:[#allocation85_spill] sm:$0xff] %v5859_v1  ;;  %1416 = vmatpush.msrb.mxu1 %v5874_v18  ;;  %v5877_v1 = vld [vmem:[#allocation2 + $0x2b0] sm:$0xff] }
 0x1d8   :  { %9064 = vst [vmem:[#allocation86_spill] sm:$0xff] %v5862_v48  ;;  %1436 = vmatpush.msrb.mxu2 %v5877_v1  ;;  %v5880_v48 = vld [vmem:[#allocation2 + $0x2b8] sm:$0xff] }
 0x1d9   :  { %9065 = vst [vmem:[#allocation87_spill] sm:$0xff] %v5865_v58  ;;  %1456 = vmatpush.msrb.mxu3 %v5880_v48  ;;  %v5883_v58 = vld [vmem:[#allocation2 + $0x260] sm:$0xff] }
 0x1da   :  { %9066 = vst [vmem:[#allocation89_spill] sm:$0xff] %v5868_v49  ;;  %1397 = vmatpush.msra.mxu0 %v5883_v58  ;;  %v5886_v49 = vld [vmem:[#allocation2 + $0x268] sm:$0xff] }
 0x1db   :  { %9067 = vst [vmem:[#allocation90_spill] sm:$0xff] %v5871_v16  ;;  %1417 = vmatpush.msrb.mxu1 %v5886_v49  ;;  %v5889_v16 = vld [vmem:[#allocation2 + $0x270] sm:$0xff] }
 0x1dc   :  { %9068 = vst [vmem:[#allocation91_spill] sm:$0xff] %v5874_v18  ;;  %1437 = vmatpush.msrb.mxu2 %v5889_v16  ;;  %v5892_v18 = vld [vmem:[#allocation2 + $0x278] sm:$0xff] }
 0x1dd   :  { %9069 = vst [vmem:[#allocation92_spill] sm:$0xff] %v5877_v1  ;;  %1457 = vmatpush.msrb.mxu3 %v5892_v18  ;;  %v5895_v1 = vld [vmem:[#allocation2 + $0x220] sm:$0xff] }
 0x1de   :  { %9070 = vst [vmem:[#allocation93_spill] sm:$0xff] %v5880_v48  ;;  %1398 = vmatpush.msra.mxu0 %v5895_v1  ;;  %v5898_v48 = vld [vmem:[#allocation2 + $0x228] sm:$0xff] }
 0x1df   :  { %9071 = vst [vmem:[#allocation94_spill] sm:$0xff] %v5883_v58  ;;  %1418 = vmatpush.msrb.mxu1 %v5898_v48  ;;  %v5901_v58 = vld [vmem:[#allocation2 + $0x230] sm:$0xff] }
 0x1e0   :  { %9072 = vst [vmem:[#allocation95_spill] sm:$0xff] %v5886_v49  ;;  %1438 = vmatpush.msrb.mxu2 %v5901_v58  ;;  %v5904_v49 = vld [vmem:[#allocation2 + $0x238] sm:$0xff] }
 0x1e1   :  { %9073 = vst [vmem:[#allocation96_spill] sm:$0xff] %v5889_v16  ;;  %1458 = vmatpush.msrb.mxu3 %v5904_v49  ;;  %v5907_v16 = vld [vmem:[#allocation2 + $0x1e0] sm:$0xff] }
 0x1e2   :  { %9074 = vst [vmem:[#allocation97_spill] sm:$0xff] %v5892_v18  ;;  %1399 = vmatpush.msra.mxu0 %v5907_v16  ;;  %v5910_v18 = vld [vmem:[#allocation2 + $0x1e8] sm:$0xff] }
 0x1e3   :  { %9075 = vst [vmem:[#allocation98_spill] sm:$0xff] %v5895_v1  ;;  %1419 = vmatpush.msrb.mxu1 %v5910_v18  ;;  %v5913_v1 = vld [vmem:[#allocation2 + $0x1f0] sm:$0xff] }
 0x1e4   :  { %9076 = vst [vmem:[#allocation99_spill] sm:$0xff] %v5898_v48  ;;  %1439 = vmatpush.msrb.mxu2 %v5913_v1  ;;  %v5916_v48 = vld [vmem:[#allocation2 + $0x1f8] sm:$0xff] }
 0x1e5   :  { %9077 = vst [vmem:[#allocation100_spill] sm:$0xff] %v5901_v58  ;;  %1459 = vmatpush.msrb.mxu3 %v5916_v48  ;;  %v5919_v58 = vld [vmem:[#allocation2 + $0x1a0] sm:$0xff] }
 0x1e6   :  { %9078 = vst [vmem:[#allocation101_spill] sm:$0xff] %v5904_v49  ;;  %1400 = vmatpush.msra.mxu0 %v5919_v58  ;;  %v5922_v49 = vld [vmem:[#allocation2 + $0x1a8] sm:$0xff] }
 0x1e7   :  { %9079 = vst [vmem:[#allocation102_spill] sm:$0xff] %v5907_v16  ;;  %1420 = vmatpush.msrb.mxu1 %v5922_v49  ;;  %v5925_v16 = vld [vmem:[#allocation2 + $0x1b0] sm:$0xff] }
 0x1e8   :  { %9080 = vst [vmem:[#allocation103_spill] sm:$0xff] %v5910_v18  ;;  %1440 = vmatpush.msrb.mxu2 %v5925_v16  ;;  %v5928_v18 = vld [vmem:[#allocation2 + $0x1b8] sm:$0xff] }
 0x1e9   :  { %9081 = vst [vmem:[#allocation104_spill] sm:$0xff] %v5913_v1  ;;  %1460 = vmatpush.msrb.mxu3 %v5928_v18  ;;  %v5931_v1 = vld [vmem:[#allocation2 + $0x160] sm:$0xff] }
 0x1ea   :  { %9082 = vst [vmem:[#allocation105_spill] sm:$0xff] %v5916_v48  ;;  %1401 = vmatpush.msra.mxu0 %v5931_v1  ;;  %v5934_v48 = vld [vmem:[#allocation2 + $0x168] sm:$0xff] }
 0x1eb   :  { %9083 = vst [vmem:[#allocation106_spill] sm:$0xff] %v5919_v58  ;;  %1421 = vmatpush.msrb.mxu1 %v5934_v48  ;;  %v5937_v58 = vld [vmem:[#allocation2 + $0x170] sm:$0xff] }
 0x1ec   :  { %9084 = vst [vmem:[#allocation107_spill] sm:$0xff] %v5922_v49  ;;  %1441 = vmatpush.msrb.mxu2 %v5937_v58  ;;  %v5940_v49 = vld [vmem:[#allocation2 + $0x178] sm:$0xff] }
 0x1ed   :  { %9085 = vst [vmem:[#allocation108_spill] sm:$0xff] %v5925_v16  ;;  %1461 = vmatpush.msrb.mxu3 %v5940_v49  ;;  %v5943_v16 = vld [vmem:[#allocation2 + $0x120] sm:$0xff] }
 0x1ee   :  { %9086 = vst [vmem:[#allocation109_spill] sm:$0xff] %v5928_v18  ;;  %1402 = vmatpush.msra.mxu0 %v5943_v16  ;;  %v5946_v18 = vld [vmem:[#allocation2 + $0x128] sm:$0xff] }
 0x1ef   :  { %9087 = vst [vmem:[#allocation110_spill] sm:$0xff] %v5931_v1  ;;  %1422 = vmatpush.msrb.mxu1 %v5946_v18  ;;  %v5949_v1 = vld [vmem:[#allocation2 + $0x130] sm:$0xff] }
 0x1f0   :  { %9088 = vst [vmem:[#allocation111_spill] sm:$0xff] %v5934_v48  ;;  %1442 = vmatpush.msrb.mxu2 %v5949_v1  ;;  %v5952_v48 = vld [vmem:[#allocation2 + $0x138] sm:$0xff] }
 0x1f1   :  { %9089 = vst [vmem:[#allocation112_spill] sm:$0xff] %v5937_v58  ;;  %1462 = vmatpush.msrb.mxu3 %v5952_v48  ;;  %v5955_v58 = vld [vmem:[#allocation2 + $0xe0] sm:$0xff] }
 0x1f2   :  { %9090 = vst [vmem:[#allocation113_spill] sm:$0xff] %v5940_v49  ;;  %1403 = vmatpush.msra.mxu0 %v5955_v58  ;;  %v5958_v49 = vld [vmem:[#allocation2 + $0xe8] sm:$0xff] }
 0x1f3   :  { %9091 = vst [vmem:[#allocation114_spill] sm:$0xff] %v5943_v16  ;;  %1423 = vmatpush.msrb.mxu1 %v5958_v49  ;;  %v5961_v16 = vld [vmem:[#allocation2 + $0xf0] sm:$0xff] }
 0x1f4   :  { %9092 = vst [vmem:[#allocation115_spill] sm:$0xff] %v5946_v18  ;;  %1443 = vmatpush.msrb.mxu2 %v5961_v16  ;;  %v5964_v18 = vld [vmem:[#allocation2 + $0xf8] sm:$0xff] }
 0x1f5   :  { %9093 = vst [vmem:[#allocation116_spill] sm:$0xff] %v5949_v1  ;;  %1463 = vmatpush.msrb.mxu3 %v5964_v18  ;;  %v5967_v1 = vld [vmem:[#allocation2 + $0xa0] sm:$0xff] }
 0x1f6   :  { %9094 = vst [vmem:[#allocation117_spill] sm:$0xff] %v5952_v48  ;;  %1404 = vmatpush.msra.mxu0 %v5967_v1  ;;  %v5970_v48 = vld [vmem:[#allocation2 + $0xa8] sm:$0xff] }
 0x1f7   :  { %9095 = vst [vmem:[#allocation118_spill] sm:$0xff] %v5955_v58  ;;  %1424 = vmatpush.msrb.mxu1 %v5970_v48  ;;  %v5973_v58 = vld [vmem:[#allocation2 + $0xb0] sm:$0xff] }
 0x1f8   :  { %9096 = vst [vmem:[#allocation119_spill] sm:$0xff] %v5958_v49  ;;  %1444 = vmatpush.msrb.mxu2 %v5973_v58  ;;  %v5976_v49 = vld [vmem:[#allocation2 + $0xb8] sm:$0xff] }
 0x1f9   :  { %9097 = vst [vmem:[#allocation120_spill] sm:$0xff] %v5961_v16  ;;  %1464 = vmatpush.msrb.mxu3 %v5976_v49  ;;  %v5979_v16 = vld [vmem:[#allocation2 + $0x60] sm:$0xff] }
 0x1fa   :  { %9098 = vst [vmem:[#allocation121_spill] sm:$0xff] %v5964_v18  ;;  %1405 = vmatpush.msra.mxu0 %v5979_v16  ;;  %v5982_v18 = vld [vmem:[#allocation2 + $0x68] sm:$0xff] }
 0x1fb   :  { %9099 = vst [vmem:[#allocation122_spill] sm:$0xff] %v5967_v1  ;;  %1425 = vmatpush.msrb.mxu1 %v5982_v18  ;;  %v5985_v1 = vld [vmem:[#allocation2 + $0x70] sm:$0xff]  ;;  %v970_v21 = vpop.f32.mrf.mxu1 }
 0x1fc   :  { %9100 = vst [vmem:[#allocation123_spill] sm:$0xff] %v5970_v48  ;;  %1445 = vmatpush.msrb.mxu2 %v5985_v1  ;;  %v5988_v48 = vld [vmem:[#allocation2 + $0x78] sm:$0xff] }
 0x1fd   :  { %9101 = vst [vmem:[#allocation124_spill] sm:$0xff] %v5973_v58  ;;  %1465 = vmatpush.msrb.mxu3 %v5988_v48  ;;  %v5991_v58 = vld [vmem:[#allocation2 + $0x20] sm:$0xff] }
 0x1fe   :  { %9102 = vst [vmem:[#allocation125_spill] sm:$0xff] %v5976_v49  ;;  %1406 = vmatpush.msra.mxu0 %v5991_v58  ;;  %v5994_v49 = vld [vmem:[#allocation2 + $0x28] sm:$0xff] }
 0x1ff   :  { %9103 = vst [vmem:[#allocation126_spill] sm:$0xff] %v5979_v16  ;;  %1426 = vmatpush.msrb.mxu1 %v5994_v49  ;;  %v5997_v16 = vld [vmem:[#allocation2 + $0x30] sm:$0xff] }
 0x200   :  { %9104 = vst [vmem:[#allocation127_spill] sm:$0xff] %v5982_v18  ;;  %1446 = vmatpush.msrb.mxu2 %v5997_v16  ;;  %v6000_v18 = vld [vmem:[#allocation2 + $0x38] sm:$0xff] }
 0x201   :  { %9105 = vst [vmem:[#allocation128_spill] sm:$0xff] %v5985_v1  ;;  %1466 = vmatpush.msrb.mxu3 %v6000_v18  ;;  %v950_v1 = vpop.f32.mrf.mxu0 }
 0x202   :  { %9106 = vst [vmem:[#allocation129_spill] sm:$0xff] %v5988_v48  ;;  %v6003_v46 = vpop.f32.mrf.mxu3  ;;  %v187_v48 = vadd.f32 %v5360_v24, %v8960_v26  ;;  %v6011_v38 = vpop.f32.mrf.mxu2 }
 0x203   :  { %9107 = vst [vmem:[#allocation130_spill] sm:$0xff] %v5991_v58  ;;  %v146_v58 = vadd.f32 %v5438_v20, %v8961_v29 }
 0x204   :  { %9108 = vst [vmem:[#allocation131_spill] sm:$0xff] %v5994_v49 }
 0x205   :  { %9109 = vst [vmem:[#allocation132_spill] sm:$0xff] %v5997_v16  ;;  %v1050_v49 = vpop.f32.mrf.mxu1 }
 0x206   :  { %9110 = vst [vmem:[#allocation133_spill] sm:$0xff] %v6000_v18  ;;  %v1245_v35 = vadd.f32 %v1050_v49, %v187_v48  ;;  %v269_v18 = vadd.f32 %v5378_v42, %v8962_v40 }
 0x208   :  { %v3541_v16 = vmul.f32 -1.442695, %v1245_v35 }
 0x209   :  { %v1030_v51 = vpop.f32.mrf.mxu0 }
 0x20a   :  { %v1244_v14 = vadd.f32 %v1030_v51, %v146_v58 }
 0x20c   :  { %v3540_v43 = vmul.f32 -1.442695, %v1244_v14  ;;  %v1090_v36 = vpop.f32.mrf.mxu3  ;;  %v1070_v49 = vpop.f32.mrf.mxu2 }
 0x20d   :  { %v1247_v22 = vadd.f32 %v1090_v36, %v269_v18 }
 0x20e   :  { %3636 = vpow2.f32 %v3540_v43  ;;  %v228_v43 = vadd.f32 %v5402_v23, %v8963_v31 }
 0x20f   :  { %3638 = vpow2.f32 %v3541_v16  ;;  %v3542_v13 = vmul.f32 -1.442695, %v1247_v22 }
 0x210   :  { %v1246_v51 = vadd.f32 %v1070_v49, %v228_v43 }
 0x211   :  { %3640 = vpow2.f32 %v3542_v13 }
 0x214   :  { %v3637_v24 = vpop.eup %3636 }
 0x215   :  { %v3639_v26 = vpop.eup %3638  ;;  %v1257_v30 = vadd.f32 1.0, %v3637_v24 }
 0x216   :  { %v1258_v20 = vadd.f32 1.0, %v3639_v26 }
 0x217   :  { %3642 = vrcp.f32 %v1257_v30  ;;  %v3641_v14 = vpop.eup %3640  ;;  %v1269_v13 = vand.u32 2147483647, %v1257_v30  ;;  %v1271_v26 = vand.u32 2147483648, %v1257_v30  ;;  %vm1265_vm8 = vweird.f32 %v1257_v30 }
 0x218   :  { %3644 = vrcp.f32 %v1258_v20  ;;  %v6015_v35 = vadd.f32 1.0, %v3641_v14  ;;  %v1286_v58 = vand.u32 2147483648, %v1258_v20  ;;  %v1284_v23 = vand.u32 2147483647, %v1258_v20 }
 0x219   :  { %vm1280_vm9 = vweird.f32 %v1258_v20  ;;  %vm1270_vm11 = vcmp.eq.f32.partialorder %v1269_v13, 8.507059e+37 }
 0x21a   :  { %3646 = vrcp.f32 %v6015_v35  ;;  %vm1285_vm13 = vcmp.eq.f32.partialorder %v1284_v23, 8.507059e+37  ;;  %vm1295_vm15 = vweird.f32 %v6015_v35 }
 0x21b   :  { %3648 = vtanh.f32 %v1246_v51 }
 0x21d   :  { %v3643_v42 = vpop.eup %3642 }
 0x21e   :  { %v3645_v16 = vpop.eup %3644  ;;  %v1261_v48 = vmul.f32 %v3643_v42, %v1257_v30  ;;  %vm1266_vm6 = vweird.f32 %v3643_v42 }
 0x21f   :  { %v1276_v22 = vmul.f32 %v3645_v16, %v1258_v20  ;;  %vm1281_vm7 = vweird.f32 %v3645_v16  ;;  %v1110_v14 = vpop.f32.mrf.mxu0  ;;  %v1130_v31 = vpop.f32.mrf.mxu1  ;;  %vm1267_vm10 = vmor %vm1265_vm8, %vm1266_vm6 }
 0x220   :  { %v1262_v36 = vsub.f32 1.0, %v1261_v48  ;;  %v3647_v49 = vpop.eup %3646  ;;  %v1173_v29 = vadd.f32 %v1110_v14, %v950_v1  ;;  %v1174_v19 = vadd.f32 %v1130_v31, %v970_v21  ;;  %v1272_v48 = vor.u32 1.1754944e-38, %v1271_v26  ;;  %vm1282_vm12 = vmor %vm1280_vm9, %vm1281_vm7 }
 0x221   :  { %v1277_v18 = vsub.f32 1.0, %v1276_v22  ;;  %v1291_v51 = vmul.f32 %v3647_v49, %v6015_v35  ;;  %v3649_v47 = vpop.eup %3648  ;;  %vm1296_vm14 = vweird.f32 %v3647_v49 }
 0x222   :  { %v1263_v24 = vmul.f32 %v3643_v42, %v1262_v36  ;;  %v1287_v36 = vor.u32 1.1754944e-38, %v1286_v58  ;;  %v1177_v30 = vadd.f32 %v1173_v29, %v5498_v39  ;;  %v1178_v52 = vadd.f32 %v1174_v19, %v5501_v32  ;;  %vm1297_vm0 = vmor %vm1295_vm15, %vm1296_vm14 }
 0x223   :  { %v1278_v40 = vmul.f32 %v3645_v16, %v1277_v18  ;;  %v1292_v1 = vsub.f32 1.0, %v1291_v51 }
 0x224   :  { %v1264_v43 = vadd.f32 %v3643_v42, %v1263_v24  ;;  %v3537_v13 = vmul.f32 -1.442695, %v1177_v30  ;;  %v3538_v26 = vmul.f32 -1.442695, %v1178_v52  ;;  %v6044_v30 = vld [vmem:[#allocation5 + $0x1e0] sm:$0xff] }
 0x225   :  { %v1279_v22 = vadd.f32 %v3645_v16, %v1278_v40  ;;  %v1293_v24 = vmul.f32 %v3647_v49, %v1292_v1 }
 0x226   :  { %v1268_v18 = vsel %vm1267_vm10, %v3643_v42, %v1264_v43  ;;  %3650 = vpow2.f32 %v3537_v13  ;;  %v1170_v14 = vpop.f32.mrf.mxu3  ;;  %v1301_v42 = vand.u32 2147483648, %v6015_v35  ;;  %v6057_v13 = vld [vmem:[#allocation5 + $0x1f8] sm:$0xff] }
 0x227   :  { %v1273_v53 = vsel %vm1270_vm11, %v1272_v48, %v1268_v18  ;;  %v1283_v20 = vsel %vm1282_vm12, %v3645_v16, %v1279_v22  ;;  %3652 = vpow2.f32 %v3538_v26  ;;  %v1294_v29 = vadd.f32 %v3647_v49, %v1293_v24  ;;  %v6067_v24 = vld [vmem:[#allocation5 + $0x1c8] sm:$0xff] }
 0x228   :  { %v1288_v31 = vsel %vm1285_vm13, %v1287_v36, %v1283_v20  ;;  %v1307_v21 = vmul.f32 %v3649_v47, %v1273_v53  ;;  %v1176_v19 = vadd.f32 %v1170_v14, %v6003_v46  ;;  %v1299_v53 = vand.u32 2147483647, %v6015_v35  ;;  %v1150_v35 = vpop.f32.mrf.mxu2  ;;  %v6047_v20 = vld [vmem:[#allocation5 + $0x1e8] sm:$0xff] }
 0x229   :  { %v1306_v40 = vmul.f32 %v1288_v31, %v5511_v6  ;;  %v1298_v52 = vsel %vm1297_vm0, %v3647_v49, %v1294_v29  ;;  %v1302_v43 = vor.u32 1.1754944e-38, %v1301_v42  ;;  %v1175_v18 = vadd.f32 %v1150_v35, %v6011_v38  ;;  %v6073_v29 = vld [vmem:[#allocation5 + $0x1d0] sm:$0xff]  ;;  %v6096_v35 = vld [vmem:[#allocation5 + $0x180] sm:$0xff] }
 0x22a   :  { %v1180_v6 = vadd.f32 %v1176_v19, %v5509_v45  ;;  %vm1300_vm1 = vcmp.eq.f32.partialorder %v1299_v53, 8.507059e+37  ;;  %v6076_v19 = vld [vmem:[#allocation5 + $0x1d8] sm:$0xff]  ;;  %9112 = vst [vmem:[#allocation135_spill] sm:$0xff] %v6096_v35 }
 0x22b   :  { %v6023_v58 = vadd.f32 %v1307_v21, %v1306_v40  ;;  %v1303_v51 = vsel %vm1300_vm1, %v1302_v43, %v1298_v52  ;;  %v6054_v21 = vld [vmem:[#allocation5 + $0x1f0] sm:$0xff]  ;;  %v6064_v40 = vld [vmem:[#allocation5 + $0x1c0] sm:$0xff]  ;;  %v1179_v53 = vadd.f32 %v1175_v18, %v5527_v33 }
 0x22c   :  { %v3651_v47 = vpop.eup %3650  ;;  %v3539_v16 = vmul.f32 -1.442695, %v1180_v6  ;;  %v6080_v6 = vld [vmem:[#allocation5 + $0x1a0] sm:$0xff] }
 0x22d   :  { %3654 = vtanh.f32 %v6023_v58  ;;  %v3653_v23 = vpop.eup %3652  ;;  %v6031_v48 = vadd.f32 1.0, %v3651_v47  ;;  %v6083_v47 = vld [vmem:[#allocation5 + $0x1a8] sm:$0xff] }
 0x22e   :  { %v6033_v46 = vadd.f32 1.0, %v3653_v23  ;;  %3656 = vpow2.f32 %v3539_v16  ;;  %v6086_v16 = vld [vmem:[#allocation5 + $0x1b0] sm:$0xff]  ;;  %v6089_v23 = vld [vmem:[#allocation5 + $0x1b8] sm:$0xff] }
 0x22f   :  { %3658 = vrcp.f32 %v6031_v48  ;;  %9111 = vst [vmem:[#allocation134_spill] sm:$0xff] %v6089_v23  ;;  %vm1198_vm4 = vweird.f32 %v6031_v48 }
 0x230   :  { %3660 = vrcp.f32 %v6033_v46  ;;  %v1219_v43 = vand.u32 2147483648, %v6033_v46  ;;  %vm1213_vm5 = vweird.f32 %v6033_v46 }
 0x233   :  { %v3655_v22 = vpop.eup %3654 }
 0x234   :  { %v6036_v36 = vmul.f32 %v3655_v22, %v1303_v51  ;;  %v3657_v49 = vpop.eup %3656  ;;  %v1204_v51 = vand.u32 2147483648, %v6031_v48 }
 0x235   :  { %v6050_v1 = vpop.eup %3658  ;;  %v6052_v31 = vadd.f32 1.0, %v3657_v49  ;;  %v6099_v49 = vld [vmem:[#allocation5 + $0x188] sm:$0xff] }
 0x236   :  { %1327 = vmatmul.f32.vlgmr.msrb.gmra.mxu0 %v6036_v36  ;;  %1347 = vmatmul.f32.vlgmr.msra.gmra.mxu1 %v6036_v36  ;;  %v6060_v38 = vpop.eup %3660  ;;  %v1194_v26 = vmul.f32 %v6050_v1, %v6031_v48  ;;  %vm1199_vm2 = vweird.f32 %v6050_v1  ;;  %9113 = vst [vmem:[#allocation136_spill] sm:$0xff] %v6099_v49 }
 0x237   :  { %1367 = vmatmul.f32.vlgmr.msra.gmra.mxu2 %v6036_v36  ;;  %1387 = vmatmul.f32.vlgmr.msra.gmra.mxu3 %v6036_v36  ;;  %v1209_v14 = vmul.f32 %v6060_v38, %v6033_v46  ;;  %3662 = vrcp.f32 %v6052_v31  ;;  %vm1214_vm3 = vweird.f32 %v6060_v38  ;;  %vm6121_vm6 = vmor %vm1198_vm4, %vm1199_vm2  ;;  %vm1228_vm11 = vweird.f32 %v6052_v31 }
 0x238   :  { %1471 = vmatpush.msrb.mxu0 %v6044_v30  ;;  %1491 = vmatpush.msra.mxu1 %v6047_v20  ;;  %v1195_v42 = vsub.f32 1.0, %v1194_v26  ;;  %v1202_v26 = vand.u32 2147483647, %v6031_v48  ;;  %3664 = vtanh.f32 %v1179_v53  ;;  %vm6130_vm7 = vmor %vm1213_vm5, %vm1214_vm3  ;;  %v1220_v53 = vor.u32 1.1754944e-38, %v1219_v43  ;;  %v6146_v43 = vld [vmem:[#allocation5 + $0x170] sm:$0xff]  ;;  %v6166_v48 = vld [vmem:[#allocation5 + $0x120] sm:$0xff] }
 0x239   :  { %1511 = vmatpush.msra.mxu2 %v6054_v21  ;;  %1531 = vmatpush.msra.mxu3 %v6057_v13  ;;  %v1210_v52 = vsub.f32 1.0, %v1209_v14  ;;  %v1217_v14 = vand.u32 2147483647, %v6033_v46  ;;  %9124 = vst [vmem:[#allocation143_spill] sm:$0xff] %v6166_v48 }
 0x23a   :  { %1472 = vmatpush.msrb.mxu0 %v6064_v40  ;;  %1492 = vmatpush.msra.mxu1 %v6067_v24  ;;  %v1196_v22 = vmul.f32 %v6050_v1, %v1195_v42  ;;  %v6106_v42 = vld [vmem:[#allocation5 + $0x190] sm:$0xff]  ;;  %vm1203_vm8 = vcmp.eq.f32.partialorder %v1202_v26, 8.507059e+37  ;;  %v6157_v26 = vld [vmem:[#allocation5 + $0x148] sm:$0xff] }
 0x23b   :  { %1512 = vmatpush.msra.mxu2 %v6073_v29  ;;  %1532 = vmatpush.msra.mxu3 %v6076_v19  ;;  %v1211_v18 = vmul.f32 %v6060_v38, %v1210_v52  ;;  %9114 = vst [vmem:[#allocation137_spill] sm:$0xff] %v6106_v42  ;;  %vm1218_vm9 = vcmp.eq.f32.partialorder %v1217_v14, 8.507059e+37 }
 0x23c   :  { %1473 = vmatpush.msrb.mxu0 %v6080_v6  ;;  %1493 = vmatpush.msra.mxu1 %v6083_v47  ;;  %9121 = vst [vmem:[#allocation140_spill] sm:$0xff] %v6157_v26 }
 0x23d   :  { %1513 = vmatpush.msra.mxu2 %v6086_v16  ;;  %1533 = vmatpush.msra.mxu3 %v6089_v23  ;;  %v6109_v23 = vld [vmem:[#allocation5 + $0x198] sm:$0xff]  ;;  %v6116_v52 = vpop.eup %3662 }
 0x23e   :  { %1474 = vmatpush.msrb.mxu0 %v6096_v35  ;;  %1494 = vmatpush.msra.mxu1 %v6099_v49  ;;  %9115 = vst [vmem:[#allocation138_spill] sm:$0xff] %v6109_v23  ;;  %v1197_v35 = vadd.f32 %v6050_v1, %v1196_v22  ;;  %v1205_v22 = vor.u32 1.1754944e-38, %v1204_v51  ;;  %v6137_v49 = vld [vmem:[#allocation5 + $0x160] sm:$0xff]  ;;  %v3665_v14 = vpop.eup %3664  ;;  %vm1229_vm10 = vweird.f32 %v6116_v52 }
 0x23f   :  { %1514 = vmatpush.msra.mxu2 %v6106_v42  ;;  %1534 = vmatpush.msra.mxu3 %v6109_v23  ;;  %v1212_v23 = vadd.f32 %v6060_v38, %v1211_v18  ;;  %v6140_v18 = vld [vmem:[#allocation5 + $0x168] sm:$0xff]  ;;  %v1224_v42 = vmul.f32 %v6116_v52, %v6052_v31  ;;  %vm6262_vm12 = vmor %vm1228_vm11, %vm1229_vm10 }
 0x240   :  { %1407 = vmatmul.f32.vlgmr.msra.gmra.mxu0 %v6036_v36  ;;  %1427 = vmatmul.f32.vlgmr.msrb.gmra.mxu1 %v6036_v36  ;;  %v1201_v46 = vsel %vm6121_vm6, %v6050_v1, %v1197_v35  ;;  %9120 = vst [vmem:[#allocation139_spill] sm:$0xff] %v6140_v18  ;;  %v6149_v1 = vld [vmem:[#allocation5 + $0x178] sm:$0xff] }
 0x241   :  { %1447 = vmatmul.f32.vlgmr.msrb.gmra.mxu2 %v6036_v36  ;;  %1467 = vmatmul.f32.vlgmr.msrb.gmra.mxu3 %v6036_v36  ;;  %v1216_v36 = vsel %vm6130_vm7, %v6060_v38, %v1212_v23  ;;  %v1206_v51 = vsel %vm1203_vm8, %v1205_v22, %v1201_v46  ;;  %v6160_v38 = vld [vmem:[#allocation5 + $0x150] sm:$0xff]  ;;  %v6163_v23 = vld [vmem:[#allocation5 + $0x158] sm:$0xff] }
 0x242   :  { %1475 = vmatpush.msrb.mxu0 %v6137_v49  ;;  %1495 = vmatpush.msra.mxu1 %v6140_v18  ;;  %v1221_v35 = vsel %vm1218_vm9, %v1220_v53, %v1216_v36  ;;  %v6154_v18 = vld [vmem:[#allocation5 + $0x140] sm:$0xff]  ;;  %9122 = vst [vmem:[#allocation141_spill] sm:$0xff] %v6160_v38  ;;  %v6169_v53 = vld [vmem:[#allocation5 + $0x128] sm:$0xff]  ;;  %v1240_v22 = vmul.f32 %v3665_v14, %v1206_v51  ;;  %v6173_v36 = vld [vmem:[#allocation5 + $0x130] sm:$0xff] }
 0x243   :  { %1515 = vmatpush.msra.mxu2 %v6146_v43  ;;  %1535 = vmatpush.msra.mxu3 %v6149_v1  ;;  %9123 = vst [vmem:[#allocation142_spill] sm:$0xff] %v6163_v23  ;;  %v1239_v46 = vmul.f32 %v1221_v35, %v5587_v7  ;;  %v6188_v7 = vld [vmem:[#allocation5 + $0x118] sm:$0xff]  ;;  %v6191_v51 = vld [vmem:[#allocation5 + $0xe0] sm:$0xff]  ;;  %v6194_v35 = vld [vmem:[#allocation5 + $0xe8] sm:$0xff] }
 0x244   :  { %1476 = vmatpush.msrb.mxu0 %v6154_v18  ;;  %1496 = vmatpush.msra.mxu1 %v6157_v26  ;;  %9125 = vst [vmem:[#allocation144_spill] sm:$0xff] %v6169_v53  ;;  %v6179_v26 = vld [vmem:[#allocation5 + $0x100] sm:$0xff]  ;;  %v6199_v14 = vld [vmem:[#allocation5 + $0xf0] sm:$0xff] }
 0x245   :  { %1516 = vmatpush.msra.mxu2 %v6160_v38  ;;  %1536 = vmatpush.msra.mxu3 %v6163_v23  ;;  %v6176_v38 = vld [vmem:[#allocation5 + $0x138] sm:$0xff]  ;;  %v1225_v23 = vsub.f32 1.0, %v1224_v42  ;;  %9127 = vst [vmem:[#allocation146_spill] sm:$0xff] %v6179_v26  ;;  %v6197_v42 = vadd.f32 %v1240_v22, %v1239_v46  ;;  %v6212_v46 = vld [vmem:[#allocation5 + $0xd0] sm:$0xff] }
 0x246   :  { %1477 = vmatpush.msrb.mxu0 %v6166_v48  ;;  %1497 = vmatpush.msra.mxu1 %v6169_v53  ;;  %9126 = vst [vmem:[#allocation145_spill] sm:$0xff] %v6176_v38  ;;  %v6182_v48 = vld [vmem:[#allocation5 + $0x108] sm:$0xff]  ;;  %v6185_v53 = vld [vmem:[#allocation5 + $0x110] sm:$0xff]  ;;  %v6215_v22 = vld [vmem:[#allocation5 + $0xd8] sm:$0xff] }
 0x247   :  { %1517 = vmatpush.msra.mxu2 %v6173_v36  ;;  %1537 = vmatpush.msra.mxu3 %v6176_v38  ;;  %9128 = vst [vmem:[#allocation147_spill] sm:$0xff] %v6182_v48  ;;  %3666 = vtanh.f32 %v6197_v42  ;;  %v6281_v38 = vld [vmem:[#allocation5 + $0x20] sm:$0xff] }
 0x248   :  { %1478 = vmatpush.msrb.mxu0 %v6179_v26  ;;  %1498 = vmatpush.msra.mxu1 %v6182_v48  ;;  %9129 = vst [vmem:[#allocation148_spill] sm:$0xff] %v6185_v53  ;;  %v6202_v48 = vld [vmem:[#allocation5 + $0xf8] sm:$0xff] }
 0x249   :  { %1518 = vmatpush.msra.mxu2 %v6185_v53  ;;  %9130 = vst [vmem:[#allocation149_spill] sm:$0xff] %v6188_v7  ;;  %1538 = vmatpush.msra.mxu3 %v6188_v7  ;;  %v6205_v53 = vld [vmem:[#allocation5 + $0xc0] sm:$0xff]  ;;  %v6208_v7 = vld [vmem:[#allocation5 + $0xc8] sm:$0xff] }
 0x24a   :  { %9131 = vst [vmem:[#allocation150_spill] sm:$0xff] %v6191_v51  ;;  %1479 = vmatpush.msrb.mxu0 %v6191_v51  ;;  %1499 = vmatpush.msra.mxu1 %v6194_v35  ;;  %v6278_v51 = vld [vmem:[#allocation5 + $0x58] sm:$0xff] }
 0x24b   :  { %9132 = vst [vmem:[#allocation151_spill] sm:$0xff] %v6194_v35  ;;  %1519 = vmatpush.msra.mxu2 %v6199_v14  ;;  %1539 = vmatpush.msra.mxu3 %v6202_v48  ;;  %v1226_v35 = vmul.f32 %v6116_v52, %v1225_v23  ;;  %v6228_v23 = vld [vmem:[#allocation5 + $0xb8] sm:$0xff] }
 0x24c   :  { %9133 = vst [vmem:[#allocation152_spill] sm:$0xff] %v6199_v14  ;;  %1480 = vmatpush.msrb.mxu0 %v6205_v53  ;;  %1500 = vmatpush.msra.mxu1 %v6208_v7  ;;  %v6218_v14 = vld [vmem:[#allocation5 + $0xa0] sm:$0xff] }
 0x24d   :  { %9134 = vst [vmem:[#allocation153_spill] sm:$0xff] %v6202_v48  ;;  %1520 = vmatpush.msra.mxu2 %v6212_v46  ;;  %1540 = vmatpush.msra.mxu3 %v6215_v22  ;;  %v6221_v48 = vld [vmem:[#allocation5 + $0xa8] sm:$0xff] }
 0x24e   :  { %9135 = vst [vmem:[#allocation154_spill] sm:$0xff] %v6205_v53  ;;  %1481 = vmatpush.msrb.mxu0 %v6218_v14  ;;  %1501 = vmatpush.msra.mxu1 %v6221_v48  ;;  %v6246_v53 = vld [vmem:[#allocation5 + $0x60] sm:$0xff] }
 0x24f   :  { %9136 = vst [vmem:[#allocation155_spill] sm:$0xff] %v6208_v7  ;;  %v6225_v7 = vld [vmem:[#allocation5 + $0xb0] sm:$0xff]  ;;  %1541 = vmatpush.msra.mxu3 %v6228_v23 }
 0x250   :  { %9137 = vst [vmem:[#allocation156_spill] sm:$0xff] %v6212_v46  ;;  %1521 = vmatpush.msra.mxu2 %v6225_v7  ;;  %v6231_v46 = vld [vmem:[#allocation5 + $0x80] sm:$0xff] }
 0x251   :  { %9138 = vst [vmem:[#allocation157_spill] sm:$0xff] %v6215_v22  ;;  %1482 = vmatpush.msrb.mxu0 %v6231_v46  ;;  %v6234_v22 = vld [vmem:[#allocation5 + $0x88] sm:$0xff] }
 0x252   :  { %9139 = vst [vmem:[#allocation158_spill] sm:$0xff] %v6218_v14  ;;  %1502 = vmatpush.msra.mxu1 %v6234_v22  ;;  %v6239_v14 = vld [vmem:[#allocation5 + $0x90] sm:$0xff] }
 0x253   :  { %9140 = vst [vmem:[#allocation159_spill] sm:$0xff] %v6221_v48  ;;  %v1227_v48 = vadd.f32 %v6116_v52, %v1226_v35  ;;  %1522 = vmatpush.msra.mxu2 %v6239_v14  ;;  %1483 = vmatpush.msrb.mxu0 %v6246_v53  ;;  %v1232_v35 = vand.u32 2147483647, %v6052_v31 }
 0x254   :  { %9141 = vst [vmem:[#allocation160_spill] sm:$0xff] %v6225_v7  ;;  %v6242_v7 = vld [vmem:[#allocation5 + $0x98] sm:$0xff] }
 0x255   :  { %9142 = vst [vmem:[#allocation161_spill] sm:$0xff] %v6228_v23  ;;  %1542 = vmatpush.msra.mxu3 %v6242_v7  ;;  %v1234_v23 = vand.u32 2147483648, %v6052_v31  ;;  %v1231_v31 = vsel %vm6262_vm12, %v6116_v52, %v1227_v48  ;;  %vm1233_vm13 = vcmp.eq.f32.partialorder %v1232_v35, 8.507059e+37  ;;  %v6287_v52 = vld [vmem:[#allocation5 + $0x30] sm:$0xff]  ;;  %v6290_v48 = vld [vmem:[#allocation5 + $0x38] sm:$0xff] }
 0x256   :  { %9143 = vst [vmem:[#allocation162_spill] sm:$0xff] %v6231_v46  ;;  %v6249_v46 = vld [vmem:[#allocation5 + $0x68] sm:$0xff]  ;;  %v6302_v35 = vld [vmem:[#allocation5 + $0x18] sm:$0xff] }
 0x257   :  { %9144 = vst [vmem:[#allocation163_spill] sm:$0xff] %v6234_v22  ;;  %1503 = vmatpush.msra.mxu1 %v6249_v46  ;;  %v6254_v22 = vld [vmem:[#allocation5 + $0x70] sm:$0xff]  ;;  %v1235_v26 = vor.u32 1.1754944e-38, %v1234_v23  ;;  %v6296_v23 = vld [vmem:[#allocation5 + $0x8] sm:$0xff] }
 0x258   :  { %9145 = vst [vmem:[#allocation164_spill] sm:$0xff] %v6239_v14  ;;  %1523 = vmatpush.msra.mxu2 %v6254_v22  ;;  %v6257_v14 = vld [vmem:[#allocation5 + $0x78] sm:$0xff] }
 0x259   :  { %9146 = vst [vmem:[#allocation165_spill] sm:$0xff] %v6242_v7  ;;  %1543 = vmatpush.msra.mxu3 %v6257_v14  ;;  %v6266_v7 = vld [vmem:[#allocation5 + $0x40] sm:$0xff] }
 0x25a   :  { %9147 = vst [vmem:[#allocation166_spill] sm:$0xff] %v6246_v53  ;;  %1484 = vmatpush.msrb.mxu0 %v6266_v7  ;;  %v1236_v53 = vsel %vm1233_vm13, %v1235_v26, %v1231_v31  ;;  %v6305_v26 = vld [vmem:[#allocation2 + $0x3c0] sm:$0xff]  ;;  %v6308_v31 = vld [vmem:[#allocation2 + $0x3c8] sm:$0xff] }
 0x25b   :  { %9148 = vst [vmem:[#allocation167_spill] sm:$0xff] %v6249_v46  ;;  %v6269_v46 = vld [vmem:[#allocation5 + $0x48] sm:$0xff]  ;;  %1544 = vmatpush.msra.mxu3 %v6278_v51 }
 0x25c   :  { %9149 = vst [vmem:[#allocation168_spill] sm:$0xff] %v6254_v22  ;;  %1504 = vmatpush.msra.mxu1 %v6269_v46  ;;  %v3667_v22 = vpop.eup %3666  ;;  %1485 = vmatpush.msrb.mxu0 %v6281_v38 }
 0x25d   :  { %9150 = vst [vmem:[#allocation169_spill] sm:$0xff] %v6257_v14  ;;  %v6275_v14 = vld [vmem:[#allocation5 + $0x50] sm:$0xff]  ;;  %1545 = vmatpush.msra.mxu3 %v6290_v48 }
 0x25e   :  { %9153 = vst [vmem:[#allocation170_spill] sm:$0xff] %v6266_v7  ;;  %1524 = vmatpush.msra.mxu2 %v6275_v14  ;;  %v6284_v7 = vld [vmem:[#allocation5 + $0x28] sm:$0xff] }
 0x25f   :  { %9154 = vst [vmem:[#allocation171_spill] sm:$0xff] %v6278_v51  ;;  %1505 = vmatpush.msra.mxu1 %v6284_v7  ;;  %v6293_v51 = vld [vmem:[#allocation5] sm:$0xff]  ;;  %1546 = vmatpush.msra.mxu3 %v6302_v35 }
 0x260   :  { %9155 = vst [vmem:[#allocation172_spill] sm:$0xff] %v6281_v38  ;;  %1525 = vmatpush.msra.mxu2 %v6287_v52  ;;  %1486 = vmatpush.msrb.mxu0 %v6293_v51  ;;  %v1243_v38 = vmul.f32 %v3667_v22, %v1236_v53  ;;  %v6312_v22 = vld [vmem:[#allocation2 + $0x3d8] sm:$0xff]  ;;  %v6315_v53 = vld [vmem:[#allocation2 + $0x380] sm:$0xff] }
 0x261   :  { %9156 = vst [vmem:[#allocation173_spill] sm:$0xff] %v6284_v7  ;;  %1506 = vmatpush.msra.mxu1 %v6296_v23  ;;  %v6299_v7 = vld [vmem:[#allocation5 + $0x10] sm:$0xff]  ;;  %1749 = vmatpush.msrb.mxu3 %v6312_v22 }
 0x262   :  { %1526 = vmatpush.msra.mxu2 %v6299_v7  ;;  %1487 = vmatmul.f32.vlgmr.msrb.gmra.mxu0 %v1243_v38 }
 0x263   :  { %1507 = vmatmul.f32.vlgmr.msra.gmra.mxu1 %v1243_v38  ;;  %1527 = vmatmul.f32.vlgmr.msra.gmra.mxu2 %v1243_v38 }
 0x264   :  { %1547 = vmatmul.f32.vlgmr.msra.gmra.mxu3 %v1243_v38  ;;  %1689 = vmatpush.msra.mxu0 %v6305_v26  ;;  %v9186_v38 = vld [vmem:[#allocation65_spill] sm:$0xff] }
 0x265   :  { %1709 = vmatpush.msrb.mxu1 %v6308_v31  ;;  %1729 = vmatpush.msrb.mxu2 %v5629_v63  ;;  %v9157_v63 = vld [vmem:[#allocation32_spill] sm:$0xff] }
 0x266   :  { %1690 = vmatpush.msra.mxu0 %v6315_v53  ;;  %1750 = vmatpush.msrb.mxu3 %v5640_v57  ;;  %v9160_v57 = vld [vmem:[#allocation35_spill] sm:$0xff] }
 0x267   :  { %1710 = vmatpush.msrb.mxu1 %v5634_v54  ;;  %1730 = vmatpush.msrb.mxu2 %v5637_v28  ;;  %v9158_v54 = vld [vmem:[#allocation33_spill] sm:$0xff]  ;;  %v9159_v28 = vld [vmem:[#allocation34_spill] sm:$0xff] }
 0x268   :  { %1691 = vmatpush.msra.mxu0 %v5643_v0  ;;  %1751 = vmatpush.msrb.mxu3 %v5652_v60  ;;  %v9161_v0 = vld [vmem:[#allocation36_spill] sm:$0xff]  ;;  %v9164_v60 = vld [vmem:[#allocation39_spill] sm:$0xff] }
 0x269   :  { %1711 = vmatpush.msrb.mxu1 %v5646_v9  ;;  %1731 = vmatpush.msrb.mxu2 %v5649_v37  ;;  %v9162_v9 = vld [vmem:[#allocation37_spill] sm:$0xff]  ;;  %v9163_v37 = vld [vmem:[#allocation38_spill] sm:$0xff] }
 0x26a   :  { %1692 = vmatpush.msra.mxu0 %v5655_v44  ;;  %1752 = vmatpush.msrb.mxu3 %v5664_v3  ;;  %v9165_v44 = vld [vmem:[#allocation41_spill] sm:$0xff]  ;;  %v9168_v3 = vld [vmem:[#allocation44_spill] sm:$0xff] }
 0x26b   :  { %1712 = vmatpush.msrb.mxu1 %v5658_v5  ;;  %1732 = vmatpush.msrb.mxu2 %v5661_v4  ;;  %v9166_v5 = vld [vmem:[#allocation42_spill] sm:$0xff]  ;;  %v9167_v4 = vld [vmem:[#allocation43_spill] sm:$0xff] }
 0x26c   :  { %1693 = vmatpush.msra.mxu0 %v5667_v59  ;;  %1753 = vmatpush.msrb.mxu3 %v5676_v8  ;;  %v9169_v59 = vld [vmem:[#allocation45_spill] sm:$0xff] }
 0x26d   :  { %1713 = vmatpush.msrb.mxu1 %v5670_v12  ;;  %1733 = vmatpush.msrb.mxu2 %v5673_v55  ;;  %v9170_v12 = vld [vmem:[#allocation46_spill] sm:$0xff]  ;;  %v9171_v55 = vld [vmem:[#allocation47_spill] sm:$0xff]  ;;  %v9172_v8 = vld [vmem:[#allocation49_spill] sm:$0xff] }
 0x26e   :  { %1694 = vmatpush.msra.mxu0 %v5679_v15  ;;  %1754 = vmatpush.msrb.mxu3 %v5688_v41  ;;  %v9173_v15 = vld [vmem:[#allocation50_spill] sm:$0xff]  ;;  %v9176_v41 = vld [vmem:[#allocation53_spill] sm:$0xff] }
 0x26f   :  { %1714 = vmatpush.msrb.mxu1 %v5682_v10  ;;  %1734 = vmatpush.msrb.mxu2 %v5685_v2  ;;  %v9174_v10 = vld [vmem:[#allocation51_spill] sm:$0xff]  ;;  %v9175_v2 = vld [vmem:[#allocation52_spill] sm:$0xff] }
 0x270   :  { %1695 = vmatpush.msra.mxu0 %v5691_v62  ;;  %1755 = vmatpush.msrb.mxu3 %v5700_v27  ;;  %v9177_v62 = vld [vmem:[#allocation54_spill] sm:$0xff] }
 0x271   :  { %1715 = vmatpush.msrb.mxu1 %v5694_v61  ;;  %1735 = vmatpush.msrb.mxu2 %v5697_v11  ;;  %v9178_v61 = vld [vmem:[#allocation55_spill] sm:$0xff]  ;;  %v9179_v11 = vld [vmem:[#allocation57_spill] sm:$0xff]  ;;  %v9180_v27 = vld [vmem:[#allocation58_spill] sm:$0xff] }
 0x272   :  { %1696 = vmatpush.msra.mxu0 %v5703_v17  ;;  %1756 = vmatpush.msrb.mxu3 %v5712_v56  ;;  %v9181_v17 = vld [vmem:[#allocation60_spill] sm:$0xff]  ;;  %v9184_v56 = vld [vmem:[#allocation63_spill] sm:$0xff] }
 0x273   :  { %1716 = vmatpush.msrb.mxu1 %v5706_v50  ;;  %1736 = vmatpush.msrb.mxu2 %v5709_v25  ;;  %v9182_v50 = vld [vmem:[#allocation61_spill] sm:$0xff]  ;;  %v9183_v25 = vld [vmem:[#allocation62_spill] sm:$0xff] }
 0x274   :  { %1697 = vmatpush.msra.mxu0 %v5715_v34  ;;  %1757 = vmatpush.msrb.mxu3 %v9159_v28  ;;  %v9185_v34 = vld [vmem:[#allocation64_spill] sm:$0xff]  ;;  %v9189_v28 = vld [vmem:[#allocation69_spill] sm:$0xff] }
 0x275   :  { %1717 = vmatpush.msrb.mxu1 %v9157_v63  ;;  %1737 = vmatpush.msrb.mxu2 %v9158_v54  ;;  %v9187_v63 = vld [vmem:[#allocation66_spill] sm:$0xff]  ;;  %v9188_v54 = vld [vmem:[#allocation68_spill] sm:$0xff] }
 0x276   :  { %1698 = vmatpush.msra.mxu0 %v9160_v57  ;;  %1758 = vmatpush.msrb.mxu3 %v9163_v37  ;;  %v9190_v57 = vld [vmem:[#allocation70_spill] sm:$0xff] }
 0x277   :  { %1718 = vmatpush.msrb.mxu1 %v9161_v0  ;;  %1738 = vmatpush.msrb.mxu2 %v9162_v9  ;;  %v9191_v0 = vld [vmem:[#allocation71_spill] sm:$0xff]  ;;  %v9192_v9 = vld [vmem:[#allocation72_spill] sm:$0xff]  ;;  %v9193_v37 = vld [vmem:[#allocation74_spill] sm:$0xff] }
 0x278   :  { %1699 = vmatpush.msra.mxu0 %v9164_v60  ;;  %1759 = vmatpush.msrb.mxu3 %v9167_v4  ;;  %v9194_v60 = vld [vmem:[#allocation75_spill] sm:$0xff]  ;;  %v9197_v4 = vld [vmem:[#allocation78_spill] sm:$0xff] }
 0x279   :  { %1719 = vmatpush.msrb.mxu1 %v9165_v44  ;;  %1739 = vmatpush.msrb.mxu2 %v9166_v5  ;;  %v9195_v44 = vld [vmem:[#allocation76_spill] sm:$0xff]  ;;  %v9196_v5 = vld [vmem:[#allocation77_spill] sm:$0xff] }
 0x27a   :  { %1700 = vmatpush.msra.mxu0 %v9168_v3  ;;  %1760 = vmatpush.msrb.mxu3 %v9171_v55  ;;  %v9198_v3 = vld [vmem:[#allocation79_spill] sm:$0xff]  ;;  %v9201_v55 = vld [vmem:[#allocation82_spill] sm:$0xff] }
 0x27b   :  { %1720 = vmatpush.msrb.mxu1 %v9169_v59  ;;  %1740 = vmatpush.msrb.mxu2 %v9170_v12  ;;  %v9199_v59 = vld [vmem:[#allocation80_spill] sm:$0xff]  ;;  %v9200_v12 = vld [vmem:[#allocation81_spill] sm:$0xff] }
 0x27c   :  { %1701 = vmatpush.msra.mxu0 %v9172_v8  ;;  %1761 = vmatpush.msrb.mxu3 %v9175_v2  ;;  %v9202_v8 = vld [vmem:[#allocation83_spill] sm:$0xff]  ;;  %v9205_v2 = vld [vmem:[#allocation86_spill] sm:$0xff] }
 0x27d   :  { %1721 = vmatpush.msrb.mxu1 %v9173_v15  ;;  %1741 = vmatpush.msrb.mxu2 %v9174_v10  ;;  %v9203_v15 = vld [vmem:[#allocation84_spill] sm:$0xff]  ;;  %v9204_v10 = vld [vmem:[#allocation85_spill] sm:$0xff] }
 0x27e   :  { %1702 = vmatpush.msra.mxu0 %v9176_v41  ;;  %1762 = vmatpush.msrb.mxu3 %v9179_v11  ;;  %v9206_v41 = vld [vmem:[#allocation87_spill] sm:$0xff] }
 0x27f   :  { %1722 = vmatpush.msrb.mxu1 %v9177_v62  ;;  %1742 = vmatpush.msrb.mxu2 %v9178_v61  ;;  %v9207_v62 = vld [vmem:[#allocation89_spill] sm:$0xff]  ;;  %v9208_v61 = vld [vmem:[#allocation90_spill] sm:$0xff]  ;;  %v9209_v11 = vld [vmem:[#allocation91_spill] sm:$0xff] }
 0x280   :  { %1703 = vmatpush.msra.mxu0 %v9180_v27  ;;  %1763 = vmatpush.msrb.mxu3 %v9183_v25  ;;  %v9210_v27 = vld [vmem:[#allocation92_spill] sm:$0xff]  ;;  %v9213_v25 = vld [vmem:[#allocation95_spill] sm:$0xff] }
 0x281   :  { %1723 = vmatpush.msrb.mxu1 %v9181_v17  ;;  %1743 = vmatpush.msrb.mxu2 %v9182_v50  ;;  %v9211_v17 = vld [vmem:[#allocation93_spill] sm:$0xff]  ;;  %v9212_v50 = vld [vmem:[#allocation94_spill] sm:$0xff] }
 0x282   :  { %1704 = vmatpush.msra.mxu0 %v9184_v56  ;;  %1764 = vmatpush.msrb.mxu3 %v9187_v63  ;;  %v9214_v56 = vld [vmem:[#allocation96_spill] sm:$0xff]  ;;  %v9217_v63 = vld [vmem:[#allocation99_spill] sm:$0xff] }
 0x283   :  { %1724 = vmatpush.msrb.mxu1 %v9185_v34  ;;  %1744 = vmatpush.msrb.mxu2 %v9186_v38  ;;  %v9215_v34 = vld [vmem:[#allocation97_spill] sm:$0xff]  ;;  %v9216_v38 = vld [vmem:[#allocation98_spill] sm:$0xff] }
 0x284   :  { %1769 = vmatpush.msrb.mxu0 %v9188_v54  ;;  %1829 = vmatpush.msra.mxu3 %v9191_v0  ;;  %v9218_v54 = vld [vmem:[#allocation100_spill] sm:$0xff]  ;;  %v9221_v0 = vld [vmem:[#allocation103_spill] sm:$0xff] }
 0x285   :  { %1789 = vmatpush.msra.mxu1 %v9189_v28  ;;  %1809 = vmatpush.msra.mxu2 %v9190_v57  ;;  %v9219_v28 = vld [vmem:[#allocation101_spill] sm:$0xff]  ;;  %v9220_v57 = vld [vmem:[#allocation102_spill] sm:$0xff] }
 0x286   :  { %1770 = vmatpush.msrb.mxu0 %v9192_v9  ;;  %1830 = vmatpush.msra.mxu3 %v9195_v44  ;;  %v9222_v9 = vld [vmem:[#allocation104_spill] sm:$0xff]  ;;  %v9225_v44 = vld [vmem:[#allocation107_spill] sm:$0xff] }
 0x287   :  { %1790 = vmatpush.msra.mxu1 %v9193_v37  ;;  %1810 = vmatpush.msra.mxu2 %v9194_v60  ;;  %v9223_v37 = vld [vmem:[#allocation105_spill] sm:$0xff]  ;;  %v9224_v60 = vld [vmem:[#allocation106_spill] sm:$0xff] }
 0x288   :  { %1771 = vmatpush.msrb.mxu0 %v9196_v5  ;;  %1831 = vmatpush.msra.mxu3 %v9199_v59  ;;  %v9226_v5 = vld [vmem:[#allocation108_spill] sm:$0xff]  ;;  %v9229_v59 = vld [vmem:[#allocation111_spill] sm:$0xff] }
 0x289   :  { %1791 = vmatpush.msra.mxu1 %v9197_v4  ;;  %1811 = vmatpush.msra.mxu2 %v9198_v3  ;;  %v9227_v4 = vld [vmem:[#allocation109_spill] sm:$0xff]  ;;  %v9228_v3 = vld [vmem:[#allocation110_spill] sm:$0xff] }
 0x28a   :  { %1772 = vmatpush.msrb.mxu0 %v9200_v12  ;;  %1832 = vmatpush.msra.mxu3 %v9203_v15  ;;  %v9230_v12 = vld [vmem:[#allocation112_spill] sm:$0xff]  ;;  %v9233_v15 = vld [vmem:[#allocation115_spill] sm:$0xff] }
 0x28b   :  { %1792 = vmatpush.msra.mxu1 %v9201_v55  ;;  %1812 = vmatpush.msra.mxu2 %v9202_v8  ;;  %v9231_v55 = vld [vmem:[#allocation113_spill] sm:$0xff]  ;;  %v9232_v8 = vld [vmem:[#allocation114_spill] sm:$0xff] }
 0x28c   :  { %1773 = vmatpush.msrb.mxu0 %v9204_v10  ;;  %1833 = vmatpush.msra.mxu3 %v9207_v62  ;;  %v9234_v10 = vld [vmem:[#allocation116_spill] sm:$0xff]  ;;  %v9237_v62 = vld [vmem:[#allocation119_spill] sm:$0xff] }
 0x28d   :  { %1793 = vmatpush.msra.mxu1 %v9205_v2  ;;  %1813 = vmatpush.msra.mxu2 %v9206_v41  ;;  %v9235_v2 = vld [vmem:[#allocation117_spill] sm:$0xff]  ;;  %v9236_v41 = vld [vmem:[#allocation118_spill] sm:$0xff] }
 0x28e   :  { %1774 = vmatpush.msrb.mxu0 %v9208_v61  ;;  %1834 = vmatpush.msra.mxu3 %v9211_v17  ;;  %v9238_v61 = vld [vmem:[#allocation120_spill] sm:$0xff]  ;;  %v9241_v17 = vld [vmem:[#allocation123_spill] sm:$0xff] }
 0x28f   :  { %1794 = vmatpush.msra.mxu1 %v9209_v11  ;;  %1814 = vmatpush.msra.mxu2 %v9210_v27  ;;  %v9239_v11 = vld [vmem:[#allocation121_spill] sm:$0xff]  ;;  %v9240_v27 = vld [vmem:[#allocation122_spill] sm:$0xff] }
 0x290   :  { %1775 = vmatpush.msrb.mxu0 %v9212_v50  ;;  %1835 = vmatpush.msra.mxu3 %v9215_v34  ;;  %v9242_v50 = vld [vmem:[#allocation124_spill] sm:$0xff]  ;;  %v9245_v34 = vld [vmem:[#allocation127_spill] sm:$0xff] }
 0x291   :  { %1795 = vmatpush.msra.mxu1 %v9213_v25  ;;  %1815 = vmatpush.msra.mxu2 %v9214_v56  ;;  %v9243_v25 = vld [vmem:[#allocation125_spill] sm:$0xff]  ;;  %v9244_v56 = vld [vmem:[#allocation126_spill] sm:$0xff] }
 0x292   :  { %1776 = vmatpush.msrb.mxu0 %v9216_v38  ;;  %1836 = vmatpush.msra.mxu3 %v9219_v28  ;;  %v9246_v38 = vld [vmem:[#allocation128_spill] sm:$0xff]  ;;  %v9249_v28 = vld [vmem:[#allocation131_spill] sm:$0xff] }
 0x293   :  { %1796 = vmatpush.msra.mxu1 %v9217_v63  ;;  %1816 = vmatpush.msra.mxu2 %v9218_v54  ;;  %v9247_v63 = vld [vmem:[#allocation129_spill] sm:$0xff]  ;;  %v9248_v54 = vld [vmem:[#allocation130_spill] sm:$0xff] }
 0x294   :  { %1777 = vmatpush.msrb.mxu0 %v9220_v57  ;;  %1837 = vmatpush.msra.mxu3 %v9223_v37  ;;  %v9250_v57 = vld [vmem:[#allocation132_spill] sm:$0xff] }
 0x295   :  { %1797 = vmatpush.msra.mxu1 %v9221_v0  ;;  %1817 = vmatpush.msra.mxu2 %v9222_v9  ;;  %v9251_v0 = vld [vmem:[#allocation133_spill] sm:$0xff] }
 0x296   :  { %1778 = vmatpush.msrb.mxu0 %v9224_v60  ;;  %1838 = vmatpush.msra.mxu3 %v9227_v4 }
 0x297   :  { %1798 = vmatpush.msra.mxu1 %v9225_v44  ;;  %1818 = vmatpush.msra.mxu2 %v9226_v5  ;;  %v9252_v44 = vld [vmem:[#allocation56_spill] sm:$0xff]  ;;  %v9253_v5 = vld [vmem:[#allocation11_spill] sm:$0xff] }
 0x298   :  { %1779 = vmatpush.msrb.mxu0 %v9228_v3  ;;  %1839 = vmatpush.msra.mxu3 %v9231_v55  ;;  %v190_v4 = vadd.f32 %v9253_v5, %v9252_v44  ;;  %v9254_v3 = vld [vmem:[#allocation40_spill] sm:$0xff] }
 0x299   :  { %1799 = vmatpush.msra.mxu1 %v9229_v59  ;;  %1819 = vmatpush.msra.mxu2 %v9230_v12  ;;  %v9255_v59 = vld [vmem:[#allocation19_spill] sm:$0xff] }
 0x29a   :  { %1780 = vmatpush.msrb.mxu0 %v9232_v8  ;;  %1840 = vmatpush.msra.mxu3 %v9235_v2  ;;  %v149_v12 = vadd.f32 %v9255_v59, %v9254_v3 }
 0x29b   :  { %1800 = vmatpush.msra.mxu1 %v9233_v15  ;;  %1820 = vmatpush.msra.mxu2 %v9234_v10 }
 0x29c   :  { %1781 = vmatpush.msrb.mxu0 %v9236_v41  ;;  %1841 = vmatpush.msra.mxu3 %v9239_v11 }
 0x29d   :  { %1801 = vmatpush.msra.mxu1 %v9237_v62  ;;  %1821 = vmatpush.msra.mxu2 %v9238_v61  ;;  %v9256_v62 = vld [vmem:[#allocation67_spill] sm:$0xff]  ;;  %v9257_v61 = vld [vmem:[#allocation12_spill] sm:$0xff] }
 0x29e   :  { %1782 = vmatpush.msrb.mxu0 %v9240_v27  ;;  %1842 = vmatpush.msra.mxu3 %v9243_v25  ;;  %v272_v11 = vadd.f32 %v9257_v61, %v9256_v62 }
 0x29f   :  { %1802 = vmatpush.msra.mxu1 %v9241_v17  ;;  %1822 = vmatpush.msra.mxu2 %v9242_v50 }
 0x2a0   :  { %1783 = vmatpush.msrb.mxu0 %v9244_v56  ;;  %1843 = vmatpush.msra.mxu3 %v9247_v63 }
 0x2a1   :  { %1803 = vmatpush.msra.mxu1 %v9245_v34  ;;  %1823 = vmatpush.msra.mxu2 %v9246_v38 }
 0x2a2   :  { %1784 = vmatpush.msrb.mxu0 %v9248_v54  ;;  %1844 = vmatpush.msra.mxu3 %v9251_v0  ;;  %v9259_v0 = vld [vmem:[#allocation14_spill] sm:$0xff] }
 0x2a3   :  { %1804 = vmatpush.msra.mxu1 %v9249_v28  ;;  %1824 = vmatpush.msra.mxu2 %v9250_v57  ;;  %v9258_v57 = vld [vmem:[#allocation88_spill] sm:$0xff] }
 0x2a4   :  { %v231_v5 = vadd.f32 %v9259_v0, %v9258_v57 }
 0x2b3   :  { %v1328_v9 = vpop.f32.mrf.mxu0  ;;  %v1348_v37 = vpop.f32.mrf.mxu1 }
 0x2ba   :  { %v6441_v60 = vpop.f32.mrf.mxu3  ;;  %v6449_v27 = vpop.f32.mrf.mxu2 }
 0x2bd   :  { %v1408_v55 = vpop.f32.mrf.mxu0  ;;  %v1428_v8 = vpop.f32.mrf.mxu1 }
 0x2be   :  { %v1622_v15 = vadd.f32 %v1408_v55, %v149_v12  ;;  %v1623_v10 = vadd.f32 %v1428_v8, %v190_v4 }
 0x2c0   :  { %v3546_v2 = vmul.f32 -1.442695, %v1622_v15  ;;  %v3547_v41 = vmul.f32 -1.442695, %v1623_v10 }
 0x2c2   :  { %3668 = vpow2.f32 %v3546_v2 }
 0x2c3   :  { %3670 = vpow2.f32 %v3547_v41 }
 0x2c4   :  { %v1468_v17 = vpop.f32.mrf.mxu3  ;;  %v1448_v54 = vpop.f32.mrf.mxu2 }
 0x2c5   :  { %v1625_v50 = vadd.f32 %v1468_v17, %v272_v11  ;;  %v1624_v12 = vadd.f32 %v1448_v54, %v231_v5 }
 0x2c7   :  { %v3548_v25 = vmul.f32 -1.442695, %v1625_v50 }
 0x2c8   :  { %v3669_v56 = vpop.eup %3668 }
 0x2c9   :  { %v3671_v34 = vpop.eup %3670  ;;  %v1635_v38 = vadd.f32 1.0, %v3669_v56  ;;  %3672 = vpow2.f32 %v3548_v25 }
 0x2ca   :  { %v1636_v63 = vadd.f32 1.0, %v3671_v34 }
 0x2cb   :  { %3674 = vrcp.f32 %v1635_v38  ;;  %v1647_v41 = vand.u32 2147483647, %v1635_v38  ;;  %v1649_v61 = vand.u32 2147483648, %v1635_v38  ;;  %vm1643_vm0 = vweird.f32 %v1635_v38 }
 0x2cc   :  { %3676 = vrcp.f32 %v1636_v63  ;;  %v1664_v11 = vand.u32 2147483648, %v1636_v63  ;;  %v1662_v25 = vand.u32 2147483647, %v1636_v63  ;;  %vm1658_vm1 = vweird.f32 %v1636_v63 }
 0x2cd   :  { %vm1648_vm3 = vcmp.eq.f32.partialorder %v1647_v41, 8.507059e+37 }
 0x2ce   :  { %vm1663_vm5 = vcmp.eq.f32.partialorder %v1662_v25, 8.507059e+37 }
 0x2cf   :  { %v3673_v28 = vpop.eup %3672 }
 0x2d0   :  { %v6453_v4 = vadd.f32 1.0, %v3673_v28 }
 0x2d1   :  { %v3675_v59 = vpop.eup %3674 }
 0x2d2   :  { %v3677_v55 = vpop.eup %3676  ;;  %v1639_v8 = vmul.f32 %v3675_v59, %v1635_v38  ;;  %3678 = vrcp.f32 %v6453_v4  ;;  %vm1644_vm14 = vweird.f32 %v3675_v59  ;;  %vm1673_vm7 = vweird.f32 %v6453_v4 }
 0x2d3   :  { %v1654_v15 = vmul.f32 %v3677_v55, %v1636_v63  ;;  %3680 = vtanh.f32 %v1624_v12  ;;  %vm1659_vm15 = vweird.f32 %v3677_v55  ;;  %vm1645_vm2 = vmor %vm1643_vm0, %vm1644_vm14 }
 0x2d4   :  { %v1640_v10 = vsub.f32 1.0, %v1639_v8  ;;  %v1650_v8 = vor.u32 1.1754944e-38, %v1649_v61  ;;  %vm1660_vm4 = vmor %vm1658_vm1, %vm1659_vm15 }
 0x2d5   :  { %v1655_v2 = vsub.f32 1.0, %v1654_v15 }
 0x2d6   :  { %v1641_v17 = vmul.f32 %v3675_v59, %v1640_v10  ;;  %v1665_v10 = vor.u32 1.1754944e-38, %v1664_v11 }
 0x2d7   :  { %v1656_v50 = vmul.f32 %v3677_v55, %v1655_v2 }
 0x2d8   :  { %v3679_v54 = vpop.eup %3678  ;;  %v1642_v28 = vadd.f32 %v3675_v59, %v1641_v17 }
 0x2d9   :  { %v1657_v15 = vadd.f32 %v3677_v55, %v1656_v50  ;;  %v1669_v12 = vmul.f32 %v3679_v54, %v6453_v4  ;;  %v3681_v62 = vpop.eup %3680  ;;  %vm1674_vm6 = vweird.f32 %v3679_v54 }
 0x2da   :  { %v1646_v2 = vsel %vm1645_vm2, %v3675_v59, %v1642_v28  ;;  %vm1675_vm8 = vmor %vm1673_vm7, %vm1674_vm6 }
 0x2db   :  { %v1651_v3 = vsel %vm1648_vm3, %v1650_v8, %v1646_v2  ;;  %v1661_v63 = vsel %vm1660_vm4, %v3677_v55, %v1657_v15  ;;  %v1679_v55 = vand.u32 2147483648, %v6453_v4 }
 0x2dc   :  { %v1685_v17 = vmul.f32 %v3681_v62, %v1651_v3  ;;  %v1677_v3 = vand.u32 2147483647, %v6453_v4 }
 0x2de   :  { %vm1678_vm9 = vcmp.eq.f32.partialorder %v1677_v3, 8.507059e+37 }
 0x2df   :  { %v1488_v56 = vpop.f32.mrf.mxu0 }
 0x2e0   :  { %v1508_v34 = vpop.f32.mrf.mxu1  ;;  %v1551_v0 = vadd.f32 %v1488_v56, %v1328_v9  ;;  %v1670_v9 = vsub.f32 1.0, %v1669_v12 }
 0x2e1   :  { %v1552_v5 = vadd.f32 %v1508_v34, %v1348_v37  ;;  %v1666_v37 = vsel %vm1663_vm5, %v1665_v10, %v1661_v63 }
 0x2e2   :  { %v1555_v38 = vadd.f32 %v1551_v0, %v5498_v39  ;;  %v1684_v50 = vmul.f32 %v1666_v37, %v6023_v58  ;;  %v1671_v56 = vmul.f32 %v3679_v54, %v1670_v9 }
 0x2e3   :  { %v1556_v57 = vadd.f32 %v1552_v5, %v5501_v32  ;;  %v1680_v5 = vor.u32 1.1754944e-38, %v1679_v55 }
 0x2e4   :  { %v3543_v41 = vmul.f32 -1.442695, %v1555_v38  ;;  %v6461_v11 = vadd.f32 %v1685_v17, %v1684_v50  ;;  %v1672_v59 = vadd.f32 %v3679_v54, %v1671_v56  ;;  %v9261_v17 = vld [vmem:[#allocation135_spill] sm:$0xff] }
 0x2e5   :  { %v3544_v61 = vmul.f32 -1.442695, %v1556_v57 }
 0x2e6   :  { %3682 = vpow2.f32 %v3543_v41  ;;  %v1676_v57 = vsel %vm1675_vm8, %v3679_v54, %v1672_v59  ;;  %v1528_v4 = vpop.f32.mrf.mxu2 }
 0x2e7   :  { %v1548_v34 = vpop.f32.mrf.mxu3  ;;  %3684 = vpow2.f32 %v3544_v61  ;;  %v1681_v12 = vsel %vm1678_vm9, %v1680_v5, %v1676_v57  ;;  %v1553_v2 = vadd.f32 %v1528_v4, %v6449_v27  ;;  %v9263_v61 = vld [vmem:[#allocation137_spill] sm:$0xff]  ;;  %v9268_v5 = vld [vmem:[#allocation140_spill] sm:$0xff] }
 0x2e8   :  { %v1554_v28 = vadd.f32 %v1548_v34, %v6441_v60  ;;  %3686 = vtanh.f32 %v6461_v11  ;;  %v9294_v34 = vld [vmem:[#allocation166_spill] sm:$0xff] }
 0x2ea   :  { %v1558_v58 = vadd.f32 %v1554_v28, %v5509_v45 }
 0x2ec   :  { %v3683_v62 = vpop.eup %3682  ;;  %v3545_v25 = vmul.f32 -1.442695, %v1558_v58  ;;  %v9267_v58 = vld [vmem:[#allocation139_spill] sm:$0xff] }
 0x2ed   :  { %v3685_v0 = vpop.eup %3684  ;;  %v6469_v8 = vadd.f32 1.0, %v3683_v62 }
 0x2ee   :  { %v6471_v60 = vadd.f32 1.0, %v3685_v0  ;;  %3688 = vpow2.f32 %v3545_v25  ;;  %v3687_v15 = vpop.eup %3686 }
 0x2ef   :  { %3690 = vrcp.f32 %v6469_v8  ;;  %v1688_v10 = vmul.f32 %v3687_v15, %v1681_v12  ;;  %vm1576_vm12 = vweird.f32 %v6469_v8  ;;  %v9271_v15 = vld [vmem:[#allocation143_spill] sm:$0xff]  ;;  %v9272_v12 = vld [vmem:[#allocation144_spill] sm:$0xff] }
 0x2f0   :  { %3692 = vrcp.f32 %v6471_v60  ;;  %vm1591_vm13 = vweird.f32 %v6471_v60 }
 0x2f1   :  { %1705 = vmatmul.f32.vlgmr.msra.gmra.mxu0 %v1688_v10  ;;  %1725 = vmatmul.f32.vlgmr.msrb.gmra.mxu1 %v1688_v10 }
 0x2f2   :  { %1745 = vmatmul.f32.vlgmr.msrb.gmra.mxu2 %v1688_v10  ;;  %1765 = vmatmul.f32.vlgmr.msrb.gmra.mxu3 %v1688_v10 }
 0x2f3   :  { %1849 = vmatpush.msra.mxu0 %v6044_v30  ;;  %1869 = vmatpush.msrb.mxu1 %v6047_v20  ;;  %v1557_v20 = vadd.f32 %v1553_v2, %v5527_v33  ;;  %v9276_v2 = vld [vmem:[#allocation148_spill] sm:$0xff] }
 0x2f4   :  { %v3689_v54 = vpop.eup %3688  ;;  %1889 = vmatpush.msrb.mxu2 %v6054_v21  ;;  %1909 = vmatpush.msrb.mxu3 %v6057_v13  ;;  %v9260_v13 = vld [vmem:[#allocation134_spill] sm:$0xff] }
 0x2f5   :  { %v3691_v38 = vpop.eup %3690  ;;  %v6478_v63 = vadd.f32 1.0, %v3689_v54  ;;  %1850 = vmatpush.msra.mxu0 %v6064_v40  ;;  %1870 = vmatpush.msrb.mxu1 %v6067_v24  ;;  %v1597_v40 = vand.u32 2147483648, %v6471_v60  ;;  %v9275_v54 = vld [vmem:[#allocation147_spill] sm:$0xff] }
 0x2f6   :  { %v3693_v9 = vpop.eup %3692  ;;  %v1572_v37 = vmul.f32 %v3691_v38, %v6469_v8  ;;  %1890 = vmatpush.msrb.mxu2 %v6073_v29  ;;  %1910 = vmatpush.msrb.mxu3 %v6076_v19  ;;  %vm1577_vm10 = vweird.f32 %v3691_v38  ;;  %v1582_v29 = vand.u32 2147483648, %v6469_v8  ;;  %v9262_v19 = vld [vmem:[#allocation136_spill] sm:$0xff] }
 0x2f7   :  { %v1587_v27 = vmul.f32 %v3693_v9, %v6471_v60  ;;  %3694 = vrcp.f32 %v6478_v63  ;;  %1851 = vmatpush.msra.mxu0 %v6080_v6  ;;  %1871 = vmatpush.msrb.mxu1 %v6083_v47  ;;  %vm1592_vm11 = vweird.f32 %v3693_v9  ;;  %v1580_v6 = vand.u32 2147483647, %v6469_v8  ;;  %vm6507_vm14 = vmor %vm1576_vm12, %vm1577_vm10  ;;  %v9269_v8 = vld [vmem:[#allocation141_spill] sm:$0xff] }
 0x2f8   :  { %v1573_v30 = vsub.f32 1.0, %v1572_v37  ;;  %1891 = vmatpush.msrb.mxu2 %v6086_v16  ;;  %1911 = vmatpush.msrb.mxu3 %v9260_v13  ;;  %v1595_v47 = vand.u32 2147483647, %v6471_v60  ;;  %v9264_v16 = vld [vmem:[#allocation138_spill] sm:$0xff]  ;;  %3696 = vtanh.f32 %v1557_v20  ;;  %vm1593_vm15 = vmor %vm1591_vm13, %vm1592_vm11  ;;  %v1598_v28 = vor.u32 1.1754944e-38, %v1597_v40  ;;  %v9279_v37 = vld [vmem:[#allocation151_spill] sm:$0xff] }
 0x2f9   :  { %v1588_v21 = vsub.f32 1.0, %v1587_v27  ;;  %1852 = vmatpush.msra.mxu0 %v9261_v17  ;;  %1872 = vmatpush.msrb.mxu1 %v9262_v19  ;;  %v1583_v3 = vor.u32 1.1754944e-38, %v1582_v29  ;;  %vm1581_vm0 = vcmp.eq.f32.partialorder %v1580_v6, 8.507059e+37  ;;  %v9283_v20 = vld [vmem:[#allocation155_spill] sm:$0xff]  ;;  %v9284_v13 = vld [vmem:[#allocation156_spill] sm:$0xff]  ;;  %v9285_v40 = vld [vmem:[#allocation157_spill] sm:$0xff]  ;;  %vm1606_vm3 = vweird.f32 %v6478_v63 }
 0x2fa   :  { %v1574_v24 = vmul.f32 %v3691_v38, %v1573_v30  ;;  %1892 = vmatpush.msrb.mxu2 %v9263_v61  ;;  %1912 = vmatpush.msrb.mxu3 %v9264_v16  ;;  %vm1596_vm1 = vcmp.eq.f32.partialorder %v1595_v47, 8.507059e+37  ;;  %v9282_v30 = vld [vmem:[#allocation154_spill] sm:$0xff]  ;;  %v9287_v29 = vld [vmem:[#allocation159_spill] sm:$0xff]  ;;  %v9288_v17 = vld [vmem:[#allocation160_spill] sm:$0xff] }
 0x2fb   :  { %v1589_v41 = vmul.f32 %v3693_v9, %v1588_v21  ;;  %1785 = vmatmul.f32.vlgmr.msrb.gmra.mxu0 %v1688_v10  ;;  %1805 = vmatmul.f32.vlgmr.msra.gmra.mxu1 %v1688_v10  ;;  %v9289_v19 = vld [vmem:[#allocation161_spill] sm:$0xff]  ;;  %v9291_v6 = vld [vmem:[#allocation163_spill] sm:$0xff]  ;;  %v9292_v61 = vld [vmem:[#allocation164_spill] sm:$0xff] }
 0x2fc   :  { %v1575_v50 = vadd.f32 %v3691_v38, %v1574_v24  ;;  %1825 = vmatmul.f32.vlgmr.msra.gmra.mxu2 %v1688_v10  ;;  %1845 = vmatmul.f32.vlgmr.msra.gmra.mxu3 %v1688_v10  ;;  %v9273_v10 = vld [vmem:[#allocation145_spill] sm:$0xff]  ;;  %v9286_v24 = vld [vmem:[#allocation158_spill] sm:$0xff] }
 0x2fd   :  { %v6503_v56 = vpop.eup %3694  ;;  %v1590_v59 = vadd.f32 %v3693_v9, %v1589_v41  ;;  %1853 = vmatpush.msra.mxu0 %v6137_v49  ;;  %1873 = vmatpush.msrb.mxu1 %v9267_v58  ;;  %v9270_v49 = vld [vmem:[#allocation142_spill] sm:$0xff]  ;;  %v9293_v16 = vld [vmem:[#allocation165_spill] sm:$0xff] }
 0x2fe   :  { %v1579_v55 = vsel %vm6507_vm14, %v3691_v38, %v1575_v50  ;;  %1893 = vmatpush.msrb.mxu2 %v6146_v43  ;;  %1913 = vmatpush.msrb.mxu3 %v6149_v1  ;;  %v1602_v0 = vmul.f32 %v6503_v56, %v6478_v63  ;;  %v3697_v60 = vpop.eup %3696  ;;  %v9277_v38 = vld [vmem:[#allocation149_spill] sm:$0xff]  ;;  %v9290_v41 = vld [vmem:[#allocation162_spill] sm:$0xff]  ;;  %vm1607_vm2 = vweird.f32 %v6503_v56  ;;  %v1612_v50 = vand.u32 2147483648, %v6478_v63 }
 0x2ff   :  { %v1594_v62 = vsel %vm1593_vm15, %v3693_v9, %v1590_v59  ;;  %v1584_v57 = vsel %vm1581_vm0, %v1583_v3, %v1579_v55  ;;  %1854 = vmatpush.msra.mxu0 %v6154_v18  ;;  %1874 = vmatpush.msrb.mxu1 %v9268_v5  ;;  %v9274_v18 = vld [vmem:[#allocation146_spill] sm:$0xff]  ;;  %v9295_v59 = vld [vmem:[#allocation167_spill] sm:$0xff]  ;;  %v9296_v55 = vld [vmem:[#allocation168_spill] sm:$0xff] }
 0x300   :  { %v1599_v25 = vsel %vm1596_vm1, %v1598_v28, %v1594_v62  ;;  %1894 = vmatpush.msrb.mxu2 %v9269_v8  ;;  %1914 = vmatpush.msrb.mxu3 %v9270_v49  ;;  %v1618_v1 = vmul.f32 %v3697_v60, %v1584_v57  ;;  %v1603_v4 = vsub.f32 1.0, %v1602_v0  ;;  %v9278_v9 = vld [vmem:[#allocation150_spill] sm:$0xff]  ;;  %v1610_v28 = vand.u32 2147483647, %v6478_v63  ;;  %v9297_v3 = vld [vmem:[#allocation169_spill] sm:$0xff]  ;;  %vm1608_vm4 = vmor %vm1606_vm3, %vm1607_vm2 }
 0x301   :  { %1855 = vmatpush.msra.mxu0 %v9271_v15  ;;  %1875 = vmatpush.msrb.mxu1 %v9272_v12  ;;  %v1617_v43 = vmul.f32 %v1599_v25, %v6197_v42  ;;  %v9280_v42 = vld [vmem:[#allocation152_spill] sm:$0xff]  ;;  %v9298_v58 = vld [vmem:[#allocation170_spill] sm:$0xff]  ;;  %v9299_v25 = vld [vmem:[#allocation171_spill] sm:$0xff]  ;;  %v1613_v0 = vor.u32 1.1754944e-38, %v1612_v50 }
 0x302   :  { %1895 = vmatpush.msrb.mxu2 %v6173_v36  ;;  %1915 = vmatpush.msrb.mxu3 %v9273_v10  ;;  %v9281_v36 = vld [vmem:[#allocation153_spill] sm:$0xff]  ;;  %v1604_v21 = vmul.f32 %v6503_v56, %v1603_v4  ;;  %v9300_v5 = vld [vmem:[#allocation172_spill] sm:$0xff]  ;;  %vm1611_vm5 = vcmp.eq.f32.partialorder %v1610_v28, 8.507059e+37  ;;  %v6615_v49 = vld [vmem:[#allocation2 + $0x2c0] sm:$0xff] }
 0x303   :  { %1856 = vmatpush.msra.mxu0 %v9274_v18  ;;  %1876 = vmatpush.msrb.mxu1 %v9275_v54  ;;  %v6535_v27 = vadd.f32 %v1618_v1, %v1617_v43  ;;  %v9301_v63 = vld [vmem:[#allocation173_spill] sm:$0xff]  ;;  %v6618_v60 = vld [vmem:[#allocation2 + $0x2c8] sm:$0xff]  ;;  %v6627_v43 = vld [vmem:[#allocation2 + $0x280] sm:$0xff] }
 0x304   :  { %1896 = vmatpush.msrb.mxu2 %v9276_v2  ;;  %1916 = vmatpush.msrb.mxu3 %v9277_v38  ;;  %v1605_v47 = vadd.f32 %v6503_v56, %v1604_v21  ;;  %v6621_v15 = vld [vmem:[#allocation2 + $0x2d0] sm:$0xff]  ;;  %v6624_v12 = vld [vmem:[#allocation2 + $0x2d8] sm:$0xff]  ;;  %v6630_v1 = vld [vmem:[#allocation2 + $0x288] sm:$0xff] }
 0x305   :  { %1857 = vmatpush.msra.mxu0 %v9278_v9  ;;  %1877 = vmatpush.msrb.mxu1 %v9279_v37  ;;  %3698 = vtanh.f32 %v6535_v27  ;;  %v6633_v10 = vld [vmem:[#allocation2 + $0x290] sm:$0xff]  ;;  %v6636_v4 = vld [vmem:[#allocation2 + $0x298] sm:$0xff]  ;;  %v6639_v18 = vld [vmem:[#allocation2 + $0x240] sm:$0xff] }
 0x306   :  { %1897 = vmatpush.msrb.mxu2 %v9280_v42  ;;  %1917 = vmatpush.msrb.mxu3 %v9281_v36  ;;  %v1609_v62 = vsel %vm1608_vm4, %v6503_v56, %v1605_v47  ;;  %v6612_v56 = vld [vmem:[#allocation2 + $0x318] sm:$0xff]  ;;  %v6642_v54 = vld [vmem:[#allocation2 + $0x248] sm:$0xff]  ;;  %v6645_v2 = vld [vmem:[#allocation2 + $0x250] sm:$0xff] }
 0x307   :  { %1858 = vmatpush.msra.mxu0 %v9282_v30  ;;  %1878 = vmatpush.msrb.mxu1 %v9283_v20  ;;  %v1614_v8 = vsel %vm1611_vm5, %v1613_v0, %v1609_v62  ;;  %v6648_v38 = vld [vmem:[#allocation2 + $0x258] sm:$0xff]  ;;  %v6651_v9 = vld [vmem:[#allocation2 + $0x200] sm:$0xff]  ;;  %v6654_v37 = vld [vmem:[#allocation2 + $0x208] sm:$0xff] }
 0x308   :  { %1898 = vmatpush.msrb.mxu2 %v9284_v13  ;;  %1918 = vmatpush.msrb.mxu3 %v9285_v40  ;;  %v6657_v42 = vld [vmem:[#allocation2 + $0x210] sm:$0xff]  ;;  %v6660_v36 = vld [vmem:[#allocation2 + $0x218] sm:$0xff]  ;;  %v6663_v30 = vld [vmem:[#allocation2 + $0x1c0] sm:$0xff] }
 0x309   :  { %1859 = vmatpush.msra.mxu0 %v9286_v24  ;;  %1879 = vmatpush.msrb.mxu1 %v9287_v29  ;;  %v6666_v20 = vld [vmem:[#allocation2 + $0x1c8] sm:$0xff]  ;;  %v6669_v21 = vld [vmem:[#allocation2 + $0x1d0] sm:$0xff]  ;;  %v6672_v13 = vld [vmem:[#allocation2 + $0x1d8] sm:$0xff] }
 0x30a   :  { %1899 = vmatpush.msrb.mxu2 %v9288_v17  ;;  %1919 = vmatpush.msrb.mxu3 %v9289_v19  ;;  %9302 = vst [vmem:[#allocation32_spill] sm:$0xff] %v6666_v20  ;;  %v6675_v40 = vld [vmem:[#allocation2 + $0x180] sm:$0xff]  ;;  %v6678_v24 = vld [vmem:[#allocation2 + $0x188] sm:$0xff]  ;;  %v6681_v29 = vld [vmem:[#allocation2 + $0x190] sm:$0xff] }
 0x30b   :  { %1860 = vmatpush.msra.mxu0 %v9290_v41  ;;  %1880 = vmatpush.msrb.mxu1 %v9291_v6  ;;  %v3699_v57 = vpop.eup %3698  ;;  %9303 = vst [vmem:[#allocation33_spill] sm:$0xff] %v6669_v21  ;;  %v6684_v17 = vld [vmem:[#allocation2 + $0x198] sm:$0xff]  ;;  %v6687_v19 = vld [vmem:[#allocation2 + $0x140] sm:$0xff]  ;;  %v6690_v41 = vld [vmem:[#allocation2 + $0x148] sm:$0xff] }
 0x30c   :  { %1900 = vmatpush.msrb.mxu2 %v9292_v61  ;;  %1920 = vmatpush.msrb.mxu3 %v9293_v16  ;;  %9304 = vst [vmem:[#allocation34_spill] sm:$0xff] %v6672_v13  ;;  %v6693_v6 = vld [vmem:[#allocation2 + $0x150] sm:$0xff]  ;;  %v6696_v47 = vld [vmem:[#allocation2 + $0x158] sm:$0xff]  ;;  %v6699_v61 = vld [vmem:[#allocation2 + $0x100] sm:$0xff] }
 0x30d   :  { %1861 = vmatpush.msra.mxu0 %v9294_v34  ;;  %1881 = vmatpush.msrb.mxu1 %v9295_v59  ;;  %9305 = vst [vmem:[#allocation35_spill] sm:$0xff] %v6675_v40  ;;  %v6702_v16 = vld [vmem:[#allocation2 + $0x108] sm:$0xff]  ;;  %v6705_v50 = vld [vmem:[#allocation2 + $0x110] sm:$0xff]  ;;  %v6708_v34 = vld [vmem:[#allocation2 + $0x118] sm:$0xff] }
 0x30e   :  { %1901 = vmatpush.msrb.mxu2 %v9296_v55  ;;  %1921 = vmatpush.msrb.mxu3 %v9297_v3  ;;  %9306 = vst [vmem:[#allocation36_spill] sm:$0xff] %v6678_v24  ;;  %v6711_v59 = vld [vmem:[#allocation2 + $0xc0] sm:$0xff]  ;;  %v6714_v28 = vld [vmem:[#allocation2 + $0xc8] sm:$0xff]  ;;  %v6717_v55 = vld [vmem:[#allocation2 + $0xd0] sm:$0xff] }
 0x30f   :  { %1862 = vmatpush.msra.mxu0 %v9298_v58  ;;  %1882 = vmatpush.msrb.mxu1 %v6269_v46  ;;  %v1621_v46 = vmul.f32 %v3699_v57, %v1614_v8  ;;  %9307 = vst [vmem:[#allocation37_spill] sm:$0xff] %v6681_v29  ;;  %v6720_v3 = vld [vmem:[#allocation2 + $0xd8] sm:$0xff]  ;;  %v6723_v58 = vld [vmem:[#allocation2 + $0x80] sm:$0xff]  ;;  %v6726_v62 = vld [vmem:[#allocation2 + $0x88] sm:$0xff] }
 0x310   :  { %1902 = vmatpush.msrb.mxu2 %v6275_v14  ;;  %1922 = vmatpush.msrb.mxu3 %v9299_v25  ;;  %v6577_v14 = vld [vmem:[#allocation2 + $0x3d0] sm:$0xff]  ;;  %9308 = vst [vmem:[#allocation38_spill] sm:$0xff] %v6684_v17  ;;  %v6732_v25 = vld [vmem:[#allocation2 + $0x98] sm:$0xff]  ;;  %v6735_v0 = vld [vmem:[#allocation2 + $0x40] sm:$0xff] }
 0x311   :  { %1863 = vmatpush.msra.mxu0 %v9300_v5  ;;  %1883 = vmatpush.msrb.mxu1 %v9301_v63  ;;  %9309 = vst [vmem:[#allocation39_spill] sm:$0xff] %v6687_v19  ;;  %v6729_v57 = vld [vmem:[#allocation2 + $0x90] sm:$0xff]  ;;  %v6738_v5 = vld [vmem:[#allocation2 + $0x48] sm:$0xff]  ;;  %v6744_v8 = vld [vmem:[#allocation2 + $0x58] sm:$0xff] }
 0x312   :  { %1903 = vmatpush.msrb.mxu2 %v6287_v52  ;;  %1923 = vmatpush.msrb.mxu3 %v6290_v48  ;;  %v6588_v52 = vld [vmem:[#allocation2 + $0x398] sm:$0xff]  ;;  %v6591_v48 = vld [vmem:[#allocation2 + $0x340] sm:$0xff]  ;;  %9310 = vst [vmem:[#allocation41_spill] sm:$0xff] %v6690_v41  ;;  %v6741_v63 = vld [vmem:[#allocation2 + $0x50] sm:$0xff] }
 0x313   :  { %1864 = vmatpush.msra.mxu0 %v6293_v51  ;;  %1884 = vmatpush.msrb.mxu1 %v6296_v23  ;;  %v6582_v51 = vld [vmem:[#allocation2 + $0x388] sm:$0xff]  ;;  %9311 = vst [vmem:[#allocation42_spill] sm:$0xff] %v6693_v6 }
 0x314   :  { %1904 = vmatpush.msrb.mxu2 %v6299_v7  ;;  %1924 = vmatpush.msrb.mxu3 %v6302_v35  ;;  %v6585_v7 = vld [vmem:[#allocation2 + $0x390] sm:$0xff]  ;;  %v6594_v23 = vld [vmem:[#allocation2 + $0x348] sm:$0xff]  ;;  %9312 = vst [vmem:[#allocation43_spill] sm:$0xff] %v6696_v47 }
 0x315   :  { %1865 = vmatmul.f32.vlgmr.msra.gmra.mxu0 %v1621_v46  ;;  %1885 = vmatmul.f32.vlgmr.msrb.gmra.mxu1 %v1621_v46  ;;  %v6597_v35 = vld [vmem:[#allocation2 + $0x350] sm:$0xff]  ;;  %9313 = vst [vmem:[#allocation44_spill] sm:$0xff] %v6699_v61 }
 0x316   :  { %1905 = vmatmul.f32.vlgmr.msrb.gmra.mxu2 %v1621_v46  ;;  %1925 = vmatmul.f32.vlgmr.msrb.gmra.mxu3 %v1621_v46  ;;  %9314 = vst [vmem:[#allocation45_spill] sm:$0xff] %v6702_v16  ;;  %v6747_v46 = vld [vmem:[#allocation2] sm:$0xff] }
 0x317   :  { %2067 = vmatpush.msrb.mxu0 %v6305_v26  ;;  %2087 = vmatpush.msra.mxu1 %v6308_v31  ;;  %v6600_v26 = vld [vmem:[#allocation2 + $0x358] sm:$0xff]  ;;  %v6603_v31 = vld [vmem:[#allocation2 + $0x300] sm:$0xff]  ;;  %9315 = vst [vmem:[#allocation46_spill] sm:$0xff] %v6705_v50 }
 0x318   :  { %2107 = vmatpush.msra.mxu2 %v6577_v14  ;;  %2127 = vmatpush.msra.mxu3 %v6312_v22  ;;  %v6606_v22 = vld [vmem:[#allocation2 + $0x308] sm:$0xff]  ;;  %9316 = vst [vmem:[#allocation47_spill] sm:$0xff] %v6708_v34 }
 0x319   :  { %2068 = vmatpush.msrb.mxu0 %v6315_v53  ;;  %2088 = vmatpush.msra.mxu1 %v6582_v51  ;;  %v6609_v53 = vld [vmem:[#allocation2 + $0x310] sm:$0xff]  ;;  %9317 = vst [vmem:[#allocation49_spill] sm:$0xff] %v6711_v59 }
 0x31a   :  { %2108 = vmatpush.msra.mxu2 %v6585_v7  ;;  %2128 = vmatpush.msra.mxu3 %v6588_v52  ;;  %9318 = vst [vmem:[#allocation50_spill] sm:$0xff] %v6714_v28 }
 0x31b   :  { %2069 = vmatpush.msrb.mxu0 %v6591_v48  ;;  %2089 = vmatpush.msra.mxu1 %v6594_v23  ;;  %9319 = vst [vmem:[#allocation51_spill] sm:$0xff] %v6717_v55 }
 0x31c   :  { %2109 = vmatpush.msra.mxu2 %v6597_v35  ;;  %2129 = vmatpush.msra.mxu3 %v6600_v26  ;;  %9320 = vst [vmem:[#allocation52_spill] sm:$0xff] %v6720_v3 }
 0x31d   :  { %2070 = vmatpush.msrb.mxu0 %v6603_v31  ;;  %2090 = vmatpush.msra.mxu1 %v6606_v22  ;;  %9321 = vst [vmem:[#allocation53_spill] sm:$0xff] %v6723_v58 }
 0x31e   :  { %2110 = vmatpush.msra.mxu2 %v6609_v53  ;;  %2130 = vmatpush.msra.mxu3 %v6612_v56  ;;  %9322 = vst [vmem:[#allocation54_spill] sm:$0xff] %v6726_v62 }
 0x31f   :  { %2071 = vmatpush.msrb.mxu0 %v6615_v49  ;;  %2091 = vmatpush.msra.mxu1 %v6618_v60  ;;  %9323 = vst [vmem:[#allocation55_spill] sm:$0xff] %v6729_v57 }
 0x320   :  { %2111 = vmatpush.msra.mxu2 %v6621_v15  ;;  %2131 = vmatpush.msra.mxu3 %v6624_v12  ;;  %9324 = vst [vmem:[#allocation57_spill] sm:$0xff] %v6732_v25 }
 0x321   :  { %2072 = vmatpush.msrb.mxu0 %v6627_v43  ;;  %2092 = vmatpush.msra.mxu1 %v6630_v1  ;;  %9325 = vst [vmem:[#allocation58_spill] sm:$0xff] %v6735_v0 }
 0x322   :  { %2112 = vmatpush.msra.mxu2 %v6633_v10  ;;  %2132 = vmatpush.msra.mxu3 %v6636_v4  ;;  %9326 = vst [vmem:[#allocation60_spill] sm:$0xff] %v6738_v5 }
 0x323   :  { %2073 = vmatpush.msrb.mxu0 %v6639_v18  ;;  %2093 = vmatpush.msra.mxu1 %v6642_v54  ;;  %9327 = vst [vmem:[#allocation61_spill] sm:$0xff] %v6741_v63 }
 0x324   :  { %2113 = vmatpush.msra.mxu2 %v6645_v2  ;;  %2133 = vmatpush.msra.mxu3 %v6648_v38  ;;  %9328 = vst [vmem:[#allocation62_spill] sm:$0xff] %v6744_v8 }
 0x325   :  { %2074 = vmatpush.msrb.mxu0 %v6651_v9  ;;  %2094 = vmatpush.msra.mxu1 %v6654_v37  ;;  %9329 = vst [vmem:[#allocation63_spill] sm:$0xff] %v6747_v46 }
 0x326   :  { %2114 = vmatpush.msra.mxu2 %v6657_v42  ;;  %2134 = vmatpush.msra.mxu3 %v6660_v36 }
 0x327   :  { %2075 = vmatpush.msrb.mxu0 %v6663_v30  ;;  %2095 = vmatpush.msra.mxu1 %v6666_v20 }
 0x328   :  { %2115 = vmatpush.msra.mxu2 %v6669_v21  ;;  %2135 = vmatpush.msra.mxu3 %v6672_v13 }
 0x329   :  { %2076 = vmatpush.msrb.mxu0 %v6675_v40  ;;  %2096 = vmatpush.msra.mxu1 %v6678_v24 }
 0x32a   :  { %2116 = vmatpush.msra.mxu2 %v6681_v29  ;;  %2136 = vmatpush.msra.mxu3 %v6684_v17 }
 0x32b   :  { %2077 = vmatpush.msrb.mxu0 %v6687_v19  ;;  %2097 = vmatpush.msra.mxu1 %v6690_v41 }
 0x32c   :  { %2117 = vmatpush.msra.mxu2 %v6693_v6  ;;  %2137 = vmatpush.msra.mxu3 %v6696_v47 }
 0x32d   :  { %2078 = vmatpush.msrb.mxu0 %v6699_v61  ;;  %2098 = vmatpush.msra.mxu1 %v6702_v16  ;;  %v9400_v16 = vld [vmem:[#allocation67_spill] sm:$0xff] }
 0x32e   :  { %2118 = vmatpush.msra.mxu2 %v6705_v50  ;;  %2138 = vmatpush.msra.mxu3 %v6708_v34  ;;  %v9401_v61 = vld [vmem:[#allocation15_spill] sm:$0xff] }
 0x32f   :  { %2079 = vmatpush.msrb.mxu0 %v6711_v59  ;;  %2099 = vmatpush.msra.mxu1 %v6714_v28 }
 0x330   :  { %2119 = vmatpush.msra.mxu2 %v6717_v55  ;;  %2139 = vmatpush.msra.mxu3 %v6720_v3  ;;  %v9399_v3 = vld [vmem:[#allocation23_spill] sm:$0xff] }
 0x331   :  { %2080 = vmatpush.msrb.mxu0 %v6723_v58  ;;  %2100 = vmatpush.msra.mxu1 %v6726_v62 }
 0x332   :  { %2120 = vmatpush.msra.mxu2 %v6729_v57  ;;  %2140 = vmatpush.msra.mxu3 %v6732_v25  ;;  %v6750_v25 = vld [vmem:[#allocation2 + $0x8] sm:$0xff] }
 0x333   :  { %2081 = vmatpush.msrb.mxu0 %v6735_v0  ;;  %2101 = vmatpush.msra.mxu1 %v6738_v5  ;;  %9330 = vst [vmem:[#allocation64_spill] sm:$0xff] %v6750_v25  ;;  %v6753_v0 = vld [vmem:[#allocation2 + $0x10] sm:$0xff]  ;;  %v6756_v5 = vld [vmem:[#allocation2 + $0x18] sm:$0xff] }
 0x334   :  { %2121 = vmatpush.msra.mxu2 %v6741_v63  ;;  %2141 = vmatpush.msra.mxu3 %v6744_v8  ;;  %9331 = vst [vmem:[#allocation65_spill] sm:$0xff] %v6753_v0  ;;  %v6759_v63 = vld [vmem:[#allocation2 + $0x3e0] sm:$0xff]  ;;  %v6762_v8 = vld [vmem:[#allocation2 + $0x3e8] sm:$0xff] }
 0x335   :  { %2082 = vmatpush.msrb.mxu0 %v6747_v46  ;;  %2102 = vmatpush.msra.mxu1 %v6750_v25  ;;  %9332 = vst [vmem:[#allocation66_spill] sm:$0xff] %v6756_v5  ;;  %v6765_v46 = vld [vmem:[#allocation2 + $0x3f0] sm:$0xff]  ;;  %v6768_v25 = vld [vmem:[#allocation2 + $0x3f8] sm:$0xff] }
 0x336   :  { %2122 = vmatpush.msra.mxu2 %v6753_v0  ;;  %2142 = vmatpush.msra.mxu3 %v6756_v5  ;;  %9333 = vst [vmem:[#allocation68_spill] sm:$0xff] %v6759_v63  ;;  %v6771_v0 = vld [vmem:[#allocation2 + $0x3a0] sm:$0xff]  ;;  %v6774_v5 = vld [vmem:[#allocation2 + $0x3a8] sm:$0xff] }
 0x337   :  { %2147 = vmatpush.msra.mxu0 %v6759_v63  ;;  %9334 = vst [vmem:[#allocation69_spill] sm:$0xff] %v6762_v8  ;;  %2167 = vmatpush.msrb.mxu1 %v6762_v8  ;;  %v6777_v63 = vld [vmem:[#allocation2 + $0x3b0] sm:$0xff]  ;;  %v6780_v8 = vld [vmem:[#allocation2 + $0x3b8] sm:$0xff] }
 0x338   :  { %9335 = vst [vmem:[#allocation70_spill] sm:$0xff] %v6765_v46  ;;  %2187 = vmatpush.msrb.mxu2 %v6765_v46  ;;  %2207 = vmatpush.msrb.mxu3 %v6768_v25  ;;  %v6783_v46 = vld [vmem:[#allocation2 + $0x360] sm:$0xff] }
 0x339   :  { %9336 = vst [vmem:[#allocation71_spill] sm:$0xff] %v6768_v25  ;;  %2148 = vmatpush.msra.mxu0 %v6771_v0  ;;  %2168 = vmatpush.msrb.mxu1 %v6774_v5  ;;  %v6786_v25 = vld [vmem:[#allocation2 + $0x368] sm:$0xff] }
 0x33a   :  { %9337 = vst [vmem:[#allocation72_spill] sm:$0xff] %v6771_v0  ;;  %2188 = vmatpush.msrb.mxu2 %v6777_v63  ;;  %2208 = vmatpush.msrb.mxu3 %v6780_v8  ;;  %v6789_v0 = vld [vmem:[#allocation2 + $0x370] sm:$0xff] }
 0x33b   :  { %9338 = vst [vmem:[#allocation74_spill] sm:$0xff] %v6774_v5  ;;  %2149 = vmatpush.msra.mxu0 %v6783_v46  ;;  %2169 = vmatpush.msrb.mxu1 %v6786_v25  ;;  %v6792_v5 = vld [vmem:[#allocation2 + $0x378] sm:$0xff] }
 0x33c   :  { %9339 = vst [vmem:[#allocation75_spill] sm:$0xff] %v6777_v63  ;;  %2189 = vmatpush.msrb.mxu2 %v6789_v0  ;;  %2209 = vmatpush.msrb.mxu3 %v6792_v5  ;;  %v6795_v63 = vld [vmem:[#allocation2 + $0x320] sm:$0xff] }
 0x33d   :  { %9340 = vst [vmem:[#allocation76_spill] sm:$0xff] %v6780_v8  ;;  %2150 = vmatpush.msra.mxu0 %v6795_v63  ;;  %v6798_v8 = vld [vmem:[#allocation2 + $0x328] sm:$0xff] }
 0x33e   :  { %9341 = vst [vmem:[#allocation77_spill] sm:$0xff] %v6783_v46  ;;  %2170 = vmatpush.msrb.mxu1 %v6798_v8  ;;  %v6801_v46 = vld [vmem:[#allocation2 + $0x330] sm:$0xff] }
 0x33f   :  { %9342 = vst [vmem:[#allocation78_spill] sm:$0xff] %v6786_v25  ;;  %2190 = vmatpush.msrb.mxu2 %v6801_v46  ;;  %v6804_v25 = vld [vmem:[#allocation2 + $0x338] sm:$0xff] }
 0x340   :  { %9343 = vst [vmem:[#allocation79_spill] sm:$0xff] %v6789_v0  ;;  %2210 = vmatpush.msrb.mxu3 %v6804_v25  ;;  %v6807_v0 = vld [vmem:[#allocation2 + $0x2e0] sm:$0xff] }
 0x341   :  { %9344 = vst [vmem:[#allocation80_spill] sm:$0xff] %v6792_v5  ;;  %2151 = vmatpush.msra.mxu0 %v6807_v0  ;;  %v6810_v5 = vld [vmem:[#allocation2 + $0x2e8] sm:$0xff] }
 0x342   :  { %9345 = vst [vmem:[#allocation81_spill] sm:$0xff] %v6795_v63  ;;  %2171 = vmatpush.msrb.mxu1 %v6810_v5  ;;  %v6813_v63 = vld [vmem:[#allocation2 + $0x2f0] sm:$0xff] }
 0x343   :  { %9346 = vst [vmem:[#allocation82_spill] sm:$0xff] %v6798_v8  ;;  %2191 = vmatpush.msrb.mxu2 %v6813_v63  ;;  %v6816_v8 = vld [vmem:[#allocation2 + $0x2f8] sm:$0xff] }
 0x344   :  { %9347 = vst [vmem:[#allocation83_spill] sm:$0xff] %v6801_v46  ;;  %2211 = vmatpush.msrb.mxu3 %v6816_v8  ;;  %v6819_v46 = vld [vmem:[#allocation2 + $0x2a0] sm:$0xff] }
 0x345   :  { %9348 = vst [vmem:[#allocation84_spill] sm:$0xff] %v6804_v25  ;;  %2152 = vmatpush.msra.mxu0 %v6819_v46  ;;  %v6822_v25 = vld [vmem:[#allocation2 + $0x2a8] sm:$0xff] }
 0x346   :  { %9349 = vst [vmem:[#allocation85_spill] sm:$0xff] %v6807_v0  ;;  %2172 = vmatpush.msrb.mxu1 %v6822_v25  ;;  %v6825_v0 = vld [vmem:[#allocation2 + $0x2b0] sm:$0xff] }
 0x347   :  { %9350 = vst [vmem:[#allocation86_spill] sm:$0xff] %v6810_v5  ;;  %2192 = vmatpush.msrb.mxu2 %v6825_v0  ;;  %v6828_v5 = vld [vmem:[#allocation2 + $0x2b8] sm:$0xff] }
 0x348   :  { %9351 = vst [vmem:[#allocation87_spill] sm:$0xff] %v6813_v63  ;;  %2212 = vmatpush.msrb.mxu3 %v6828_v5  ;;  %v6831_v63 = vld [vmem:[#allocation2 + $0x260] sm:$0xff] }
 0x349   :  { %9352 = vst [vmem:[#allocation89_spill] sm:$0xff] %v6816_v8  ;;  %2153 = vmatpush.msra.mxu0 %v6831_v63  ;;  %v6834_v8 = vld [vmem:[#allocation2 + $0x268] sm:$0xff] }
 0x34a   :  { %9353 = vst [vmem:[#allocation90_spill] sm:$0xff] %v6819_v46  ;;  %2173 = vmatpush.msrb.mxu1 %v6834_v8  ;;  %v6837_v46 = vld [vmem:[#allocation2 + $0x270] sm:$0xff] }
 0x34b   :  { %9354 = vst [vmem:[#allocation91_spill] sm:$0xff] %v6822_v25  ;;  %2193 = vmatpush.msrb.mxu2 %v6837_v46  ;;  %v6840_v25 = vld [vmem:[#allocation2 + $0x278] sm:$0xff] }
 0x34c   :  { %9355 = vst [vmem:[#allocation92_spill] sm:$0xff] %v6825_v0  ;;  %2213 = vmatpush.msrb.mxu3 %v6840_v25  ;;  %v6843_v0 = vld [vmem:[#allocation2 + $0x220] sm:$0xff] }
 0x34d   :  { %9356 = vst [vmem:[#allocation93_spill] sm:$0xff] %v6828_v5  ;;  %2154 = vmatpush.msra.mxu0 %v6843_v0  ;;  %v6846_v5 = vld [vmem:[#allocation2 + $0x228] sm:$0xff] }
 0x34e   :  { %9357 = vst [vmem:[#allocation94_spill] sm:$0xff] %v6831_v63  ;;  %2174 = vmatpush.msrb.mxu1 %v6846_v5  ;;  %v6849_v63 = vld [vmem:[#allocation2 + $0x230] sm:$0xff] }
 0x34f   :  { %9358 = vst [vmem:[#allocation95_spill] sm:$0xff] %v6834_v8  ;;  %2194 = vmatpush.msrb.mxu2 %v6849_v63  ;;  %v6852_v8 = vld [vmem:[#allocation2 + $0x238] sm:$0xff] }
 0x350   :  { %9359 = vst [vmem:[#allocation96_spill] sm:$0xff] %v6837_v46  ;;  %2214 = vmatpush.msrb.mxu3 %v6852_v8  ;;  %v6855_v46 = vld [vmem:[#allocation2 + $0x1e0] sm:$0xff] }
 0x351   :  { %9360 = vst [vmem:[#allocation97_spill] sm:$0xff] %v6840_v25  ;;  %2155 = vmatpush.msra.mxu0 %v6855_v46  ;;  %v6858_v25 = vld [vmem:[#allocation2 + $0x1e8] sm:$0xff] }
 0x352   :  { %9361 = vst [vmem:[#allocation98_spill] sm:$0xff] %v6843_v0  ;;  %2175 = vmatpush.msrb.mxu1 %v6858_v25  ;;  %v6861_v0 = vld [vmem:[#allocation2 + $0x1f0] sm:$0xff] }
 0x353   :  { %9362 = vst [vmem:[#allocation99_spill] sm:$0xff] %v6846_v5  ;;  %2195 = vmatpush.msrb.mxu2 %v6861_v0  ;;  %v6864_v5 = vld [vmem:[#allocation2 + $0x1f8] sm:$0xff] }
 0x354   :  { %9363 = vst [vmem:[#allocation100_spill] sm:$0xff] %v6849_v63  ;;  %2215 = vmatpush.msrb.mxu3 %v6864_v5  ;;  %v6867_v63 = vld [vmem:[#allocation2 + $0x1a0] sm:$0xff] }
 0x355   :  { %9364 = vst [vmem:[#allocation101_spill] sm:$0xff] %v6852_v8  ;;  %2156 = vmatpush.msra.mxu0 %v6867_v63  ;;  %v6870_v8 = vld [vmem:[#allocation2 + $0x1a8] sm:$0xff] }
 0x356   :  { %9365 = vst [vmem:[#allocation102_spill] sm:$0xff] %v6855_v46  ;;  %2176 = vmatpush.msrb.mxu1 %v6870_v8  ;;  %v6873_v46 = vld [vmem:[#allocation2 + $0x1b0] sm:$0xff] }
 0x357   :  { %9366 = vst [vmem:[#allocation103_spill] sm:$0xff] %v6858_v25  ;;  %2196 = vmatpush.msrb.mxu2 %v6873_v46  ;;  %v6876_v25 = vld [vmem:[#allocation2 + $0x1b8] sm:$0xff] }
 0x358   :  { %9367 = vst [vmem:[#allocation104_spill] sm:$0xff] %v6861_v0  ;;  %2216 = vmatpush.msrb.mxu3 %v6876_v25  ;;  %v6879_v0 = vld [vmem:[#allocation2 + $0x160] sm:$0xff] }
 0x359   :  { %9368 = vst [vmem:[#allocation105_spill] sm:$0xff] %v6864_v5  ;;  %2157 = vmatpush.msra.mxu0 %v6879_v0  ;;  %v6882_v5 = vld [vmem:[#allocation2 + $0x168] sm:$0xff] }
 0x35a   :  { %9369 = vst [vmem:[#allocation106_spill] sm:$0xff] %v6867_v63  ;;  %2177 = vmatpush.msrb.mxu1 %v6882_v5  ;;  %v6885_v63 = vld [vmem:[#allocation2 + $0x170] sm:$0xff] }
 0x35b   :  { %9370 = vst [vmem:[#allocation107_spill] sm:$0xff] %v6870_v8  ;;  %2197 = vmatpush.msrb.mxu2 %v6885_v63  ;;  %v6888_v8 = vld [vmem:[#allocation2 + $0x178] sm:$0xff] }
 0x35c   :  { %9371 = vst [vmem:[#allocation108_spill] sm:$0xff] %v6873_v46  ;;  %2217 = vmatpush.msrb.mxu3 %v6888_v8  ;;  %v6891_v46 = vld [vmem:[#allocation2 + $0x120] sm:$0xff] }
 0x35d   :  { %9372 = vst [vmem:[#allocation109_spill] sm:$0xff] %v6876_v25  ;;  %2158 = vmatpush.msra.mxu0 %v6891_v46  ;;  %v6894_v25 = vld [vmem:[#allocation2 + $0x128] sm:$0xff] }
 0x35e   :  { %9373 = vst [vmem:[#allocation110_spill] sm:$0xff] %v6879_v0  ;;  %2178 = vmatpush.msrb.mxu1 %v6894_v25  ;;  %v6897_v0 = vld [vmem:[#allocation2 + $0x130] sm:$0xff] }
 0x35f   :  { %9374 = vst [vmem:[#allocation111_spill] sm:$0xff] %v6882_v5  ;;  %2198 = vmatpush.msrb.mxu2 %v6897_v0  ;;  %v6900_v5 = vld [vmem:[#allocation2 + $0x138] sm:$0xff] }
 0x360   :  { %9375 = vst [vmem:[#allocation112_spill] sm:$0xff] %v6885_v63  ;;  %2218 = vmatpush.msrb.mxu3 %v6900_v5  ;;  %v6903_v63 = vld [vmem:[#allocation2 + $0xe0] sm:$0xff] }
 0x361   :  { %9376 = vst [vmem:[#allocation113_spill] sm:$0xff] %v6888_v8  ;;  %2159 = vmatpush.msra.mxu0 %v6903_v63  ;;  %v6906_v8 = vld [vmem:[#allocation2 + $0xe8] sm:$0xff] }
 0x362   :  { %9377 = vst [vmem:[#allocation114_spill] sm:$0xff] %v6891_v46  ;;  %2179 = vmatpush.msrb.mxu1 %v6906_v8  ;;  %v6909_v46 = vld [vmem:[#allocation2 + $0xf0] sm:$0xff] }
 0x363   :  { %9378 = vst [vmem:[#allocation115_spill] sm:$0xff] %v6894_v25  ;;  %2199 = vmatpush.msrb.mxu2 %v6909_v46  ;;  %v6912_v25 = vld [vmem:[#allocation2 + $0xf8] sm:$0xff] }
 0x364   :  { %9379 = vst [vmem:[#allocation116_spill] sm:$0xff] %v6897_v0  ;;  %2219 = vmatpush.msrb.mxu3 %v6912_v25  ;;  %v6915_v0 = vld [vmem:[#allocation2 + $0xa0] sm:$0xff] }
 0x365   :  { %9380 = vst [vmem:[#allocation117_spill] sm:$0xff] %v6900_v5  ;;  %2160 = vmatpush.msra.mxu0 %v6915_v0  ;;  %v6918_v5 = vld [vmem:[#allocation2 + $0xa8] sm:$0xff] }
 0x366   :  { %9381 = vst [vmem:[#allocation118_spill] sm:$0xff] %v6903_v63  ;;  %2180 = vmatpush.msrb.mxu1 %v6918_v5  ;;  %v6921_v63 = vld [vmem:[#allocation2 + $0xb0] sm:$0xff] }
 0x367   :  { %9382 = vst [vmem:[#allocation119_spill] sm:$0xff] %v6906_v8  ;;  %2200 = vmatpush.msrb.mxu2 %v6921_v63  ;;  %v6924_v8 = vld [vmem:[#allocation2 + $0xb8] sm:$0xff] }
 0x368   :  { %9383 = vst [vmem:[#allocation120_spill] sm:$0xff] %v6909_v46  ;;  %2220 = vmatpush.msrb.mxu3 %v6924_v8  ;;  %v6927_v46 = vld [vmem:[#allocation2 + $0x60] sm:$0xff] }
 0x369   :  { %9384 = vst [vmem:[#allocation121_spill] sm:$0xff] %v6912_v25  ;;  %2161 = vmatpush.msra.mxu0 %v6927_v46  ;;  %v6930_v25 = vld [vmem:[#allocation2 + $0x68] sm:$0xff] }
 0x36a   :  { %9385 = vst [vmem:[#allocation122_spill] sm:$0xff] %v6915_v0  ;;  %2181 = vmatpush.msrb.mxu1 %v6930_v25  ;;  %v6933_v0 = vld [vmem:[#allocation2 + $0x70] sm:$0xff] }
 0x36b   :  { %9386 = vst [vmem:[#allocation123_spill] sm:$0xff] %v6918_v5  ;;  %2201 = vmatpush.msrb.mxu2 %v6933_v0  ;;  %v6936_v5 = vld [vmem:[#allocation2 + $0x78] sm:$0xff] }
 0x36c   :  { %9387 = vst [vmem:[#allocation124_spill] sm:$0xff] %v6921_v63  ;;  %2221 = vmatpush.msrb.mxu3 %v6936_v5  ;;  %v6939_v63 = vld [vmem:[#allocation2 + $0x20] sm:$0xff] }
 0x36d   :  { %9388 = vst [vmem:[#allocation125_spill] sm:$0xff] %v6924_v8  ;;  %2162 = vmatpush.msra.mxu0 %v6939_v63  ;;  %v6942_v8 = vld [vmem:[#allocation2 + $0x28] sm:$0xff] }
 0x36e   :  { %9389 = vst [vmem:[#allocation126_spill] sm:$0xff] %v6927_v46  ;;  %2182 = vmatpush.msrb.mxu1 %v6942_v8  ;;  %v6945_v46 = vld [vmem:[#allocation2 + $0x30] sm:$0xff]  ;;  %v1726_v57 = vpop.f32.mrf.mxu1 }
 0x36f   :  { %9390 = vst [vmem:[#allocation127_spill] sm:$0xff] %v6930_v25  ;;  %2202 = vmatpush.msrb.mxu2 %v6945_v46  ;;  %v6948_v25 = vld [vmem:[#allocation2 + $0x38] sm:$0xff] }
 0x370   :  { %9391 = vst [vmem:[#allocation128_spill] sm:$0xff] %v6933_v0  ;;  %2222 = vmatpush.msrb.mxu3 %v6948_v25  ;;  %v1706_v0 = vpop.f32.mrf.mxu0 }
 0x371   :  { %9392 = vst [vmem:[#allocation129_spill] sm:$0xff] %v6936_v5  ;;  %v9397_v5 = vld [vmem:[#allocation13_spill] sm:$0xff] }
 0x372   :  { %9393 = vst [vmem:[#allocation130_spill] sm:$0xff] %v6939_v63  ;;  %v193_v58 = vadd.f32 %v9397_v5, %v9252_v44  ;;  %v9398_v63 = vld [vmem:[#allocation40_spill] sm:$0xff] }
 0x373   :  { %9394 = vst [vmem:[#allocation131_spill] sm:$0xff] %v6942_v8  ;;  %v152_v55 = vadd.f32 %v9399_v3, %v9398_v63 }
 0x374   :  { %9395 = vst [vmem:[#allocation132_spill] sm:$0xff] %v6945_v46 }
 0x375   :  { %9396 = vst [vmem:[#allocation133_spill] sm:$0xff] %v6948_v25  ;;  %v6951_v62 = vpop.f32.mrf.mxu3  ;;  %v275_v25 = vadd.f32 %v9401_v61, %v9400_v16  ;;  %v6959_v47 = vpop.f32.mrf.mxu2 }
 0x378   :  { %v1786_v28 = vpop.f32.mrf.mxu0  ;;  %v1806_v8 = vpop.f32.mrf.mxu1 }
 0x379   :  { %v2000_v59 = vadd.f32 %v1786_v28, %v152_v55  ;;  %v2001_v34 = vadd.f32 %v1806_v8, %v193_v58 }
 0x37b   :  { %v3552_v50 = vmul.f32 -1.442695, %v2000_v59  ;;  %v3553_v46 = vmul.f32 -1.442695, %v2001_v34  ;;  %v9402_v34 = vld [vmem:[#allocation88_spill] sm:$0xff] }
 0x37d   :  { %3700 = vpow2.f32 %v3552_v50  ;;  %v9403_v50 = vld [vmem:[#allocation17_spill] sm:$0xff] }
 0x37e   :  { %3702 = vpow2.f32 %v3553_v46  ;;  %v234_v55 = vadd.f32 %v9403_v50, %v9402_v34 }
 0x37f   :  { %v1846_v6 = vpop.f32.mrf.mxu3  ;;  %v1826_v28 = vpop.f32.mrf.mxu2 }
 0x380   :  { %v2003_v41 = vadd.f32 %v1846_v6, %v275_v25  ;;  %v2002_v8 = vadd.f32 %v1826_v28, %v234_v55 }
 0x382   :  { %v3554_v19 = vmul.f32 -1.442695, %v2003_v41 }
 0x383   :  { %v3701_v5 = vpop.eup %3700 }
 0x384   :  { %v3703_v44 = vpop.eup %3702  ;;  %v2013_v17 = vadd.f32 1.0, %v3701_v5  ;;  %3704 = vpow2.f32 %v3554_v19 }
 0x385   :  { %v2014_v3 = vadd.f32 1.0, %v3703_v44 }
 0x386   :  { %3706 = vrcp.f32 %v2013_v17  ;;  %v2025_v19 = vand.u32 2147483647, %v2013_v17  ;;  %v2027_v44 = vand.u32 2147483648, %v2013_v17  ;;  %vm2021_vm8 = vweird.f32 %v2013_v17 }
 0x387   :  { %3708 = vrcp.f32 %v2014_v3  ;;  %v2042_v5 = vand.u32 2147483648, %v2014_v3  ;;  %vm2036_vm9 = vweird.f32 %v2014_v3 }
 0x388   :  { %vm2026_vm11 = vcmp.eq.f32.partialorder %v2025_v19, 8.507059e+37 }
 0x38a   :  { %v3705_v59 = vpop.eup %3704 }
 0x38b   :  { %v6963_v58 = vadd.f32 1.0, %v3705_v59  ;;  %v2040_v59 = vand.u32 2147483647, %v2014_v3 }
 0x38c   :  { %v3707_v61 = vpop.eup %3706 }
 0x38d   :  { %v3709_v46 = vpop.eup %3708  ;;  %v2017_v16 = vmul.f32 %v3707_v61, %v2013_v17  ;;  %3710 = vrcp.f32 %v6963_v58  ;;  %vm2022_vm6 = vweird.f32 %v3707_v61  ;;  %vm2041_vm13 = vcmp.eq.f32.partialorder %v2040_v59, 8.507059e+37 }
 0x38e   :  { %v2032_v41 = vmul.f32 %v3709_v46, %v2014_v3  ;;  %3712 = vtanh.f32 %v2002_v8  ;;  %vm2037_vm7 = vweird.f32 %v3709_v46  ;;  %vm2023_vm10 = vmor %vm2021_vm8, %vm2022_vm6  ;;  %vm2051_vm15 = vweird.f32 %v6963_v58 }
 0x38f   :  { %v2018_v6 = vsub.f32 1.0, %v2017_v16  ;;  %v2028_v16 = vor.u32 1.1754944e-38, %v2027_v44  ;;  %vm2038_vm12 = vmor %vm2036_vm9, %vm2037_vm7 }
 0x390   :  { %v2033_v25 = vsub.f32 1.0, %v2032_v41 }
 0x391   :  { %v2019_v63 = vmul.f32 %v3707_v61, %v2018_v6  ;;  %v2043_v6 = vor.u32 1.1754944e-38, %v2042_v5 }
 0x392   :  { %v2034_v29 = vmul.f32 %v3709_v46, %v2033_v25  ;;  %v1866_v50 = vpop.f32.mrf.mxu0  ;;  %v1886_v34 = vpop.f32.mrf.mxu1 }
 0x393   :  { %v3711_v28 = vpop.eup %3710  ;;  %v2020_v55 = vadd.f32 %v3707_v61, %v2019_v63  ;;  %v1929_v24 = vadd.f32 %v1866_v50, %v1706_v0  ;;  %v1930_v40 = vadd.f32 %v1886_v34, %v1726_v57 }
 0x394   :  { %v2035_v41 = vadd.f32 %v3709_v46, %v2034_v29  ;;  %v2047_v8 = vmul.f32 %v3711_v28, %v6963_v58  ;;  %v3713_v21 = vpop.eup %3712  ;;  %vm2052_vm14 = vweird.f32 %v3711_v28 }
 0x395   :  { %v2024_v25 = vsel %vm2023_vm10, %v3707_v61, %v2020_v55  ;;  %v1933_v17 = vadd.f32 %v1929_v24, %v5498_v39  ;;  %v1934_v13 = vadd.f32 %v1930_v40, %v5501_v32  ;;  %v2057_v61 = vand.u32 2147483648, %v6963_v58  ;;  %vm2053_vm0 = vmor %vm2051_vm15, %vm2052_vm14 }
 0x396   :  { %v2029_v20 = vsel %vm2026_vm11, %v2028_v16, %v2024_v25  ;;  %v2039_v3 = vsel %vm2038_vm12, %v3709_v46, %v2035_v41  ;;  %v2048_v0 = vsub.f32 1.0, %v2047_v8 }
 0x397   :  { %v2044_v57 = vsel %vm2041_vm13, %v2043_v6, %v2039_v3  ;;  %v2063_v63 = vmul.f32 %v3713_v21, %v2029_v20  ;;  %v3549_v34 = vmul.f32 -1.442695, %v1933_v17  ;;  %v3550_v19 = vmul.f32 -1.442695, %v1934_v13  ;;  %v6992_v17 = vld [vmem:[#allocation5 + $0x1e0] sm:$0xff]  ;;  %v6995_v3 = vld [vmem:[#allocation5 + $0x1e8] sm:$0xff] }
 0x398   :  { %v2062_v29 = vmul.f32 %v2044_v57, %v6461_v11  ;;  %v2049_v44 = vmul.f32 %v3711_v28, %v2048_v0  ;;  %v2055_v20 = vand.u32 2147483647, %v6963_v58  ;;  %v2058_v55 = vor.u32 1.1754944e-38, %v2057_v61 }
 0x399   :  { %3714 = vpow2.f32 %v3549_v34  ;;  %v1926_v50 = vpop.f32.mrf.mxu3  ;;  %v1906_v58 = vpop.f32.mrf.mxu2  ;;  %v7005_v34 = vld [vmem:[#allocation5 + $0x1f8] sm:$0xff] }
 0x39a   :  { %v6971_v5 = vadd.f32 %v2063_v63, %v2062_v29  ;;  %3716 = vpow2.f32 %v3550_v19  ;;  %v2050_v24 = vadd.f32 %v3711_v28, %v2049_v44  ;;  %v1932_v40 = vadd.f32 %v1926_v50, %v6951_v62  ;;  %v7002_v63 = vld [vmem:[#allocation5 + $0x1f0] sm:$0xff]  ;;  %v7012_v29 = vld [vmem:[#allocation5 + $0x1c0] sm:$0xff]  ;;  %v7015_v44 = vld [vmem:[#allocation5 + $0x1c8] sm:$0xff] }
 0x39b   :  { %vm2056_vm1 = vcmp.eq.f32.partialorder %v2055_v20, 8.507059e+37  ;;  %v1931_v25 = vadd.f32 %v1906_v58, %v6959_v47  ;;  %v7044_v58 = vld [vmem:[#allocation5 + $0x180] sm:$0xff] }
 0x39c   :  { %3718 = vtanh.f32 %v6971_v5  ;;  %v1936_v11 = vadd.f32 %v1932_v40, %v5509_v45  ;;  %v2054_v13 = vsel %vm2053_vm0, %v3711_v28, %v2050_v24  ;;  %v7021_v24 = vld [vmem:[#allocation5 + $0x1d0] sm:$0xff]  ;;  %v7024_v40 = vld [vmem:[#allocation5 + $0x1d8] sm:$0xff]  ;;  %9405 = vst [vmem:[#allocation19_spill] sm:$0xff] %v7044_v58 }
 0x39d   :  { %v2059_v8 = vsel %vm2056_vm1, %v2058_v55, %v2054_v13  ;;  %v1935_v20 = vadd.f32 %v1931_v25, %v5527_v33 }
 0x39e   :  { %v3551_v46 = vmul.f32 -1.442695, %v1936_v11  ;;  %v7028_v11 = vld [vmem:[#allocation5 + $0x1a0] sm:$0xff] }
 0x39f   :  { %v3715_v21 = vpop.eup %3714 }
 0x3a0   :  { %v3717_v59 = vpop.eup %3716  ;;  %v6979_v16 = vadd.f32 1.0, %v3715_v21  ;;  %3720 = vpow2.f32 %v3551_v46  ;;  %v7031_v21 = vld [vmem:[#allocation5 + $0x1a8] sm:$0xff]  ;;  %v7034_v46 = vld [vmem:[#allocation5 + $0x1b0] sm:$0xff] }
 0x3a1   :  { %v6981_v62 = vadd.f32 1.0, %v3717_v59  ;;  %v7037_v59 = vld [vmem:[#allocation5 + $0x1b8] sm:$0xff] }
 0x3a2   :  { %v3719_v41 = vpop.eup %3718  ;;  %3722 = vrcp.f32 %v6979_v16  ;;  %9404 = vst [vmem:[#allocation11_spill] sm:$0xff] %v7037_v59  ;;  %vm1954_vm4 = vweird.f32 %v6979_v16 }
 0x3a3   :  { %v6984_v6 = vmul.f32 %v3719_v41, %v2059_v8  ;;  %3724 = vrcp.f32 %v6981_v62  ;;  %v1975_v55 = vand.u32 2147483648, %v6981_v62  ;;  %v1960_v8 = vand.u32 2147483648, %v6979_v16 }
 0x3a4   :  { %vm1969_vm5 = vweird.f32 %v6981_v62 }
 0x3a5   :  { %2083 = vmatmul.f32.vlgmr.msrb.gmra.mxu0 %v6984_v6  ;;  %2103 = vmatmul.f32.vlgmr.msra.gmra.mxu1 %v6984_v6 }
 0x3a6   :  { %2123 = vmatmul.f32.vlgmr.msra.gmra.mxu2 %v6984_v6  ;;  %2143 = vmatmul.f32.vlgmr.msra.gmra.mxu3 %v6984_v6  ;;  %v3721_v28 = vpop.eup %3720 }
 0x3a7   :  { %2227 = vmatpush.msrb.mxu0 %v6992_v17  ;;  %2247 = vmatpush.msra.mxu1 %v6995_v3  ;;  %v7000_v57 = vadd.f32 1.0, %v3721_v28  ;;  %v7047_v28 = vld [vmem:[#allocation5 + $0x188] sm:$0xff] }
 0x3a8   :  { %v6998_v0 = vpop.eup %3722  ;;  %2267 = vmatpush.msra.mxu2 %v7002_v63  ;;  %2287 = vmatpush.msra.mxu3 %v7005_v34  ;;  %9406 = vst [vmem:[#allocation12_spill] sm:$0xff] %v7047_v28 }
 0x3a9   :  { %v7008_v47 = vpop.eup %3724  ;;  %v1950_v19 = vmul.f32 %v6998_v0, %v6979_v16  ;;  %2228 = vmatpush.msrb.mxu0 %v7012_v29  ;;  %2248 = vmatpush.msra.mxu1 %v7015_v44  ;;  %3726 = vrcp.f32 %v7000_v57  ;;  %vm1955_vm2 = vweird.f32 %v6998_v0  ;;  %vm1984_vm11 = vweird.f32 %v7000_v57 }
 0x3aa   :  { %v1965_v50 = vmul.f32 %v7008_v47, %v6981_v62  ;;  %2268 = vmatpush.msra.mxu2 %v7021_v24  ;;  %2288 = vmatpush.msra.mxu3 %v7024_v40  ;;  %vm1970_vm3 = vweird.f32 %v7008_v47  ;;  %3728 = vtanh.f32 %v1935_v20  ;;  %vm7069_vm6 = vmor %vm1954_vm4, %vm1955_vm2  ;;  %v1976_v20 = vor.u32 1.1754944e-38, %v1975_v55  ;;  %v7094_v55 = vld [vmem:[#allocation5 + $0x170] sm:$0xff] }
 0x3ab   :  { %v1951_v61 = vsub.f32 1.0, %v1950_v19  ;;  %2229 = vmatpush.msrb.mxu0 %v7028_v11  ;;  %2249 = vmatpush.msra.mxu1 %v7031_v21  ;;  %v1958_v19 = vand.u32 2147483647, %v6979_v16  ;;  %vm7078_vm7 = vmor %vm1969_vm5, %vm1970_vm3  ;;  %v7114_v16 = vld [vmem:[#allocation5 + $0x120] sm:$0xff] }
 0x3ac   :  { %v1966_v13 = vsub.f32 1.0, %v1965_v50  ;;  %2269 = vmatpush.msra.mxu2 %v7034_v46  ;;  %2289 = vmatpush.msra.mxu3 %v7037_v59  ;;  %v1973_v50 = vand.u32 2147483647, %v6981_v62  ;;  %v7057_v59 = vld [vmem:[#allocation5 + $0x198] sm:$0xff]  ;;  %9417 = vst [vmem:[#allocation139_spill] sm:$0xff] %v7114_v16 }
 0x3ad   :  { %v1952_v41 = vmul.f32 %v6998_v0, %v1951_v61  ;;  %2230 = vmatpush.msrb.mxu0 %v7044_v58  ;;  %2250 = vmatpush.msra.mxu1 %v7047_v28  ;;  %v7054_v61 = vld [vmem:[#allocation5 + $0x190] sm:$0xff]  ;;  %9408 = vst [vmem:[#allocation134_spill] sm:$0xff] %v7057_v59  ;;  %v7085_v28 = vld [vmem:[#allocation5 + $0x160] sm:$0xff]  ;;  %vm1959_vm8 = vcmp.eq.f32.partialorder %v1958_v19, 8.507059e+37  ;;  %v7105_v19 = vld [vmem:[#allocation5 + $0x148] sm:$0xff] }
 0x3ae   :  { %v1967_v25 = vmul.f32 %v7008_v47, %v1966_v13  ;;  %9407 = vst [vmem:[#allocation14_spill] sm:$0xff] %v7054_v61  ;;  %2270 = vmatpush.msra.mxu2 %v7054_v61  ;;  %2290 = vmatpush.msra.mxu3 %v7057_v59  ;;  %vm1974_vm9 = vcmp.eq.f32.partialorder %v1973_v50, 8.507059e+37 }
 0x3af   :  { %v1953_v58 = vadd.f32 %v6998_v0, %v1952_v41  ;;  %2163 = vmatmul.f32.vlgmr.msra.gmra.mxu0 %v6984_v6  ;;  %2183 = vmatmul.f32.vlgmr.msrb.gmra.mxu1 %v6984_v6  ;;  %v7064_v13 = vpop.eup %3726  ;;  %v1961_v41 = vor.u32 1.1754944e-38, %v1960_v8  ;;  %9414 = vst [vmem:[#allocation136_spill] sm:$0xff] %v7105_v19 }
 0x3b0   :  { %v1968_v59 = vadd.f32 %v7008_v47, %v1967_v25  ;;  %2203 = vmatmul.f32.vlgmr.msrb.gmra.mxu2 %v6984_v6  ;;  %2223 = vmatmul.f32.vlgmr.msrb.gmra.mxu3 %v6984_v6  ;;  %v7088_v25 = vld [vmem:[#allocation5 + $0x168] sm:$0xff]  ;;  %v1980_v61 = vmul.f32 %v7064_v13, %v7000_v57  ;;  %v3729_v50 = vpop.eup %3728  ;;  %vm1985_vm10 = vweird.f32 %v7064_v13 }
 0x3b1   :  { %v1957_v62 = vsel %vm7069_vm6, %v6998_v0, %v1953_v58  ;;  %2231 = vmatpush.msrb.mxu0 %v7085_v28  ;;  %9413 = vst [vmem:[#allocation135_spill] sm:$0xff] %v7088_v25  ;;  %2251 = vmatpush.msra.mxu1 %v7088_v25  ;;  %v7097_v0 = vld [vmem:[#allocation5 + $0x178] sm:$0xff]  ;;  %v7102_v25 = vld [vmem:[#allocation5 + $0x140] sm:$0xff]  ;;  %vm7210_vm12 = vmor %vm1984_vm11, %vm1985_vm10 }
 0x3b2   :  { %v1972_v6 = vsel %vm7078_vm7, %v7008_v47, %v1968_v59  ;;  %2271 = vmatpush.msra.mxu2 %v7094_v55  ;;  %2291 = vmatpush.msra.mxu3 %v7097_v0  ;;  %v1962_v8 = vsel %vm1959_vm8, %v1961_v41, %v1957_v62  ;;  %v7108_v47 = vld [vmem:[#allocation5 + $0x150] sm:$0xff]  ;;  %v7111_v59 = vld [vmem:[#allocation5 + $0x158] sm:$0xff] }
 0x3b3   :  { %v1977_v58 = vsel %vm1974_vm9, %v1976_v20, %v1972_v6  ;;  %2232 = vmatpush.msrb.mxu0 %v7102_v25  ;;  %2252 = vmatpush.msra.mxu1 %v7105_v19  ;;  %9415 = vst [vmem:[#allocation137_spill] sm:$0xff] %v7108_v47  ;;  %v7117_v20 = vld [vmem:[#allocation5 + $0x128] sm:$0xff]  ;;  %v1996_v41 = vmul.f32 %v3729_v50, %v1962_v8  ;;  %v7121_v6 = vld [vmem:[#allocation5 + $0x130] sm:$0xff]  ;;  %v7127_v19 = vld [vmem:[#allocation5 + $0x100] sm:$0xff] }
 0x3b4   :  { %2272 = vmatpush.msra.mxu2 %v7108_v47  ;;  %9416 = vst [vmem:[#allocation138_spill] sm:$0xff] %v7111_v59  ;;  %2292 = vmatpush.msra.mxu3 %v7111_v59  ;;  %v1995_v62 = vmul.f32 %v1977_v58, %v6535_v27  ;;  %v7124_v47 = vld [vmem:[#allocation5 + $0x138] sm:$0xff]  ;;  %v1981_v59 = vsub.f32 1.0, %v1980_v61  ;;  %v7139_v8 = vld [vmem:[#allocation5 + $0xe0] sm:$0xff]  ;;  %v7142_v58 = vld [vmem:[#allocation5 + $0xe8] sm:$0xff] }
 0x3b5   :  { %2233 = vmatpush.msrb.mxu0 %v7114_v16  ;;  %9418 = vst [vmem:[#allocation140_spill] sm:$0xff] %v7117_v20  ;;  %2253 = vmatpush.msra.mxu1 %v7117_v20  ;;  %v7130_v16 = vld [vmem:[#allocation5 + $0x108] sm:$0xff]  ;;  %v7133_v20 = vld [vmem:[#allocation5 + $0x110] sm:$0xff]  ;;  %v7136_v27 = vld [vmem:[#allocation5 + $0x118] sm:$0xff] }
 0x3b6   :  { %2273 = vmatpush.msra.mxu2 %v7121_v6  ;;  %9419 = vst [vmem:[#allocation141_spill] sm:$0xff] %v7124_v47  ;;  %2293 = vmatpush.msra.mxu3 %v7124_v47  ;;  %v7145_v61 = vadd.f32 %v1996_v41, %v1995_v62  ;;  %v7147_v50 = vld [vmem:[#allocation5 + $0xf0] sm:$0xff]  ;;  %v7163_v41 = vld [vmem:[#allocation5 + $0xd8] sm:$0xff]  ;;  %v7229_v47 = vld [vmem:[#allocation5 + $0x20] sm:$0xff] }
 0x3b7   :  { %9420 = vst [vmem:[#allocation142_spill] sm:$0xff] %v7127_v19  ;;  %2234 = vmatpush.msrb.mxu0 %v7127_v19  ;;  %2254 = vmatpush.msra.mxu1 %v7130_v16  ;;  %v7160_v62 = vld [vmem:[#allocation5 + $0xd0] sm:$0xff] }
 0x3b8   :  { %9421 = vst [vmem:[#allocation143_spill] sm:$0xff] %v7130_v16  ;;  %2274 = vmatpush.msra.mxu2 %v7133_v20  ;;  %2294 = vmatpush.msra.mxu3 %v7136_v27  ;;  %v7150_v16 = vld [vmem:[#allocation5 + $0xf8] sm:$0xff]  ;;  %3730 = vtanh.f32 %v7145_v61 }
 0x3b9   :  { %9422 = vst [vmem:[#allocation144_spill] sm:$0xff] %v7133_v20  ;;  %2235 = vmatpush.msrb.mxu0 %v7139_v8  ;;  %2255 = vmatpush.msra.mxu1 %v7142_v58  ;;  %v7153_v20 = vld [vmem:[#allocation5 + $0xc0] sm:$0xff] }
 0x3ba   :  { %9423 = vst [vmem:[#allocation145_spill] sm:$0xff] %v7136_v27  ;;  %2275 = vmatpush.msra.mxu2 %v7147_v50  ;;  %2295 = vmatpush.msra.mxu3 %v7150_v16  ;;  %v7156_v27 = vld [vmem:[#allocation5 + $0xc8] sm:$0xff] }
 0x3bb   :  { %9424 = vst [vmem:[#allocation146_spill] sm:$0xff] %v7139_v8  ;;  %2236 = vmatpush.msrb.mxu0 %v7153_v20  ;;  %2256 = vmatpush.msra.mxu1 %v7156_v27  ;;  %v7226_v8 = vld [vmem:[#allocation5 + $0x58] sm:$0xff] }
 0x3bc   :  { %9425 = vst [vmem:[#allocation147_spill] sm:$0xff] %v7142_v58  ;;  %v1982_v58 = vmul.f32 %v7064_v13, %v1981_v59  ;;  %2276 = vmatpush.msra.mxu2 %v7160_v62  ;;  %2296 = vmatpush.msra.mxu3 %v7163_v41  ;;  %v7176_v59 = vld [vmem:[#allocation5 + $0xb8] sm:$0xff] }
 0x3bd   :  { %9426 = vst [vmem:[#allocation148_spill] sm:$0xff] %v7147_v50  ;;  %v7166_v50 = vld [vmem:[#allocation5 + $0xa0] sm:$0xff] }
 0x3be   :  { %9427 = vst [vmem:[#allocation149_spill] sm:$0xff] %v7150_v16  ;;  %2237 = vmatpush.msrb.mxu0 %v7166_v50  ;;  %v7169_v16 = vld [vmem:[#allocation5 + $0xa8] sm:$0xff]  ;;  %2297 = vmatpush.msra.mxu3 %v7176_v59 }
 0x3bf   :  { %9428 = vst [vmem:[#allocation150_spill] sm:$0xff] %v7153_v20  ;;  %2257 = vmatpush.msra.mxu1 %v7169_v16  ;;  %v7194_v20 = vld [vmem:[#allocation5 + $0x60] sm:$0xff] }
 0x3c0   :  { %9429 = vst [vmem:[#allocation151_spill] sm:$0xff] %v7156_v27  ;;  %v7173_v27 = vld [vmem:[#allocation5 + $0xb0] sm:$0xff] }
 0x3c1   :  { %9430 = vst [vmem:[#allocation152_spill] sm:$0xff] %v7160_v62  ;;  %2277 = vmatpush.msra.mxu2 %v7173_v27  ;;  %v7179_v62 = vld [vmem:[#allocation5 + $0x80] sm:$0xff] }
 0x3c2   :  { %9431 = vst [vmem:[#allocation153_spill] sm:$0xff] %v7163_v41  ;;  %2238 = vmatpush.msrb.mxu0 %v7179_v62  ;;  %v7182_v41 = vld [vmem:[#allocation5 + $0x88] sm:$0xff] }
 0x3c3   :  { %9432 = vst [vmem:[#allocation154_spill] sm:$0xff] %v7166_v50  ;;  %2258 = vmatpush.msra.mxu1 %v7182_v41  ;;  %v7187_v50 = vld [vmem:[#allocation5 + $0x90] sm:$0xff] }
 0x3c4   :  { %9433 = vst [vmem:[#allocation155_spill] sm:$0xff] %v7169_v16  ;;  %v1983_v16 = vadd.f32 %v7064_v13, %v1982_v58  ;;  %2278 = vmatpush.msra.mxu2 %v7187_v50  ;;  %2239 = vmatpush.msrb.mxu0 %v7194_v20  ;;  %v1988_v58 = vand.u32 2147483647, %v7000_v57 }
 0x3c5   :  { %9434 = vst [vmem:[#allocation156_spill] sm:$0xff] %v7173_v27  ;;  %v7190_v27 = vld [vmem:[#allocation5 + $0x98] sm:$0xff] }
 0x3c6   :  { %9435 = vst [vmem:[#allocation157_spill] sm:$0xff] %v7176_v59  ;;  %2298 = vmatpush.msra.mxu3 %v7190_v27  ;;  %v1990_v59 = vand.u32 2147483648, %v7000_v57  ;;  %v1987_v57 = vsel %vm7210_vm12, %v7064_v13, %v1983_v16  ;;  %vm1989_vm13 = vcmp.eq.f32.partialorder %v1988_v58, 8.507059e+37  ;;  %v7235_v13 = vld [vmem:[#allocation5 + $0x30] sm:$0xff]  ;;  %v7238_v16 = vld [vmem:[#allocation5 + $0x38] sm:$0xff] }
 0x3c7   :  { %9436 = vst [vmem:[#allocation158_spill] sm:$0xff] %v7179_v62  ;;  %v7197_v62 = vld [vmem:[#allocation5 + $0x68] sm:$0xff]  ;;  %v7250_v58 = vld [vmem:[#allocation5 + $0x18] sm:$0xff] }
 0x3c8   :  { %9437 = vst [vmem:[#allocation159_spill] sm:$0xff] %v7182_v41  ;;  %2259 = vmatpush.msra.mxu1 %v7197_v62  ;;  %v7202_v41 = vld [vmem:[#allocation5 + $0x70] sm:$0xff]  ;;  %v1991_v19 = vor.u32 1.1754944e-38, %v1990_v59  ;;  %v7244_v59 = vld [vmem:[#allocation5 + $0x8] sm:$0xff] }
 0x3c9   :  { %9438 = vst [vmem:[#allocation160_spill] sm:$0xff] %v7187_v50  ;;  %2279 = vmatpush.msra.mxu2 %v7202_v41  ;;  %v7205_v50 = vld [vmem:[#allocation5 + $0x78] sm:$0xff] }
 0x3ca   :  { %9439 = vst [vmem:[#allocation161_spill] sm:$0xff] %v7190_v27  ;;  %2299 = vmatpush.msra.mxu3 %v7205_v50  ;;  %v7214_v27 = vld [vmem:[#allocation5 + $0x40] sm:$0xff] }
 0x3cb   :  { %9440 = vst [vmem:[#allocation162_spill] sm:$0xff] %v7194_v20  ;;  %2240 = vmatpush.msrb.mxu0 %v7214_v27  ;;  %v1992_v20 = vsel %vm1989_vm13, %v1991_v19, %v1987_v57  ;;  %v7253_v19 = vld [vmem:[#allocation2 + $0x3c0] sm:$0xff]  ;;  %v7256_v57 = vld [vmem:[#allocation2 + $0x3c8] sm:$0xff] }
 0x3cc   :  { %9441 = vst [vmem:[#allocation163_spill] sm:$0xff] %v7197_v62  ;;  %v7217_v62 = vld [vmem:[#allocation5 + $0x48] sm:$0xff]  ;;  %2300 = vmatpush.msra.mxu3 %v7226_v8 }
 0x3cd   :  { %9442 = vst [vmem:[#allocation164_spill] sm:$0xff] %v7202_v41  ;;  %2260 = vmatpush.msra.mxu1 %v7217_v62  ;;  %v3731_v41 = vpop.eup %3730  ;;  %2241 = vmatpush.msrb.mxu0 %v7229_v47 }
 0x3ce   :  { %9443 = vst [vmem:[#allocation165_spill] sm:$0xff] %v7205_v50  ;;  %v7223_v50 = vld [vmem:[#allocation5 + $0x50] sm:$0xff]  ;;  %2301 = vmatpush.msra.mxu3 %v7238_v16 }
 0x3cf   :  { %9446 = vst [vmem:[#allocation166_spill] sm:$0xff] %v7214_v27  ;;  %2280 = vmatpush.msra.mxu2 %v7223_v50  ;;  %v7232_v27 = vld [vmem:[#allocation5 + $0x28] sm:$0xff] }
 0x3d0   :  { %9447 = vst [vmem:[#allocation167_spill] sm:$0xff] %v7226_v8  ;;  %2261 = vmatpush.msra.mxu1 %v7232_v27  ;;  %v7241_v8 = vld [vmem:[#allocation5] sm:$0xff]  ;;  %2302 = vmatpush.msra.mxu3 %v7250_v58 }
 0x3d1   :  { %9448 = vst [vmem:[#allocation168_spill] sm:$0xff] %v7229_v47  ;;  %2281 = vmatpush.msra.mxu2 %v7235_v13  ;;  %2242 = vmatpush.msrb.mxu0 %v7241_v8  ;;  %v1999_v47 = vmul.f32 %v3731_v41, %v1992_v20  ;;  %v7260_v41 = vld [vmem:[#allocation2 + $0x3d8] sm:$0xff]  ;;  %v7263_v20 = vld [vmem:[#allocation2 + $0x380] sm:$0xff] }
 0x3d2   :  { %9449 = vst [vmem:[#allocation169_spill] sm:$0xff] %v7232_v27  ;;  %2262 = vmatpush.msra.mxu1 %v7244_v59  ;;  %v7247_v27 = vld [vmem:[#allocation5 + $0x10] sm:$0xff]  ;;  %2505 = vmatpush.msrb.mxu3 %v7260_v41 }
 0x3d3   :  { %2282 = vmatpush.msra.mxu2 %v7247_v27  ;;  %2243 = vmatmul.f32.vlgmr.msrb.gmra.mxu0 %v1999_v47 }
 0x3d4   :  { %2263 = vmatmul.f32.vlgmr.msra.gmra.mxu1 %v1999_v47  ;;  %2283 = vmatmul.f32.vlgmr.msra.gmra.mxu2 %v1999_v47 }
 0x3d5   :  { %2303 = vmatmul.f32.vlgmr.msra.gmra.mxu3 %v1999_v47  ;;  %2445 = vmatpush.msra.mxu0 %v7253_v19  ;;  %v9479_v47 = vld [vmem:[#allocation65_spill] sm:$0xff] }
 0x3d6   :  { %2465 = vmatpush.msrb.mxu1 %v7256_v57  ;;  %2485 = vmatpush.msrb.mxu2 %v6577_v14  ;;  %v9450_v14 = vld [vmem:[#allocation32_spill] sm:$0xff] }
 0x3d7   :  { %2446 = vmatpush.msra.mxu0 %v7263_v20  ;;  %2506 = vmatpush.msrb.mxu3 %v6588_v52  ;;  %v9453_v52 = vld [vmem:[#allocation35_spill] sm:$0xff] }
 0x3d8   :  { %2466 = vmatpush.msrb.mxu1 %v6582_v51  ;;  %2486 = vmatpush.msrb.mxu2 %v6585_v7  ;;  %v9451_v51 = vld [vmem:[#allocation33_spill] sm:$0xff]  ;;  %v9452_v7 = vld [vmem:[#allocation34_spill] sm:$0xff] }
 0x3d9   :  { %2447 = vmatpush.msra.mxu0 %v6591_v48  ;;  %2507 = vmatpush.msrb.mxu3 %v6600_v26  ;;  %v9454_v48 = vld [vmem:[#allocation36_spill] sm:$0xff]  ;;  %v9457_v26 = vld [vmem:[#allocation39_spill] sm:$0xff] }
 0x3da   :  { %2467 = vmatpush.msrb.mxu1 %v6594_v23  ;;  %2487 = vmatpush.msrb.mxu2 %v6597_v35  ;;  %v9455_v23 = vld [vmem:[#allocation37_spill] sm:$0xff]  ;;  %v9456_v35 = vld [vmem:[#allocation38_spill] sm:$0xff] }
 0x3db   :  { %2448 = vmatpush.msra.mxu0 %v6603_v31  ;;  %2508 = vmatpush.msrb.mxu3 %v6612_v56  ;;  %v9458_v31 = vld [vmem:[#allocation41_spill] sm:$0xff]  ;;  %v9461_v56 = vld [vmem:[#allocation44_spill] sm:$0xff] }
 0x3dc   :  { %2468 = vmatpush.msrb.mxu1 %v6606_v22  ;;  %2488 = vmatpush.msrb.mxu2 %v6609_v53  ;;  %v9459_v22 = vld [vmem:[#allocation42_spill] sm:$0xff]  ;;  %v9460_v53 = vld [vmem:[#allocation43_spill] sm:$0xff] }
 0x3dd   :  { %2449 = vmatpush.msra.mxu0 %v6615_v49  ;;  %2509 = vmatpush.msrb.mxu3 %v6624_v12  ;;  %v9462_v49 = vld [vmem:[#allocation45_spill] sm:$0xff] }
 0x3de   :  { %2469 = vmatpush.msrb.mxu1 %v6618_v60  ;;  %2489 = vmatpush.msrb.mxu2 %v6621_v15  ;;  %v9463_v60 = vld [vmem:[#allocation46_spill] sm:$0xff]  ;;  %v9464_v15 = vld [vmem:[#allocation47_spill] sm:$0xff]  ;;  %v9465_v12 = vld [vmem:[#allocation49_spill] sm:$0xff] }
 0x3df   :  { %2450 = vmatpush.msra.mxu0 %v6627_v43  ;;  %2510 = vmatpush.msrb.mxu3 %v6636_v4  ;;  %v9466_v43 = vld [vmem:[#allocation50_spill] sm:$0xff]  ;;  %v9469_v4 = vld [vmem:[#allocation53_spill] sm:$0xff] }
 0x3e0   :  { %2470 = vmatpush.msrb.mxu1 %v6630_v1  ;;  %2490 = vmatpush.msrb.mxu2 %v6633_v10  ;;  %v9467_v1 = vld [vmem:[#allocation51_spill] sm:$0xff]  ;;  %v9468_v10 = vld [vmem:[#allocation52_spill] sm:$0xff] }
 0x3e1   :  { %2451 = vmatpush.msra.mxu0 %v6639_v18  ;;  %2511 = vmatpush.msrb.mxu3 %v6648_v38  ;;  %v9470_v18 = vld [vmem:[#allocation54_spill] sm:$0xff] }
 0x3e2   :  { %2471 = vmatpush.msrb.mxu1 %v6642_v54  ;;  %2491 = vmatpush.msrb.mxu2 %v6645_v2  ;;  %v9471_v54 = vld [vmem:[#allocation55_spill] sm:$0xff]  ;;  %v9472_v2 = vld [vmem:[#allocation57_spill] sm:$0xff]  ;;  %v9473_v38 = vld [vmem:[#allocation58_spill] sm:$0xff] }
 0x3e3   :  { %2452 = vmatpush.msra.mxu0 %v6651_v9  ;;  %2512 = vmatpush.msrb.mxu3 %v6660_v36  ;;  %v9474_v9 = vld [vmem:[#allocation60_spill] sm:$0xff]  ;;  %v9477_v36 = vld [vmem:[#allocation63_spill] sm:$0xff] }
 0x3e4   :  { %2472 = vmatpush.msrb.mxu1 %v6654_v37  ;;  %2492 = vmatpush.msrb.mxu2 %v6657_v42  ;;  %v9475_v37 = vld [vmem:[#allocation61_spill] sm:$0xff]  ;;  %v9476_v42 = vld [vmem:[#allocation62_spill] sm:$0xff] }
 0x3e5   :  { %2453 = vmatpush.msra.mxu0 %v6663_v30  ;;  %2513 = vmatpush.msrb.mxu3 %v9452_v7  ;;  %v9478_v30 = vld [vmem:[#allocation64_spill] sm:$0xff]  ;;  %v9482_v7 = vld [vmem:[#allocation69_spill] sm:$0xff] }
 0x3e6   :  { %2473 = vmatpush.msrb.mxu1 %v9450_v14  ;;  %2493 = vmatpush.msrb.mxu2 %v9451_v51  ;;  %v9480_v14 = vld [vmem:[#allocation66_spill] sm:$0xff]  ;;  %v9481_v51 = vld [vmem:[#allocation68_spill] sm:$0xff] }
 0x3e7   :  { %2454 = vmatpush.msra.mxu0 %v9453_v52  ;;  %2514 = vmatpush.msrb.mxu3 %v9456_v35  ;;  %v9483_v52 = vld [vmem:[#allocation70_spill] sm:$0xff] }
 0x3e8   :  { %2474 = vmatpush.msrb.mxu1 %v9454_v48  ;;  %2494 = vmatpush.msrb.mxu2 %v9455_v23  ;;  %v9484_v48 = vld [vmem:[#allocation71_spill] sm:$0xff]  ;;  %v9485_v23 = vld [vmem:[#allocation72_spill] sm:$0xff]  ;;  %v9486_v35 = vld [vmem:[#allocation74_spill] sm:$0xff] }
 0x3e9   :  { %2455 = vmatpush.msra.mxu0 %v9457_v26  ;;  %2515 = vmatpush.msrb.mxu3 %v9460_v53  ;;  %v9487_v26 = vld [vmem:[#allocation75_spill] sm:$0xff]  ;;  %v9490_v53 = vld [vmem:[#allocation78_spill] sm:$0xff] }
 0x3ea   :  { %2475 = vmatpush.msrb.mxu1 %v9458_v31  ;;  %2495 = vmatpush.msrb.mxu2 %v9459_v22  ;;  %v9488_v31 = vld [vmem:[#allocation76_spill] sm:$0xff]  ;;  %v9489_v22 = vld [vmem:[#allocation77_spill] sm:$0xff] }
 0x3eb   :  { %2456 = vmatpush.msra.mxu0 %v9461_v56  ;;  %2516 = vmatpush.msrb.mxu3 %v9464_v15  ;;  %v9491_v56 = vld [vmem:[#allocation79_spill] sm:$0xff]  ;;  %v9494_v15 = vld [vmem:[#allocation82_spill] sm:$0xff] }
 0x3ec   :  { %2476 = vmatpush.msrb.mxu1 %v9462_v49  ;;  %2496 = vmatpush.msrb.mxu2 %v9463_v60  ;;  %v9492_v49 = vld [vmem:[#allocation80_spill] sm:$0xff]  ;;  %v9493_v60 = vld [vmem:[#allocation81_spill] sm:$0xff] }
 0x3ed   :  { %2457 = vmatpush.msra.mxu0 %v9465_v12  ;;  %2517 = vmatpush.msrb.mxu3 %v9468_v10  ;;  %v9495_v12 = vld [vmem:[#allocation83_spill] sm:$0xff]  ;;  %v9498_v10 = vld [vmem:[#allocation86_spill] sm:$0xff] }
 0x3ee   :  { %2477 = vmatpush.msrb.mxu1 %v9466_v43  ;;  %2497 = vmatpush.msrb.mxu2 %v9467_v1  ;;  %v9496_v43 = vld [vmem:[#allocation84_spill] sm:$0xff]  ;;  %v9497_v1 = vld [vmem:[#allocation85_spill] sm:$0xff] }
 0x3ef   :  { %2458 = vmatpush.msra.mxu0 %v9469_v4  ;;  %2518 = vmatpush.msrb.mxu3 %v9472_v2  ;;  %v9499_v4 = vld [vmem:[#allocation87_spill] sm:$0xff] }
 0x3f0   :  { %2478 = vmatpush.msrb.mxu1 %v9470_v18  ;;  %2498 = vmatpush.msrb.mxu2 %v9471_v54  ;;  %v9500_v18 = vld [vmem:[#allocation89_spill] sm:$0xff]  ;;  %v9501_v54 = vld [vmem:[#allocation90_spill] sm:$0xff]  ;;  %v9502_v2 = vld [vmem:[#allocation91_spill] sm:$0xff] }
 0x3f1   :  { %2459 = vmatpush.msra.mxu0 %v9473_v38  ;;  %2519 = vmatpush.msrb.mxu3 %v9476_v42  ;;  %v9503_v38 = vld [vmem:[#allocation92_spill] sm:$0xff]  ;;  %v9506_v42 = vld [vmem:[#allocation95_spill] sm:$0xff] }
 0x3f2   :  { %2479 = vmatpush.msrb.mxu1 %v9474_v9  ;;  %2499 = vmatpush.msrb.mxu2 %v9475_v37  ;;  %v9504_v9 = vld [vmem:[#allocation93_spill] sm:$0xff]  ;;  %v9505_v37 = vld [vmem:[#allocation94_spill] sm:$0xff] }
 0x3f3   :  { %2460 = vmatpush.msra.mxu0 %v9477_v36  ;;  %2520 = vmatpush.msrb.mxu3 %v9480_v14  ;;  %v9507_v36 = vld [vmem:[#allocation96_spill] sm:$0xff]  ;;  %v9510_v14 = vld [vmem:[#allocation99_spill] sm:$0xff] }
 0x3f4   :  { %2480 = vmatpush.msrb.mxu1 %v9478_v30  ;;  %2500 = vmatpush.msrb.mxu2 %v9479_v47  ;;  %v9508_v30 = vld [vmem:[#allocation97_spill] sm:$0xff]  ;;  %v9509_v47 = vld [vmem:[#allocation98_spill] sm:$0xff] }
 0x3f5   :  { %2525 = vmatpush.msrb.mxu0 %v9481_v51  ;;  %2585 = vmatpush.msra.mxu3 %v9484_v48  ;;  %v9511_v51 = vld [vmem:[#allocation100_spill] sm:$0xff]  ;;  %v9514_v48 = vld [vmem:[#allocation103_spill] sm:$0xff] }
 0x3f6   :  { %2545 = vmatpush.msra.mxu1 %v9482_v7  ;;  %2565 = vmatpush.msra.mxu2 %v9483_v52  ;;  %v9512_v7 = vld [vmem:[#allocation101_spill] sm:$0xff]  ;;  %v9513_v52 = vld [vmem:[#allocation102_spill] sm:$0xff] }
 0x3f7   :  { %2526 = vmatpush.msrb.mxu0 %v9485_v23  ;;  %2586 = vmatpush.msra.mxu3 %v9488_v31  ;;  %v9515_v23 = vld [vmem:[#allocation104_spill] sm:$0xff]  ;;  %v9518_v31 = vld [vmem:[#allocation107_spill] sm:$0xff] }
 0x3f8   :  { %2546 = vmatpush.msra.mxu1 %v9486_v35  ;;  %2566 = vmatpush.msra.mxu2 %v9487_v26  ;;  %v9516_v35 = vld [vmem:[#allocation105_spill] sm:$0xff]  ;;  %v9517_v26 = vld [vmem:[#allocation106_spill] sm:$0xff] }
 0x3f9   :  { %2527 = vmatpush.msrb.mxu0 %v9489_v22  ;;  %2587 = vmatpush.msra.mxu3 %v9492_v49  ;;  %v9519_v22 = vld [vmem:[#allocation108_spill] sm:$0xff]  ;;  %v9522_v49 = vld [vmem:[#allocation111_spill] sm:$0xff] }
 0x3fa   :  { %2547 = vmatpush.msra.mxu1 %v9490_v53  ;;  %2567 = vmatpush.msra.mxu2 %v9491_v56  ;;  %v9520_v53 = vld [vmem:[#allocation109_spill] sm:$0xff]  ;;  %v9521_v56 = vld [vmem:[#allocation110_spill] sm:$0xff] }
 0x3fb   :  { %2528 = vmatpush.msrb.mxu0 %v9493_v60  ;;  %2588 = vmatpush.msra.mxu3 %v9496_v43  ;;  %v9523_v60 = vld [vmem:[#allocation112_spill] sm:$0xff]  ;;  %v9526_v43 = vld [vmem:[#allocation115_spill] sm:$0xff] }
 0x3fc   :  { %2548 = vmatpush.msra.mxu1 %v9494_v15  ;;  %2568 = vmatpush.msra.mxu2 %v9495_v12  ;;  %v9524_v15 = vld [vmem:[#allocation113_spill] sm:$0xff]  ;;  %v9525_v12 = vld [vmem:[#allocation114_spill] sm:$0xff] }
 0x3fd   :  { %2529 = vmatpush.msrb.mxu0 %v9497_v1  ;;  %2589 = vmatpush.msra.mxu3 %v9500_v18  ;;  %v9527_v1 = vld [vmem:[#allocation116_spill] sm:$0xff]  ;;  %v9530_v18 = vld [vmem:[#allocation119_spill] sm:$0xff] }
 0x3fe   :  { %2549 = vmatpush.msra.mxu1 %v9498_v10  ;;  %2569 = vmatpush.msra.mxu2 %v9499_v4  ;;  %v9528_v10 = vld [vmem:[#allocation117_spill] sm:$0xff]  ;;  %v9529_v4 = vld [vmem:[#allocation118_spill] sm:$0xff] }
 0x3ff   :  { %2530 = vmatpush.msrb.mxu0 %v9501_v54  ;;  %2590 = vmatpush.msra.mxu3 %v9504_v9  ;;  %v9531_v54 = vld [vmem:[#allocation120_spill] sm:$0xff]  ;;  %v9534_v9 = vld [vmem:[#allocation123_spill] sm:$0xff] }
 0x400   :  { %2550 = vmatpush.msra.mxu1 %v9502_v2  ;;  %2570 = vmatpush.msra.mxu2 %v9503_v38  ;;  %v9532_v2 = vld [vmem:[#allocation121_spill] sm:$0xff]  ;;  %v9533_v38 = vld [vmem:[#allocation122_spill] sm:$0xff] }
 0x401   :  { %2531 = vmatpush.msrb.mxu0 %v9505_v37  ;;  %2591 = vmatpush.msra.mxu3 %v9508_v30  ;;  %v9535_v37 = vld [vmem:[#allocation124_spill] sm:$0xff]  ;;  %v9538_v30 = vld [vmem:[#allocation127_spill] sm:$0xff] }
 0x402   :  { %2551 = vmatpush.msra.mxu1 %v9506_v42  ;;  %2571 = vmatpush.msra.mxu2 %v9507_v36  ;;  %v9536_v42 = vld [vmem:[#allocation125_spill] sm:$0xff]  ;;  %v9537_v36 = vld [vmem:[#allocation126_spill] sm:$0xff] }
 0x403   :  { %2532 = vmatpush.msrb.mxu0 %v9509_v47  ;;  %2592 = vmatpush.msra.mxu3 %v9512_v7  ;;  %v9539_v47 = vld [vmem:[#allocation128_spill] sm:$0xff]  ;;  %v9542_v7 = vld [vmem:[#allocation131_spill] sm:$0xff] }
 0x404   :  { %2552 = vmatpush.msra.mxu1 %v9510_v14  ;;  %2572 = vmatpush.msra.mxu2 %v9511_v51  ;;  %v9540_v14 = vld [vmem:[#allocation129_spill] sm:$0xff]  ;;  %v9541_v51 = vld [vmem:[#allocation130_spill] sm:$0xff] }
 0x405   :  { %2533 = vmatpush.msrb.mxu0 %v9513_v52  ;;  %2593 = vmatpush.msra.mxu3 %v9516_v35  ;;  %v9543_v52 = vld [vmem:[#allocation132_spill] sm:$0xff] }
 0x406   :  { %2553 = vmatpush.msra.mxu1 %v9514_v48  ;;  %2573 = vmatpush.msra.mxu2 %v9515_v23  ;;  %v9544_v48 = vld [vmem:[#allocation133_spill] sm:$0xff] }
 0x407   :  { %2534 = vmatpush.msrb.mxu0 %v9517_v26  ;;  %2594 = vmatpush.msra.mxu3 %v9520_v53 }
 0x408   :  { %2554 = vmatpush.msra.mxu1 %v9518_v31  ;;  %2574 = vmatpush.msra.mxu2 %v9519_v22  ;;  %v9545_v31 = vld [vmem:[#allocation40_spill] sm:$0xff] }
 0x409   :  { %2535 = vmatpush.msrb.mxu0 %v9521_v56  ;;  %2595 = vmatpush.msra.mxu3 %v9524_v15  ;;  %v9546_v22 = vld [vmem:[#allocation48_spill] sm:$0xff] }
 0x40a   :  { %2555 = vmatpush.msra.mxu1 %v9522_v49  ;;  %2575 = vmatpush.msra.mxu2 %v9523_v60  ;;  %v155_v53 = vadd.f32 %v9546_v22, %v9545_v31  ;;  %v9547_v56 = vld [vmem:[#allocation56_spill] sm:$0xff] }
 0x40b   :  { %2536 = vmatpush.msrb.mxu0 %v9525_v12  ;;  %2596 = vmatpush.msra.mxu3 %v9528_v10  ;;  %v9548_v49 = vld [vmem:[#allocation16_spill] sm:$0xff] }
 0x40c   :  { %2556 = vmatpush.msra.mxu1 %v9526_v43  ;;  %2576 = vmatpush.msra.mxu2 %v9527_v1  ;;  %v196_v60 = vadd.f32 %v9548_v49, %v9547_v56 }
 0x40d   :  { %2537 = vmatpush.msrb.mxu0 %v9529_v4  ;;  %2597 = vmatpush.msra.mxu3 %v9532_v2 }
 0x40e   :  { %2557 = vmatpush.msra.mxu1 %v9530_v18  ;;  %2577 = vmatpush.msra.mxu2 %v9531_v54  ;;  %v9549_v18 = vld [vmem:[#allocation67_spill] sm:$0xff]  ;;  %v9550_v54 = vld [vmem:[#allocation18_spill] sm:$0xff] }
 0x40f   :  { %2538 = vmatpush.msrb.mxu0 %v9533_v38  ;;  %2598 = vmatpush.msra.mxu3 %v9536_v42  ;;  %v278_v2 = vadd.f32 %v9550_v54, %v9549_v18 }
 0x410   :  { %2558 = vmatpush.msra.mxu1 %v9534_v9  ;;  %2578 = vmatpush.msra.mxu2 %v9535_v37 }
 0x411   :  { %2539 = vmatpush.msrb.mxu0 %v9537_v36  ;;  %2599 = vmatpush.msra.mxu3 %v9540_v14 }
 0x412   :  { %2559 = vmatpush.msra.mxu1 %v9538_v30  ;;  %2579 = vmatpush.msra.mxu2 %v9539_v47 }
 0x413   :  { %2540 = vmatpush.msrb.mxu0 %v9541_v51  ;;  %2600 = vmatpush.msra.mxu3 %v9544_v48  ;;  %v9552_v48 = vld [vmem:[#allocation21_spill] sm:$0xff] }
 0x414   :  { %2560 = vmatpush.msra.mxu1 %v9542_v7  ;;  %2580 = vmatpush.msra.mxu2 %v9543_v52  ;;  %v9551_v52 = vld [vmem:[#allocation88_spill] sm:$0xff] }
 0x415   :  { %v237_v22 = vadd.f32 %v9552_v48, %v9551_v52 }
 0x422   :  { %v2084_v23 = vpop.f32.mrf.mxu0  ;;  %v2104_v35 = vpop.f32.mrf.mxu1 }
 0x429   :  { %v7389_v26 = vpop.f32.mrf.mxu3  ;;  %v7397_v38 = vpop.f32.mrf.mxu2 }
 0x42c   :  { %v2164_v15 = vpop.f32.mrf.mxu0  ;;  %v2184_v12 = vpop.f32.mrf.mxu1 }
 0x42d   :  { %v2378_v43 = vadd.f32 %v2164_v15, %v155_v53  ;;  %v2379_v1 = vadd.f32 %v2184_v12, %v196_v60 }
 0x42f   :  { %v3558_v10 = vmul.f32 -1.442695, %v2378_v43  ;;  %v3559_v4 = vmul.f32 -1.442695, %v2379_v1 }
 0x431   :  { %3732 = vpow2.f32 %v3558_v10 }
 0x432   :  { %3734 = vpow2.f32 %v3559_v4 }
 0x433   :  { %v2224_v9 = vpop.f32.mrf.mxu3  ;;  %v2204_v51 = vpop.f32.mrf.mxu2 }
 0x434   :  { %v2381_v37 = vadd.f32 %v2224_v9, %v278_v2  ;;  %v2380_v60 = vadd.f32 %v2204_v51, %v237_v22 }
 0x436   :  { %v3560_v42 = vmul.f32 -1.442695, %v2381_v37 }
 0x437   :  { %v3733_v36 = vpop.eup %3732 }
 0x438   :  { %v3735_v30 = vpop.eup %3734  ;;  %v2391_v47 = vadd.f32 1.0, %v3733_v36  ;;  %3736 = vpow2.f32 %v3560_v42 }
 0x439   :  { %v2392_v14 = vadd.f32 1.0, %v3735_v30 }
 0x43a   :  { %3738 = vrcp.f32 %v2391_v47  ;;  %v2403_v4 = vand.u32 2147483647, %v2391_v47  ;;  %v2405_v54 = vand.u32 2147483648, %v2391_v47  ;;  %vm2399_vm0 = vweird.f32 %v2391_v47 }
 0x43b   :  { %3740 = vrcp.f32 %v2392_v14  ;;  %v2420_v2 = vand.u32 2147483648, %v2392_v14  ;;  %v2418_v42 = vand.u32 2147483647, %v2392_v14  ;;  %vm2414_vm1 = vweird.f32 %v2392_v14 }
 0x43c   :  { %vm2404_vm3 = vcmp.eq.f32.partialorder %v2403_v4, 8.507059e+37 }
 0x43d   :  { %vm2419_vm5 = vcmp.eq.f32.partialorder %v2418_v42, 8.507059e+37 }
 0x43e   :  { %v3737_v7 = vpop.eup %3736 }
 0x43f   :  { %v7401_v53 = vadd.f32 1.0, %v3737_v7 }
 0x440   :  { %v3739_v49 = vpop.eup %3738 }
 0x441   :  { %v3741_v15 = vpop.eup %3740  ;;  %v2395_v12 = vmul.f32 %v3739_v49, %v2391_v47  ;;  %3742 = vrcp.f32 %v7401_v53  ;;  %vm2400_vm14 = vweird.f32 %v3739_v49  ;;  %vm2429_vm7 = vweird.f32 %v7401_v53 }
 0x442   :  { %v2410_v43 = vmul.f32 %v3741_v15, %v2392_v14  ;;  %3744 = vtanh.f32 %v2380_v60  ;;  %vm2415_vm15 = vweird.f32 %v3741_v15  ;;  %vm2401_vm2 = vmor %vm2399_vm0, %vm2400_vm14 }
 0x443   :  { %v2396_v1 = vsub.f32 1.0, %v2395_v12  ;;  %v2406_v12 = vor.u32 1.1754944e-38, %v2405_v54  ;;  %vm2416_vm4 = vmor %vm2414_vm1, %vm2415_vm15 }
 0x444   :  { %v2411_v10 = vsub.f32 1.0, %v2410_v43 }
 0x445   :  { %v2397_v9 = vmul.f32 %v3739_v49, %v2396_v1  ;;  %v2421_v1 = vor.u32 1.1754944e-38, %v2420_v2 }
 0x446   :  { %v2412_v37 = vmul.f32 %v3741_v15, %v2411_v10 }
 0x447   :  { %v3743_v51 = vpop.eup %3742  ;;  %v2398_v7 = vadd.f32 %v3739_v49, %v2397_v9 }
 0x448   :  { %v2413_v43 = vadd.f32 %v3741_v15, %v2412_v37  ;;  %v2425_v60 = vmul.f32 %v3743_v51, %v7401_v53  ;;  %v3745_v18 = vpop.eup %3744  ;;  %vm2430_vm6 = vweird.f32 %v3743_v51 }
 0x449   :  { %v2402_v10 = vsel %vm2401_vm2, %v3739_v49, %v2398_v7  ;;  %vm2431_vm8 = vmor %vm2429_vm7, %vm2430_vm6 }
 0x44a   :  { %v2407_v56 = vsel %vm2404_vm3, %v2406_v12, %v2402_v10  ;;  %v2417_v14 = vsel %vm2416_vm4, %v3741_v15, %v2413_v43  ;;  %v2435_v15 = vand.u32 2147483648, %v7401_v53 }
 0x44b   :  { %v2441_v9 = vmul.f32 %v3745_v18, %v2407_v56  ;;  %v2433_v56 = vand.u32 2147483647, %v7401_v53 }
 0x44d   :  { %vm2434_vm9 = vcmp.eq.f32.partialorder %v2433_v56, 8.507059e+37 }
 0x450   :  { %v2244_v36 = vpop.f32.mrf.mxu0 }
 0x451   :  { %v2264_v30 = vpop.f32.mrf.mxu1  ;;  %v2307_v48 = vadd.f32 %v2244_v36, %v2084_v23  ;;  %v2426_v23 = vsub.f32 1.0, %v2425_v60 }
 0x452   :  { %v2308_v22 = vadd.f32 %v2264_v30, %v2104_v35  ;;  %v2422_v35 = vsel %vm2419_vm5, %v2421_v1, %v2417_v14 }
 0x453   :  { %v2311_v47 = vadd.f32 %v2307_v48, %v5498_v39  ;;  %v2440_v37 = vmul.f32 %v2422_v35, %v6971_v5  ;;  %v2427_v36 = vmul.f32 %v3743_v51, %v2426_v23 }
 0x454   :  { %v2312_v52 = vadd.f32 %v2308_v22, %v5501_v32  ;;  %v2436_v22 = vor.u32 1.1754944e-38, %v2435_v15 }
 0x455   :  { %v3555_v4 = vmul.f32 -1.442695, %v2311_v47  ;;  %v7409_v2 = vadd.f32 %v2441_v9, %v2440_v37  ;;  %v2428_v49 = vadd.f32 %v3743_v51, %v2427_v36  ;;  %v9554_v9 = vld [vmem:[#allocation19_spill] sm:$0xff] }
 0x456   :  { %v3556_v54 = vmul.f32 -1.442695, %v2312_v52 }
 0x457   :  { %3746 = vpow2.f32 %v3555_v4  ;;  %v2432_v52 = vsel %vm2431_vm8, %v3743_v51, %v2428_v49  ;;  %v2284_v53 = vpop.f32.mrf.mxu2 }
 0x458   :  { %v2304_v30 = vpop.f32.mrf.mxu3  ;;  %3748 = vpow2.f32 %v3556_v54  ;;  %v2437_v60 = vsel %vm2434_vm9, %v2436_v22, %v2432_v52  ;;  %v2309_v10 = vadd.f32 %v2284_v53, %v7397_v38  ;;  %v9556_v54 = vld [vmem:[#allocation14_spill] sm:$0xff]  ;;  %v9561_v22 = vld [vmem:[#allocation136_spill] sm:$0xff] }
 0x459   :  { %v2310_v7 = vadd.f32 %v2304_v30, %v7389_v26  ;;  %3750 = vtanh.f32 %v7409_v2  ;;  %v9587_v30 = vld [vmem:[#allocation162_spill] sm:$0xff] }
 0x45b   :  { %v2314_v5 = vadd.f32 %v2310_v7, %v5509_v45 }
 0x45d   :  { %v3747_v18 = vpop.eup %3746  ;;  %v3557_v42 = vmul.f32 -1.442695, %v2314_v5  ;;  %v9560_v5 = vld [vmem:[#allocation135_spill] sm:$0xff] }
 0x45e   :  { %v3749_v48 = vpop.eup %3748  ;;  %v7417_v12 = vadd.f32 1.0, %v3747_v18 }
 0x45f   :  { %v7419_v26 = vadd.f32 1.0, %v3749_v48  ;;  %3752 = vpow2.f32 %v3557_v42  ;;  %v3751_v43 = vpop.eup %3750 }
 0x460   :  { %3754 = vrcp.f32 %v7417_v12  ;;  %v2444_v1 = vmul.f32 %v3751_v43, %v2437_v60  ;;  %vm2332_vm12 = vweird.f32 %v7417_v12  ;;  %v9564_v43 = vld [vmem:[#allocation139_spill] sm:$0xff]  ;;  %v9565_v60 = vld [vmem:[#allocation140_spill] sm:$0xff] }
 0x461   :  { %3756 = vrcp.f32 %v7419_v26  ;;  %vm2347_vm13 = vweird.f32 %v7419_v26 }
 0x462   :  { %2461 = vmatmul.f32.vlgmr.msra.gmra.mxu0 %v2444_v1  ;;  %2481 = vmatmul.f32.vlgmr.msrb.gmra.mxu1 %v2444_v1 }
 0x463   :  { %2501 = vmatmul.f32.vlgmr.msrb.gmra.mxu2 %v2444_v1  ;;  %2521 = vmatmul.f32.vlgmr.msrb.gmra.mxu3 %v2444_v1 }
 0x464   :  { %2605 = vmatpush.msra.mxu0 %v6992_v17  ;;  %2625 = vmatpush.msrb.mxu1 %v6995_v3  ;;  %v2313_v3 = vadd.f32 %v2309_v10, %v5527_v33  ;;  %v9569_v10 = vld [vmem:[#allocation144_spill] sm:$0xff] }
 0x465   :  { %v3753_v51 = vpop.eup %3752  ;;  %2645 = vmatpush.msrb.mxu2 %v7002_v63  ;;  %2665 = vmatpush.msrb.mxu3 %v7005_v34  ;;  %v9553_v34 = vld [vmem:[#allocation11_spill] sm:$0xff] }
 0x466   :  { %v3755_v47 = vpop.eup %3754  ;;  %v7426_v14 = vadd.f32 1.0, %v3753_v51  ;;  %2606 = vmatpush.msra.mxu0 %v7012_v29  ;;  %2626 = vmatpush.msrb.mxu1 %v7015_v44  ;;  %v2353_v29 = vand.u32 2147483648, %v7419_v26  ;;  %v9568_v51 = vld [vmem:[#allocation143_spill] sm:$0xff] }
 0x467   :  { %v3757_v23 = vpop.eup %3756  ;;  %v2328_v35 = vmul.f32 %v3755_v47, %v7417_v12  ;;  %2646 = vmatpush.msrb.mxu2 %v7021_v24  ;;  %2666 = vmatpush.msrb.mxu3 %v7024_v40  ;;  %vm2333_vm10 = vweird.f32 %v3755_v47  ;;  %v2338_v24 = vand.u32 2147483648, %v7417_v12  ;;  %v9555_v40 = vld [vmem:[#allocation12_spill] sm:$0xff] }
 0x468   :  { %v2343_v38 = vmul.f32 %v3757_v23, %v7419_v26  ;;  %3758 = vrcp.f32 %v7426_v14  ;;  %2607 = vmatpush.msra.mxu0 %v7028_v11  ;;  %2627 = vmatpush.msrb.mxu1 %v7031_v21  ;;  %vm2348_vm11 = vweird.f32 %v3757_v23  ;;  %v2336_v11 = vand.u32 2147483647, %v7417_v12  ;;  %vm7455_vm14 = vmor %vm2332_vm12, %vm2333_vm10  ;;  %v9562_v12 = vld [vmem:[#allocation137_spill] sm:$0xff] }
 0x469   :  { %v2329_v17 = vsub.f32 1.0, %v2328_v35  ;;  %2647 = vmatpush.msrb.mxu2 %v7034_v46  ;;  %2667 = vmatpush.msrb.mxu3 %v9553_v34  ;;  %v2351_v21 = vand.u32 2147483647, %v7419_v26  ;;  %v9557_v46 = vld [vmem:[#allocation134_spill] sm:$0xff]  ;;  %3760 = vtanh.f32 %v2313_v3  ;;  %vm2349_vm15 = vmor %vm2347_vm13, %vm2348_vm11  ;;  %v2354_v7 = vor.u32 1.1754944e-38, %v2353_v29  ;;  %v9572_v35 = vld [vmem:[#allocation147_spill] sm:$0xff] }
 0x46a   :  { %v2344_v63 = vsub.f32 1.0, %v2343_v38  ;;  %2608 = vmatpush.msra.mxu0 %v9554_v9  ;;  %2628 = vmatpush.msrb.mxu1 %v9555_v40  ;;  %v2339_v56 = vor.u32 1.1754944e-38, %v2338_v24  ;;  %vm2337_vm0 = vcmp.eq.f32.partialorder %v2336_v11, 8.507059e+37  ;;  %v9576_v3 = vld [vmem:[#allocation151_spill] sm:$0xff]  ;;  %v9577_v34 = vld [vmem:[#allocation152_spill] sm:$0xff]  ;;  %v9578_v29 = vld [vmem:[#allocation153_spill] sm:$0xff]  ;;  %vm2362_vm3 = vweird.f32 %v7426_v14 }
 0x46b   :  { %v2330_v44 = vmul.f32 %v3755_v47, %v2329_v17  ;;  %2648 = vmatpush.msrb.mxu2 %v9556_v54  ;;  %2668 = vmatpush.msrb.mxu3 %v9557_v46  ;;  %vm2352_vm1 = vcmp.eq.f32.partialorder %v2351_v21, 8.507059e+37  ;;  %v9575_v17 = vld [vmem:[#allocation150_spill] sm:$0xff]  ;;  %v9580_v24 = vld [vmem:[#allocation155_spill] sm:$0xff]  ;;  %v9581_v9 = vld [vmem:[#allocation156_spill] sm:$0xff] }
 0x46c   :  { %v2345_v4 = vmul.f32 %v3757_v23, %v2344_v63  ;;  %2541 = vmatmul.f32.vlgmr.msrb.gmra.mxu0 %v2444_v1  ;;  %2561 = vmatmul.f32.vlgmr.msra.gmra.mxu1 %v2444_v1  ;;  %v9582_v40 = vld [vmem:[#allocation157_spill] sm:$0xff]  ;;  %v9584_v11 = vld [vmem:[#allocation159_spill] sm:$0xff]  ;;  %v9585_v54 = vld [vmem:[#allocation160_spill] sm:$0xff] }
 0x46d   :  { %v2331_v37 = vadd.f32 %v3755_v47, %v2330_v44  ;;  %2581 = vmatmul.f32.vlgmr.msra.gmra.mxu2 %v2444_v1  ;;  %2601 = vmatmul.f32.vlgmr.msra.gmra.mxu3 %v2444_v1  ;;  %v9566_v1 = vld [vmem:[#allocation141_spill] sm:$0xff]  ;;  %v9579_v44 = vld [vmem:[#allocation154_spill] sm:$0xff] }
 0x46e   :  { %v7451_v36 = vpop.eup %3758  ;;  %v2346_v49 = vadd.f32 %v3757_v23, %v2345_v4  ;;  %2609 = vmatpush.msra.mxu0 %v7085_v28  ;;  %2629 = vmatpush.msrb.mxu1 %v9560_v5  ;;  %v9563_v28 = vld [vmem:[#allocation138_spill] sm:$0xff]  ;;  %v9586_v46 = vld [vmem:[#allocation161_spill] sm:$0xff] }
 0x46f   :  { %v2335_v15 = vsel %vm7455_vm14, %v3755_v47, %v2331_v37  ;;  %2649 = vmatpush.msrb.mxu2 %v7094_v55  ;;  %2669 = vmatpush.msrb.mxu3 %v7097_v0  ;;  %v2358_v48 = vmul.f32 %v7451_v36, %v7426_v14  ;;  %v3761_v26 = vpop.eup %3760  ;;  %v9570_v47 = vld [vmem:[#allocation145_spill] sm:$0xff]  ;;  %v9583_v4 = vld [vmem:[#allocation158_spill] sm:$0xff]  ;;  %vm2363_vm2 = vweird.f32 %v7451_v36  ;;  %v2368_v37 = vand.u32 2147483648, %v7426_v14 }
 0x470   :  { %v2350_v18 = vsel %vm2349_vm15, %v3757_v23, %v2346_v49  ;;  %v2340_v52 = vsel %vm2337_vm0, %v2339_v56, %v2335_v15  ;;  %2610 = vmatpush.msra.mxu0 %v7102_v25  ;;  %2630 = vmatpush.msrb.mxu1 %v9561_v22  ;;  %v9567_v25 = vld [vmem:[#allocation142_spill] sm:$0xff]  ;;  %v9588_v49 = vld [vmem:[#allocation163_spill] sm:$0xff]  ;;  %v9589_v15 = vld [vmem:[#allocation164_spill] sm:$0xff] }
 0x471   :  { %v2355_v42 = vsel %vm2352_vm1, %v2354_v7, %v2350_v18  ;;  %2650 = vmatpush.msrb.mxu2 %v9562_v12  ;;  %2670 = vmatpush.msrb.mxu3 %v9563_v28  ;;  %v2374_v0 = vmul.f32 %v3761_v26, %v2340_v52  ;;  %v2359_v53 = vsub.f32 1.0, %v2358_v48  ;;  %v9571_v23 = vld [vmem:[#allocation146_spill] sm:$0xff]  ;;  %v2366_v7 = vand.u32 2147483647, %v7426_v14  ;;  %v9590_v56 = vld [vmem:[#allocation165_spill] sm:$0xff]  ;;  %vm2364_vm4 = vmor %vm2362_vm3, %vm2363_vm2 }
 0x472   :  { %2611 = vmatpush.msra.mxu0 %v9564_v43  ;;  %2631 = vmatpush.msrb.mxu1 %v9565_v60  ;;  %v2373_v55 = vmul.f32 %v2355_v42, %v7145_v61  ;;  %v9573_v61 = vld [vmem:[#allocation148_spill] sm:$0xff]  ;;  %v9591_v5 = vld [vmem:[#allocation166_spill] sm:$0xff]  ;;  %v9592_v42 = vld [vmem:[#allocation167_spill] sm:$0xff]  ;;  %v2369_v48 = vor.u32 1.1754944e-38, %v2368_v37 }
 0x473   :  { %2651 = vmatpush.msrb.mxu2 %v7121_v6  ;;  %2671 = vmatpush.msrb.mxu3 %v9566_v1  ;;  %v9574_v6 = vld [vmem:[#allocation149_spill] sm:$0xff]  ;;  %v2360_v63 = vmul.f32 %v7451_v36, %v2359_v53  ;;  %v9593_v22 = vld [vmem:[#allocation168_spill] sm:$0xff]  ;;  %vm2367_vm5 = vcmp.eq.f32.partialorder %v2366_v7, 8.507059e+37  ;;  %v7563_v28 = vld [vmem:[#allocation2 + $0x2c0] sm:$0xff] }
 0x474   :  { %2612 = vmatpush.msra.mxu0 %v9567_v25  ;;  %2632 = vmatpush.msrb.mxu1 %v9568_v51  ;;  %v7483_v38 = vadd.f32 %v2374_v0, %v2373_v55  ;;  %v9594_v14 = vld [vmem:[#allocation169_spill] sm:$0xff]  ;;  %v7566_v26 = vld [vmem:[#allocation2 + $0x2c8] sm:$0xff]  ;;  %v7575_v55 = vld [vmem:[#allocation2 + $0x280] sm:$0xff] }
 0x475   :  { %2652 = vmatpush.msrb.mxu2 %v9569_v10  ;;  %2672 = vmatpush.msrb.mxu3 %v9570_v47  ;;  %v2361_v21 = vadd.f32 %v7451_v36, %v2360_v63  ;;  %v7569_v43 = vld [vmem:[#allocation2 + $0x2d0] sm:$0xff]  ;;  %v7572_v60 = vld [vmem:[#allocation2 + $0x2d8] sm:$0xff]  ;;  %v7578_v0 = vld [vmem:[#allocation2 + $0x288] sm:$0xff] }
 0x476   :  { %2613 = vmatpush.msra.mxu0 %v9571_v23  ;;  %2633 = vmatpush.msrb.mxu1 %v9572_v35  ;;  %3762 = vtanh.f32 %v7483_v38  ;;  %v7581_v1 = vld [vmem:[#allocation2 + $0x290] sm:$0xff]  ;;  %v7584_v53 = vld [vmem:[#allocation2 + $0x298] sm:$0xff]  ;;  %v7587_v25 = vld [vmem:[#allocation2 + $0x240] sm:$0xff] }
 0x477   :  { %2653 = vmatpush.msrb.mxu2 %v9573_v61  ;;  %2673 = vmatpush.msrb.mxu3 %v9574_v6  ;;  %v2365_v18 = vsel %vm2364_vm4, %v7451_v36, %v2361_v21  ;;  %v7560_v36 = vld [vmem:[#allocation2 + $0x318] sm:$0xff]  ;;  %v7590_v51 = vld [vmem:[#allocation2 + $0x248] sm:$0xff]  ;;  %v7593_v10 = vld [vmem:[#allocation2 + $0x250] sm:$0xff] }
 0x478   :  { %2614 = vmatpush.msra.mxu0 %v9575_v17  ;;  %2634 = vmatpush.msrb.mxu1 %v9576_v3  ;;  %v2370_v12 = vsel %vm2367_vm5, %v2369_v48, %v2365_v18  ;;  %v7596_v47 = vld [vmem:[#allocation2 + $0x258] sm:$0xff]  ;;  %v7599_v23 = vld [vmem:[#allocation2 + $0x200] sm:$0xff]  ;;  %v7602_v35 = vld [vmem:[#allocation2 + $0x208] sm:$0xff] }
 0x479   :  { %2654 = vmatpush.msrb.mxu2 %v9577_v34  ;;  %2674 = vmatpush.msrb.mxu3 %v9578_v29  ;;  %v7605_v61 = vld [vmem:[#allocation2 + $0x210] sm:$0xff]  ;;  %v7608_v6 = vld [vmem:[#allocation2 + $0x218] sm:$0xff]  ;;  %v7611_v17 = vld [vmem:[#allocation2 + $0x1c0] sm:$0xff] }
 0x47a   :  { %2615 = vmatpush.msra.mxu0 %v9579_v44  ;;  %2635 = vmatpush.msrb.mxu1 %v9580_v24  ;;  %v7614_v3 = vld [vmem:[#allocation2 + $0x1c8] sm:$0xff]  ;;  %v7617_v63 = vld [vmem:[#allocation2 + $0x1d0] sm:$0xff]  ;;  %v7620_v34 = vld [vmem:[#allocation2 + $0x1d8] sm:$0xff] }
 0x47b   :  { %2655 = vmatpush.msrb.mxu2 %v9581_v9  ;;  %2675 = vmatpush.msrb.mxu3 %v9582_v40  ;;  %9595 = vst [vmem:[#allocation170_spill] sm:$0xff] %v7614_v3  ;;  %v7623_v29 = vld [vmem:[#allocation2 + $0x180] sm:$0xff]  ;;  %v7626_v44 = vld [vmem:[#allocation2 + $0x188] sm:$0xff]  ;;  %v7629_v24 = vld [vmem:[#allocation2 + $0x190] sm:$0xff] }
 0x47c   :  { %2616 = vmatpush.msra.mxu0 %v9583_v4  ;;  %2636 = vmatpush.msrb.mxu1 %v9584_v11  ;;  %v3763_v52 = vpop.eup %3762  ;;  %9596 = vst [vmem:[#allocation171_spill] sm:$0xff] %v7617_v63  ;;  %v7632_v9 = vld [vmem:[#allocation2 + $0x198] sm:$0xff]  ;;  %v7635_v40 = vld [vmem:[#allocation2 + $0x140] sm:$0xff]  ;;  %v7638_v4 = vld [vmem:[#allocation2 + $0x148] sm:$0xff] }
 0x47d   :  { %2656 = vmatpush.msrb.mxu2 %v9585_v54  ;;  %2676 = vmatpush.msrb.mxu3 %v9586_v46  ;;  %9597 = vst [vmem:[#allocation172_spill] sm:$0xff] %v7620_v34  ;;  %v7641_v11 = vld [vmem:[#allocation2 + $0x150] sm:$0xff]  ;;  %v7644_v21 = vld [vmem:[#allocation2 + $0x158] sm:$0xff]  ;;  %v7647_v54 = vld [vmem:[#allocation2 + $0x100] sm:$0xff] }
 0x47e   :  { %2617 = vmatpush.msra.mxu0 %v9587_v30  ;;  %2637 = vmatpush.msrb.mxu1 %v9588_v49  ;;  %9598 = vst [vmem:[#allocation173_spill] sm:$0xff] %v7623_v29  ;;  %v7650_v46 = vld [vmem:[#allocation2 + $0x108] sm:$0xff]  ;;  %v7653_v37 = vld [vmem:[#allocation2 + $0x110] sm:$0xff]  ;;  %v7656_v30 = vld [vmem:[#allocation2 + $0x118] sm:$0xff] }
 0x47f   :  { %2657 = vmatpush.msrb.mxu2 %v9589_v15  ;;  %2677 = vmatpush.msrb.mxu3 %v9590_v56  ;;  %9599 = vst [vmem:[#allocation13_spill] sm:$0xff] %v7626_v44  ;;  %v7659_v49 = vld [vmem:[#allocation2 + $0xc0] sm:$0xff]  ;;  %v7662_v7 = vld [vmem:[#allocation2 + $0xc8] sm:$0xff]  ;;  %v7665_v15 = vld [vmem:[#allocation2 + $0xd0] sm:$0xff] }
 0x480   :  { %2618 = vmatpush.msra.mxu0 %v9591_v5  ;;  %2638 = vmatpush.msrb.mxu1 %v7217_v62  ;;  %v2377_v62 = vmul.f32 %v3763_v52, %v2370_v12  ;;  %9600 = vst [vmem:[#allocation23_spill] sm:$0xff] %v7629_v24  ;;  %v7668_v56 = vld [vmem:[#allocation2 + $0xd8] sm:$0xff]  ;;  %v7671_v5 = vld [vmem:[#allocation2 + $0x80] sm:$0xff]  ;;  %v7674_v18 = vld [vmem:[#allocation2 + $0x88] sm:$0xff] }
 0x481   :  { %2658 = vmatpush.msrb.mxu2 %v7223_v50  ;;  %2678 = vmatpush.msrb.mxu3 %v9592_v42  ;;  %v7525_v50 = vld [vmem:[#allocation2 + $0x3d0] sm:$0xff]  ;;  %9601 = vst [vmem:[#allocation15_spill] sm:$0xff] %v7632_v9  ;;  %v7680_v42 = vld [vmem:[#allocation2 + $0x98] sm:$0xff]  ;;  %v7683_v48 = vld [vmem:[#allocation2 + $0x40] sm:$0xff] }
 0x482   :  { %2619 = vmatpush.msra.mxu0 %v9593_v22  ;;  %2639 = vmatpush.msrb.mxu1 %v9594_v14  ;;  %9602 = vst [vmem:[#allocation17_spill] sm:$0xff] %v7635_v40  ;;  %v7677_v52 = vld [vmem:[#allocation2 + $0x90] sm:$0xff]  ;;  %v7686_v22 = vld [vmem:[#allocation2 + $0x48] sm:$0xff]  ;;  %v7692_v12 = vld [vmem:[#allocation2 + $0x58] sm:$0xff] }
 0x483   :  { %2659 = vmatpush.msrb.mxu2 %v7235_v13  ;;  %2679 = vmatpush.msrb.mxu3 %v7238_v16  ;;  %v7536_v13 = vld [vmem:[#allocation2 + $0x398] sm:$0xff]  ;;  %v7539_v16 = vld [vmem:[#allocation2 + $0x340] sm:$0xff]  ;;  %9603 = vst [vmem:[#allocation32_spill] sm:$0xff] %v7638_v4  ;;  %v7689_v14 = vld [vmem:[#allocation2 + $0x50] sm:$0xff] }
 0x484   :  { %2620 = vmatpush.msra.mxu0 %v7241_v8  ;;  %2640 = vmatpush.msrb.mxu1 %v7244_v59  ;;  %v7530_v8 = vld [vmem:[#allocation2 + $0x388] sm:$0xff]  ;;  %9604 = vst [vmem:[#allocation33_spill] sm:$0xff] %v7641_v11 }
 0x485   :  { %2660 = vmatpush.msrb.mxu2 %v7247_v27  ;;  %2680 = vmatpush.msrb.mxu3 %v7250_v58  ;;  %v7533_v27 = vld [vmem:[#allocation2 + $0x390] sm:$0xff]  ;;  %v7542_v59 = vld [vmem:[#allocation2 + $0x348] sm:$0xff]  ;;  %9605 = vst [vmem:[#allocation34_spill] sm:$0xff] %v7644_v21 }
 0x486   :  { %2621 = vmatmul.f32.vlgmr.msra.gmra.mxu0 %v2377_v62  ;;  %2641 = vmatmul.f32.vlgmr.msrb.gmra.mxu1 %v2377_v62  ;;  %v7545_v58 = vld [vmem:[#allocation2 + $0x350] sm:$0xff]  ;;  %9606 = vst [vmem:[#allocation35_spill] sm:$0xff] %v7647_v54 }
 0x487   :  { %2661 = vmatmul.f32.vlgmr.msrb.gmra.mxu2 %v2377_v62  ;;  %2681 = vmatmul.f32.vlgmr.msrb.gmra.mxu3 %v2377_v62  ;;  %9607 = vst [vmem:[#allocation36_spill] sm:$0xff] %v7650_v46  ;;  %v7695_v62 = vld [vmem:[#allocation2] sm:$0xff] }
 0x488   :  { %2823 = vmatpush.msrb.mxu0 %v7253_v19  ;;  %2843 = vmatpush.msra.mxu1 %v7256_v57  ;;  %v7548_v19 = vld [vmem:[#allocation2 + $0x358] sm:$0xff]  ;;  %v7551_v57 = vld [vmem:[#allocation2 + $0x300] sm:$0xff]  ;;  %9608 = vst [vmem:[#allocation37_spill] sm:$0xff] %v7653_v37 }
 0x489   :  { %2863 = vmatpush.msra.mxu2 %v7525_v50  ;;  %2883 = vmatpush.msra.mxu3 %v7260_v41  ;;  %v7554_v41 = vld [vmem:[#allocation2 + $0x308] sm:$0xff]  ;;  %9609 = vst [vmem:[#allocation38_spill] sm:$0xff] %v7656_v30 }
 0x48a   :  { %2824 = vmatpush.msrb.mxu0 %v7263_v20  ;;  %2844 = vmatpush.msra.mxu1 %v7530_v8  ;;  %v7557_v20 = vld [vmem:[#allocation2 + $0x310] sm:$0xff]  ;;  %9610 = vst [vmem:[#allocation39_spill] sm:$0xff] %v7659_v49 }
 0x48b   :  { %2864 = vmatpush.msra.mxu2 %v7533_v27  ;;  %2884 = vmatpush.msra.mxu3 %v7536_v13  ;;  %9611 = vst [vmem:[#allocation41_spill] sm:$0xff] %v7662_v7 }
 0x48c   :  { %2825 = vmatpush.msrb.mxu0 %v7539_v16  ;;  %2845 = vmatpush.msra.mxu1 %v7542_v59  ;;  %9612 = vst [vmem:[#allocation42_spill] sm:$0xff] %v7665_v15 }
 0x48d   :  { %2865 = vmatpush.msra.mxu2 %v7545_v58  ;;  %2885 = vmatpush.msra.mxu3 %v7548_v19  ;;  %9613 = vst [vmem:[#allocation43_spill] sm:$0xff] %v7668_v56 }
 0x48e   :  { %2826 = vmatpush.msrb.mxu0 %v7551_v57  ;;  %2846 = vmatpush.msra.mxu1 %v7554_v41  ;;  %9614 = vst [vmem:[#allocation44_spill] sm:$0xff] %v7671_v5 }
 0x48f   :  { %2866 = vmatpush.msra.mxu2 %v7557_v20  ;;  %2886 = vmatpush.msra.mxu3 %v7560_v36  ;;  %9615 = vst [vmem:[#allocation45_spill] sm:$0xff] %v7674_v18 }
 0x490   :  { %2827 = vmatpush.msrb.mxu0 %v7563_v28  ;;  %2847 = vmatpush.msra.mxu1 %v7566_v26  ;;  %9616 = vst [vmem:[#allocation46_spill] sm:$0xff] %v7677_v52 }
 0x491   :  { %2867 = vmatpush.msra.mxu2 %v7569_v43  ;;  %2887 = vmatpush.msra.mxu3 %v7572_v60  ;;  %9617 = vst [vmem:[#allocation47_spill] sm:$0xff] %v7680_v42 }
 0x492   :  { %2828 = vmatpush.msrb.mxu0 %v7575_v55  ;;  %2848 = vmatpush.msra.mxu1 %v7578_v0  ;;  %9618 = vst [vmem:[#allocation49_spill] sm:$0xff] %v7683_v48 }
 0x493   :  { %2868 = vmatpush.msra.mxu2 %v7581_v1  ;;  %2888 = vmatpush.msra.mxu3 %v7584_v53  ;;  %9619 = vst [vmem:[#allocation50_spill] sm:$0xff] %v7686_v22 }
 0x494   :  { %2829 = vmatpush.msrb.mxu0 %v7587_v25  ;;  %2849 = vmatpush.msra.mxu1 %v7590_v51  ;;  %9620 = vst [vmem:[#allocation51_spill] sm:$0xff] %v7689_v14 }
 0x495   :  { %2869 = vmatpush.msra.mxu2 %v7593_v10  ;;  %2889 = vmatpush.msra.mxu3 %v7596_v47  ;;  %9621 = vst [vmem:[#allocation52_spill] sm:$0xff] %v7692_v12 }
 0x496   :  { %2830 = vmatpush.msrb.mxu0 %v7599_v23  ;;  %2850 = vmatpush.msra.mxu1 %v7602_v35  ;;  %9622 = vst [vmem:[#allocation53_spill] sm:$0xff] %v7695_v62 }
 0x497   :  { %2870 = vmatpush.msra.mxu2 %v7605_v61  ;;  %2890 = vmatpush.msra.mxu3 %v7608_v6 }
 0x498   :  { %2831 = vmatpush.msrb.mxu0 %v7611_v17  ;;  %2851 = vmatpush.msra.mxu1 %v7614_v3 }
 0x499   :  { %2871 = vmatpush.msra.mxu2 %v7617_v63  ;;  %2891 = vmatpush.msra.mxu3 %v7620_v34 }
 0x49a   :  { %2832 = vmatpush.msrb.mxu0 %v7623_v29  ;;  %2852 = vmatpush.msra.mxu1 %v7626_v44 }
 0x49b   :  { %2872 = vmatpush.msra.mxu2 %v7629_v24  ;;  %2892 = vmatpush.msra.mxu3 %v7632_v9 }
 0x49c   :  { %2833 = vmatpush.msrb.mxu0 %v7635_v40  ;;  %2853 = vmatpush.msra.mxu1 %v7638_v4 }
 0x49d   :  { %2873 = vmatpush.msra.mxu2 %v7641_v11  ;;  %2893 = vmatpush.msra.mxu3 %v7644_v21 }
 0x49e   :  { %2834 = vmatpush.msrb.mxu0 %v7647_v54  ;;  %2854 = vmatpush.msra.mxu1 %v7650_v46  ;;  %v9630_v54 = vld [vmem:[#allocation22_spill] sm:$0xff] }
 0x49f   :  { %2874 = vmatpush.msra.mxu2 %v7653_v37  ;;  %2894 = vmatpush.msra.mxu3 %v7656_v30 }
 0x4a0   :  { %2835 = vmatpush.msrb.mxu0 %v7659_v49  ;;  %2855 = vmatpush.msra.mxu1 %v7662_v7  ;;  %v9628_v49 = vld [vmem:[#allocation20_spill] sm:$0xff] }
 0x4a1   :  { %2875 = vmatpush.msra.mxu2 %v7665_v15  ;;  %2895 = vmatpush.msra.mxu3 %v7668_v56  ;;  %v4299_v56 = vld [vmem:[#allocation2 + $0x3b8] sm:$0xff]  ;;  %v4301_v15 = vld [vmem:[#allocation2 + $0x368] sm:$0xff] }
 0x4a2   :  { %2836 = vmatpush.msrb.mxu0 %v7671_v5  ;;  %2856 = vmatpush.msra.mxu1 %v7674_v18  ;;  %v4295_v18 = vld [vmem:[#allocation2 + $0x3f8] sm:$0xff]  ;;  %v4297_v5 = vld [vmem:[#allocation2 + $0x3a8] sm:$0xff] }
 0x4a3   :  { %2876 = vmatpush.msra.mxu2 %v7677_v52  ;;  %2896 = vmatpush.msra.mxu3 %v7680_v42  ;;  %v7698_v42 = vld [vmem:[#allocation2 + $0x8] sm:$0xff] }
 0x4a4   :  { %2837 = vmatpush.msrb.mxu0 %v7683_v48  ;;  %2857 = vmatpush.msra.mxu1 %v7686_v22  ;;  %9623 = vst [vmem:[#allocation54_spill] sm:$0xff] %v7698_v42  ;;  %v7701_v48 = vld [vmem:[#allocation2 + $0x10] sm:$0xff]  ;;  %v7704_v22 = vld [vmem:[#allocation2 + $0x18] sm:$0xff]  ;;  %v4293_v52 = vld [vmem:[#allocation2 + $0x3e8] sm:$0xff] }
 0x4a5   :  { %2877 = vmatpush.msra.mxu2 %v7689_v14  ;;  %2897 = vmatpush.msra.mxu3 %v7692_v12  ;;  %9624 = vst [vmem:[#allocation55_spill] sm:$0xff] %v7701_v48  ;;  %v4292_v14 = vld [vmem:[#allocation2 + $0x3e0] sm:$0xff]  ;;  %v4294_v12 = vld [vmem:[#allocation2 + $0x3f0] sm:$0xff] }
 0x4a6   :  { %2838 = vmatpush.msrb.mxu0 %v7695_v62  ;;  %2858 = vmatpush.msra.mxu1 %v7698_v42  ;;  %9625 = vst [vmem:[#allocation57_spill] sm:$0xff] %v7704_v22  ;;  %v4296_v62 = vld [vmem:[#allocation2 + $0x3a0] sm:$0xff]  ;;  %v4298_v42 = vld [vmem:[#allocation2 + $0x3b0] sm:$0xff] }
 0x4a7   :  { %2878 = vmatpush.msra.mxu2 %v7701_v48  ;;  %2898 = vmatpush.msra.mxu3 %v7704_v22  ;;  %v4300_v48 = vld [vmem:[#allocation2 + $0x360] sm:$0xff]  ;;  %v4302_v22 = vld [vmem:[#allocation2 + $0x370] sm:$0xff] }
 0x4a8   :  { %2903 = vmatpush.msra.mxu0 %v4292_v14  ;;  %2923 = vmatpush.msrb.mxu1 %v4293_v52  ;;  %v4303_v14 = vld [vmem:[#allocation2 + $0x378] sm:$0xff]  ;;  %v4304_v52 = vld [vmem:[#allocation2 + $0x320] sm:$0xff] }
 0x4a9   :  { %2943 = vmatpush.msrb.mxu2 %v4294_v12  ;;  %2963 = vmatpush.msrb.mxu3 %v4295_v18  ;;  %v4305_v12 = vld [vmem:[#allocation2 + $0x328] sm:$0xff]  ;;  %v4306_v18 = vld [vmem:[#allocation2 + $0x330] sm:$0xff] }
 0x4aa   :  { %2904 = vmatpush.msra.mxu0 %v4296_v62  ;;  %2924 = vmatpush.msrb.mxu1 %v4297_v5  ;;  %v4307_v62 = vld [vmem:[#allocation2 + $0x338] sm:$0xff]  ;;  %v4308_v5 = vld [vmem:[#allocation2 + $0x2e0] sm:$0xff] }
 0x4ab   :  { %2944 = vmatpush.msrb.mxu2 %v4298_v42  ;;  %2964 = vmatpush.msrb.mxu3 %v4299_v56  ;;  %v4309_v42 = vld [vmem:[#allocation2 + $0x2e8] sm:$0xff]  ;;  %v4310_v56 = vld [vmem:[#allocation2 + $0x2f0] sm:$0xff] }
 0x4ac   :  { %2905 = vmatpush.msra.mxu0 %v4300_v48  ;;  %2925 = vmatpush.msrb.mxu1 %v4301_v15  ;;  %v4311_v48 = vld [vmem:[#allocation2 + $0x2f8] sm:$0xff]  ;;  %v4312_v15 = vld [vmem:[#allocation2 + $0x2a0] sm:$0xff] }
 0x4ad   :  { %2945 = vmatpush.msrb.mxu2 %v4302_v22  ;;  %2965 = vmatpush.msrb.mxu3 %v4303_v14  ;;  %v4313_v22 = vld [vmem:[#allocation2 + $0x2a8] sm:$0xff]  ;;  %v4314_v14 = vld [vmem:[#allocation2 + $0x2b0] sm:$0xff] }
 0x4ae   :  { %2906 = vmatpush.msra.mxu0 %v4304_v52  ;;  %2926 = vmatpush.msrb.mxu1 %v4305_v12  ;;  %v4315_v52 = vld [vmem:[#allocation2 + $0x2b8] sm:$0xff]  ;;  %v4316_v12 = vld [vmem:[#allocation2 + $0x260] sm:$0xff] }
 0x4af   :  { %2946 = vmatpush.msrb.mxu2 %v4306_v18  ;;  %2966 = vmatpush.msrb.mxu3 %v4307_v62  ;;  %v4317_v18 = vld [vmem:[#allocation2 + $0x268] sm:$0xff]  ;;  %v4318_v62 = vld [vmem:[#allocation2 + $0x270] sm:$0xff] }
 0x4b0   :  { %2907 = vmatpush.msra.mxu0 %v4308_v5  ;;  %2927 = vmatpush.msrb.mxu1 %v4309_v42  ;;  %v4319_v5 = vld [vmem:[#allocation2 + $0x278] sm:$0xff]  ;;  %v4320_v42 = vld [vmem:[#allocation2 + $0x220] sm:$0xff] }
 0x4b1   :  { %2947 = vmatpush.msrb.mxu2 %v4310_v56  ;;  %2967 = vmatpush.msrb.mxu3 %v4311_v48  ;;  %v4321_v56 = vld [vmem:[#allocation2 + $0x228] sm:$0xff]  ;;  %v4322_v48 = vld [vmem:[#allocation2 + $0x230] sm:$0xff] }
 0x4b2   :  { %2908 = vmatpush.msra.mxu0 %v4312_v15  ;;  %2928 = vmatpush.msrb.mxu1 %v4313_v22  ;;  %v4323_v15 = vld [vmem:[#allocation2 + $0x238] sm:$0xff]  ;;  %v4324_v22 = vld [vmem:[#allocation2 + $0x1e0] sm:$0xff] }
 0x4b3   :  { %2948 = vmatpush.msrb.mxu2 %v4314_v14  ;;  %2968 = vmatpush.msrb.mxu3 %v4315_v52  ;;  %v4325_v14 = vld [vmem:[#allocation2 + $0x1e8] sm:$0xff]  ;;  %v4326_v52 = vld [vmem:[#allocation2 + $0x1f0] sm:$0xff] }
 0x4b4   :  { %2909 = vmatpush.msra.mxu0 %v4316_v12  ;;  %2929 = vmatpush.msrb.mxu1 %v4317_v18  ;;  %v4327_v12 = vld [vmem:[#allocation2 + $0x1f8] sm:$0xff]  ;;  %v4328_v18 = vld [vmem:[#allocation2 + $0x1a0] sm:$0xff] }
 0x4b5   :  { %2949 = vmatpush.msrb.mxu2 %v4318_v62  ;;  %2969 = vmatpush.msrb.mxu3 %v4319_v5  ;;  %v4329_v62 = vld [vmem:[#allocation2 + $0x1a8] sm:$0xff]  ;;  %v4330_v5 = vld [vmem:[#allocation2 + $0x1b0] sm:$0xff] }
 0x4b6   :  { %2910 = vmatpush.msra.mxu0 %v4320_v42  ;;  %2930 = vmatpush.msrb.mxu1 %v4321_v56  ;;  %v4331_v42 = vld [vmem:[#allocation2 + $0x1b8] sm:$0xff]  ;;  %v4332_v56 = vld [vmem:[#allocation2 + $0x160] sm:$0xff] }
 0x4b7   :  { %2950 = vmatpush.msrb.mxu2 %v4322_v48  ;;  %2970 = vmatpush.msrb.mxu3 %v4323_v15  ;;  %v4333_v48 = vld [vmem:[#allocation2 + $0x168] sm:$0xff]  ;;  %v4334_v15 = vld [vmem:[#allocation2 + $0x170] sm:$0xff] }
 0x4b8   :  { %2911 = vmatpush.msra.mxu0 %v4324_v22  ;;  %2931 = vmatpush.msrb.mxu1 %v4325_v14  ;;  %v4335_v22 = vld [vmem:[#allocation2 + $0x178] sm:$0xff]  ;;  %v4336_v14 = vld [vmem:[#allocation2 + $0x120] sm:$0xff] }
 0x4b9   :  { %2951 = vmatpush.msrb.mxu2 %v4326_v52  ;;  %2971 = vmatpush.msrb.mxu3 %v4327_v12  ;;  %v4337_v52 = vld [vmem:[#allocation2 + $0x128] sm:$0xff]  ;;  %v4338_v12 = vld [vmem:[#allocation2 + $0x130] sm:$0xff] }
 0x4ba   :  { %2912 = vmatpush.msra.mxu0 %v4328_v18  ;;  %2932 = vmatpush.msrb.mxu1 %v4329_v62  ;;  %v4339_v18 = vld [vmem:[#allocation2 + $0x138] sm:$0xff]  ;;  %v4340_v62 = vld [vmem:[#allocation2 + $0xe0] sm:$0xff] }
 0x4bb   :  { %2952 = vmatpush.msrb.mxu2 %v4330_v5  ;;  %2972 = vmatpush.msrb.mxu3 %v4331_v42  ;;  %v4341_v5 = vld [vmem:[#allocation2 + $0xe8] sm:$0xff]  ;;  %v4342_v42 = vld [vmem:[#allocation2 + $0xf0] sm:$0xff] }
 0x4bc   :  { %2913 = vmatpush.msra.mxu0 %v4332_v56  ;;  %2933 = vmatpush.msrb.mxu1 %v4333_v48  ;;  %v4343_v56 = vld [vmem:[#allocation2 + $0xf8] sm:$0xff]  ;;  %v4344_v48 = vld [vmem:[#allocation2 + $0xa0] sm:$0xff] }
 0x4bd   :  { %2953 = vmatpush.msrb.mxu2 %v4334_v15  ;;  %2973 = vmatpush.msrb.mxu3 %v4335_v22  ;;  %v4345_v15 = vld [vmem:[#allocation2 + $0xa8] sm:$0xff]  ;;  %v4346_v22 = vld [vmem:[#allocation2 + $0xb0] sm:$0xff] }
 0x4be   :  { %2914 = vmatpush.msra.mxu0 %v4336_v14  ;;  %2934 = vmatpush.msrb.mxu1 %v4337_v52  ;;  %v4347_v14 = vld [vmem:[#allocation2 + $0xb8] sm:$0xff]  ;;  %v4348_v52 = vld [vmem:[#allocation2 + $0x60] sm:$0xff] }
 0x4bf   :  { %2954 = vmatpush.msrb.mxu2 %v4338_v12  ;;  %2974 = vmatpush.msrb.mxu3 %v4339_v18  ;;  %v4349_v12 = vld [vmem:[#allocation2 + $0x68] sm:$0xff]  ;;  %v4350_v18 = vld [vmem:[#allocation2 + $0x70] sm:$0xff] }
 0x4c0   :  { %2915 = vmatpush.msra.mxu0 %v4340_v62  ;;  %2935 = vmatpush.msrb.mxu1 %v4341_v5  ;;  %v4351_v62 = vld [vmem:[#allocation2 + $0x78] sm:$0xff]  ;;  %v4352_v5 = vld [vmem:[#allocation2 + $0x20] sm:$0xff] }
 0x4c1   :  { %2955 = vmatpush.msrb.mxu2 %v4342_v42  ;;  %2975 = vmatpush.msrb.mxu3 %v4343_v56  ;;  %v4353_v42 = vld [vmem:[#allocation2 + $0x28] sm:$0xff]  ;;  %v4354_v56 = vld [vmem:[#allocation2 + $0x30] sm:$0xff] }
 0x4c2   :  { %2916 = vmatpush.msra.mxu0 %v4344_v48  ;;  %2936 = vmatpush.msrb.mxu1 %v4345_v15  ;;  %v4355_v48 = vld [vmem:[#allocation2 + $0x38] sm:$0xff] }
 0x4c3   :  { %2956 = vmatpush.msrb.mxu2 %v4346_v22  ;;  %2976 = vmatpush.msrb.mxu3 %v4347_v14  ;;  %v9626_v14 = vld [vmem:[#allocation73_spill] sm:$0xff] }
 0x4c4   :  { %2917 = vmatpush.msra.mxu0 %v4348_v52  ;;  %2937 = vmatpush.msrb.mxu1 %v4349_v12  ;;  %v158_v52 = vadd.f32 %v9626_v14, %v9545_v31  ;;  %v9627_v12 = vld [vmem:[#allocation56_spill] sm:$0xff] }
 0x4c5   :  { %2957 = vmatpush.msrb.mxu2 %v4350_v18  ;;  %2977 = vmatpush.msrb.mxu3 %v4351_v62  ;;  %v199_v18 = vadd.f32 %v9628_v49, %v9627_v12 }
 0x4c6   :  { %2918 = vmatpush.msra.mxu0 %v4352_v5  ;;  %2938 = vmatpush.msrb.mxu1 %v4353_v42 }
 0x4c7   :  { %2958 = vmatpush.msrb.mxu2 %v4354_v56  ;;  %2978 = vmatpush.msrb.mxu3 %v4355_v48  ;;  %v9629_v56 = vld [vmem:[#allocation67_spill] sm:$0xff] }
 0x4c8   :  { %v281_v48 = vadd.f32 %v9630_v54, %v9629_v56 }
 0x4df   :  { %v2462_v15 = vpop.f32.mrf.mxu0  ;;  %v2482_v22 = vpop.f32.mrf.mxu1 }
 0x4e6   :  { %v7707_v7 = vpop.f32.mrf.mxu3  ;;  %v7715_v21 = vpop.f32.mrf.mxu2 }
 0x4e9   :  { %v2542_v30 = vpop.f32.mrf.mxu0  ;;  %v2562_v62 = vpop.f32.mrf.mxu1 }
 0x4ea   :  { %v2756_v37 = vadd.f32 %v2542_v30, %v158_v52  ;;  %v2757_v5 = vadd.f32 %v2562_v62, %v199_v18  ;;  %v9631_v52 = vld [vmem:[#allocation88_spill] sm:$0xff] }
 0x4ec   :  { %v3564_v46 = vmul.f32 -1.442695, %v2756_v37  ;;  %v3565_v42 = vmul.f32 -1.442695, %v2757_v5 }
 0x4ee   :  { %3764 = vpow2.f32 %v3564_v46  ;;  %v9632_v46 = vld [vmem:[#allocation25_spill] sm:$0xff] }
 0x4ef   :  { %3766 = vpow2.f32 %v3565_v42  ;;  %v240_v18 = vadd.f32 %v9632_v46, %v9631_v52 }
 0x4f0   :  { %v2602_v11 = vpop.f32.mrf.mxu3  ;;  %v2582_v30 = vpop.f32.mrf.mxu2 }
 0x4f1   :  { %v2759_v4 = vadd.f32 %v2602_v11, %v281_v48  ;;  %v2758_v5 = vadd.f32 %v2582_v30, %v240_v18 }
 0x4f3   :  { %v3566_v40 = vmul.f32 -1.442695, %v2759_v4 }
 0x4f4   :  { %v3765_v14 = vpop.eup %3764 }
 0x4f5   :  { %v3767_v31 = vpop.eup %3766  ;;  %v2769_v9 = vadd.f32 1.0, %v3765_v14  ;;  %3768 = vpow2.f32 %v3566_v40 }
 0x4f6   :  { %v2770_v49 = vadd.f32 1.0, %v3767_v31 }
 0x4f7   :  { %3770 = vrcp.f32 %v2769_v9  ;;  %v2781_v40 = vand.u32 2147483647, %v2769_v9  ;;  %v2783_v31 = vand.u32 2147483648, %v2769_v9  ;;  %vm2777_vm8 = vweird.f32 %v2769_v9 }
 0x4f8   :  { %3772 = vrcp.f32 %v2770_v49  ;;  %v2798_v14 = vand.u32 2147483648, %v2770_v49  ;;  %vm2792_vm9 = vweird.f32 %v2770_v49 }
 0x4f9   :  { %vm2782_vm11 = vcmp.eq.f32.partialorder %v2781_v40, 8.507059e+37 }
 0x4fb   :  { %v3769_v37 = vpop.eup %3768 }
 0x4fc   :  { %v7719_v62 = vadd.f32 1.0, %v3769_v37  ;;  %v2796_v37 = vand.u32 2147483647, %v2770_v49 }
 0x4fd   :  { %v3771_v54 = vpop.eup %3770 }
 0x4fe   :  { %v3773_v42 = vpop.eup %3772  ;;  %v2773_v56 = vmul.f32 %v3771_v54, %v2769_v9  ;;  %3774 = vrcp.f32 %v7719_v62  ;;  %vm2778_vm6 = vweird.f32 %v3771_v54  ;;  %vm2797_vm13 = vcmp.eq.f32.partialorder %v2796_v37, 8.507059e+37 }
 0x4ff   :  { %v2788_v4 = vmul.f32 %v3773_v42, %v2770_v49  ;;  %3776 = vtanh.f32 %v2758_v5  ;;  %vm2793_vm7 = vweird.f32 %v3773_v42  ;;  %vm2779_vm10 = vmor %vm2777_vm8, %vm2778_vm6  ;;  %vm2807_vm15 = vweird.f32 %v7719_v62 }
 0x500   :  { %v2774_v11 = vsub.f32 1.0, %v2773_v56  ;;  %v2784_v56 = vor.u32 1.1754944e-38, %v2783_v31  ;;  %vm2794_vm12 = vmor %vm2792_vm9, %vm2793_vm7 }
 0x501   :  { %v2789_v48 = vsub.f32 1.0, %v2788_v4 }
 0x502   :  { %v2775_v12 = vmul.f32 %v3771_v54, %v2774_v11  ;;  %v2799_v11 = vor.u32 1.1754944e-38, %v2798_v14 }
 0x503   :  { %v2790_v24 = vmul.f32 %v3773_v42, %v2789_v48  ;;  %v2622_v46 = vpop.f32.mrf.mxu0  ;;  %v2642_v52 = vpop.f32.mrf.mxu1 }
 0x504   :  { %v3775_v30 = vpop.eup %3774  ;;  %v2776_v18 = vadd.f32 %v3771_v54, %v2775_v12  ;;  %v2685_v44 = vadd.f32 %v2622_v46, %v2462_v15  ;;  %v2686_v29 = vadd.f32 %v2642_v52, %v2482_v22 }
 0x505   :  { %v2791_v4 = vadd.f32 %v3773_v42, %v2790_v24  ;;  %v2803_v5 = vmul.f32 %v3775_v30, %v7719_v62  ;;  %v3777_v63 = vpop.eup %3776  ;;  %vm2808_vm14 = vweird.f32 %v3775_v30 }
 0x506   :  { %v2780_v48 = vsel %vm2779_vm10, %v3771_v54, %v2776_v18  ;;  %v2689_v9 = vadd.f32 %v2685_v44, %v5498_v39  ;;  %v2690_v34 = vadd.f32 %v2686_v29, %v5501_v32  ;;  %v2813_v54 = vand.u32 2147483648, %v7719_v62  ;;  %vm2809_vm0 = vmor %vm2807_vm15, %vm2808_vm14  ;;  %v7841_v39 = vld [vmem:[#allocation5 + $0x160] sm:$0xff] }
 0x507   :  { %v2785_v3 = vsel %vm2782_vm11, %v2784_v56, %v2780_v48  ;;  %v2795_v49 = vsel %vm2794_vm12, %v3773_v42, %v2791_v4  ;;  %v2804_v15 = vsub.f32 1.0, %v2803_v5 }
 0x508   :  { %v2800_v22 = vsel %vm2797_vm13, %v2799_v11, %v2795_v49  ;;  %v2819_v12 = vmul.f32 %v3777_v63, %v2785_v3  ;;  %v3561_v52 = vmul.f32 -1.442695, %v2689_v9  ;;  %v3562_v40 = vmul.f32 -1.442695, %v2690_v34  ;;  %v7748_v9 = vld [vmem:[#allocation5 + $0x1e0] sm:$0xff]  ;;  %v7751_v49 = vld [vmem:[#allocation5 + $0x1e8] sm:$0xff] }
 0x509   :  { %v2818_v24 = vmul.f32 %v2800_v22, %v7409_v2  ;;  %v2805_v31 = vmul.f32 %v3775_v30, %v2804_v15  ;;  %v2811_v3 = vand.u32 2147483647, %v7719_v62  ;;  %v2814_v18 = vor.u32 1.1754944e-38, %v2813_v54 }
 0x50a   :  { %3778 = vpow2.f32 %v3561_v52  ;;  %v2682_v46 = vpop.f32.mrf.mxu3  ;;  %v2662_v62 = vpop.f32.mrf.mxu2  ;;  %v7761_v52 = vld [vmem:[#allocation5 + $0x1f8] sm:$0xff] }
 0x50b   :  { %v7727_v14 = vadd.f32 %v2819_v12, %v2818_v24  ;;  %3780 = vpow2.f32 %v3562_v40  ;;  %v2806_v44 = vadd.f32 %v3775_v30, %v2805_v31  ;;  %v2688_v29 = vadd.f32 %v2682_v46, %v7707_v7  ;;  %v7758_v12 = vld [vmem:[#allocation5 + $0x1f0] sm:$0xff]  ;;  %v7768_v24 = vld [vmem:[#allocation5 + $0x1c0] sm:$0xff]  ;;  %v7771_v31 = vld [vmem:[#allocation5 + $0x1c8] sm:$0xff] }
 0x50c   :  { %vm2812_vm1 = vcmp.eq.f32.partialorder %v2811_v3, 8.507059e+37  ;;  %v2687_v48 = vadd.f32 %v2662_v62, %v7715_v21  ;;  %v7800_v62 = vld [vmem:[#allocation5 + $0x180] sm:$0xff] }
 0x50d   :  { %9633 = vst [vmem:[#allocation58_spill] sm:$0xff] %v7727_v14  ;;  %3782 = vtanh.f32 %v7727_v14  ;;  %v2692_v2 = vadd.f32 %v2688_v29, %v5509_v45  ;;  %v2810_v34 = vsel %vm2809_vm0, %v3775_v30, %v2806_v44  ;;  %v7777_v44 = vld [vmem:[#allocation5 + $0x1d0] sm:$0xff]  ;;  %v7780_v29 = vld [vmem:[#allocation5 + $0x1d8] sm:$0xff] }
 0x50e   :  { %v2815_v5 = vsel %vm2812_vm1, %v2814_v18, %v2810_v34  ;;  %v2691_v3 = vadd.f32 %v2687_v48, %v5527_v33  ;;  %v7813_v33 = vld [vmem:[#allocation5 + $0x198] sm:$0xff] }
 0x50f   :  { %v3563_v42 = vmul.f32 -1.442695, %v2692_v2  ;;  %v7784_v2 = vld [vmem:[#allocation5 + $0x1a0] sm:$0xff] }
 0x510   :  { %v3779_v63 = vpop.eup %3778 }
 0x511   :  { %v3781_v37 = vpop.eup %3780  ;;  %v7735_v56 = vadd.f32 1.0, %v3779_v63  ;;  %3784 = vpow2.f32 %v3563_v42  ;;  %v7787_v63 = vld [vmem:[#allocation5 + $0x1a8] sm:$0xff]  ;;  %v7790_v42 = vld [vmem:[#allocation5 + $0x1b0] sm:$0xff] }
 0x512   :  { %v7737_v7 = vadd.f32 1.0, %v3781_v37  ;;  %v7793_v37 = vld [vmem:[#allocation5 + $0x1b8] sm:$0xff] }
 0x513   :  { %v3783_v4 = vpop.eup %3782  ;;  %3786 = vrcp.f32 %v7735_v56  ;;  %vm2710_vm4 = vweird.f32 %v7735_v56 }
 0x514   :  { %v7740_v11 = vmul.f32 %v3783_v4, %v2815_v5  ;;  %3788 = vrcp.f32 %v7737_v7  ;;  %v2731_v18 = vand.u32 2147483648, %v7737_v7  ;;  %v2716_v5 = vand.u32 2147483648, %v7735_v56 }
 0x515   :  { %vm2725_vm5 = vweird.f32 %v7737_v7 }
 0x516   :  { %2839 = vmatmul.f32.vlgmr.msrb.gmra.mxu0 %v7740_v11  ;;  %2859 = vmatmul.f32.vlgmr.msra.gmra.mxu1 %v7740_v11 }
 0x517   :  { %2879 = vmatmul.f32.vlgmr.msra.gmra.mxu2 %v7740_v11  ;;  %2899 = vmatmul.f32.vlgmr.msra.gmra.mxu3 %v7740_v11  ;;  %v3785_v30 = vpop.eup %3784 }
 0x518   :  { %2983 = vmatpush.msrb.mxu0 %v7748_v9  ;;  %3003 = vmatpush.msra.mxu1 %v7751_v49  ;;  %v7756_v22 = vadd.f32 1.0, %v3785_v30  ;;  %v7803_v30 = vld [vmem:[#allocation5 + $0x188] sm:$0xff] }
 0x519   :  { %v7754_v15 = vpop.eup %3786  ;;  %3023 = vmatpush.msra.mxu2 %v7758_v12  ;;  %3043 = vmatpush.msra.mxu3 %v7761_v52 }
 0x51a   :  { %v7764_v21 = vpop.eup %3788  ;;  %v2706_v40 = vmul.f32 %v7754_v15, %v7735_v56  ;;  %2984 = vmatpush.msrb.mxu0 %v7768_v24  ;;  %3004 = vmatpush.msra.mxu1 %v7771_v31  ;;  %3790 = vrcp.f32 %v7756_v22  ;;  %vm2711_vm2 = vweird.f32 %v7754_v15  ;;  %vm2740_vm11 = vweird.f32 %v7756_v22 }
 0x51b   :  { %v2721_v46 = vmul.f32 %v7764_v21, %v7737_v7  ;;  %3024 = vmatpush.msra.mxu2 %v7777_v44  ;;  %3044 = vmatpush.msra.mxu3 %v7780_v29  ;;  %vm2726_vm3 = vweird.f32 %v7764_v21  ;;  %3792 = vtanh.f32 %v2691_v3  ;;  %vm7825_vm6 = vmor %vm2710_vm4, %vm2711_vm2  ;;  %v2732_v3 = vor.u32 1.1754944e-38, %v2731_v18  ;;  %v7850_v18 = vld [vmem:[#allocation5 + $0x170] sm:$0xff] }
 0x51c   :  { %v2707_v54 = vsub.f32 1.0, %v2706_v40  ;;  %2985 = vmatpush.msrb.mxu0 %v7784_v2  ;;  %3005 = vmatpush.msra.mxu1 %v7787_v63  ;;  %v2714_v40 = vand.u32 2147483647, %v7735_v56  ;;  %vm7834_vm7 = vmor %vm2725_vm5, %vm2726_vm3  ;;  %v7870_v56 = vld [vmem:[#allocation5 + $0x120] sm:$0xff] }
 0x51d   :  { %v2722_v34 = vsub.f32 1.0, %v2721_v46  ;;  %3025 = vmatpush.msra.mxu2 %v7790_v42  ;;  %3045 = vmatpush.msra.mxu3 %v7793_v37  ;;  %v2729_v46 = vand.u32 2147483647, %v7737_v7  ;;  %9642 = vst [vmem:[#allocation64_spill] sm:$0xff] %v7870_v56 }
 0x51e   :  { %v2708_v4 = vmul.f32 %v7754_v15, %v2707_v54  ;;  %2986 = vmatpush.msrb.mxu0 %v7800_v62  ;;  %3006 = vmatpush.msra.mxu1 %v7803_v30  ;;  %v7810_v54 = vld [vmem:[#allocation5 + $0x190] sm:$0xff]  ;;  %vm2715_vm8 = vcmp.eq.f32.partialorder %v2714_v40, 8.507059e+37  ;;  %v7861_v40 = vld [vmem:[#allocation5 + $0x148] sm:$0xff] }
 0x51f   :  { %v2723_v48 = vmul.f32 %v7764_v21, %v2722_v34  ;;  %3026 = vmatpush.msra.mxu2 %v7810_v54  ;;  %3046 = vmatpush.msra.mxu3 %v7813_v33  ;;  %vm2730_vm9 = vcmp.eq.f32.partialorder %v2729_v46, 8.507059e+37  ;;  %9639 = vst [vmem:[#allocation61_spill] sm:$0xff] %v7861_v40 }
 0x520   :  { %v2709_v45 = vadd.f32 %v7754_v15, %v2708_v4  ;;  %2919 = vmatmul.f32.vlgmr.msra.gmra.mxu0 %v7740_v11  ;;  %2939 = vmatmul.f32.vlgmr.msrb.gmra.mxu1 %v7740_v11  ;;  %v7820_v34 = vpop.eup %3790  ;;  %v2717_v4 = vor.u32 1.1754944e-38, %v2716_v5 }
 0x521   :  { %v2724_v32 = vadd.f32 %v7764_v21, %v2723_v48  ;;  %2959 = vmatmul.f32.vlgmr.msrb.gmra.mxu2 %v7740_v11  ;;  %2979 = vmatmul.f32.vlgmr.msrb.gmra.mxu3 %v7740_v11  ;;  %v7844_v48 = vld [vmem:[#allocation5 + $0x168] sm:$0xff]  ;;  %v2736_v5 = vmul.f32 %v7820_v34, %v7756_v22  ;;  %v3793_v46 = vpop.eup %3792  ;;  %vm2741_vm10 = vweird.f32 %v7820_v34 }
 0x522   :  { %v2713_v7 = vsel %vm7825_vm6, %v7754_v15, %v2709_v45  ;;  %2987 = vmatpush.msrb.mxu0 %v7841_v39  ;;  %9638 = vst [vmem:[#allocation60_spill] sm:$0xff] %v7844_v48  ;;  %3007 = vmatpush.msra.mxu1 %v7844_v48  ;;  %v7853_v45 = vld [vmem:[#allocation5 + $0x178] sm:$0xff]  ;;  %v7858_v48 = vld [vmem:[#allocation5 + $0x140] sm:$0xff]  ;;  %vm7966_vm12 = vmor %vm2740_vm11, %vm2741_vm10 }
 0x523   :  { %v2728_v11 = vsel %vm7834_vm7, %v7764_v21, %v2724_v32  ;;  %3027 = vmatpush.msra.mxu2 %v7850_v18  ;;  %3047 = vmatpush.msra.mxu3 %v7853_v45  ;;  %v2718_v14 = vsel %vm2715_vm8, %v2717_v4, %v2713_v7  ;;  %v7864_v32 = vld [vmem:[#allocation5 + $0x150] sm:$0xff]  ;;  %v7867_v21 = vld [vmem:[#allocation5 + $0x158] sm:$0xff] }
 0x524   :  { %v2733_v15 = vsel %vm2730_vm9, %v2732_v3, %v2728_v11  ;;  %2988 = vmatpush.msrb.mxu0 %v7858_v48  ;;  %3008 = vmatpush.msra.mxu1 %v7861_v40  ;;  %9640 = vst [vmem:[#allocation62_spill] sm:$0xff] %v7864_v32  ;;  %v7873_v3 = vld [vmem:[#allocation5 + $0x128] sm:$0xff]  ;;  %v2752_v4 = vmul.f32 %v3793_v46, %v2718_v14  ;;  %v7877_v11 = vld [vmem:[#allocation5 + $0x130] sm:$0xff]  ;;  %v7883_v40 = vld [vmem:[#allocation5 + $0x100] sm:$0xff] }
 0x525   :  { %3028 = vmatpush.msra.mxu2 %v7864_v32  ;;  %9641 = vst [vmem:[#allocation63_spill] sm:$0xff] %v7867_v21  ;;  %3048 = vmatpush.msra.mxu3 %v7867_v21  ;;  %v2751_v7 = vmul.f32 %v2733_v15, %v7483_v38  ;;  %v7880_v32 = vld [vmem:[#allocation5 + $0x138] sm:$0xff]  ;;  %v2737_v21 = vsub.f32 1.0, %v2736_v5  ;;  %v7895_v14 = vld [vmem:[#allocation5 + $0xe0] sm:$0xff]  ;;  %v7898_v15 = vld [vmem:[#allocation5 + $0xe8] sm:$0xff] }
 0x526   :  { %2989 = vmatpush.msrb.mxu0 %v7870_v56  ;;  %9643 = vst [vmem:[#allocation65_spill] sm:$0xff] %v7873_v3  ;;  %3009 = vmatpush.msra.mxu1 %v7873_v3  ;;  %v7886_v56 = vld [vmem:[#allocation5 + $0x108] sm:$0xff]  ;;  %v7889_v3 = vld [vmem:[#allocation5 + $0x110] sm:$0xff]  ;;  %v7892_v38 = vld [vmem:[#allocation5 + $0x118] sm:$0xff] }
 0x527   :  { %3029 = vmatpush.msra.mxu2 %v7877_v11  ;;  %3049 = vmatpush.msra.mxu3 %v7880_v32  ;;  %9644 = vst [vmem:[#allocation66_spill] sm:$0xff] %v7883_v40  ;;  %v7901_v5 = vadd.f32 %v2752_v4, %v2751_v7  ;;  %v7903_v46 = vld [vmem:[#allocation5 + $0xf0] sm:$0xff]  ;;  %v7919_v4 = vld [vmem:[#allocation5 + $0xd8] sm:$0xff] }
 0x528   :  { %2990 = vmatpush.msrb.mxu0 %v7883_v40  ;;  %9645 = vst [vmem:[#allocation68_spill] sm:$0xff] %v7886_v56  ;;  %3010 = vmatpush.msra.mxu1 %v7886_v56  ;;  %v7906_v56 = vld [vmem:[#allocation5 + $0xf8] sm:$0xff]  ;;  %v7916_v7 = vld [vmem:[#allocation5 + $0xd0] sm:$0xff]  ;;  %v7985_v40 = vld [vmem:[#allocation5 + $0x20] sm:$0xff] }
 0x529   :  { %9646 = vst [vmem:[#allocation69_spill] sm:$0xff] %v7889_v3  ;;  %3030 = vmatpush.msra.mxu2 %v7889_v3  ;;  %3050 = vmatpush.msra.mxu3 %v7892_v38  ;;  %v7910_v3 = vld [vmem:[#allocation5 + $0xc0] sm:$0xff]  ;;  %3794 = vtanh.f32 %v7901_v5 }
 0x52a   :  { %9647 = vst [vmem:[#allocation70_spill] sm:$0xff] %v7892_v38  ;;  %2991 = vmatpush.msrb.mxu0 %v7895_v14  ;;  %3011 = vmatpush.msra.mxu1 %v7898_v15  ;;  %v2738_v38 = vmul.f32 %v7820_v34, %v2737_v21  ;;  %v7925_v21 = vld [vmem:[#allocation5 + $0xa8] sm:$0xff] }
 0x52b   :  { %9648 = vst [vmem:[#allocation71_spill] sm:$0xff] %v7895_v14  ;;  %3031 = vmatpush.msra.mxu2 %v7903_v46  ;;  %3051 = vmatpush.msra.mxu3 %v7906_v56  ;;  %v7913_v14 = vld [vmem:[#allocation5 + $0xc8] sm:$0xff] }
 0x52c   :  { %9649 = vst [vmem:[#allocation72_spill] sm:$0xff] %v7898_v15  ;;  %2992 = vmatpush.msrb.mxu0 %v7910_v3  ;;  %3012 = vmatpush.msra.mxu1 %v7913_v14 }
 0x52d   :  { %9650 = vst [vmem:[#allocation74_spill] sm:$0xff] %v7901_v5  ;;  %3032 = vmatpush.msra.mxu2 %v7916_v7  ;;  %3052 = vmatpush.msra.mxu3 %v7919_v4  ;;  %v2746_v5 = vand.u32 2147483648, %v7756_v22 }
 0x52e   :  { %9651 = vst [vmem:[#allocation75_spill] sm:$0xff] %v7903_v46  ;;  %v7922_v46 = vld [vmem:[#allocation5 + $0xa0] sm:$0xff]  ;;  %3013 = vmatpush.msra.mxu1 %v7925_v21 }
 0x52f   :  { %9652 = vst [vmem:[#allocation76_spill] sm:$0xff] %v7906_v56  ;;  %2993 = vmatpush.msrb.mxu0 %v7922_v46  ;;  %v7982_v56 = vld [vmem:[#allocation5 + $0x58] sm:$0xff]  ;;  %v2747_v15 = vor.u32 1.1754944e-38, %v2746_v5  ;;  %v8000_v5 = vld [vmem:[#allocation5 + $0x8] sm:$0xff] }
 0x530   :  { %9653 = vst [vmem:[#allocation77_spill] sm:$0xff] %v7910_v3  ;;  %v7929_v3 = vld [vmem:[#allocation5 + $0xb0] sm:$0xff] }
 0x531   :  { %9654 = vst [vmem:[#allocation78_spill] sm:$0xff] %v7913_v14  ;;  %3033 = vmatpush.msra.mxu2 %v7929_v3  ;;  %v7932_v14 = vld [vmem:[#allocation5 + $0xb8] sm:$0xff] }
 0x532   :  { %9655 = vst [vmem:[#allocation79_spill] sm:$0xff] %v7916_v7  ;;  %3053 = vmatpush.msra.mxu3 %v7932_v14  ;;  %v7935_v7 = vld [vmem:[#allocation5 + $0x80] sm:$0xff] }
 0x533   :  { %9656 = vst [vmem:[#allocation80_spill] sm:$0xff] %v7919_v4  ;;  %2994 = vmatpush.msrb.mxu0 %v7935_v7  ;;  %v7938_v4 = vld [vmem:[#allocation5 + $0x88] sm:$0xff] }
 0x534   :  { %9657 = vst [vmem:[#allocation81_spill] sm:$0xff] %v7922_v46  ;;  %3014 = vmatpush.msra.mxu1 %v7938_v4  ;;  %v7944_v46 = vld [vmem:[#allocation5 + $0x90] sm:$0xff] }
 0x535   :  { %9658 = vst [vmem:[#allocation82_spill] sm:$0xff] %v7925_v21  ;;  %v2739_v21 = vadd.f32 %v7820_v34, %v2738_v38  ;;  %3034 = vmatpush.msra.mxu2 %v7944_v46  ;;  %v2744_v38 = vand.u32 2147483647, %v7756_v22 }
 0x536   :  { %9659 = vst [vmem:[#allocation83_spill] sm:$0xff] %v7929_v3  ;;  %v7947_v3 = vld [vmem:[#allocation5 + $0x98] sm:$0xff] }
 0x537   :  { %9660 = vst [vmem:[#allocation84_spill] sm:$0xff] %v7932_v14  ;;  %3054 = vmatpush.msra.mxu3 %v7947_v3  ;;  %v7958_v14 = vld [vmem:[#allocation5 + $0x70] sm:$0xff]  ;;  %v2743_v22 = vsel %vm7966_vm12, %v7820_v34, %v2739_v21  ;;  %vm2745_vm13 = vcmp.eq.f32.partialorder %v2744_v38, 8.507059e+37  ;;  %v8006_v38 = vld [vmem:[#allocation5 + $0x18] sm:$0xff] }
 0x538   :  { %9661 = vst [vmem:[#allocation85_spill] sm:$0xff] %v7935_v7  ;;  %v7951_v7 = vld [vmem:[#allocation5 + $0x60] sm:$0xff]  ;;  %3035 = vmatpush.msra.mxu2 %v7958_v14  ;;  %v7991_v34 = vld [vmem:[#allocation5 + $0x30] sm:$0xff]  ;;  %v2748_v21 = vsel %vm2745_vm13, %v2747_v15, %v2743_v22  ;;  %v4421_v22 = vld [vmem:[#allocation2 + $0x3c8] sm:$0xff] }
 0x539   :  { %9662 = vst [vmem:[#allocation86_spill] sm:$0xff] %v7938_v4  ;;  %2995 = vmatpush.msrb.mxu0 %v7951_v7  ;;  %v7954_v4 = vld [vmem:[#allocation5 + $0x68] sm:$0xff]  ;;  %v4420_v15 = vld [vmem:[#allocation2 + $0x3c0] sm:$0xff] }
 0x53a   :  { %9663 = vst [vmem:[#allocation87_spill] sm:$0xff] %v7944_v46  ;;  %3015 = vmatpush.msra.mxu1 %v7954_v4  ;;  %v7961_v46 = vld [vmem:[#allocation5 + $0x78] sm:$0xff] }
 0x53b   :  { %9664 = vst [vmem:[#allocation89_spill] sm:$0xff] %v7947_v3  ;;  %3055 = vmatpush.msra.mxu3 %v7961_v46  ;;  %v7994_v3 = vld [vmem:[#allocation5 + $0x38] sm:$0xff] }
 0x53c   :  { %9665 = vst [vmem:[#allocation90_spill] sm:$0xff] %v7951_v7  ;;  %v7970_v7 = vld [vmem:[#allocation5 + $0x40] sm:$0xff] }
 0x53d   :  { %9666 = vst [vmem:[#allocation91_spill] sm:$0xff] %v7954_v4  ;;  %2996 = vmatpush.msrb.mxu0 %v7970_v7  ;;  %v7973_v4 = vld [vmem:[#allocation5 + $0x48] sm:$0xff]  ;;  %3056 = vmatpush.msra.mxu3 %v7982_v56 }
 0x53e   :  { %9667 = vst [vmem:[#allocation92_spill] sm:$0xff] %v7958_v14  ;;  %3016 = vmatpush.msra.mxu1 %v7973_v4  ;;  %v3795_v14 = vpop.eup %3794 }
 0x53f   :  { %9668 = vst [vmem:[#allocation93_spill] sm:$0xff] %v7961_v46  ;;  %v7979_v46 = vld [vmem:[#allocation5 + $0x50] sm:$0xff]  ;;  %2997 = vmatpush.msrb.mxu0 %v7985_v40  ;;  %3057 = vmatpush.msra.mxu3 %v7994_v3 }
 0x540   :  { %9671 = vst [vmem:[#allocation94_spill] sm:$0xff] %v7970_v7  ;;  %3036 = vmatpush.msra.mxu2 %v7979_v46  ;;  %v7988_v7 = vld [vmem:[#allocation5 + $0x28] sm:$0xff] }
 0x541   :  { %9672 = vst [vmem:[#allocation95_spill] sm:$0xff] %v7982_v56  ;;  %3017 = vmatpush.msra.mxu1 %v7988_v7  ;;  %v7997_v56 = vld [vmem:[#allocation5] sm:$0xff]  ;;  %3058 = vmatpush.msra.mxu3 %v8006_v38 }
 0x542   :  { %9673 = vst [vmem:[#allocation96_spill] sm:$0xff] %v7985_v40  ;;  %3037 = vmatpush.msra.mxu2 %v7991_v34  ;;  %2998 = vmatpush.msrb.mxu0 %v7997_v56  ;;  %v2755_v40 = vmul.f32 %v3795_v14, %v2748_v21  ;;  %v4423_v14 = vld [vmem:[#allocation2 + $0x380] sm:$0xff]  ;;  %v9706_v21 = vld [vmem:[#allocation57_spill] sm:$0xff] }
 0x543   :  { %9674 = vst [vmem:[#allocation97_spill] sm:$0xff] %v7988_v7  ;;  %3018 = vmatpush.msra.mxu1 %v8000_v5  ;;  %v8003_v7 = vld [vmem:[#allocation5 + $0x10] sm:$0xff] }
 0x544   :  { %9675 = vst [vmem:[#allocation98_spill] sm:$0xff] %v8000_v5  ;;  %3038 = vmatpush.msra.mxu2 %v8003_v7  ;;  %2999 = vmatmul.f32.vlgmr.msrb.gmra.mxu0 %v2755_v40  ;;  %v4422_v5 = vld [vmem:[#allocation2 + $0x3d8] sm:$0xff] }
 0x545   :  { %3019 = vmatmul.f32.vlgmr.msra.gmra.mxu1 %v2755_v40  ;;  %3039 = vmatmul.f32.vlgmr.msra.gmra.mxu2 %v2755_v40 }
 0x546   :  { %3059 = vmatmul.f32.vlgmr.msra.gmra.mxu3 %v2755_v40  ;;  %3201 = vmatpush.msra.mxu0 %v4420_v15  ;;  %v9705_v40 = vld [vmem:[#allocation55_spill] sm:$0xff]  ;;  %v9730_v15 = vld [vmem:[#allocation86_spill] sm:$0xff] }
 0x547   :  { %3221 = vmatpush.msrb.mxu1 %v4421_v22  ;;  %3241 = vmatpush.msrb.mxu2 %v7525_v50  ;;  %v9676_v50 = vld [vmem:[#allocation170_spill] sm:$0xff]  ;;  %v9731_v22 = vld [vmem:[#allocation87_spill] sm:$0xff] }
 0x548   :  { %3261 = vmatpush.msrb.mxu3 %v4422_v5  ;;  %3202 = vmatpush.msra.mxu0 %v4423_v14  ;;  %v9729_v5 = vld [vmem:[#allocation85_spill] sm:$0xff] }
 0x549   :  { %3222 = vmatpush.msrb.mxu1 %v7530_v8  ;;  %3242 = vmatpush.msrb.mxu2 %v7533_v27  ;;  %v9677_v8 = vld [vmem:[#allocation171_spill] sm:$0xff]  ;;  %v9678_v27 = vld [vmem:[#allocation172_spill] sm:$0xff]  ;;  %v9732_v14 = vld [vmem:[#allocation89_spill] sm:$0xff] }
 0x54a   :  { %3262 = vmatpush.msrb.mxu3 %v7536_v13  ;;  %3203 = vmatpush.msra.mxu0 %v7539_v16  ;;  %v9679_v13 = vld [vmem:[#allocation173_spill] sm:$0xff] }
 0x54b   :  { %3223 = vmatpush.msrb.mxu1 %v7542_v59  ;;  %3243 = vmatpush.msrb.mxu2 %v7545_v58  ;;  %v9680_v16 = vld [vmem:[#allocation13_spill] sm:$0xff]  ;;  %v9681_v59 = vld [vmem:[#allocation23_spill] sm:$0xff] }
 0x54c   :  { %3263 = vmatpush.msrb.mxu3 %v7548_v19  ;;  %3204 = vmatpush.msra.mxu0 %v7551_v57  ;;  %v9682_v58 = vld [vmem:[#allocation15_spill] sm:$0xff]  ;;  %v9683_v19 = vld [vmem:[#allocation17_spill] sm:$0xff]  ;;  %v9684_v57 = vld [vmem:[#allocation32_spill] sm:$0xff] }
 0x54d   :  { %3224 = vmatpush.msrb.mxu1 %v7554_v41  ;;  %3244 = vmatpush.msrb.mxu2 %v7557_v20  ;;  %v9685_v41 = vld [vmem:[#allocation33_spill] sm:$0xff]  ;;  %v9686_v20 = vld [vmem:[#allocation34_spill] sm:$0xff] }
 0x54e   :  { %3264 = vmatpush.msrb.mxu3 %v7560_v36  ;;  %3205 = vmatpush.msra.mxu0 %v7563_v28  ;;  %v9687_v36 = vld [vmem:[#allocation35_spill] sm:$0xff]  ;;  %v9688_v28 = vld [vmem:[#allocation36_spill] sm:$0xff] }
 0x54f   :  { %3225 = vmatpush.msrb.mxu1 %v7566_v26  ;;  %3245 = vmatpush.msrb.mxu2 %v7569_v43  ;;  %v9689_v26 = vld [vmem:[#allocation37_spill] sm:$0xff]  ;;  %v9690_v43 = vld [vmem:[#allocation38_spill] sm:$0xff] }
 0x550   :  { %3265 = vmatpush.msrb.mxu3 %v7572_v60  ;;  %3206 = vmatpush.msra.mxu0 %v7575_v55  ;;  %v9691_v60 = vld [vmem:[#allocation39_spill] sm:$0xff]  ;;  %v9692_v55 = vld [vmem:[#allocation41_spill] sm:$0xff] }
 0x551   :  { %3226 = vmatpush.msrb.mxu1 %v7578_v0  ;;  %3246 = vmatpush.msrb.mxu2 %v7581_v1  ;;  %v9693_v0 = vld [vmem:[#allocation42_spill] sm:$0xff]  ;;  %v9694_v1 = vld [vmem:[#allocation43_spill] sm:$0xff] }
 0x552   :  { %3266 = vmatpush.msrb.mxu3 %v7584_v53  ;;  %3207 = vmatpush.msra.mxu0 %v7587_v25  ;;  %v9695_v53 = vld [vmem:[#allocation44_spill] sm:$0xff]  ;;  %v9696_v25 = vld [vmem:[#allocation45_spill] sm:$0xff] }
 0x553   :  { %3227 = vmatpush.msrb.mxu1 %v7590_v51  ;;  %3247 = vmatpush.msrb.mxu2 %v7593_v10  ;;  %v9697_v51 = vld [vmem:[#allocation46_spill] sm:$0xff]  ;;  %v9698_v10 = vld [vmem:[#allocation47_spill] sm:$0xff] }
 0x554   :  { %3267 = vmatpush.msrb.mxu3 %v7596_v47  ;;  %3208 = vmatpush.msra.mxu0 %v7599_v23  ;;  %v9699_v47 = vld [vmem:[#allocation49_spill] sm:$0xff]  ;;  %v9700_v23 = vld [vmem:[#allocation50_spill] sm:$0xff] }
 0x555   :  { %3228 = vmatpush.msrb.mxu1 %v7602_v35  ;;  %3248 = vmatpush.msrb.mxu2 %v7605_v61  ;;  %v9701_v35 = vld [vmem:[#allocation51_spill] sm:$0xff]  ;;  %v9702_v61 = vld [vmem:[#allocation52_spill] sm:$0xff] }
 0x556   :  { %3268 = vmatpush.msrb.mxu3 %v7608_v6  ;;  %3209 = vmatpush.msra.mxu0 %v7611_v17  ;;  %v9703_v6 = vld [vmem:[#allocation53_spill] sm:$0xff]  ;;  %v9704_v17 = vld [vmem:[#allocation54_spill] sm:$0xff] }
 0x557   :  { %3229 = vmatpush.msrb.mxu1 %v9676_v50  ;;  %3249 = vmatpush.msrb.mxu2 %v9677_v8  ;;  %v9733_v50 = vld [vmem:[#allocation90_spill] sm:$0xff]  ;;  %v9734_v8 = vld [vmem:[#allocation91_spill] sm:$0xff] }
 0x558   :  { %3269 = vmatpush.msrb.mxu3 %v9678_v27  ;;  %3210 = vmatpush.msra.mxu0 %v9679_v13  ;;  %v9735_v27 = vld [vmem:[#allocation92_spill] sm:$0xff]  ;;  %v9736_v13 = vld [vmem:[#allocation93_spill] sm:$0xff] }
 0x559   :  { %3230 = vmatpush.msrb.mxu1 %v9680_v16  ;;  %3250 = vmatpush.msrb.mxu2 %v9681_v59  ;;  %v9737_v16 = vld [vmem:[#allocation94_spill] sm:$0xff]  ;;  %v9738_v59 = vld [vmem:[#allocation95_spill] sm:$0xff] }
 0x55a   :  { %3270 = vmatpush.msrb.mxu3 %v9682_v58  ;;  %3211 = vmatpush.msra.mxu0 %v9683_v19  ;;  %v9739_v58 = vld [vmem:[#allocation96_spill] sm:$0xff]  ;;  %v9740_v19 = vld [vmem:[#allocation97_spill] sm:$0xff] }
 0x55b   :  { %3231 = vmatpush.msrb.mxu1 %v9684_v57  ;;  %3251 = vmatpush.msrb.mxu2 %v9685_v41  ;;  %v9741_v57 = vld [vmem:[#allocation98_spill] sm:$0xff] }
 0x55c   :  { %3271 = vmatpush.msrb.mxu3 %v9686_v20  ;;  %3212 = vmatpush.msra.mxu0 %v9687_v36  ;;  %v9742_v20 = vld [vmem:[#allocation40_spill] sm:$0xff]  ;;  %v9743_v36 = vld [vmem:[#allocation59_spill] sm:$0xff] }
 0x55d   :  { %3232 = vmatpush.msrb.mxu1 %v9688_v28  ;;  %3252 = vmatpush.msrb.mxu2 %v9689_v26  ;;  %v161_v28 = vadd.f32 %v9743_v36, %v9742_v20  ;;  %v9744_v26 = vld [vmem:[#allocation56_spill] sm:$0xff] }
 0x55e   :  { %3272 = vmatpush.msrb.mxu3 %v9690_v43  ;;  %3213 = vmatpush.msra.mxu0 %v9691_v60  ;;  %v9745_v43 = vld [vmem:[#allocation24_spill] sm:$0xff] }
 0x55f   :  { %3233 = vmatpush.msrb.mxu1 %v9692_v55  ;;  %3253 = vmatpush.msrb.mxu2 %v9693_v0 }
 0x560   :  { %3273 = vmatpush.msrb.mxu3 %v9694_v1  ;;  %3214 = vmatpush.msra.mxu0 %v9695_v53  ;;  %v9747_v53 = vld [vmem:[#allocation26_spill] sm:$0xff] }
 0x561   :  { %3234 = vmatpush.msrb.mxu1 %v9696_v25  ;;  %3254 = vmatpush.msrb.mxu2 %v9697_v51 }
 0x562   :  { %3274 = vmatpush.msrb.mxu3 %v9698_v10  ;;  %3215 = vmatpush.msra.mxu0 %v9699_v47 }
 0x563   :  { %3235 = vmatpush.msrb.mxu1 %v9700_v23  ;;  %3255 = vmatpush.msrb.mxu2 %v9701_v35 }
 0x564   :  { %3275 = vmatpush.msrb.mxu3 %v9702_v61  ;;  %3216 = vmatpush.msra.mxu0 %v9703_v6 }
 0x565   :  { %3236 = vmatpush.msrb.mxu1 %v9704_v17  ;;  %3256 = vmatpush.msrb.mxu2 %v9705_v40 }
 0x566   :  { %3276 = vmatpush.msrb.mxu3 %v9706_v21  ;;  %3281 = vmatpush.msrb.mxu0 %v7748_v9  ;;  %v9707_v9 = vld [vmem:[#allocation60_spill] sm:$0xff] }
 0x567   :  { %3301 = vmatpush.msra.mxu1 %v7751_v49  ;;  %3321 = vmatpush.msra.mxu2 %v7758_v12  ;;  %v9708_v49 = vld [vmem:[#allocation61_spill] sm:$0xff]  ;;  %v9709_v12 = vld [vmem:[#allocation62_spill] sm:$0xff]  ;;  %v9748_v21 = vld [vmem:[#allocation88_spill] sm:$0xff] }
 0x568   :  { %3341 = vmatpush.msra.mxu3 %v7761_v52  ;;  %3282 = vmatpush.msrb.mxu0 %v7768_v24  ;;  %v9710_v52 = vld [vmem:[#allocation63_spill] sm:$0xff]  ;;  %v9711_v24 = vld [vmem:[#allocation64_spill] sm:$0xff] }
 0x569   :  { %3302 = vmatpush.msra.mxu1 %v7771_v31  ;;  %3322 = vmatpush.msra.mxu2 %v7777_v44  ;;  %v9712_v31 = vld [vmem:[#allocation65_spill] sm:$0xff] }
 0x56a   :  { %3342 = vmatpush.msra.mxu3 %v7780_v29  ;;  %3283 = vmatpush.msrb.mxu0 %v7784_v2  ;;  %v9715_v44 = vld [vmem:[#allocation69_spill] sm:$0xff]  ;;  %v9716_v29 = vld [vmem:[#allocation70_spill] sm:$0xff]  ;;  %v9717_v2 = vld [vmem:[#allocation71_spill] sm:$0xff] }
 0x56b   :  { %3303 = vmatpush.msra.mxu1 %v7787_v63  ;;  %3323 = vmatpush.msra.mxu2 %v7790_v42  ;;  %v9718_v63 = vld [vmem:[#allocation72_spill] sm:$0xff]  ;;  %v9719_v42 = vld [vmem:[#allocation75_spill] sm:$0xff] }
 0x56c   :  { %3343 = vmatpush.msra.mxu3 %v7793_v37  ;;  %3284 = vmatpush.msrb.mxu0 %v7800_v62  ;;  %v9720_v37 = vld [vmem:[#allocation76_spill] sm:$0xff]  ;;  %v9721_v62 = vld [vmem:[#allocation77_spill] sm:$0xff] }
 0x56d   :  { %3304 = vmatpush.msra.mxu1 %v7803_v30  ;;  %3324 = vmatpush.msra.mxu2 %v7810_v54  ;;  %v9722_v30 = vld [vmem:[#allocation78_spill] sm:$0xff]  ;;  %v9723_v54 = vld [vmem:[#allocation79_spill] sm:$0xff] }
 0x56e   :  { %3344 = vmatpush.msra.mxu3 %v7813_v33  ;;  %3285 = vmatpush.msrb.mxu0 %v7841_v39  ;;  %v9713_v39 = vld [vmem:[#allocation66_spill] sm:$0xff]  ;;  %v9714_v33 = vld [vmem:[#allocation68_spill] sm:$0xff] }
 0x56f   :  { %3305 = vmatpush.msra.mxu1 %v9707_v9  ;;  %3325 = vmatpush.msra.mxu2 %v7850_v18  ;;  %v9725_v18 = vld [vmem:[#allocation81_spill] sm:$0xff]  ;;  %v9749_v9 = vld [vmem:[#allocation27_spill] sm:$0xff] }
 0x570   :  { %3345 = vmatpush.msra.mxu3 %v7853_v45  ;;  %3286 = vmatpush.msrb.mxu0 %v7858_v48  ;;  %v9724_v48 = vld [vmem:[#allocation80_spill] sm:$0xff]  ;;  %v9726_v45 = vld [vmem:[#allocation82_spill] sm:$0xff] }
 0x571   :  { %3306 = vmatpush.msra.mxu1 %v9708_v49  ;;  %3326 = vmatpush.msra.mxu2 %v9709_v12  ;;  %v243_v49 = vadd.f32 %v9749_v9, %v9748_v21 }
 0x572   :  { %3346 = vmatpush.msra.mxu3 %v9710_v52  ;;  %3287 = vmatpush.msrb.mxu0 %v9711_v24 }
 0x573   :  { %3307 = vmatpush.msra.mxu1 %v9712_v31  ;;  %3327 = vmatpush.msra.mxu2 %v7877_v11  ;;  %v9728_v11 = vld [vmem:[#allocation84_spill] sm:$0xff] }
 0x574   :  { %3347 = vmatpush.msra.mxu3 %v7880_v32  ;;  %3288 = vmatpush.msrb.mxu0 %v9713_v39  ;;  %v9727_v32 = vld [vmem:[#allocation83_spill] sm:$0xff] }
 0x575   :  { %3308 = vmatpush.msra.mxu1 %v9714_v33  ;;  %3328 = vmatpush.msra.mxu2 %v9715_v44 }
 0x576   :  { %3348 = vmatpush.msra.mxu3 %v9716_v29  ;;  %3289 = vmatpush.msrb.mxu0 %v9717_v2 }
 0x577   :  { %3309 = vmatpush.msra.mxu1 %v9718_v63  ;;  %3329 = vmatpush.msra.mxu2 %v9719_v42 }
 0x578   :  { %3349 = vmatpush.msra.mxu3 %v9720_v37  ;;  %3290 = vmatpush.msrb.mxu0 %v9721_v62 }
 0x579   :  { %3310 = vmatpush.msra.mxu1 %v9722_v30  ;;  %3330 = vmatpush.msra.mxu2 %v9723_v54 }
 0x57a   :  { %3350 = vmatpush.msra.mxu3 %v9724_v48  ;;  %3291 = vmatpush.msrb.mxu0 %v9725_v18 }
 0x57b   :  { %3311 = vmatpush.msra.mxu1 %v9726_v45  ;;  %3331 = vmatpush.msra.mxu2 %v9727_v32 }
 0x57c   :  { %3351 = vmatpush.msra.mxu3 %v9728_v11  ;;  %3292 = vmatpush.msrb.mxu0 %v9729_v5 }
 0x57d   :  { %3312 = vmatpush.msra.mxu1 %v9730_v15  ;;  %3332 = vmatpush.msra.mxu2 %v9731_v22 }
 0x57e   :  { %3352 = vmatpush.msra.mxu3 %v9732_v14  ;;  %3293 = vmatpush.msrb.mxu0 %v9733_v50 }
 0x57f   :  { %3313 = vmatpush.msra.mxu1 %v9734_v8  ;;  %3333 = vmatpush.msra.mxu2 %v9735_v27  ;;  %v9750_v8 = vld [vmem:[#allocation28_spill] sm:$0xff] }
 0x580   :  { %3353 = vmatpush.msra.mxu3 %v9736_v13  ;;  %3294 = vmatpush.msrb.mxu0 %v9737_v16  ;;  %v9751_v13 = vld [vmem:[#allocation29_spill] sm:$0xff] }
 0x581   :  { %3314 = vmatpush.msra.mxu1 %v7973_v4  ;;  %3334 = vmatpush.msra.mxu2 %v7979_v46 }
 0x582   :  { %3354 = vmatpush.msra.mxu3 %v9738_v59  ;;  %3295 = vmatpush.msrb.mxu0 %v9739_v58 }
 0x583   :  { %3315 = vmatpush.msra.mxu1 %v9740_v19  ;;  %3335 = vmatpush.msra.mxu2 %v7991_v34  ;;  %v202_v34 = vadd.f32 %v9745_v43, %v9744_v26 }
 0x584   :  { %3355 = vmatpush.msra.mxu3 %v7994_v3  ;;  %3296 = vmatpush.msrb.mxu0 %v7997_v56 }
 0x585   :  { %3316 = vmatpush.msra.mxu1 %v9741_v57  ;;  %3336 = vmatpush.msra.mxu2 %v8003_v7  ;;  %v9746_v7 = vld [vmem:[#allocation67_spill] sm:$0xff] }
 0x586   :  { %3356 = vmatpush.msra.mxu3 %v8006_v38  ;;  %v284_v38 = vadd.f32 %v9747_v53, %v9746_v7 }
 0x593   :  { %v2840_v4 = vpop.f32.mrf.mxu0  ;;  %v2860_v46 = vpop.f32.mrf.mxu1 }
 0x59a   :  { %v8133_v41 = vpop.f32.mrf.mxu3  ;;  %v8141_v25 = vpop.f32.mrf.mxu2 }
 0x59d   :  { %v2920_v60 = vpop.f32.mrf.mxu0  ;;  %v2940_v3 = vpop.f32.mrf.mxu1 }
 0x59e   :  { %v3134_v55 = vadd.f32 %v2920_v60, %v161_v28  ;;  %v3135_v56 = vadd.f32 %v2940_v3, %v202_v34  ;;  %v9752_v28 = vld [vmem:[#allocation58_spill] sm:$0xff] }
 0x5a0   :  { %v3570_v0 = vmul.f32 -1.442695, %v3134_v55  ;;  %v3571_v1 = vmul.f32 -1.442695, %v3135_v56  ;;  %v9753_v55 = vld [vmem:[#allocation30_spill] sm:$0xff] }
 0x5a2   :  { %3796 = vpow2.f32 %v3570_v0 }
 0x5a3   :  { %3798 = vpow2.f32 %v3571_v1 }
 0x5a4   :  { %v2980_v51 = vpop.f32.mrf.mxu3  ;;  %v2960_v17 = vpop.f32.mrf.mxu2 }
 0x5a5   :  { %v3137_v10 = vadd.f32 %v2980_v51, %v284_v38  ;;  %v3136_v24 = vadd.f32 %v2960_v17, %v243_v49 }
 0x5a7   :  { %v3572_v47 = vmul.f32 -1.442695, %v3137_v10 }
 0x5a8   :  { %v3797_v23 = vpop.eup %3796 }
 0x5a9   :  { %v3799_v35 = vpop.eup %3798  ;;  %v3147_v61 = vadd.f32 1.0, %v3797_v23  ;;  %3800 = vpow2.f32 %v3572_v47 }
 0x5aa   :  { %v3148_v6 = vadd.f32 1.0, %v3799_v35 }
 0x5ab   :  { %3802 = vrcp.f32 %v3147_v61  ;;  %v3159_v2 = vand.u32 2147483647, %v3147_v61  ;;  %v3161_v63 = vand.u32 2147483648, %v3147_v61  ;;  %vm3155_vm0 = vweird.f32 %v3147_v61 }
 0x5ac   :  { %3804 = vrcp.f32 %v3148_v6  ;;  %v3176_v42 = vand.u32 2147483648, %v3148_v6  ;;  %v3174_v30 = vand.u32 2147483647, %v3148_v6  ;;  %vm3170_vm1 = vweird.f32 %v3148_v6 }
 0x5ad   :  { %vm3160_vm3 = vcmp.eq.f32.partialorder %v3159_v2, 8.507059e+37  ;;  %v3162_v5 = vor.u32 1.1754944e-38, %v3161_v63 }
 0x5ae   :  { %v3177_v14 = vor.u32 1.1754944e-38, %v3176_v42  ;;  %vm3175_vm5 = vcmp.eq.f32.partialorder %v3174_v30, 8.507059e+37 }
 0x5af   :  { %v3801_v40 = vpop.eup %3800 }
 0x5b0   :  { %v8145_v12 = vadd.f32 1.0, %v3801_v40 }
 0x5b1   :  { %v3803_v52 = vpop.eup %3802 }
 0x5b2   :  { %v3805_v31 = vpop.eup %3804  ;;  %v3151_v39 = vmul.f32 %v3803_v52, %v3147_v61  ;;  %3806 = vrcp.f32 %v8145_v12  ;;  %vm3156_vm14 = vweird.f32 %v3803_v52  ;;  %v3191_v1 = vand.u32 2147483648, %v8145_v12 }
 0x5b3   :  { %v3166_v33 = vmul.f32 %v3805_v31, %v3148_v6  ;;  %3808 = vtanh.f32 %v3136_v24  ;;  %vm3171_vm15 = vweird.f32 %v3805_v31  ;;  %vm3157_vm2 = vmor %vm3155_vm0, %vm3156_vm14  ;;  %vm3185_vm7 = vweird.f32 %v8145_v12 }
 0x5b4   :  { %v3152_v44 = vsub.f32 1.0, %v3151_v39  ;;  %vm3172_vm4 = vmor %vm3170_vm1, %vm3171_vm15  ;;  %v3189_v53 = vand.u32 2147483647, %v8145_v12  ;;  %v3192_v23 = vor.u32 1.1754944e-38, %v3191_v1  ;;  %v3443_v1 = vld [vmem:[%s8229_s6 + $0x58] sm:$0xff] }
 0x5b5   :  { %v3167_v29 = vsub.f32 1.0, %v3166_v33 }
 0x5b6   :  { %v3153_v37 = vmul.f32 %v3803_v52, %v3152_v44  ;;  %vm3190_vm9 = vcmp.eq.f32.partialorder %v3189_v53, 8.507059e+37  ;;  %v3441_v53 = vld [vmem:[%s8229_s6 + $0x48] sm:$0xff] }
 0x5b7   :  { %v3168_v62 = vmul.f32 %v3805_v31, %v3167_v29 }
 0x5b8   :  { %v3807_v18 = vpop.eup %3806  ;;  %v3154_v45 = vadd.f32 %v3803_v52, %v3153_v37 }
 0x5b9   :  { %v3169_v15 = vadd.f32 %v3805_v31, %v3168_v62  ;;  %v3181_v22 = vmul.f32 %v3807_v18, %v8145_v12  ;;  %v3809_v59 = vpop.eup %3808  ;;  %vm3186_vm6 = vweird.f32 %v3807_v18  ;;  %v9754_v12 = vld [vmem:[#allocation31_spill] sm:$0xff] }
 0x5ba   :  { %v3158_v50 = vsel %vm3157_vm2, %v3803_v52, %v3154_v45  ;;  %vm3187_vm8 = vmor %vm3185_vm7, %vm3186_vm6 }
 0x5bb   :  { %v3163_v58 = vsel %vm3160_vm3, %v3162_v5, %v3158_v50  ;;  %v3173_v19 = vsel %vm3172_vm4, %v3805_v31, %v3169_v15  ;;  %v3182_v57 = vsub.f32 1.0, %v3181_v22 }
 0x5bd   :  { %v3183_v43 = vmul.f32 %v3807_v18, %v3182_v57 }
 0x5bf   :  { %v3184_v0 = vadd.f32 %v3807_v18, %v3183_v43  ;;  %v3447_v43 = vld [vmem:[%s8229_s6 + $0x78] sm:$0xff] }
 0x5c1   :  { %v3000_v54 = vpop.f32.mrf.mxu0  ;;  %v3188_v47 = vsel %vm3187_vm8, %v3807_v18, %v3184_v0 }
 0x5c2   :  { %v3020_v48 = vpop.f32.mrf.mxu1  ;;  %v3063_v32 = vadd.f32 %v3000_v54, %v2840_v4  ;;  %v3178_v4 = vsel %vm3175_vm5, %v3177_v14, %v3173_v19  ;;  %v3193_v6 = vsel %vm3190_vm9, %v3192_v23, %v3188_v47  ;;  %v3439_v23 = vld [vmem:[%s8229_s6 + $0x38] sm:$0xff] }
 0x5c3   :  { %v3064_v11 = vadd.f32 %v3020_v48, %v2860_v46  ;;  %v3197_v46 = vmul.f32 %v3809_v59, %v3163_v58  ;;  %v3196_v26 = vmul.f32 %v3178_v4, %v9752_v28 }
 0x5c4   :  { %v3067_v27 = vadd.f32 %v3063_v32, %v9750_v8 }
 0x5c5   :  { %v3068_v16 = vadd.f32 %v3064_v11, %v9751_v13  ;;  %v3198_v60 = vadd.f32 %v3197_v46, %v3196_v26 }
 0x5c6   :  { %v3567_v20 = vmul.f32 -1.442695, %v3067_v27  ;;  %v9755_v27 = vld [vmem:[#allocation74_spill] sm:$0xff] }
 0x5c7   :  { %v3568_v36 = vmul.f32 -1.442695, %v3068_v16 }
 0x5c8   :  { %3810 = vpow2.f32 %v3567_v20  ;;  %v3040_v35 = vpop.f32.mrf.mxu2 }
 0x5c9   :  { %v3060_v34 = vpop.f32.mrf.mxu3  ;;  %3812 = vpow2.f32 %v3568_v36  ;;  %v3065_v17 = vadd.f32 %v3040_v35, %v8141_v25 }
 0x5ca   :  { %v3066_v3 = vadd.f32 %v3060_v34, %v8133_v41  ;;  %3814 = vtanh.f32 %v3198_v60  ;;  %v3446_v34 = vld [vmem:[%s8229_s6 + $0x70] sm:$0xff]  ;;  %v3445_v60 = vld [vmem:[%s8229_s6 + $0x68] sm:$0xff] }
 0x5cb   :  { %v3069_v52 = vadd.f32 %v3065_v17, %v9754_v12 }
 0x5cc   :  { %v3070_v56 = vadd.f32 %v3066_v3, %v9753_v55  ;;  %v3444_v3 = vld [vmem:[%s8229_s6 + $0x60] sm:$0xff] }
 0x5ce   :  { %v3569_v7 = vmul.f32 -1.442695, %v3070_v56  ;;  %v3811_v38 = vpop.eup %3810 }
 0x5cf   :  { %v3813_v51 = vpop.eup %3812  ;;  %v3080_v10 = vadd.f32 1.0, %v3811_v38  ;;  %v3440_v38 = vld [vmem:[%s8229_s6 + $0x40] sm:$0xff] }
 0x5d0   :  { %3816 = vpow2.f32 %v3569_v7  ;;  %v3081_v41 = vadd.f32 1.0, %v3813_v51  ;;  %v3815_v61 = vpop.eup %3814  ;;  %v3442_v7 = vld [vmem:[%s8229_s6 + $0x50] sm:$0xff] }
 0x5d1   :  { %3818 = vrcp.f32 %v3080_v10  ;;  %v3200_v40 = vmul.f32 %v3815_v61, %v3193_v6  ;;  %v3094_v29 = vand.u32 2147483648, %v3080_v10  ;;  %v3092_v63 = vand.u32 2147483647, %v3080_v10  ;;  %v3438_v61 = vld [vmem:[%s8229_s6 + $0x30] sm:$0xff] }
 0x5d2   :  { %3820 = vrcp.f32 %v3081_v41  ;;  %v3109_v2 = vand.u32 2147483648, %v3081_v41  ;;  %v3107_v37 = vand.u32 2147483647, %v3081_v41  ;;  %vm3088_vm12 = vweird.f32 %v3080_v10 }
 0x5d3   :  { %3217 = vmatmul.f32.vlgmr.msra.gmra.mxu0 %v3200_v40  ;;  %3237 = vmatmul.f32.vlgmr.msrb.gmra.mxu1 %v3200_v40  ;;  %vm3103_vm13 = vweird.f32 %v3081_v41  ;;  %v3095_v54 = vor.u32 1.1754944e-38, %v3094_v29  ;;  %vm3093_vm0 = vcmp.eq.f32.partialorder %v3092_v63, 8.507059e+37  ;;  %v3432_v29 = vld [vmem:[%s8229_s6] sm:$0xff] }
 0x5d4   :  { %3257 = vmatmul.f32.vlgmr.msrb.gmra.mxu2 %v3200_v40  ;;  %3277 = vmatmul.f32.vlgmr.msrb.gmra.mxu3 %v3200_v40  ;;  %v3110_v45 = vor.u32 1.1754944e-38, %v3109_v2  ;;  %vm3108_vm1 = vcmp.eq.f32.partialorder %v3107_v37, 8.507059e+37  ;;  %v3437_v40 = vld [vmem:[%s8229_s6 + $0x28] sm:$0xff] }
 0x5d5   :  { %3452 = vmatpush.msra.mxu0 %v3447_v43 }
 0x5d6   :  { %v3817_v21 = vpop.eup %3816 }
 0x5d7   :  { %v3082_v9 = vadd.f32 1.0, %v3817_v21  ;;  %v3819_v49 = vpop.eup %3818  ;;  %3453 = vmatpush.msra.mxu0 %v3446_v34 }
 0x5d8   :  { %v3821_v24 = vpop.eup %3820  ;;  %v3084_v31 = vmul.f32 %v3819_v49, %v3080_v10  ;;  %vm3089_vm10 = vweird.f32 %v3819_v49 }
 0x5d9   :  { %3822 = vrcp.f32 %v3082_v9  ;;  %v3099_v39 = vmul.f32 %v3821_v24, %v3081_v41  ;;  %vm3104_vm11 = vweird.f32 %v3821_v24  ;;  %vm3090_vm14 = vmor %vm3088_vm12, %vm3089_vm10  ;;  %v3124_v57 = vand.u32 2147483648, %v3082_v9  ;;  %3454 = vmatpush.msra.mxu0 %v3445_v60 }
 0x5da   :  { %v3085_v33 = vsub.f32 1.0, %v3084_v31  ;;  %3824 = vtanh.f32 %v3069_v52  ;;  %vm3105_vm15 = vmor %vm3103_vm13, %vm3104_vm11  ;;  %vm3118_vm3 = vweird.f32 %v3082_v9  ;;  %v3122_v4 = vand.u32 2147483647, %v3082_v9  ;;  %v3435_v52 = vld [vmem:[%s8229_s6 + $0x18] sm:$0xff]  ;;  %v3434_v31 = vld [vmem:[%s8229_s6 + $0x10] sm:$0xff] }
 0x5db   :  { %v3100_v44 = vsub.f32 1.0, %v3099_v39  ;;  %v3125_v20 = vor.u32 1.1754944e-38, %v3124_v57  ;;  %3455 = vmatpush.msra.mxu0 %v3444_v3 }
 0x5dc   :  { %v3086_v25 = vmul.f32 %v3819_v49, %v3085_v33  ;;  %vm3123_vm5 = vcmp.eq.f32.partialorder %v3122_v4, 8.507059e+37  ;;  %v3433_v33 = vld [vmem:[%s8229_s6 + $0x8] sm:$0xff] }
 0x5dd   :  { %v3101_v42 = vmul.f32 %v3821_v24, %v3100_v44  ;;  %3456 = vmatpush.msra.mxu0 %v3443_v1 }
 0x5de   :  { %v3087_v30 = vadd.f32 %v3819_v49, %v3086_v25 }
 0x5df   :  { %v3823_v62 = vpop.eup %3822  ;;  %v3102_v48 = vadd.f32 %v3821_v24, %v3101_v42  ;;  %3457 = vmatpush.msra.mxu0 %v3442_v7 }
 0x5e0   :  { %v3114_v18 = vmul.f32 %v3823_v62, %v3082_v9  ;;  %v3091_v32 = vsel %vm3090_vm14, %v3819_v49, %v3087_v30  ;;  %v3825_v11 = vpop.eup %3824  ;;  %vm3119_vm2 = vweird.f32 %v3823_v62  ;;  %v3436_v49 = vld [vmem:[%s8229_s6 + $0x20] sm:$0xff] }
 0x5e1   :  { %v3096_v5 = vsel %vm3093_vm0, %v3095_v54, %v3091_v32  ;;  %v3106_v15 = vsel %vm3105_vm15, %v3821_v24, %v3102_v48  ;;  %vm3120_vm4 = vmor %vm3118_vm3, %vm3119_vm2  ;;  %3458 = vmatpush.msra.mxu0 %v3441_v53  ;;  %vm3472_vm2 = vcmask 74752  }
 0x5e2   :  { %v3115_v22 = vsub.f32 1.0, %v3114_v18  ;;  %v3111_v14 = vsel %vm3108_vm1, %v3110_v45, %v3106_v15  ;;  %v3130_v50 = vmul.f32 %v3825_v11, %v3096_v5 }
 0x5e3   :  { %v3129_v16 = vmul.f32 %v3111_v14, %v9755_v27  ;;  %3459 = vmatpush.msra.mxu0 %v3440_v38 }
 0x5e4   :  { %v3116_v59 = vmul.f32 %v3823_v62, %v3115_v22 }
 0x5e5   :  { %v8161_v58 = vadd.f32 %v3130_v50, %v3129_v16  ;;  %3460 = vmatpush.msra.mxu0 %v3439_v23 }
 0x5e6   :  { %v3117_v19 = vadd.f32 %v3823_v62, %v3116_v59 }
 0x5e7   :  { %3826 = vtanh.f32 %v8161_v58  ;;  %3461 = vmatpush.msra.mxu0 %v3438_v61 }
 0x5e8   :  { %v3121_v46 = vsel %vm3120_vm4, %v3823_v62, %v3117_v19 }
 0x5e9   :  { %v3126_v28 = vsel %vm3123_vm5, %v3125_v20, %v3121_v46  ;;  %3462 = vmatpush.msra.mxu0 %v3437_v40 }
 0x5eb   :  { %3463 = vmatpush.msra.mxu0 %v3436_v49 }
 0x5ed   :  { %v3827_v36 = vpop.eup %3826  ;;  %3464 = vmatpush.msra.mxu0 %v3435_v52 }
 0x5ee   :  { %v3133_v26 = vmul.f32 %v3827_v36, %v3126_v28 }
 0x5ef   :  { %3465 = vmatpush.msra.mxu0 %v3434_v31 }
 0x5f0   :  { %3297 = vmatmul.f32.vlgmr.msrb.gmra.mxu0 %v3133_v26  ;;  %3317 = vmatmul.f32.vlgmr.msra.gmra.mxu1 %v3133_v26 }
 0x5f1   :  { %3337 = vmatmul.f32.vlgmr.msra.gmra.mxu2 %v3133_v26  ;;  %3357 = vmatmul.f32.vlgmr.msra.gmra.mxu3 %v3133_v26 }
 0x5f2   :  { %3466 = vmatpush.msra.mxu0 %v3433_v33 }
 0x5f4   :  { %3467 = vmatpush.msra.mxu0 %v3432_v29 }
 0x650   :  { %v3218_v56 = vpop.f32.mrf.mxu0  ;;  %v3238_v0 = vpop.f32.mrf.mxu1 }
 0x657   :  { %v3278_v51 = vpop.f32.mrf.mxu3  ;;  %v3258_v24 = vpop.f32.mrf.mxu2 }
 0x66d   :  { %v3298_v10 = vpop.f32.mrf.mxu0  ;;  %v3318_v47 = vpop.f32.mrf.mxu1 }
 0x66e   :  { %v3361_v41 = vadd.f32 %v3298_v10, %v3218_v56  ;;  %v3362_v35 = vadd.f32 %v3318_v47, %v3238_v0 }
 0x670   :  { %v3365_v6 = vadd.f32 %v3361_v41, %v9750_v8  ;;  %v3366_v17 = vadd.f32 %v3362_v35, %v9751_v13 }
 0x672   :  { %v3573_v21 = vmul.f32 -1.442695, %v3365_v6  ;;  %v3574_v9 = vmul.f32 -1.442695, %v3366_v17 }
 0x674   :  { %3828 = vpow2.f32 %v3573_v21  ;;  %v3358_v8 = vpop.f32.mrf.mxu3  ;;  %v3338_v37 = vpop.f32.mrf.mxu2 }
 0x675   :  { %3830 = vpow2.f32 %v3574_v9  ;;  %v3364_v13 = vadd.f32 %v3358_v8, %v3278_v51 }
 0x677   :  { %v3368_v39 = vadd.f32 %v3364_v13, %v9753_v55  ;;  %v3363_v55 = vadd.f32 %v3338_v37, %v3258_v24 }
 0x679   :  { %v3575_v44 = vmul.f32 -1.442695, %v3368_v39  ;;  %v3367_v48 = vadd.f32 %v3363_v55, %v9754_v12 }
 0x67a   :  { %v3829_v2 = vpop.eup %3828 }
 0x67b   :  { %v3831_v25 = vpop.eup %3830  ;;  %v3378_v63 = vadd.f32 1.0, %v3829_v2  ;;  %3832 = vpow2.f32 %v3575_v44 }
 0x67c   :  { %v3379_v42 = vadd.f32 1.0, %v3831_v25 }
 0x67d   :  { %3834 = vrcp.f32 %v3378_v63  ;;  %v3392_v15 = vand.u32 2147483648, %v3378_v63  ;;  %v3390_v50 = vand.u32 2147483647, %v3378_v63  ;;  %vm3386_vm8 = vweird.f32 %v3378_v63 }
 0x67e   :  { %3836 = vrcp.f32 %v3379_v42  ;;  %v3407_v22 = vand.u32 2147483648, %v3379_v42  ;;  %v3405_v16 = vand.u32 2147483647, %v3379_v42  ;;  %vm3401_vm9 = vweird.f32 %v3379_v42 }
 0x67f   :  { %v3393_v12 = vor.u32 1.1754944e-38, %v3392_v15  ;;  %vm3391_vm12 = vcmp.eq.f32.partialorder %v3390_v50, 8.507059e+37 }
 0x680   :  { %v3408_v46 = vor.u32 1.1754944e-38, %v3407_v22  ;;  %vm3406_vm13 = vcmp.eq.f32.partialorder %v3405_v16, 8.507059e+37 }
 0x681   :  { %v3833_v62 = vpop.eup %3832 }
 0x682   :  { %v3380_v30 = vadd.f32 1.0, %v3833_v62 }
 0x683   :  { %v3835_v54 = vpop.eup %3834 }
 0x684   :  { %v3837_v18 = vpop.eup %3836  ;;  %v3382_v45 = vmul.f32 %v3835_v54, %v3378_v63  ;;  %3838 = vrcp.f32 %v3380_v30  ;;  %vm3387_vm6 = vweird.f32 %v3835_v54  ;;  %v3422_v7 = vand.u32 2147483648, %v3380_v30 }
 0x685   :  { %v3397_v32 = vmul.f32 %v3837_v18, %v3379_v42  ;;  %3840 = vtanh.f32 %v3367_v48  ;;  %vm3402_vm7 = vweird.f32 %v3837_v18  ;;  %vm3388_vm10 = vmor %vm3386_vm8, %vm3387_vm6  ;;  %vm3416_vm15 = vweird.f32 %v3380_v30 }
 0x686   :  { %v3383_v11 = vsub.f32 1.0, %v3382_v45  ;;  %vm3403_vm11 = vmor %vm3401_vm9, %vm3402_vm7  ;;  %v3420_v53 = vand.u32 2147483647, %v3380_v30  ;;  %v3423_v51 = vor.u32 1.1754944e-38, %v3422_v7 }
 0x687   :  { %v3398_v5 = vsub.f32 1.0, %v3397_v32 }
 0x688   :  { %v3384_v14 = vmul.f32 %v3835_v54, %v3383_v11  ;;  %vm3421_vm1 = vcmp.eq.f32.partialorder %v3420_v53, 8.507059e+37 }
 0x689   :  { %v3399_v27 = vmul.f32 %v3837_v18, %v3398_v5 }
 0x68a   :  { %v3839_v59 = vpop.eup %3838  ;;  %v3385_v19 = vadd.f32 %v3835_v54, %v3384_v14 }
 0x68b   :  { %v3400_v57 = vadd.f32 %v3837_v18, %v3399_v27  ;;  %v3412_v4 = vmul.f32 %v3839_v59, %v3380_v30  ;;  %v3841_v36 = vpop.eup %3840  ;;  %vm3417_vm14 = vweird.f32 %v3839_v59 }
 0x68c   :  { %v3389_v20 = vsel %vm3388_vm10, %v3835_v54, %v3385_v19  ;;  %vm3418_vm0 = vmor %vm3416_vm15, %vm3417_vm14 }
 0x68d   :  { %v3394_v28 = vsel %vm3391_vm12, %v3393_v12, %v3389_v20  ;;  %v3404_v26 = vsel %vm3403_vm11, %v3837_v18, %v3400_v57  ;;  %v3413_v43 = vsub.f32 1.0, %v3412_v4 }
 0x68e   :  { %v3409_v34 = vsel %vm3406_vm13, %v3408_v46, %v3404_v26  ;;  %v3428_v60 = vmul.f32 %v3841_v36, %v3394_v28 }
 0x68f   :  { %v3427_v3 = vmul.f32 %v3409_v34, %v8161_v58  ;;  %v3414_v56 = vmul.f32 %v3839_v59, %v3413_v43  ;;  %v3587_v58 = vld [vmem:[%s8230_s7] ss:$0 sm:$0xff] }
 0x691   :  { %v3429_v0 = vadd.f32 %v3428_v60, %v3427_v3  ;;  %v3415_v1 = vadd.f32 %v3839_v59, %v3414_v56 }
 0x693   :  { %3842 = vtanh.f32 %v3429_v0  ;;  %v3419_v38 = vsel %vm3418_vm0, %v3839_v59, %v3415_v1 }
 0x694   :  { %v3424_v47 = vsel %vm3421_vm1, %v3423_v51, %v3419_v38 }
 0x699   :  { %v3843_v10 = vpop.eup %3842 }
 0x69a   :  { %v3431_v23 = vmul.f32 %v3843_v10, %v3424_v47 }
 0x69c   :  { %3468 = vmatmul.f32.vlgmr.msra.gmra.mxu0 %v3431_v23 }
 0x719   :  { %v3469_v41 = vpop.f32.mrf.mxu0 }
 0x71a   :  { %v3470_v35 = vadd.f32 %v3587_v58, %v3469_v41 }
 0x71c   :  { %3473 = vst.msk [vmem:[#allocation7] sm:$0x3] %vm3472_vm2, %v3470_v35 }
 0x71d   :  { %3484 = dma.vmem_to_hbm [thread:$0]  %s3480_s23, 32, %s3482_s26, [#allocation4]  }
 0x71e   :  { %4500 = dma.done.wait [#allocation4], 32  }
 0x71f   :  { %4501 = vsyncadd [#allocation4], 4294967264 }
 0x720   :  { %3489 = vsyncpa [#allocation3], 1 }
 0x721   :  { %3490 = vsyncpa [#allocation6], 1 }
 0x722   :  { %3491 = vsyncpa [#allocation4], 1 }

</bundles_post_ra>
